<compile_context>
chip_gen: v6e
topology: v6e:2x2x1
jax: 0.10.0
libtpu: 0.0.40
codegen_flags: <defaults>
</compile_context>

<pallas_src>
import functools

import numpy as np
import jax
import jax.numpy as jnp
from jax.experimental import pallas as pl
from jax.experimental.pallas import tpu as pltpu


# ----------------------------------------------------------------------------------
# The one fused kernel: 3D backbone + 3 pyramid levels + shared detection head.
# (Signature is specialised to the module's 3 pyramid levels.)
# ----------------------------------------------------------------------------------
def _acsfed_fused_kernel(
    # 3D path
    x3_ref, w3_ref, b3_ref, we3_0_ref, we3_1_ref, we3_2_ref,
    # nearest-upsample row-selection matrices (levels 0 and 1; level 2 needs none)
    up0_ref, up1_ref,
    # level 0 (stride 8)
    x20_ref, w20_ref, b20_ref, we20_ref, be0_ref,
    # level 1 (stride 16)
    x21_ref, w21_ref, b21_ref, we21_ref, be1_ref,
    # level 2 (stride 32)
    x22_ref, w22_ref, b22_ref, we22_ref, be2_ref,
    # shared detection head (conf|cls|reg fused on N, lane-padded to multiple of 128)
    wh_ref, bh_ref,
    # outputs (one per level)
    o0_ref, o1_ref, o2_ref,
):
    cdt = w3_ref.dtype  # bf16 compute dtype for all MXU operands

    # 3D backbone patchify-conv (full K in one shot) + ReLU
    f3 = jnp.dot(x3_ref[...], w3_ref[...], preferred_element_type=jnp.float32)
    f3 = jnp.maximum(f3 + b3_ref[...], 0.0).astype(cdt)

    # Nearest-neighbour upsample == row replication == 0/1 selection matmul.
    # Values are replicated exactly (1 * bf16 value), so rounding matches the
    # reference concat/upsample formulation bit-for-bit at the bf16 cast points.
    f3_up0 = jnp.dot(up0_ref[...], f3, preferred_element_type=jnp.float32).astype(cdt)
    f3_up1 = jnp.dot(up1_ref[...], f3, preferred_element_type=jnp.float32).astype(cdt)

    whead = wh_ref[...]
    bhead = bh_ref[...]

    def run_level(x2_ref, w2_ref, b2_ref, we2_ref, be_ref, we3_ref, f3_lvl, o_ref):
        # 2D backbone patchify-conv + ReLU
        f2 = jnp.dot(x2_ref[...], w2_ref[...], preferred_element_type=jnp.float32)
        f2 = jnp.maximum(f2 + b2_ref[...], 0.0)
        # channel encoder: concat(feat2d, feat3d_up) @ wenc  ==  split-weight sum
        enc = jnp.dot(f2.astype(cdt), we2_ref[...], preferred_element_type=jnp.float32)
        enc = enc + jnp.dot(f3_lvl, we3_ref[...], preferred_element_type=jnp.float32)
        enc = jnp.maximum(enc + be_ref[...], 0.0)
        # fused conf|cls|reg detection head (lane-padded -> unmasked stores)
        o_ref[...] = (jnp.dot(enc.astype(cdt), whead,
                              preferred_element_type=jnp.float32)
                      + bhead).astype(o_ref.dtype)

    run_level(x20_ref, w20_ref, b20_ref, we20_ref, be0_ref, we3_0_ref, f3_up0, o0_ref)
    run_level(x21_ref, w21_ref, b21_ref, we21_ref, be1_ref, we3_1_ref, f3_up1, o1_ref)
    run_level(x22_ref, w22_ref, b22_ref, we22_ref, be2_ref, we3_2_ref, f3, o2_ref)


# ----------------------------------------------------------------------------------
# Glue (reshapes / layout) in plain JAX — tiny, layout-only ops
# ----------------------------------------------------------------------------------
def patchify_2d(x_nhwc, p):
    """[B, H, W, C] -> [B, H/p, W/p, p*p*C] (non-overlapping patch conv == matmul)."""
    B, H, W, C = x_nhwc.shape
    h, w = H // p, W // p
    x = x_nhwc.reshape(B, h, p, w, p, C)
    x = x.transpose(0, 1, 3, 2, 4, 5).reshape(B, h, w, p * p * C)
    return x


def patchify_3d(x_nthwc, p):
    """[B, T, H, W, C] -> [B, H/p, W/p, T*p*p*C] (full-temporal-extent 3D patch conv)."""
    B, T, H, W, C = x_nthwc.shape
    h, w = H // p, W // p
    x = x_nthwc.reshape(B, T, h, p, w, p, C)
    x = x.transpose(0, 2, 4, 1, 3, 5, 6).reshape(B, h, w, T * p * p * C)
    return x


def upsample_nearest(x, s):
    """F.interpolate(scale_factor=s, mode='nearest') on NHWC (reference path only)."""
    if s == 1:
        return x
    x = jnp.repeat(x, s, axis=1)
    x = jnp.repeat(x, s, axis=2)
    return x


def _upsample_selection_matrix(B, h3, w3, r, dtype):
    """S[fine, coarse] = 1 implementing nearest-neighbour x r upsample on rows
    flattened as (B, h, w) -> fine row (b, y, x) reads coarse row (b, y//r, x//r)."""
    h, w = h3 * r, w3 * r
    fine = np.arange(B * h * w)
    b = fine // (h * w)
    rem = fine % (h * w)
    y = rem // w
    x = rem % w
    coarse = b * (h3 * w3) + (y // r) * w3 + (x // r)
    S = np.zeros((B * h * w, B * h3 * w3), dtype=np.float32)
    S[fine, coarse] = 1.0
    return jnp.asarray(S, dtype=dtype)


# ----------------------------------------------------------------------------------
# Parameter construction (deterministic, synthetic)
# ----------------------------------------------------------------------------------
def init_params(key, cfg, num_classes):
    strides = cfg["stride"]
    bk2d = cfg["bk_dim_2d"]
    bk3d = cfg["bk_dim_3d"]
    head_dim = cfg["head_dim"]
    T = cfg["len_clip"]

    keys = jax.random.split(key, 16)
    ki = iter(keys)

    def w_init(k, shape):
        fan_in = shape[0]
        return jax.random.normal(k, shape, jnp.float32) / jnp.sqrt(float(fan_in))

    params = {}
    # 2D backbone: one patchify "conv" per stride level
    params["w2d"] = [w_init(next(ki), (s * s * 3, bk2d[l]))
                     for l, s in enumerate(strides)]
    params["b2d"] = [jnp.zeros((bk2d[l],), jnp.float32) for l in range(len(strides))]
    # 3D backbone: single patchify conv at the coarsest stride (collapses T)
    s3 = strides[-1]
    params["w3d"] = w_init(next(ki), (T * s3 * s3 * 3, bk3d))
    params["b3d"] = jnp.zeros((bk3d,), jnp.float32)
    # Channel encoders: 1x1 conv on concat(feat_2d, feat_3d_up) -> head_dim
    params["wenc"] = [w_init(next(ki), (bk2d[l] + bk3d, head_dim))
                      for l in range(len(strides))]
    params["benc"] = [jnp.zeros((head_dim,), jnp.float32) for _ in strides]
    # Decoder heads (shared across levels): conf / cls / reg 1x1 convs
    init_prob = 0.01
    bias_value = -jnp.log(jnp.asarray((1.0 - init_prob) / init_prob, jnp.float32))
    params["wconf"] = w_init(next(ki), (head_dim, 1))
    params["bconf"] = jnp.full((1,), bias_value, jnp.float32)
    params["wcls"] = w_init(next(ki), (head_dim, num_classes))
    params["bcls"] = jnp.full((num_classes,), bias_value, jnp.float32)
    params["wreg"] = w_init(next(ki), (head_dim, 4))
    params["breg"] = jnp.zeros((4,), jnp.float32)
    return params


# ----------------------------------------------------------------------------------
# acsfed forward (inference path) — ONE pallas_call total
# ----------------------------------------------------------------------------------
def acsfed_forward(params, video_clips, *, cfg, num_classes):
    """
    video_clips: [B, 3, T, H, W]  (PyTorch NCTHW layout)
    returns: per-level (conf_preds [B, M, 1], cls_preds [B, M, C], reg_preds [B, M, 4])
    """
    strides = cfg["stride"]
    bk2d = cfg["bk_dim_2d"]
    n_levels = len(strides)
    assert n_levels == 3, "fused kernel is specialised to the module's 3 pyramid levels"
    cdt = jnp.bfloat16

    key_frame = video_clips[:, :, -1, :, :]                      # [B, 3, H, W]
    key_nhwc = jnp.transpose(key_frame, (0, 2, 3, 1))             # [B, H, W, 3]
    clip_nthwc = jnp.transpose(video_clips, (0, 2, 3, 4, 1))      # [B, T, H, W, 3]

    # ---- 3D patchify at the coarsest stride ----
    p3 = strides[-1]
    x3 = patchify_3d(clip_nthwc, p3)
    b3, h3, w3sz, k3 = x3.shape
    x3_flat = x3.reshape(-1, k3).astype(cdt)

    # ---- per-level 2D patchify ----
    x2_list, shapes2d = [], []
    for s in strides:
        x2 = patchify_2d(key_nhwc, s)
        bb, hh, ww, kk = x2.shape
        shapes2d.append((bb, hh, ww))
        x2_list.append(x2.reshape(-1, kk).astype(cdt))

    # ---- weight prep / fusion ----
    # encoder weight split: rows [:bk2d] act on feat_2d, rows [bk2d:] on feat_3d_up
    we2_list = [params["wenc"][l][:bk2d[l], :].astype(cdt) for l in range(n_levels)]
    we3_list = [params["wenc"][l][bk2d[l]:, :].astype(cdt) for l in range(n_levels)]
    benc_list = [params["benc"][l].reshape(1, -1) for l in range(n_levels)]
    w2d_list = [params["w2d"][l].astype(cdt) for l in range(n_levels)]
    b2d_list = [params["b2d"][l].reshape(1, -1) for l in range(n_levels)]

    # fused detection head, lane-padded to a multiple of 128 for dense stores
    whead = jnp.concatenate([params["wconf"], params["wcls"], params["wreg"]], axis=1)
    bhead = jnp.concatenate([params["bconf"], params["bcls"], params["breg"]])
    NH = whead.shape[1]
    NP = max(128, ((NH + 127) // 128) * 128)
    whead_pad = jnp.pad(whead, ((0, 0), (0, NP - NH))).astype(cdt)
    bhead_pad = jnp.pad(bhead, (0, NP - NH)).reshape(1, -1)

    # static nearest-upsample selection matrices (levels 0 and 1; level 2 is 1:1)
    up_mats = [_upsample_selection_matrix(b3, h3, w3sz, 2 ** (n_levels - 1 - l), cdt)
               for l in range(n_levels - 1)]

    args = (
        x3_flat, params["w3d"].astype(cdt), params["b3d"].reshape(1, -1),
        we3_list[0], we3_list[1], we3_list[2],
        up_mats[0], up_mats[1],
        x2_list[0], w2d_list[0], b2d_list[0], we2_list[0], benc_list[0],
        x2_list[1], w2d_list[1], b2d_list[1], we2_list[1], benc_list[1],
        x2_list[2], w2d_list[2], b2d_list[2], we2_list[2], benc_list[2],
        whead_pad, bhead_pad,
    )

    outs = pl.pallas_call(
        _acsfed_fused_kernel,
        out_shape=tuple(jax.ShapeDtypeStruct((x.shape[0], NP), jnp.float32)
                        for x in x2_list),
        # single program, every operand is one full block resident in VMEM (~6.5 MiB)
        in_specs=[pl.BlockSpec(memory_space=pltpu.MemorySpace.VMEM) for _ in args],
        out_specs=tuple(pl.BlockSpec(memory_space=pltpu.MemorySpace.VMEM)
                        for _ in x2_list),
    )(*args)

    conf_preds, cls_preds, reg_preds = [], [], []
    for level, out in enumerate(outs):
        bb, hh, ww = shapes2d[level]
        out = out[:, :NH].reshape(bb, hh * ww, NH)
        conf_preds.append(out[:, :, :1])
        cls_preds.append(out[:, :, 1:1 + num_classes])
        reg_preds.append(out[:, :, 1 + num_classes:])

    # TODO(synk): post_process (topk / multiclass NMS / box decoding) is data-dependent
    # host-side logic and not part of forward(); it is intentionally not lowered.
    return conf_preds, cls_preds, reg_preds


# ----------------------------------------------------------------------------------
# Pure-jnp reference (original concat/upsample structure, same bf16 cast points)
# ----------------------------------------------------------------------------------
def acsfed_forward_ref(params, video_clips, *, cfg, num_classes):
    strides = cfg["stride"]
    cdt = jnp.bfloat16
    key_nhwc = jnp.transpose(video_clips[:, :, -1], (0, 2, 3, 1))
    clip_nthwc = jnp.transpose(video_clips, (0, 2, 3, 4, 1))

    p3 = strides[-1]
    x3 = patchify_3d(clip_nthwc, p3)
    b3, h3, w3sz, k3 = x3.shape
    f3 = jnp.dot(x3.reshape(-1, k3).astype(cdt), params["w3d"].astype(cdt),
                 preferred_element_type=jnp.float32) + params["b3d"]
    f3 = jnp.maximum(f3, 0.0).reshape(b3, h3, w3sz, -1)

    whead = jnp.concatenate([params["wconf"], params["wcls"], params["wreg"]], axis=1)
    bhead = jnp.concatenate([params["bconf"], params["bcls"], params["breg"]])

    confs, clss, regs = [], [], []
    for level, s in enumerate(strides):
        x2 = patchify_2d(key_nhwc, s)
        bb, hh, ww, kk = x2.shape
        f2 = jnp.dot(x2.reshape(-1, kk).astype(cdt), params["w2d"][level].astype(cdt),
                     preferred_element_type=jnp.float32) + params["b2d"][level]
        f2 = jnp.maximum(f2, 0.0).reshape(bb, hh, ww, -1)
        f3u = upsample_nearest(f3, 2 ** (2 - level))
        fused = jnp.concatenate([f2, f3u], axis=-1)
        kk2 = fused.shape[-1]
        enc = jnp.dot(fused.reshape(-1, kk2).astype(cdt),
                      params["wenc"][level].astype(cdt),
                      preferred_element_type=jnp.float32) + params["benc"][level]
        enc = jnp.maximum(enc, 0.0)
        out = jnp.dot(enc.astype(cdt), whead.astype(cdt),
                      preferred_element_type=jnp.float32) + bhead
        out = out.reshape(bb, hh * ww, -1)
        confs.append(out[:, :, :1])
        clss.append(out[:, :, 1:1 + num_classes])
        regs.append(out[:, :, 1 + num_classes:])
    return confs, clss, regs


if __name__ == "__main__":
    cfg = {
        "stride": [8, 16, 32],
        "bk_dim_2d": [64, 128, 256],
        "bk_dim_3d": 128,
        "head_dim": 64,
        "len_clip": 4,
        "pretrained_2d": False,
        "pretrained_3d": False,
    }
    num_classes = 20

    key = jax.random.PRNGKey(0)
    pkey, xkey = jax.random.split(key)
    params = init_params(pkey, cfg, num_classes)

    B, T, H, W = 2, cfg["len_clip"], 64, 64
    video_clips = jax.random.normal(xkey, (B, 3, T, H, W), jnp.float32)

    fwd = jax.jit(functools.partial(acsfed_forward, cfg=cfg, num_classes=num_classes))
    conf_preds, cls_preds, reg_preds = fwd(params, video_clips)
    jax.block_until_ready((conf_preds, cls_preds, reg_preds))

    # sanity: shapes match a 3-level anchor-free head on a 64x64 key frame
    assert [c.shape for c in conf_preds] == [(2, 64, 1), (2, 16, 1), (2, 4, 1)]
    assert [c.shape for c in cls_preds] == [(2, 64, 20), (2, 16, 20), (2, 4, 20)]
    assert [r.shape for r in reg_preds] == [(2, 64, 4), (2, 16, 4), (2, 4, 4)]

    # numerical check vs. a pure-jnp reference using the original concat/upsample
    # structure with identical bf16 cast points (verifies split-weight + selection
    # -matmul upsample fusion)
    ref_fwd = jax.jit(functools.partial(acsfed_forward_ref, cfg=cfg,
                                        num_classes=num_classes))
    rconf, rcls, rreg = ref_fwd(params, video_clips)
    for a, b in zip(conf_preds + cls_preds + reg_preds, rconf + rcls + rreg):
        assert bool(jnp.all(jnp.isfinite(a)))
        assert bool(jnp.allclose(a, b, atol=2e-2, rtol=2e-2)), \
            float(jnp.max(jnp.abs(a - b)))

    print("KERNEL_OK")
</pallas_src>

<mosaic_0001>
module attributes {stable_mosaic.version = 11 : i64} {
  func.func @_acsfed_fused_kernel(%arg0: memref<8x12288xbf16, #tpu.memory_space<vmem>>, %arg1: memref<12288x128xbf16, #tpu.memory_space<vmem>>, %arg2: memref<1x128xf32, #tpu.memory_space<vmem>>, %arg3: memref<128x64xbf16, #tpu.memory_space<vmem>>, %arg4: memref<128x64xbf16, #tpu.memory_space<vmem>>, %arg5: memref<128x64xbf16, #tpu.memory_space<vmem>>, %arg6: memref<128x8xbf16, #tpu.memory_space<vmem>>, %arg7: memref<32x8xbf16, #tpu.memory_space<vmem>>, %arg8: memref<128x192xbf16, #tpu.memory_space<vmem>>, %arg9: memref<192x64xbf16, #tpu.memory_space<vmem>>, %arg10: memref<1x64xf32, #tpu.memory_space<vmem>>, %arg11: memref<64x64xbf16, #tpu.memory_space<vmem>>, %arg12: memref<1x64xf32, #tpu.memory_space<vmem>>, %arg13: memref<32x768xbf16, #tpu.memory_space<vmem>>, %arg14: memref<768x128xbf16, #tpu.memory_space<vmem>>, %arg15: memref<1x128xf32, #tpu.memory_space<vmem>>, %arg16: memref<128x64xbf16, #tpu.memory_space<vmem>>, %arg17: memref<1x64xf32, #tpu.memory_space<vmem>>, %arg18: memref<8x3072xbf16, #tpu.memory_space<vmem>>, %arg19: memref<3072x256xbf16, #tpu.memory_space<vmem>>, %arg20: memref<1x256xf32, #tpu.memory_space<vmem>>, %arg21: memref<256x64xbf16, #tpu.memory_space<vmem>>, %arg22: memref<1x64xf32, #tpu.memory_space<vmem>>, %arg23: memref<64x128xbf16, #tpu.memory_space<vmem>>, %arg24: memref<1x128xf32, #tpu.memory_space<vmem>>, %arg25: memref<128x128xf32, #tpu.memory_space<vmem>>, %arg26: memref<32x128xf32, #tpu.memory_space<vmem>>, %arg27: memref<8x128xf32, #tpu.memory_space<vmem>>) attributes {dimension_semantics = [], scalar_prefetch = 0 : i64, scratch_operands = 0 : i64, tpu.core_type = #tpu.core_type<tc>} {
    %c0 = arith.constant 0 : index
    %c0_0 = arith.constant 0 : index
    %0 = vector.load %arg0[%c0, %c0_0] : memref<8x12288xbf16, #tpu.memory_space<vmem>>, vector<8x12288xbf16>
    %c0_1 = arith.constant 0 : index
    %c0_2 = arith.constant 0 : index
    %1 = vector.load %arg1[%c0_1, %c0_2] : memref<12288x128xbf16, #tpu.memory_space<vmem>>, vector<12288x128xbf16>
    %cst = arith.constant dense<0.000000e+00> : vector<8x128xf32>
    %2 = tpu.matmul %0, %1, %cst {dimension_numbers = #tpu.dot_dimension_numbers<[1], [0], [0], [1], [0, 0, 1, 1], [], []>} : vector<8x12288xbf16>, vector<12288x128xbf16>, vector<8x128xf32> -> vector<8x128xf32>
    %c0_3 = arith.constant 0 : index
    %c0_4 = arith.constant 0 : index
    %3 = vector.load %arg2[%c0_3, %c0_4] : memref<1x128xf32, #tpu.memory_space<vmem>>, vector<1x128xf32>
    %4 = vector.broadcast %3 : vector<1x128xf32> to vector<8x128xf32>
    %5 = arith.addf %2, %4 : vector<8x128xf32>
    %cst_5 = arith.constant 0.000000e+00 : f32
    %6 = vector.broadcast %cst_5 : f32 to vector<8x128xf32>
    %7 = arith.maximumf %5, %6 : vector<8x128xf32>
    %8 = arith.truncf %7 : vector<8x128xf32> to vector<8x128xbf16>
    %c0_6 = arith.constant 0 : index
    %c0_7 = arith.constant 0 : index
    %9 = vector.load %arg6[%c0_6, %c0_7] : memref<128x8xbf16, #tpu.memory_space<vmem>>, vector<128x8xbf16>
    %cst_8 = arith.constant dense<0.000000e+00> : vector<128x128xf32>
    %10 = tpu.matmul %9, %8, %cst_8 {dimension_numbers = #tpu.dot_dimension_numbers<[1], [0], [0], [1], [0, 0, 1, 1], [], []>} : vector<128x8xbf16>, vector<8x128xbf16>, vector<128x128xf32> -> vector<128x128xf32>
    %11 = arith.truncf %10 : vector<128x128xf32> to vector<128x128xbf16>
    %c0_9 = arith.constant 0 : index
    %c0_10 = arith.constant 0 : index
    %12 = vector.load %arg7[%c0_9, %c0_10] : memref<32x8xbf16, #tpu.memory_space<vmem>>, vector<32x8xbf16>
    %cst_11 = arith.constant dense<0.000000e+00> : vector<32x128xf32>
    %13 = tpu.matmul %12, %8, %cst_11 {dimension_numbers = #tpu.dot_dimension_numbers<[1], [0], [0], [1], [0, 0, 1, 1], [], []>} : vector<32x8xbf16>, vector<8x128xbf16>, vector<32x128xf32> -> vector<32x128xf32>
    %14 = arith.truncf %13 : vector<32x128xf32> to vector<32x128xbf16>
    %c0_12 = arith.constant 0 : index
    %c0_13 = arith.constant 0 : index
    %15 = vector.load %arg23[%c0_12, %c0_13] : memref<64x128xbf16, #tpu.memory_space<vmem>>, vector<64x128xbf16>
    %c0_14 = arith.constant 0 : index
    %c0_15 = arith.constant 0 : index
    %16 = vector.load %arg24[%c0_14, %c0_15] : memref<1x128xf32, #tpu.memory_space<vmem>>, vector<1x128xf32>
    %c0_16 = arith.constant 0 : index
    %c0_17 = arith.constant 0 : index
    %17 = vector.load %arg8[%c0_16, %c0_17] : memref<128x192xbf16, #tpu.memory_space<vmem>>, vector<128x192xbf16>
    %c0_18 = arith.constant 0 : index
    %c0_19 = arith.constant 0 : index
    %18 = vector.load %arg9[%c0_18, %c0_19] : memref<192x64xbf16, #tpu.memory_space<vmem>>, vector<192x64xbf16>
    %cst_20 = arith.constant dense<0.000000e+00> : vector<128x64xf32>
    %19 = tpu.matmul %17, %18, %cst_20 {dimension_numbers = #tpu.dot_dimension_numbers<[1], [0], [0], [1], [0, 0, 1, 1], [], []>} : vector<128x192xbf16>, vector<192x64xbf16>, vector<128x64xf32> -> vector<128x64xf32>
    %c0_21 = arith.constant 0 : index
    %c0_22 = arith.constant 0 : index
    %20 = vector.load %arg10[%c0_21, %c0_22] : memref<1x64xf32, #tpu.memory_space<vmem>>, vector<1x64xf32>
    %21 = vector.broadcast %20 : vector<1x64xf32> to vector<128x64xf32>
    %22 = arith.addf %19, %21 : vector<128x64xf32>
    %cst_23 = arith.constant 0.000000e+00 : f32
    %23 = vector.broadcast %cst_23 : f32 to vector<128x64xf32>
    %24 = arith.maximumf %22, %23 : vector<128x64xf32>
    %25 = arith.truncf %24 : vector<128x64xf32> to vector<128x64xbf16>
    %c0_24 = arith.constant 0 : index
    %c0_25 = arith.constant 0 : index
    %26 = vector.load %arg11[%c0_24, %c0_25] : memref<64x64xbf16, #tpu.memory_space<vmem>>, vector<64x64xbf16>
    %cst_26 = arith.constant dense<0.000000e+00> : vector<128x64xf32>
    %27 = tpu.matmul %25, %26, %cst_26 {dimension_numbers = #tpu.dot_dimension_numbers<[1], [0], [0], [1], [0, 0, 1, 1], [], []>} : vector<128x64xbf16>, vector<64x64xbf16>, vector<128x64xf32> -> vector<128x64xf32>
    %c0_27 = arith.constant 0 : index
    %c0_28 = arith.constant 0 : index
    %28 = vector.load %arg3[%c0_27, %c0_28] : memref<128x64xbf16, #tpu.memory_space<vmem>>, vector<128x64xbf16>
    %cst_29 = arith.constant dense<0.000000e+00> : vector<128x64xf32>
    %29 = tpu.matmul %11, %28, %cst_29 {dimension_numbers = #tpu.dot_dimension_numbers<[1], [0], [0], [1], [0, 0, 1, 1], [], []>} : vector<128x128xbf16>, vector<128x64xbf16>, vector<128x64xf32> -> vector<128x64xf32>
    %30 = arith.addf %27, %29 : vector<128x64xf32>
    %c0_30 = arith.constant 0 : index
    %c0_31 = arith.constant 0 : index
    %31 = vector.load %arg12[%c0_30, %c0_31] : memref<1x64xf32, #tpu.memory_space<vmem>>, vector<1x64xf32>
    %32 = vector.broadcast %31 : vector<1x64xf32> to vector<128x64xf32>
    %33 = arith.addf %30, %32 : vector<128x64xf32>
    %cst_32 = arith.constant 0.000000e+00 : f32
    %34 = vector.broadcast %cst_32 : f32 to vector<128x64xf32>
    %35 = arith.maximumf %33, %34 : vector<128x64xf32>
    %36 = arith.truncf %35 : vector<128x64xf32> to vector<128x64xbf16>
    %cst_33 = arith.constant dense<0.000000e+00> : vector<128x128xf32>
    %37 = tpu.matmul %36, %15, %cst_33 {dimension_numbers = #tpu.dot_dimension_numbers<[1], [0], [0], [1], [0, 0, 1, 1], [], []>} : vector<128x64xbf16>, vector<64x128xbf16>, vector<128x128xf32> -> vector<128x128xf32>
    %38 = vector.broadcast %16 : vector<1x128xf32> to vector<128x128xf32>
    %39 = arith.addf %37, %38 : vector<128x128xf32>
    %c0_34 = arith.constant 0 : index
    %c0_35 = arith.constant 0 : index
    %40 = vector.load %arg25[%c0_34, %c0_35] : memref<128x128xf32, #tpu.memory_space<vmem>>, vector<128x128xf32>
    tpu.vector_store %arg25[%c0_34, %c0_35], %39 {strides = array<i32>} : memref<128x128xf32, #tpu.memory_space<vmem>>, vector<128x128xf32>,
    %c0_36 = arith.constant 0 : index
    %c0_37 = arith.constant 0 : index
    %41 = vector.load %arg13[%c0_36, %c0_37] : memref<32x768xbf16, #tpu.memory_space<vmem>>, vector<32x768xbf16>
    %c0_38 = arith.constant 0 : index
    %c0_39 = arith.constant 0 : index
    %42 = vector.load %arg14[%c0_38, %c0_39] : memref<768x128xbf16, #tpu.memory_space<vmem>>, vector<768x128xbf16>
    %cst_40 = arith.constant dense<0.000000e+00> : vector<32x128xf32>
    %43 = tpu.matmul %41, %42, %cst_40 {dimension_numbers = #tpu.dot_dimension_numbers<[1], [0], [0], [1], [0, 0, 1, 1], [], []>} : vector<32x768xbf16>, vector<768x128xbf16>, vector<32x128xf32> -> vector<32x128xf32>
    %c0_41 = arith.constant 0 : index
    %c0_42 = arith.constant 0 : index
    %44 = vector.load %arg15[%c0_41, %c0_42] : memref<1x128xf32, #tpu.memory_space<vmem>>, vector<1x128xf32>
    %45 = vector.broadcast %44 : vector<1x128xf32> to vector<32x128xf32>
    %46 = arith.addf %43, %45 : vector<32x128xf32>
    %cst_43 = arith.constant 0.000000e+00 : f32
    %47 = vector.broadcast %cst_43 : f32 to vector<32x128xf32>
    %48 = arith.maximumf %46, %47 : vector<32x128xf32>
    %49 = arith.truncf %48 : vector<32x128xf32> to vector<32x128xbf16>
    %c0_44 = arith.constant 0 : index
    %c0_45 = arith.constant 0 : index
    %50 = vector.load %arg16[%c0_44, %c0_45] : memref<128x64xbf16, #tpu.memory_space<vmem>>, vector<128x64xbf16>
    %cst_46 = arith.constant dense<0.000000e+00> : vector<32x64xf32>
    %51 = tpu.matmul %49, %50, %cst_46 {dimension_numbers = #tpu.dot_dimension_numbers<[1], [0], [0], [1], [0, 0, 1, 1], [], []>} : vector<32x128xbf16>, vector<128x64xbf16>, vector<32x64xf32> -> vector<32x64xf32>
    %c0_47 = arith.constant 0 : index
    %c0_48 = arith.constant 0 : index
    %52 = vector.load %arg4[%c0_47, %c0_48] : memref<128x64xbf16, #tpu.memory_space<vmem>>, vector<128x64xbf16>
    %cst_49 = arith.constant dense<0.000000e+00> : vector<32x64xf32>
    %53 = tpu.matmul %14, %52, %cst_49 {dimension_numbers = #tpu.dot_dimension_numbers<[1], [0], [0], [1], [0, 0, 1, 1], [], []>} : vector<32x128xbf16>, vector<128x64xbf16>, vector<32x64xf32> -> vector<32x64xf32>
    %54 = arith.addf %51, %53 : vector<32x64xf32>
    %c0_50 = arith.constant 0 : index
    %c0_51 = arith.constant 0 : index
    %55 = vector.load %arg17[%c0_50, %c0_51] : memref<1x64xf32, #tpu.memory_space<vmem>>, vector<1x64xf32>
    %56 = vector.broadcast %55 : vector<1x64xf32> to vector<32x64xf32>
    %57 = arith.addf %54, %56 : vector<32x64xf32>
    %cst_52 = arith.constant 0.000000e+00 : f32
    %58 = vector.broadcast %cst_52 : f32 to vector<32x64xf32>
    %59 = arith.maximumf %57, %58 : vector<32x64xf32>
    %60 = arith.truncf %59 : vector<32x64xf32> to vector<32x64xbf16>
    %cst_53 = arith.constant dense<0.000000e+00> : vector<32x128xf32>
    %61 = tpu.matmul %60, %15, %cst_53 {dimension_numbers = #tpu.dot_dimension_numbers<[1], [0], [0], [1], [0, 0, 1, 1], [], []>} : vector<32x64xbf16>, vector<64x128xbf16>, vector<32x128xf32> -> vector<32x128xf32>
    %62 = vector.broadcast %16 : vector<1x128xf32> to vector<32x128xf32>
    %63 = arith.addf %61, %62 : vector<32x128xf32>
    %c0_54 = arith.constant 0 : index
    %c0_55 = arith.constant 0 : index
    %64 = vector.load %arg26[%c0_54, %c0_55] : memref<32x128xf32, #tpu.memory_space<vmem>>, vector<32x128xf32>
    tpu.vector_store %arg26[%c0_54, %c0_55], %63 {strides = array<i32>} : memref<32x128xf32, #tpu.memory_space<vmem>>, vector<32x128xf32>,
    %c0_56 = arith.constant 0 : index
    %c0_57 = arith.constant 0 : index
    %65 = vector.load %arg18[%c0_56, %c0_57] : memref<8x3072xbf16, #tpu.memory_space<vmem>>, vector<8x3072xbf16>
    %c0_58 = arith.constant 0 : index
    %c0_59 = arith.constant 0 : index
    %66 = vector.load %arg19[%c0_58, %c0_59] : memref<3072x256xbf16, #tpu.memory_space<vmem>>, vector<3072x256xbf16>
    %cst_60 = arith.constant dense<0.000000e+00> : vector<8x256xf32>
    %67 = tpu.matmul %65, %66, %cst_60 {dimension_numbers = #tpu.dot_dimension_numbers<[1], [0], [0], [1], [0, 0, 1, 1], [], []>} : vector<8x3072xbf16>, vector<3072x256xbf16>, vector<8x256xf32> -> vector<8x256xf32>
    %c0_61 = arith.constant 0 : index
    %c0_62 = arith.constant 0 : index
    %68 = vector.load %arg20[%c0_61, %c0_62] : memref<1x256xf32, #tpu.memory_space<vmem>>, vector<1x256xf32>
    %69 = vector.broadcast %68 : vector<1x256xf32> to vector<8x256xf32>
    %70 = arith.addf %67, %69 : vector<8x256xf32>
    %cst_63 = arith.constant 0.000000e+00 : f32
    %71 = vector.broadcast %cst_63 : f32 to vector<8x256xf32>
    %72 = arith.maximumf %70, %71 : vector<8x256xf32>
    %73 = arith.truncf %72 : vector<8x256xf32> to vector<8x256xbf16>
    %c0_64 = arith.constant 0 : index
    %c0_65 = arith.constant 0 : index
    %74 = vector.load %arg21[%c0_64, %c0_65] : memref<256x64xbf16, #tpu.memory_space<vmem>>, vector<256x64xbf16>
    %cst_66 = arith.constant dense<0.000000e+00> : vector<8x64xf32>
    %75 = tpu.matmul %73, %74, %cst_66 {dimension_numbers = #tpu.dot_dimension_numbers<[1], [0], [0], [1], [0, 0, 1, 1], [], []>} : vector<8x256xbf16>, vector<256x64xbf16>, vector<8x64xf32> -> vector<8x64xf32>
    %c0_67 = arith.constant 0 : index
    %c0_68 = arith.constant 0 : index
    %76 = vector.load %arg5[%c0_67, %c0_68] : memref<128x64xbf16, #tpu.memory_space<vmem>>, vector<128x64xbf16>
    %cst_69 = arith.constant dense<0.000000e+00> : vector<8x64xf32>
    %77 = tpu.matmul %8, %76, %cst_69 {dimension_numbers = #tpu.dot_dimension_numbers<[1], [0], [0], [1], [0, 0, 1, 1], [], []>} : vector<8x128xbf16>, vector<128x64xbf16>, vector<8x64xf32> -> vector<8x64xf32>
    %78 = arith.addf %75, %77 : vector<8x64xf32>
    %c0_70 = arith.constant 0 : index
    %c0_71 = arith.constant 0 : index
    %79 = vector.load %arg22[%c0_70, %c0_71] : memref<1x64xf32, #tpu.memory_space<vmem>>, vector<1x64xf32>
    %80 = vector.broadcast %79 : vector<1x64xf32> to vector<8x64xf32>
    %81 = arith.addf %78, %80 : vector<8x64xf32>
    %cst_72 = arith.constant 0.000000e+00 : f32
    %82 = vector.broadcast %cst_72 : f32 to vector<8x64xf32>
    %83 = arith.maximumf %81, %82 : vector<8x64xf32>
    %84 = arith.truncf %83 : vector<8x64xf32> to vector<8x64xbf16>
    %cst_73 = arith.constant dense<0.000000e+00> : vector<8x128xf32>
    %85 = tpu.matmul %84, %15, %cst_73 {dimension_numbers = #tpu.dot_dimension_numbers<[1], [0], [0], [1], [0, 0, 1, 1], [], []>} : vector<8x64xbf16>, vector<64x128xbf16>, vector<8x128xf32> -> vector<8x128xf32>
    %86 = vector.broadcast %16 : vector<1x128xf32> to vector<8x128xf32>
    %87 = arith.addf %85, %86 : vector<8x128xf32>
    %c0_74 = arith.constant 0 : index
    %c0_75 = arith.constant 0 : index
    %88 = vector.load %arg27[%c0_74, %c0_75] : memref<8x128xf32, #tpu.memory_space<vmem>>, vector<8x128xf32>
    tpu.vector_store %arg27[%c0_74, %c0_75], %87 {strides = array<i32>} : memref<8x128xf32, #tpu.memory_space<vmem>>, vector<8x128xf32>,
    return
  }
}

</mosaic_0001>

<bundles_post_ra>
// kernel: acsfed_forward.1
= control target key start
LH: loop header
LB: loop body
LE: loop exit
PB: predicated region body
PF: predicated region fallthrough
CT: control target
= control target key end

     0   :  { %vm8597_vm0 = vcmask 64512   ;;  %vm8622_vm1 = vcmask 1043456   ;;  %vm9002_vm2 = vcmask 523264   ;;  %vm18396_vm3 = vmmov 0   ;;  %s23103_s1 = inlined_call_operand.vmem [shape: bf16[12288,128], index: 1, kind: input, shape index: {}]   ;;  %s23104_s0 = inlined_call_operand.vmem [shape: bf16[8,12288], index: 0, kind: input, shape index: {}]   ;;  %s23105_s2 = inlined_call_operand.vmem [shape: f32[1,128], index: 2, kind: input, shape index: {}]   ;;  %s23106_s6 = inlined_call_operand.vmem [shape: bf16[128,8], index: 6, kind: input, shape index: {}]   ;;  %s23107_s9 = inlined_call_operand.vmem [shape: bf16[192,64], index: 9, kind: input, shape index: {}]   ;;  %s23108_s8 = inlined_call_operand.vmem [shape: bf16[128,192], index: 8, kind: input, shape index: {}]   ;;  %s23109_s7 = inlined_call_operand.vmem [shape: bf16[32,8], index: 7, kind: input, shape index: {}]   ;;  %s23110_s3 = inlined_call_operand.vmem [shape: bf16[128,64], index: 3, kind: input, shape index: {}]   ;;  %s23111_s11 = inlined_call_operand.vmem [shape: bf16[64,64], index: 11, kind: input, shape index: {}]   ;;  %s23112_s10 = inlined_call_operand.vmem [shape: f32[1,64], index: 10, kind: input, shape index: {}]   ;;  %s23113_s14 = inlined_call_operand.vmem [shape: bf16[768,128], index: 14, kind: input, shape index: {}]   ;;  %s23114_s23 = inlined_call_operand.vmem [shape: bf16[64,128], index: 23, kind: input, shape index: {}]   ;;  %s23115_s13 = inlined_call_operand.vmem [shape: bf16[32,768], index: 13, kind: input, shape index: {}]   ;;  %s23116_s4 = inlined_call_operand.vmem [shape: bf16[128,64], index: 4, kind: input, shape index: {}]   ;;  %s23117_s12 = inlined_call_operand.vmem [shape: f32[1,64], index: 12, kind: input, shape index: {}]   ;;  %s23118_s16 = inlined_call_operand.vmem [shape: bf16[128,64], index: 16, kind: input, shape index: {}]   ;;  %s23119_s19 = inlined_call_operand.vmem [shape: bf16[3072,256], index: 19, kind: input, shape index: {}]   ;;  %s23120_s24 = inlined_call_operand.vmem [shape: f32[1,128], index: 24, kind: input, shape index: {}]   ;;  %s23121_s25 = inlined_call_operand.vmem [shape: f32[128,128], index: 25, kind: output, shape index: {0}]   ;;  %s23122_s15 = inlined_call_operand.vmem [shape: f32[1,128], index: 15, kind: input, shape index: {}]   ;;  %s23123_s18 = inlined_call_operand.vmem [shape: bf16[8,3072], index: 18, kind: input, shape index: {}]   ;;  %s23124_s17 = inlined_call_operand.vmem [shape: f32[1,64], index: 17, kind: input, shape index: {}]   ;;  %s23125_s5 = inlined_call_operand.vmem [shape: bf16[128,64], index: 5, kind: input, shape index: {}]   ;;  %s23126_s26 = inlined_call_operand.vmem [shape: f32[32,128], index: 26, kind: output, shape index: {1}]   ;;  %s23127_s20 = inlined_call_operand.vmem [shape: f32[1,256], index: 20, kind: input, shape index: {}]   ;;  %s23128_s21 = inlined_call_operand.vmem [shape: bf16[256,64], index: 21, kind: input, shape index: {}]   ;;  %s23129_s22 = inlined_call_operand.vmem [shape: f32[1,64], index: 22, kind: input, shape index: {}]   ;;  %s23130_s27 = inlined_call_operand.vmem [shape: f32[8,128], index: 27, kind: output, shape index: {2}]  }
   0x1   :  { %23141 = sst [smem:[#allocation2_spill]] %s23103_s1 }
   0x2   :  { %23142 = sst [smem:[#allocation3_spill]] %s23104_s0 }
   0x3   :  { %23143 = sst [smem:[#allocation4_spill]] %s23105_s2 }
   0x4   :  { %23144 = sst [smem:[#allocation5_spill]] %s23106_s6 }
   0x5   :  { %23145 = sst [smem:[#allocation6_spill]] %s23107_s9 }
   0x6   :  { %23146 = sst [smem:[#allocation7_spill]] %s23108_s8 }
   0x7   :  { %23147 = sst [smem:[#allocation8_spill]] %s23109_s7 }
   0x8   :  { %23148 = sst [smem:[#allocation9_spill]] %s23110_s3 }
   0x9   :  { %23149 = sst [smem:[#allocation10_spill]] %s23111_s11 }
   0xa   :  { %23150 = sst [smem:[#allocation11_spill]] %s23112_s10 }
   0xb   :  { %23151 = sst [smem:[#allocation12_spill]] %s23113_s14 }
   0xc   :  { %23152 = sst [smem:[#allocation13_spill]] %s23114_s23 }
   0xd   :  { %s23153_s11 = sld [smem:[#allocation2_spill]] }
   0xe   :  { %s23154_s7 = sld [smem:[#allocation3_spill]] }
   0xf   :  { %s23155_s9 = sld [smem:[#allocation4_spill]] }
  0x10   :  { %s23156_s0 = sld [smem:[#allocation5_spill]] }
  0x11   :  { %s23157_s1 = sld [smem:[#allocation8_spill]] }
  0x12   :  { %s23158_s2 = sld [smem:[#allocation9_spill]] }
  0x13   :  { %v16757_v0 = vld [vmem:[%s23153_s11 + $0x78] sm:$0xff]   ;;  %v16761_v4 = vld [vmem:[%s23153_s11 + $0x70] sm:$0xff]   ;;  %v16765_v8 = vld [vmem:[%s23153_s11 + $0x68] sm:$0xff]   ;;  %s23161_s6 = sld [smem:[#allocation10_spill]] }
  0x14   :  { %v16758_v1 = vld [vmem:[%s23153_s11 + $0xf8] sm:$0xff]   ;;  %15310 = vmatprep.subr.bf16.mxu0 %v16757_v0  ;;  %v16762_v5 = vld [vmem:[%s23153_s11 + $0xf0] sm:$0xff]   ;;  %v16766_v9 = vld [vmem:[%s23153_s11 + $0xe8] sm:$0xff]   ;;  %s23162_s29 = sld [smem:[#allocation11_spill]] }
  0x15   :  { %v16759_v2 = vld [vmem:[%s23153_s11 + $0x38] sm:$0xff]   ;;  %15332 = vmatprep.subr.bf16.mxu1 %v16758_v1  ;;  %v16763_v6 = vld [vmem:[%s23153_s11 + $0x30] sm:$0xff]   ;;  %v16767_v10 = vld [vmem:[%s23153_s11 + $0x28] sm:$0xff]  }
  0x16   :  { %v16760_v3 = vld [vmem:[%s23153_s11 + $0xb8] sm:$0xff]   ;;  %15311 = vmatpush3.bf16.msra.mxu0 %v16759_v2  ;;  %v16764_v7 = vld [vmem:[%s23153_s11 + $0xb0] sm:$0xff]   ;;  %v16768_v11 = vld [vmem:[%s23153_s11 + $0xa8] sm:$0xff]  }
  0x17   :  { %15333 = vmatpush3.bf16.msra.mxu1 %v16760_v3  ;;  %15312 = vmatprep.subr.bf16.mxu0 %v16761_v4  ;;  %v16769_v12 = vld [vmem:[%s23153_s11 + $0x60] sm:$0xff]   ;;  %v16773_v16 = vld [vmem:[%s23153_s11 + $0x58] sm:$0xff]   ;;  %v16777_v20 = vld [vmem:[%s23153_s11 + $0x50] sm:$0xff]  }
  0x18   :  { %15334 = vmatprep.subr.bf16.mxu1 %v16762_v5  ;;  %v16770_v13 = vld [vmem:[%s23153_s11 + $0xe0] sm:$0xff]   ;;  %v16774_v17 = vld [vmem:[%s23153_s11 + $0xd8] sm:$0xff]   ;;  %v16778_v21 = vld [vmem:[%s23153_s11 + $0xd0] sm:$0xff]  }
  0x19   :  { %v16771_v14 = vld [vmem:[%s23153_s11 + $0x20] sm:$0xff]   ;;  %v16775_v18 = vld [vmem:[%s23153_s11 + $0x18] sm:$0xff]   ;;  %v16779_v22 = vld [vmem:[%s23153_s11 + $0x10] sm:$0xff]  }
  0x1a   :  { %15313 = vmatpush3.bf16.msra.mxu0 %v16763_v6  ;;  %v16772_v15 = vld [vmem:[%s23153_s11 + $0xa0] sm:$0xff]   ;;  %v16776_v19 = vld [vmem:[%s23153_s11 + $0x98] sm:$0xff]   ;;  %v16780_v23 = vld [vmem:[%s23153_s11 + $0x90] sm:$0xff]  }
  0x1b   :  { %15335 = vmatpush3.bf16.msra.mxu1 %v16764_v7  ;;  %15314 = vmatprep.subr.bf16.mxu0 %v16765_v8  ;;  %v16781_v24 = vld [vmem:[%s23153_s11 + $0x48] sm:$0xff]   ;;  %v16785_v28 = vld [vmem:[%s23153_s11 + $0x40] sm:$0xff]   ;;  %v16793_v38 = vld [vmem:[%s23153_s11 + $0x178] sm:$0xff]  }
  0x1c   :  { %15336 = vmatprep.subr.bf16.mxu1 %v16766_v9  ;;  %v16782_v25 = vld [vmem:[%s23153_s11 + $0xc8] sm:$0xff]   ;;  %v16786_v29 = vld [vmem:[%s23153_s11 + $0xc0] sm:$0xff]   ;;  %v16794_v39 = vld [vmem:[%s23153_s11 + $0x1f8] sm:$0xff]  }
  0x1d   :  { %v16783_v26 = vld [vmem:[%s23153_s11 + $0x8] sm:$0xff]   ;;  %v16787_v30 = vld [vmem:[%s23153_s11] sm:$0xff]   ;;  %v16795_v40 = vld [vmem:[%s23153_s11 + $0x138] sm:$0xff]  }
  0x1e   :  { %15315 = vmatpush3.bf16.msra.mxu0 %v16767_v10  ;;  %v16784_v27 = vld [vmem:[%s23153_s11 + $0x88] sm:$0xff]   ;;  %v16788_v31 = vld [vmem:[%s23153_s11 + $0x80] sm:$0xff]   ;;  %v16796_v41 = vld [vmem:[%s23153_s11 + $0x1b8] sm:$0xff]  }
  0x1f   :  { %15337 = vmatpush3.bf16.msra.mxu1 %v16768_v11  ;;  %15316 = vmatprep.subr.bf16.mxu0 %v16769_v12  ;;  %v84_v32 = vld [vmem:[%s23154_s7] sm:$0xff]  ;;  %v85_v33 = vld [vmem:[%s23154_s7 + $0x8] sm:$0xff]  ;;  %v16797_v42 = vld [vmem:[%s23153_s11 + $0x170] sm:$0xff]  }
  0x20   :  { %15338 = vmatprep.subr.bf16.mxu1 %v16770_v13  ;;  %v13841_v34 = vcombine.low %v84_v32, %v84_v32  ;;  %v13842_v35 = vcombine.high %v84_v32, %v84_v32  ;;  %v13843_v36 = vcombine.low %v85_v33, %v85_v33  ;;  %v13844_v37 = vcombine.high %v85_v33, %v85_v33  ;;  %v16798_v43 = vld [vmem:[%s23153_s11 + $0x1f0] sm:$0xff]   ;;  %v16801_v46 = vld [vmem:[%s23153_s11 + $0x168] sm:$0xff]   ;;  %v16805_v50 = vld [vmem:[%s23153_s11 + $0x160] sm:$0xff]  }
  0x21   :  { %v16799_v44 = vld [vmem:[%s23153_s11 + $0x130] sm:$0xff]   ;;  %v16802_v47 = vld [vmem:[%s23153_s11 + $0x1e8] sm:$0xff]   ;;  %v16806_v51 = vld [vmem:[%s23153_s11 + $0x1e0] sm:$0xff]  }
  0x22   :  { %15317 = vmatpush3.bf16.msra.mxu0 %v16771_v14  ;;  %6651 = vmatprep.mubr.bf16.mxu0 %v13842_v35  ;;  %v16800_v45 = vld [vmem:[%s23153_s11 + $0x1b0] sm:$0xff]   ;;  %v16803_v48 = vld [vmem:[%s23153_s11 + $0x128] sm:$0xff]   ;;  %v16807_v52 = vld [vmem:[%s23153_s11 + $0x120] sm:$0xff]  }
  0x23   :  { %15339 = vmatpush3.bf16.msra.mxu1 %v16772_v15  ;;  %15318 = vmatprep.subr.bf16.mxu0 %v16773_v16  ;;  %v16804_v49 = vld [vmem:[%s23153_s11 + $0x1a8] sm:$0xff]   ;;  %v16808_v53 = vld [vmem:[%s23153_s11 + $0x1a0] sm:$0xff]   ;;  %v16809_v54 = vld [vmem:[%s23153_s11 + $0x158] sm:$0xff]  }
  0x24   :  { %15340 = vmatprep.subr.bf16.mxu1 %v16774_v17  ;;  %6691 = vmatprep.mubr.bf16.mxu1 %v13844_v37  ;;  %v16810_v55 = vld [vmem:[%s23153_s11 + $0x1d8] sm:$0xff]   ;;  %v16813_v58 = vld [vmem:[%s23153_s11 + $0x150] sm:$0xff]   ;;  %v16817_v62 = vld [vmem:[%s23153_s11 + $0x148] sm:$0xff]  }
  0x25   :  { %v16811_v56 = vld [vmem:[%s23153_s11 + $0x118] sm:$0xff]   ;;  %v16814_v59 = vld [vmem:[%s23153_s11 + $0x1d0] sm:$0xff]   ;;  %v16818_v63 = vld [vmem:[%s23153_s11 + $0x1c8] sm:$0xff]  }
  0x26   :  { %15319 = vmatpush3.bf16.msra.mxu0 %v16775_v18  ;;  %v16812_v57 = vld [vmem:[%s23153_s11 + $0x198] sm:$0xff]   ;;  %v16815_v60 = vld [vmem:[%s23153_s11 + $0x110] sm:$0xff]   ;;  %v16819_v0 = vld [vmem:[%s23153_s11 + $0x108] sm:$0xff]  }
  0x27   :  { %15341 = vmatpush3.bf16.msra.mxu1 %v16776_v19  ;;  %15320 = vmatprep.subr.bf16.mxu0 %v16777_v20  ;;  %v16816_v61 = vld [vmem:[%s23153_s11 + $0x190] sm:$0xff]   ;;  %v16820_v1 = vld [vmem:[%s23153_s11 + $0x188] sm:$0xff]   ;;  %v16821_v2 = vld [vmem:[%s23153_s11 + $0x140] sm:$0xff]  }
  0x28   :  { %15342 = vmatprep.subr.bf16.mxu1 %v16778_v21  ;;  %v16822_v3 = vld [vmem:[%s23153_s11 + $0x1c0] sm:$0xff]   ;;  %v86_v6 = vld [vmem:[%s23154_s7 + $0x10] sm:$0xff]  ;;  %v87_v9 = vld [vmem:[%s23154_s7 + $0x18] sm:$0xff] }
  0x29   :  { %v16823_v4 = vld [vmem:[%s23153_s11 + $0x100] sm:$0xff]   ;;  %v13845_v7 = vcombine.low %v86_v6, %v86_v6  ;;  %v13846_v8 = vcombine.high %v86_v6, %v86_v6  ;;  %v13847_v10 = vcombine.low %v87_v9, %v87_v9  ;;  %v13848_v11 = vcombine.high %v87_v9, %v87_v9  ;;  %v16829_v12 = vld [vmem:[%s23153_s11 + $0x278] sm:$0xff]   ;;  %v16833_v16 = vld [vmem:[%s23153_s11 + $0x270] sm:$0xff]  }
  0x2a   :  { %15321 = vmatpush3.bf16.msra.mxu0 %v16779_v22  ;;  %v16824_v5 = vld [vmem:[%s23153_s11 + $0x180] sm:$0xff]   ;;  %v16830_v13 = vld [vmem:[%s23153_s11 + $0x2f8] sm:$0xff]   ;;  %v16834_v17 = vld [vmem:[%s23153_s11 + $0x2f0] sm:$0xff]  }
  0x2b   :  { %15343 = vmatpush3.bf16.msra.mxu1 %v16780_v23  ;;  %15322 = vmatprep.subr.bf16.mxu0 %v16781_v24  ;;  %v16831_v14 = vld [vmem:[%s23153_s11 + $0x238] sm:$0xff]   ;;  %v16835_v18 = vld [vmem:[%s23153_s11 + $0x230] sm:$0xff]   ;;  %v16837_v20 = vld [vmem:[%s23153_s11 + $0x268] sm:$0xff]  }
  0x2c   :  { %15344 = vmatprep.subr.bf16.mxu1 %v16782_v25  ;;  %v16832_v15 = vld [vmem:[%s23153_s11 + $0x2b8] sm:$0xff]   ;;  %v16836_v19 = vld [vmem:[%s23153_s11 + $0x2b0] sm:$0xff]   ;;  %v16838_v21 = vld [vmem:[%s23153_s11 + $0x2e8] sm:$0xff]  }
  0x2d   :  { %v16839_v22 = vld [vmem:[%s23153_s11 + $0x228] sm:$0xff]   ;;  %v16841_v24 = vld [vmem:[%s23153_s11 + $0x260] sm:$0xff]   ;;  %v16849_v32 = vld [vmem:[%s23153_s11 + $0x250] sm:$0xff]  }
  0x2e   :  { %15323 = vmatpush3.bf16.msra.mxu0 %v16783_v26  ;;  %v16840_v23 = vld [vmem:[%s23153_s11 + $0x2a8] sm:$0xff]   ;;  %v16842_v25 = vld [vmem:[%s23153_s11 + $0x2e0] sm:$0xff]   ;;  %v16850_v33 = vld [vmem:[%s23153_s11 + $0x2d0] sm:$0xff]  }
  0x2f   :  { %15345 = vmatpush3.bf16.msra.mxu1 %v16784_v27  ;;  %15324 = vmatprep.subr.bf16.mxu0 %v16785_v28  ;;  %v16843_v26 = vld [vmem:[%s23153_s11 + $0x220] sm:$0xff]   ;;  %v16845_v28 = vld [vmem:[%s23153_s11 + $0x258] sm:$0xff]   ;;  %v16852_v35 = vld [vmem:[%s23153_s11 + $0x290] sm:$0xff]  }
  0x30   :  { %15346 = vmatprep.subr.bf16.mxu1 %v16786_v29  ;;  %v16844_v27 = vld [vmem:[%s23153_s11 + $0x2a0] sm:$0xff]   ;;  %v16846_v29 = vld [vmem:[%s23153_s11 + $0x2d8] sm:$0xff]   ;;  %v16854_v37 = vld [vmem:[%s23153_s11 + $0x2c8] sm:$0xff]  }
  0x31   :  { %v16885_v6 = vld [vmem:[%s23153_s11 + $0x350] sm:$0xff]  }
  0x32   :  { %15325 = vmatpush3.bf16.msra.mxu0 %v16787_v30  ;;  %v16847_v30 = vld [vmem:[%s23153_s11 + $0x218] sm:$0xff]   ;;  %v16888_v9 = vld [vmem:[%s23153_s11 + $0x390] sm:$0xff]  }
  0x33   :  { %15347 = vmatpush3.bf16.msra.mxu1 %v16788_v31  ;;  %15354 = vmatprep.subr.bf16.mxu0 %v16793_v38  ;;  %v16848_v31 = vld [vmem:[%s23153_s11 + $0x298] sm:$0xff]   ;;  %v16855_v38 = vld [vmem:[%s23153_s11 + $0x208] sm:$0xff]  }
  0x34   :  { %15376 = vmatprep.subr.bf16.mxu1 %v16794_v39  ;;  %v16856_v39 = vld [vmem:[%s23153_s11 + $0x288] sm:$0xff]  }
  0x35   :  { %6652 = vmatmul.mubr.bf16.vlgmr.msra.gmra.mxu0 %v13841_v34  ;;  %v16851_v34 = vld [vmem:[%s23153_s11 + $0x210] sm:$0xff]  }
  0x36   :  { %6692 = vmatmul.mubr.bf16.vlgmr.msra.gmra.mxu1 %v13843_v36  ;;  %15355 = vmatpush3.bf16.msra.mxu0 %v16795_v40  ;;  %v16853_v36 = vld [vmem:[%s23153_s11 + $0x248] sm:$0xff]   ;;  %v16857_v40 = vld [vmem:[%s23153_s11 + $0x240] sm:$0xff]  }
  0x37   :  { %15377 = vmatpush3.bf16.msra.mxu1 %v16796_v41  ;;  %15356 = vmatprep.subr.bf16.mxu0 %v16797_v42  ;;  %v16858_v41 = vld [vmem:[%s23153_s11 + $0x2c0] sm:$0xff]  }
  0x38   :  { %15378 = vmatprep.subr.bf16.mxu1 %v16798_v43  ;;  %6731 = vmatprep.mubr.bf16.mxu0 %v13846_v8  ;;  %v16859_v42 = vld [vmem:[%s23153_s11 + $0x200] sm:$0xff]   ;;  %v16887_v8 = vld [vmem:[%s23153_s11 + $0x310] sm:$0xff]  }
  0x39   :  { %6771 = vmatprep.mubr.bf16.mxu1 %v13848_v11  ;;  %v16860_v43 = vld [vmem:[%s23153_s11 + $0x280] sm:$0xff]   ;;  %v16890_v11 = vld [vmem:[%s23153_s11 + $0x3c8] sm:$0xff]  }
  0x3a   :  { %15357 = vmatpush3.bf16.msra.mxu0 %v16799_v44  ;;  %v88_v44 = vld [vmem:[%s23154_s7 + $0x20] sm:$0xff] }
  0x3b   :  { %15379 = vmatpush3.bf16.msra.mxu1 %v16800_v45  ;;  %15358 = vmatprep.subr.bf16.mxu0 %v16801_v46  ;;  %v89_v45 = vld [vmem:[%s23154_s7 + $0x28] sm:$0xff]  ;;  %v13849_v46 = vcombine.low %v88_v44, %v88_v44 }
  0x3c   :  { %15380 = vmatprep.subr.bf16.mxu1 %v16802_v47  ;;  %v13850_v47 = vcombine.high %v88_v44, %v88_v44  ;;  %v16921_v44 = vld [vmem:[%s23153_s11 + $0x450] sm:$0xff]  }
  0x3e   :  { %15359 = vmatpush3.bf16.msra.mxu0 %v16803_v48  ;;  %v13851_v48 = vcombine.low %v89_v45, %v89_v45 }
  0x3f   :  { %15381 = vmatpush3.bf16.msra.mxu1 %v16804_v49  ;;  %15360 = vmatprep.subr.bf16.mxu0 %v16805_v50  ;;  %v13852_v49 = vcombine.high %v89_v45, %v89_v45  ;;  %v16865_v50 = vld [vmem:[%s23153_s11 + $0x378] sm:$0xff]   ;;  %v16922_v45 = vld [vmem:[%s23153_s11 + $0x4d0] sm:$0xff]  }
  0x40   :  { %15382 = vmatprep.subr.bf16.mxu1 %v16806_v51  ;;  %v16866_v51 = vld [vmem:[%s23153_s11 + $0x3f8] sm:$0xff]  }
  0x42   :  { %15361 = vmatpush3.bf16.msra.mxu0 %v16807_v52  ;;  %v16867_v52 = vld [vmem:[%s23153_s11 + $0x338] sm:$0xff]  }
  0x43   :  { %15383 = vmatpush3.bf16.msra.mxu1 %v16808_v53  ;;  %15362 = vmatprep.subr.bf16.mxu0 %v16809_v54  ;;  %v16868_v53 = vld [vmem:[%s23153_s11 + $0x3b8] sm:$0xff]   ;;  %v16869_v54 = vld [vmem:[%s23153_s11 + $0x370] sm:$0xff]  }
  0x44   :  { %15384 = vmatprep.subr.bf16.mxu1 %v16810_v55  ;;  %v16870_v55 = vld [vmem:[%s23153_s11 + $0x3f0] sm:$0xff]  }
  0x46   :  { %15363 = vmatpush3.bf16.msra.mxu0 %v16811_v56  ;;  %v16871_v56 = vld [vmem:[%s23153_s11 + $0x330] sm:$0xff]  }
  0x47   :  { %15385 = vmatpush3.bf16.msra.mxu1 %v16812_v57  ;;  %15364 = vmatprep.subr.bf16.mxu0 %v16813_v58  ;;  %v16872_v57 = vld [vmem:[%s23153_s11 + $0x3b0] sm:$0xff]   ;;  %v16873_v58 = vld [vmem:[%s23153_s11 + $0x368] sm:$0xff]  }
  0x48   :  { %15386 = vmatprep.subr.bf16.mxu1 %v16814_v59  ;;  %v16874_v59 = vld [vmem:[%s23153_s11 + $0x3e8] sm:$0xff]  }
  0x4a   :  { %15365 = vmatpush3.bf16.msra.mxu0 %v16815_v60  ;;  %v16875_v60 = vld [vmem:[%s23153_s11 + $0x328] sm:$0xff]  }
  0x4b   :  { %15387 = vmatpush3.bf16.msra.mxu1 %v16816_v61  ;;  %15366 = vmatprep.subr.bf16.mxu0 %v16817_v62  ;;  %v16876_v61 = vld [vmem:[%s23153_s11 + $0x3a8] sm:$0xff]   ;;  %v16877_v62 = vld [vmem:[%s23153_s11 + $0x360] sm:$0xff]  }
  0x4c   :  { %15388 = vmatprep.subr.bf16.mxu1 %v16818_v63  ;;  %v16878_v63 = vld [vmem:[%s23153_s11 + $0x3e0] sm:$0xff]  }
  0x4e   :  { %15367 = vmatpush3.bf16.msra.mxu0 %v16819_v0  ;;  %v16879_v0 = vld [vmem:[%s23153_s11 + $0x320] sm:$0xff]  }
  0x4f   :  { %15389 = vmatpush3.bf16.msra.mxu1 %v16820_v1  ;;  %15368 = vmatprep.subr.bf16.mxu0 %v16821_v2  ;;  %v16880_v1 = vld [vmem:[%s23153_s11 + $0x3a0] sm:$0xff]   ;;  %v16881_v2 = vld [vmem:[%s23153_s11 + $0x358] sm:$0xff]  }
  0x50   :  { %15390 = vmatprep.subr.bf16.mxu1 %v16822_v3  ;;  %v16882_v3 = vld [vmem:[%s23153_s11 + $0x3d8] sm:$0xff]  }
  0x52   :  { %15369 = vmatpush3.bf16.msra.mxu0 %v16823_v4  ;;  %v16883_v4 = vld [vmem:[%s23153_s11 + $0x318] sm:$0xff]  }
  0x53   :  { %15391 = vmatpush3.bf16.msra.mxu1 %v16824_v5  ;;  %15398 = vmatprep.subr.bf16.mxu0 %v16829_v12  ;;  %v16884_v5 = vld [vmem:[%s23153_s11 + $0x398] sm:$0xff]   ;;  %v16891_v12 = vld [vmem:[%s23153_s11 + $0x308] sm:$0xff]  }
  0x54   :  { %15420 = vmatprep.subr.bf16.mxu1 %v16830_v13  ;;  %v16892_v13 = vld [vmem:[%s23153_s11 + $0x388] sm:$0xff]  }
  0x55   :  { %6732 = vmatmul.mubr.bf16.vlgmr.msra.gmra.mxu0 %v13845_v7  ;;  %v16886_v7 = vld [vmem:[%s23153_s11 + $0x3d0] sm:$0xff]  }
  0x56   :  { %6772 = vmatmul.mubr.bf16.vlgmr.msra.gmra.mxu1 %v13847_v10  ;;  %15399 = vmatpush3.bf16.msra.mxu0 %v16831_v14  ;;  %v16889_v10 = vld [vmem:[%s23153_s11 + $0x348] sm:$0xff]   ;;  %v16893_v14 = vld [vmem:[%s23153_s11 + $0x340] sm:$0xff]  }
  0x57   :  { %15421 = vmatpush3.bf16.msra.mxu1 %v16832_v15  ;;  %15400 = vmatprep.subr.bf16.mxu0 %v16833_v16  ;;  %v16894_v15 = vld [vmem:[%s23153_s11 + $0x3c0] sm:$0xff]  }
  0x58   :  { %15422 = vmatprep.subr.bf16.mxu1 %v16834_v17  ;;  %6811 = vmatprep.mubr.bf16.mxu0 %v13850_v47  ;;  %v16895_v16 = vld [vmem:[%s23153_s11 + $0x300] sm:$0xff]   ;;  %v16924_v47 = vld [vmem:[%s23153_s11 + $0x490] sm:$0xff]  }
  0x59   :  { %6851 = vmatprep.mubr.bf16.mxu1 %v13852_v49  ;;  %v16896_v17 = vld [vmem:[%s23153_s11 + $0x380] sm:$0xff]   ;;  %v16926_v49 = vld [vmem:[%s23153_s11 + $0x4c8] sm:$0xff]  }
  0x5a   :  { %15401 = vmatpush3.bf16.msra.mxu0 %v16835_v18  ;;  %v90_v18 = vld [vmem:[%s23154_s7 + $0x30] sm:$0xff] }
  0x5b   :  { %15423 = vmatpush3.bf16.msra.mxu1 %v16836_v19  ;;  %15402 = vmatprep.subr.bf16.mxu0 %v16837_v20  ;;  %v91_v19 = vld [vmem:[%s23154_s7 + $0x38] sm:$0xff]  ;;  %v13853_v20 = vcombine.low %v90_v18, %v90_v18 }
  0x5c   :  { %15424 = vmatprep.subr.bf16.mxu1 %v16838_v21  ;;  %v13854_v21 = vcombine.high %v90_v18, %v90_v18  ;;  %v16957_v18 = vld [vmem:[%s23153_s11 + $0x550] sm:$0xff]  }
  0x5e   :  { %15403 = vmatpush3.bf16.msra.mxu0 %v16839_v22  ;;  %v13855_v22 = vcombine.low %v91_v19, %v91_v19 }
  0x5f   :  { %15425 = vmatpush3.bf16.msra.mxu1 %v16840_v23  ;;  %15404 = vmatprep.subr.bf16.mxu0 %v16841_v24  ;;  %v16901_v23 = vld [vmem:[%s23153_s11 + $0x478] sm:$0xff]   ;;  %v13856_v24 = vcombine.high %v91_v19, %v91_v19  ;;  %v16958_v19 = vld [vmem:[%s23153_s11 + $0x5d0] sm:$0xff]  }
  0x60   :  { %15426 = vmatprep.subr.bf16.mxu1 %v16842_v25  ;;  %v16902_v25 = vld [vmem:[%s23153_s11 + $0x4f8] sm:$0xff]  }
  0x62   :  { %15405 = vmatpush3.bf16.msra.mxu0 %v16843_v26  ;;  %v16903_v26 = vld [vmem:[%s23153_s11 + $0x438] sm:$0xff]  }
  0x63   :  { %15427 = vmatpush3.bf16.msra.mxu1 %v16844_v27  ;;  %15406 = vmatprep.subr.bf16.mxu0 %v16845_v28  ;;  %v16904_v27 = vld [vmem:[%s23153_s11 + $0x4b8] sm:$0xff]   ;;  %v16905_v28 = vld [vmem:[%s23153_s11 + $0x470] sm:$0xff]  }
  0x64   :  { %15428 = vmatprep.subr.bf16.mxu1 %v16846_v29  ;;  %v16906_v29 = vld [vmem:[%s23153_s11 + $0x4f0] sm:$0xff]  }
  0x66   :  { %15407 = vmatpush3.bf16.msra.mxu0 %v16847_v30  ;;  %v16907_v30 = vld [vmem:[%s23153_s11 + $0x430] sm:$0xff]  }
  0x67   :  { %15429 = vmatpush3.bf16.msra.mxu1 %v16848_v31  ;;  %15408 = vmatprep.subr.bf16.mxu0 %v16849_v32  ;;  %v16908_v31 = vld [vmem:[%s23153_s11 + $0x4b0] sm:$0xff]   ;;  %v16909_v32 = vld [vmem:[%s23153_s11 + $0x468] sm:$0xff]  }
  0x68   :  { %15430 = vmatprep.subr.bf16.mxu1 %v16850_v33  ;;  %v16910_v33 = vld [vmem:[%s23153_s11 + $0x4e8] sm:$0xff]  }
  0x6a   :  { %15409 = vmatpush3.bf16.msra.mxu0 %v16851_v34  ;;  %v16911_v34 = vld [vmem:[%s23153_s11 + $0x428] sm:$0xff]  }
  0x6b   :  { %15431 = vmatpush3.bf16.msra.mxu1 %v16852_v35  ;;  %15410 = vmatprep.subr.bf16.mxu0 %v16853_v36  ;;  %v16912_v35 = vld [vmem:[%s23153_s11 + $0x4a8] sm:$0xff]   ;;  %v16913_v36 = vld [vmem:[%s23153_s11 + $0x460] sm:$0xff]  }
  0x6c   :  { %15432 = vmatprep.subr.bf16.mxu1 %v16854_v37  ;;  %v16914_v37 = vld [vmem:[%s23153_s11 + $0x4e0] sm:$0xff]  }
  0x6e   :  { %15411 = vmatpush3.bf16.msra.mxu0 %v16855_v38  ;;  %v16915_v38 = vld [vmem:[%s23153_s11 + $0x420] sm:$0xff]  }
  0x6f   :  { %15433 = vmatpush3.bf16.msra.mxu1 %v16856_v39  ;;  %15412 = vmatprep.subr.bf16.mxu0 %v16857_v40  ;;  %v16916_v39 = vld [vmem:[%s23153_s11 + $0x4a0] sm:$0xff]   ;;  %v16917_v40 = vld [vmem:[%s23153_s11 + $0x458] sm:$0xff]  }
  0x70   :  { %15434 = vmatprep.subr.bf16.mxu1 %v16858_v41  ;;  %v16918_v41 = vld [vmem:[%s23153_s11 + $0x4d8] sm:$0xff]  }
  0x72   :  { %15413 = vmatpush3.bf16.msra.mxu0 %v16859_v42  ;;  %v16919_v42 = vld [vmem:[%s23153_s11 + $0x418] sm:$0xff]  }
  0x73   :  { %15435 = vmatpush3.bf16.msra.mxu1 %v16860_v43  ;;  %15442 = vmatprep.subr.bf16.mxu0 %v16865_v50  ;;  %v16920_v43 = vld [vmem:[%s23153_s11 + $0x498] sm:$0xff]   ;;  %v16927_v50 = vld [vmem:[%s23153_s11 + $0x408] sm:$0xff]  }
  0x74   :  { %15464 = vmatprep.subr.bf16.mxu1 %v16866_v51  ;;  %v16928_v51 = vld [vmem:[%s23153_s11 + $0x488] sm:$0xff]  }
  0x75   :  { %6812 = vmatmul.mubr.bf16.vlgmr.msra.gmra.mxu0 %v13849_v46  ;;  %v16923_v46 = vld [vmem:[%s23153_s11 + $0x410] sm:$0xff]  }
  0x76   :  { %6852 = vmatmul.mubr.bf16.vlgmr.msra.gmra.mxu1 %v13851_v48  ;;  %15443 = vmatpush3.bf16.msra.mxu0 %v16867_v52  ;;  %v16925_v48 = vld [vmem:[%s23153_s11 + $0x448] sm:$0xff]   ;;  %v16929_v52 = vld [vmem:[%s23153_s11 + $0x440] sm:$0xff]  }
  0x77   :  { %15465 = vmatpush3.bf16.msra.mxu1 %v16868_v53  ;;  %15444 = vmatprep.subr.bf16.mxu0 %v16869_v54  ;;  %v16930_v53 = vld [vmem:[%s23153_s11 + $0x4c0] sm:$0xff]  }
  0x78   :  { %15466 = vmatprep.subr.bf16.mxu1 %v16870_v55  ;;  %6891 = vmatprep.mubr.bf16.mxu0 %v13854_v21  ;;  %v16931_v54 = vld [vmem:[%s23153_s11 + $0x400] sm:$0xff]   ;;  %v16960_v21 = vld [vmem:[%s23153_s11 + $0x590] sm:$0xff]  }
  0x79   :  { %6931 = vmatprep.mubr.bf16.mxu1 %v13856_v24  ;;  %v16932_v55 = vld [vmem:[%s23153_s11 + $0x480] sm:$0xff]   ;;  %v16963_v24 = vld [vmem:[%s23153_s11 + $0x508] sm:$0xff]  }
  0x7a   :  { %15445 = vmatpush3.bf16.msra.mxu0 %v16871_v56  ;;  %v92_v56 = vld [vmem:[%s23154_s7 + $0x40] sm:$0xff] }
  0x7b   :  { %15467 = vmatpush3.bf16.msra.mxu1 %v16872_v57  ;;  %15446 = vmatprep.subr.bf16.mxu0 %v16873_v58  ;;  %v13857_v57 = vcombine.low %v92_v56, %v92_v56  ;;  %v13858_v58 = vcombine.high %v92_v56, %v92_v56  ;;  %v16993_v56 = vld [vmem:[%s23153_s11 + $0x650] sm:$0xff]  }
  0x7c   :  { %15468 = vmatprep.subr.bf16.mxu1 %v16874_v59  ;;  %v93_v59 = vld [vmem:[%s23154_s7 + $0x48] sm:$0xff] }
  0x7e   :  { %15447 = vmatpush3.bf16.msra.mxu0 %v16875_v60  ;;  %v13859_v60 = vcombine.low %v93_v59, %v93_v59 }
  0x7f   :  { %15469 = vmatpush3.bf16.msra.mxu1 %v16876_v61  ;;  %15448 = vmatprep.subr.bf16.mxu0 %v16877_v62  ;;  %v13860_v61 = vcombine.high %v93_v59, %v93_v59  ;;  %v16937_v62 = vld [vmem:[%s23153_s11 + $0x578] sm:$0xff]   ;;  %v16996_v59 = vld [vmem:[%s23153_s11 + $0x690] sm:$0xff]  }
  0x80   :  { %15470 = vmatprep.subr.bf16.mxu1 %v16878_v63  ;;  %v16938_v63 = vld [vmem:[%s23153_s11 + $0x5f8] sm:$0xff]  }
  0x82   :  { %15449 = vmatpush3.bf16.msra.mxu0 %v16879_v0  ;;  %v16939_v0 = vld [vmem:[%s23153_s11 + $0x538] sm:$0xff]  }
  0x83   :  { %15471 = vmatpush3.bf16.msra.mxu1 %v16880_v1  ;;  %15450 = vmatprep.subr.bf16.mxu0 %v16881_v2  ;;  %v16940_v1 = vld [vmem:[%s23153_s11 + $0x5b8] sm:$0xff]   ;;  %v16941_v2 = vld [vmem:[%s23153_s11 + $0x570] sm:$0xff]  }
  0x84   :  { %15472 = vmatprep.subr.bf16.mxu1 %v16882_v3  ;;  %v16942_v3 = vld [vmem:[%s23153_s11 + $0x5f0] sm:$0xff]  }
  0x86   :  { %15451 = vmatpush3.bf16.msra.mxu0 %v16883_v4  ;;  %v16943_v4 = vld [vmem:[%s23153_s11 + $0x530] sm:$0xff]  }
  0x87   :  { %15473 = vmatpush3.bf16.msra.mxu1 %v16884_v5  ;;  %15452 = vmatprep.subr.bf16.mxu0 %v16885_v6  ;;  %v16944_v5 = vld [vmem:[%s23153_s11 + $0x5b0] sm:$0xff]   ;;  %v16945_v6 = vld [vmem:[%s23153_s11 + $0x568] sm:$0xff]  }
  0x88   :  { %15474 = vmatprep.subr.bf16.mxu1 %v16886_v7  ;;  %v16946_v7 = vld [vmem:[%s23153_s11 + $0x5e8] sm:$0xff]  }
  0x8a   :  { %15453 = vmatpush3.bf16.msra.mxu0 %v16887_v8  ;;  %v16947_v8 = vld [vmem:[%s23153_s11 + $0x528] sm:$0xff]  }
  0x8b   :  { %15475 = vmatpush3.bf16.msra.mxu1 %v16888_v9  ;;  %15454 = vmatprep.subr.bf16.mxu0 %v16889_v10  ;;  %v16948_v9 = vld [vmem:[%s23153_s11 + $0x5a8] sm:$0xff]   ;;  %v16949_v10 = vld [vmem:[%s23153_s11 + $0x560] sm:$0xff]  }
  0x8c   :  { %15476 = vmatprep.subr.bf16.mxu1 %v16890_v11  ;;  %v16950_v11 = vld [vmem:[%s23153_s11 + $0x5e0] sm:$0xff]  }
  0x8e   :  { %15455 = vmatpush3.bf16.msra.mxu0 %v16891_v12  ;;  %v16951_v12 = vld [vmem:[%s23153_s11 + $0x520] sm:$0xff]  }
  0x8f   :  { %15477 = vmatpush3.bf16.msra.mxu1 %v16892_v13  ;;  %15456 = vmatprep.subr.bf16.mxu0 %v16893_v14  ;;  %v16952_v13 = vld [vmem:[%s23153_s11 + $0x5a0] sm:$0xff]   ;;  %v16953_v14 = vld [vmem:[%s23153_s11 + $0x558] sm:$0xff]  }
  0x90   :  { %15478 = vmatprep.subr.bf16.mxu1 %v16894_v15  ;;  %v16954_v15 = vld [vmem:[%s23153_s11 + $0x5d8] sm:$0xff]  }
  0x92   :  { %15457 = vmatpush3.bf16.msra.mxu0 %v16895_v16  ;;  %v16955_v16 = vld [vmem:[%s23153_s11 + $0x518] sm:$0xff]  }
  0x93   :  { %15479 = vmatpush3.bf16.msra.mxu1 %v16896_v17  ;;  %15486 = vmatprep.subr.bf16.mxu0 %v16901_v23  ;;  %v16956_v17 = vld [vmem:[%s23153_s11 + $0x598] sm:$0xff]   ;;  %v16962_v23 = vld [vmem:[%s23153_s11 + $0x5c8] sm:$0xff]  }
  0x94   :  { %15508 = vmatprep.subr.bf16.mxu1 %v16902_v25  ;;  %v16964_v25 = vld [vmem:[%s23153_s11 + $0x588] sm:$0xff]  }
  0x95   :  { %6892 = vmatmul.mubr.bf16.vlgmr.msra.gmra.mxu0 %v13853_v20  ;;  %v16959_v20 = vld [vmem:[%s23153_s11 + $0x510] sm:$0xff]  }
  0x96   :  { %6932 = vmatmul.mubr.bf16.vlgmr.msra.gmra.mxu1 %v13855_v22  ;;  %15487 = vmatpush3.bf16.msra.mxu0 %v16903_v26  ;;  %v16961_v22 = vld [vmem:[%s23153_s11 + $0x548] sm:$0xff]   ;;  %v16965_v26 = vld [vmem:[%s23153_s11 + $0x540] sm:$0xff]  }
  0x97   :  { %15509 = vmatpush3.bf16.msra.mxu1 %v16904_v27  ;;  %15488 = vmatprep.subr.bf16.mxu0 %v16905_v28  ;;  %v16966_v27 = vld [vmem:[%s23153_s11 + $0x5c0] sm:$0xff]  }
  0x98   :  { %15510 = vmatprep.subr.bf16.mxu1 %v16906_v29  ;;  %6971 = vmatprep.mubr.bf16.mxu0 %v13858_v58  ;;  %v16967_v28 = vld [vmem:[%s23153_s11 + $0x500] sm:$0xff]   ;;  %v16995_v58 = vld [vmem:[%s23153_s11 + $0x610] sm:$0xff]  }
  0x99   :  { %7011 = vmatprep.mubr.bf16.mxu1 %v13860_v61  ;;  %v16968_v29 = vld [vmem:[%s23153_s11 + $0x580] sm:$0xff]   ;;  %v16998_v61 = vld [vmem:[%s23153_s11 + $0x6c8] sm:$0xff]  }
  0x9a   :  { %15489 = vmatpush3.bf16.msra.mxu0 %v16907_v30  ;;  %v94_v30 = vld [vmem:[%s23154_s7 + $0x50] sm:$0xff] }
  0x9b   :  { %15511 = vmatpush3.bf16.msra.mxu1 %v16908_v31  ;;  %15490 = vmatprep.subr.bf16.mxu0 %v16909_v32  ;;  %v95_v31 = vld [vmem:[%s23154_s7 + $0x58] sm:$0xff]  ;;  %v13861_v32 = vcombine.low %v94_v30, %v94_v30 }
  0x9c   :  { %15512 = vmatprep.subr.bf16.mxu1 %v16910_v33  ;;  %v13862_v33 = vcombine.high %v94_v30, %v94_v30  ;;  %v17016_v30 = vld [vmem:[%s23153_s11 + $0x7b0] sm:$0xff]  }
  0x9e   :  { %15491 = vmatpush3.bf16.msra.mxu0 %v16911_v34  ;;  %v13863_v34 = vcombine.low %v95_v31, %v95_v31 }
  0x9f   :  { %15513 = vmatpush3.bf16.msra.mxu1 %v16912_v35  ;;  %15492 = vmatprep.subr.bf16.mxu0 %v16913_v36  ;;  %v13864_v35 = vcombine.high %v95_v31, %v95_v31  ;;  %v16973_v36 = vld [vmem:[%s23153_s11 + $0x678] sm:$0xff]   ;;  %v17017_v31 = vld [vmem:[%s23153_s11 + $0x768] sm:$0xff]  }
  0xa0   :  { %15514 = vmatprep.subr.bf16.mxu1 %v16914_v37  ;;  %v16974_v37 = vld [vmem:[%s23153_s11 + $0x6f8] sm:$0xff]  }
  0xa2   :  { %15493 = vmatpush3.bf16.msra.mxu0 %v16915_v38  ;;  %v16975_v38 = vld [vmem:[%s23153_s11 + $0x638] sm:$0xff]  }
  0xa3   :  { %15515 = vmatpush3.bf16.msra.mxu1 %v16916_v39  ;;  %15494 = vmatprep.subr.bf16.mxu0 %v16917_v40  ;;  %v16976_v39 = vld [vmem:[%s23153_s11 + $0x6b8] sm:$0xff]   ;;  %v16977_v40 = vld [vmem:[%s23153_s11 + $0x670] sm:$0xff]  }
  0xa4   :  { %15516 = vmatprep.subr.bf16.mxu1 %v16918_v41  ;;  %v16978_v41 = vld [vmem:[%s23153_s11 + $0x6f0] sm:$0xff]  }
  0xa6   :  { %15495 = vmatpush3.bf16.msra.mxu0 %v16919_v42  ;;  %v16979_v42 = vld [vmem:[%s23153_s11 + $0x630] sm:$0xff]  }
  0xa7   :  { %15517 = vmatpush3.bf16.msra.mxu1 %v16920_v43  ;;  %15496 = vmatprep.subr.bf16.mxu0 %v16921_v44  ;;  %v16980_v43 = vld [vmem:[%s23153_s11 + $0x6b0] sm:$0xff]   ;;  %v16981_v44 = vld [vmem:[%s23153_s11 + $0x668] sm:$0xff]  }
  0xa8   :  { %15518 = vmatprep.subr.bf16.mxu1 %v16922_v45  ;;  %v16982_v45 = vld [vmem:[%s23153_s11 + $0x6e8] sm:$0xff]  }
  0xaa   :  { %15497 = vmatpush3.bf16.msra.mxu0 %v16923_v46  ;;  %v16983_v46 = vld [vmem:[%s23153_s11 + $0x628] sm:$0xff]  }
  0xab   :  { %15519 = vmatpush3.bf16.msra.mxu1 %v16924_v47  ;;  %15498 = vmatprep.subr.bf16.mxu0 %v16925_v48  ;;  %v16984_v47 = vld [vmem:[%s23153_s11 + $0x6a8] sm:$0xff]   ;;  %v16985_v48 = vld [vmem:[%s23153_s11 + $0x660] sm:$0xff]  }
  0xac   :  { %15520 = vmatprep.subr.bf16.mxu1 %v16926_v49  ;;  %v16986_v49 = vld [vmem:[%s23153_s11 + $0x6e0] sm:$0xff]  }
  0xae   :  { %15499 = vmatpush3.bf16.msra.mxu0 %v16927_v50  ;;  %v16987_v50 = vld [vmem:[%s23153_s11 + $0x620] sm:$0xff]  }
  0xaf   :  { %15521 = vmatpush3.bf16.msra.mxu1 %v16928_v51  ;;  %15500 = vmatprep.subr.bf16.mxu0 %v16929_v52  ;;  %v16988_v51 = vld [vmem:[%s23153_s11 + $0x6a0] sm:$0xff]   ;;  %v16989_v52 = vld [vmem:[%s23153_s11 + $0x658] sm:$0xff]  }
  0xb0   :  { %15522 = vmatprep.subr.bf16.mxu1 %v16930_v53  ;;  %v16990_v53 = vld [vmem:[%s23153_s11 + $0x6d8] sm:$0xff]  }
  0xb2   :  { %15501 = vmatpush3.bf16.msra.mxu0 %v16931_v54  ;;  %v16991_v54 = vld [vmem:[%s23153_s11 + $0x618] sm:$0xff]  }
  0xb3   :  { %15523 = vmatpush3.bf16.msra.mxu1 %v16932_v55  ;;  %15530 = vmatprep.subr.bf16.mxu0 %v16937_v62  ;;  %v16992_v55 = vld [vmem:[%s23153_s11 + $0x698] sm:$0xff]   ;;  %v16999_v62 = vld [vmem:[%s23153_s11 + $0x608] sm:$0xff]  }
  0xb4   :  { %15552 = vmatprep.subr.bf16.mxu1 %v16938_v63  ;;  %v17000_v63 = vld [vmem:[%s23153_s11 + $0x688] sm:$0xff]  }
  0xb5   :  { %6972 = vmatmul.mubr.bf16.vlgmr.msra.gmra.mxu0 %v13857_v57  ;;  %v16994_v57 = vld [vmem:[%s23153_s11 + $0x6d0] sm:$0xff]  }
  0xb6   :  { %7012 = vmatmul.mubr.bf16.vlgmr.msra.gmra.mxu1 %v13859_v60  ;;  %15531 = vmatpush3.bf16.msra.mxu0 %v16939_v0  ;;  %v16997_v60 = vld [vmem:[%s23153_s11 + $0x648] sm:$0xff]   ;;  %v17001_v0 = vld [vmem:[%s23153_s11 + $0x640] sm:$0xff]  }
  0xb7   :  { %15553 = vmatpush3.bf16.msra.mxu1 %v16940_v1  ;;  %15532 = vmatprep.subr.bf16.mxu0 %v16941_v2  ;;  %v17002_v1 = vld [vmem:[%s23153_s11 + $0x6c0] sm:$0xff]  }
  0xb8   :  { %15554 = vmatprep.subr.bf16.mxu1 %v16942_v3  ;;  %7051 = vmatprep.mubr.bf16.mxu0 %v13862_v33  ;;  %v17003_v2 = vld [vmem:[%s23153_s11 + $0x600] sm:$0xff]   ;;  %v17019_v33 = vld [vmem:[%s23153_s11 + $0x728] sm:$0xff]  }
  0xb9   :  { %7091 = vmatprep.mubr.bf16.mxu1 %v13864_v35  ;;  %v17004_v3 = vld [vmem:[%s23153_s11 + $0x680] sm:$0xff]  }
  0xba   :  { %15533 = vmatpush3.bf16.msra.mxu0 %v16943_v4  ;;  %v96_v4 = vld [vmem:[%s23154_s7 + $0x60] sm:$0xff] }
  0xbb   :  { %15555 = vmatpush3.bf16.msra.mxu1 %v16944_v5  ;;  %15534 = vmatprep.subr.bf16.mxu0 %v16945_v6  ;;  %v97_v5 = vld [vmem:[%s23154_s7 + $0x68] sm:$0xff]  ;;  %v17021_v35 = vld [vmem:[%s23153_s11 + $0x760] sm:$0xff]  }
  0xbc   :  { %15556 = vmatprep.subr.bf16.mxu1 %v16946_v7 }
  0xbe   :  { %15535 = vmatpush3.bf16.msra.mxu0 %v16947_v8  ;;  %v13865_v8 = vcombine.low %v96_v4, %v96_v4 }
  0xbf   :  { %15557 = vmatpush3.bf16.msra.mxu1 %v16948_v9  ;;  %15536 = vmatprep.subr.bf16.mxu0 %v16949_v10  ;;  %v13866_v9 = vcombine.high %v96_v4, %v96_v4  ;;  %v13867_v10 = vcombine.low %v97_v5, %v97_v5 }
  0xc0   :  { %15558 = vmatprep.subr.bf16.mxu1 %v16950_v11  ;;  %v17009_v11 = vld [vmem:[%s23153_s11 + $0x778] sm:$0xff]  }
  0xc2   :  { %15537 = vmatpush3.bf16.msra.mxu0 %v16951_v12  ;;  %v13868_v12 = vcombine.high %v97_v5, %v97_v5 }
  0xc3   :  { %15559 = vmatpush3.bf16.msra.mxu1 %v16952_v13  ;;  %15538 = vmatprep.subr.bf16.mxu0 %v16953_v14  ;;  %v17010_v13 = vld [vmem:[%s23153_s11 + $0x7f8] sm:$0xff]  }
  0xc4   :  { %15560 = vmatprep.subr.bf16.mxu1 %v16954_v15 }
  0xc6   :  { %15539 = vmatpush3.bf16.msra.mxu0 %v16955_v16  ;;  %v17011_v16 = vld [vmem:[%s23153_s11 + $0x738] sm:$0xff]  }
  0xc7   :  { %15561 = vmatpush3.bf16.msra.mxu1 %v16956_v17  ;;  %15540 = vmatprep.subr.bf16.mxu0 %v16957_v18 }
  0xc8   :  { %15562 = vmatprep.subr.bf16.mxu1 %v16958_v19  ;;  %v17012_v19 = vld [vmem:[%s23153_s11 + $0x7b8] sm:$0xff]  }
  0xca   :  { %15541 = vmatpush3.bf16.msra.mxu0 %v16959_v20  ;;  %v13840_v20 = vld [vmem:[%s23155_s9] ss:$0 sm:$0xff] }
  0xcb   :  { %15563 = vmatpush3.bf16.msra.mxu1 %v16960_v21  ;;  %15542 = vmatprep.subr.bf16.mxu0 %v16961_v22 }
  0xcc   :  { %15564 = vmatprep.subr.bf16.mxu1 %v16962_v23 }
  0xce   :  { %15543 = vmatpush3.bf16.msra.mxu0 %v16963_v24  ;;  %v17013_v24 = vld [vmem:[%s23153_s11 + $0x770] sm:$0xff]  }
  0xcf   :  { %15565 = vmatpush3.bf16.msra.mxu1 %v16964_v25  ;;  %15544 = vmatprep.subr.bf16.mxu0 %v16965_v26  ;;  %v17014_v25 = vld [vmem:[%s23153_s11 + $0x7f0] sm:$0xff]  }
  0xd0   :  { %15566 = vmatprep.subr.bf16.mxu1 %v16966_v27 }
  0xd2   :  { %15545 = vmatpush3.bf16.msra.mxu0 %v16967_v28 }
  0xd3   :  { %15567 = vmatpush3.bf16.msra.mxu1 %v16968_v29  ;;  %15574 = vmatprep.subr.bf16.mxu0 %v16973_v36  ;;  %v17015_v29 = vld [vmem:[%s23153_s11 + $0x730] sm:$0xff]   ;;  %v17022_v36 = vld [vmem:[%s23153_s11 + $0x7e0] sm:$0xff]  }
  0xd4   :  { %15596 = vmatprep.subr.bf16.mxu1 %v16974_v37  ;;  %v17023_v37 = vld [vmem:[%s23153_s11 + $0x720] sm:$0xff]  }
  0xd5   :  { %7052 = vmatmul.mubr.bf16.vlgmr.msra.gmra.mxu0 %v13861_v32  ;;  %v17018_v32 = vld [vmem:[%s23153_s11 + $0x7e8] sm:$0xff]  }
  0xd6   :  { %7092 = vmatmul.mubr.bf16.vlgmr.msra.gmra.mxu1 %v13863_v34  ;;  %15575 = vmatpush3.bf16.msra.mxu0 %v16975_v38  ;;  %v17020_v34 = vld [vmem:[%s23153_s11 + $0x7a8] sm:$0xff]   ;;  %v17024_v38 = vld [vmem:[%s23153_s11 + $0x7a0] sm:$0xff]  }
  0xd7   :  { %15597 = vmatpush3.bf16.msra.mxu1 %v16976_v39  ;;  %15576 = vmatprep.subr.bf16.mxu0 %v16977_v40  ;;  %v17025_v39 = vld [vmem:[%s23153_s11 + $0x758] sm:$0xff]  }
  0xd8   :  { %15598 = vmatprep.subr.bf16.mxu1 %v16978_v41  ;;  %7131 = vmatprep.mubr.bf16.mxu0 %v13866_v9  ;;  %v17026_v40 = vld [vmem:[%s23153_s11 + $0x7d8] sm:$0xff]  }
  0xd9   :  { %7171 = vmatprep.mubr.bf16.mxu1 %v13868_v12  ;;  %v17027_v41 = vld [vmem:[%s23153_s11 + $0x718] sm:$0xff]  }
  0xda   :  { %15577 = vmatpush3.bf16.msra.mxu0 %v16979_v42  ;;  %v17028_v42 = vld [vmem:[%s23153_s11 + $0x798] sm:$0xff]  }
  0xdb   :  { %15599 = vmatpush3.bf16.msra.mxu1 %v16980_v43  ;;  %15578 = vmatprep.subr.bf16.mxu0 %v16981_v44  ;;  %v17029_v43 = vld [vmem:[%s23153_s11 + $0x750] sm:$0xff]  }
  0xdc   :  { %15600 = vmatprep.subr.bf16.mxu1 %v16982_v45  ;;  %v17030_v44 = vld [vmem:[%s23153_s11 + $0x7d0] sm:$0xff]  }
  0xdd   :  { %v17031_v45 = vld [vmem:[%s23153_s11 + $0x710] sm:$0xff]  }
  0xde   :  { %15579 = vmatpush3.bf16.msra.mxu0 %v16983_v46  ;;  %v17032_v46 = vld [vmem:[%s23153_s11 + $0x790] sm:$0xff]  }
  0xdf   :  { %15601 = vmatpush3.bf16.msra.mxu1 %v16984_v47  ;;  %15580 = vmatprep.subr.bf16.mxu0 %v16985_v48  ;;  %v17033_v47 = vld [vmem:[%s23153_s11 + $0x748] sm:$0xff]  }
  0xe0   :  { %15602 = vmatprep.subr.bf16.mxu1 %v16986_v49  ;;  %v17034_v48 = vld [vmem:[%s23153_s11 + $0x7c8] sm:$0xff]  }
  0xe1   :  { %v17035_v49 = vld [vmem:[%s23153_s11 + $0x708] sm:$0xff]  }
  0xe2   :  { %15581 = vmatpush3.bf16.msra.mxu0 %v16987_v50  ;;  %v17036_v50 = vld [vmem:[%s23153_s11 + $0x788] sm:$0xff]  }
  0xe3   :  { %15603 = vmatpush3.bf16.msra.mxu1 %v16988_v51  ;;  %15582 = vmatprep.subr.bf16.mxu0 %v16989_v52  ;;  %v17037_v51 = vld [vmem:[%s23153_s11 + $0x740] sm:$0xff]  }
  0xe4   :  { %15604 = vmatprep.subr.bf16.mxu1 %v16990_v53  ;;  %v17038_v52 = vld [vmem:[%s23153_s11 + $0x7c0] sm:$0xff]  }
  0xe5   :  { %v17039_v53 = vld [vmem:[%s23153_s11 + $0x700] sm:$0xff]  }
  0xe6   :  { %15583 = vmatpush3.bf16.msra.mxu0 %v16991_v54  ;;  %v17040_v54 = vld [vmem:[%s23153_s11 + $0x780] sm:$0xff]  }
  0xe7   :  { %15605 = vmatpush3.bf16.msra.mxu1 %v16992_v55  ;;  %15584 = vmatprep.subr.bf16.mxu0 %v16993_v56  ;;  %v98_v55 = vld [vmem:[%s23154_s7 + $0x70] sm:$0xff]  ;;  %v99_v56 = vld [vmem:[%s23154_s7 + $0x78] sm:$0xff] }
  0xe8   :  { %15606 = vmatprep.subr.bf16.mxu1 %v16994_v57 }
  0xea   :  { %15585 = vmatpush3.bf16.msra.mxu0 %v16995_v58 }
  0xeb   :  { %15607 = vmatpush3.bf16.msra.mxu1 %v16996_v59  ;;  %15586 = vmatprep.subr.bf16.mxu0 %v16997_v60  ;;  %v13869_v59 = vcombine.low %v98_v55, %v98_v55  ;;  %v13870_v60 = vcombine.high %v98_v55, %v98_v55 }
  0xec   :  { %15608 = vmatprep.subr.bf16.mxu1 %v16998_v61  ;;  %v13871_v61 = vcombine.low %v99_v56, %v99_v56 }
  0xee   :  { %15587 = vmatpush3.bf16.msra.mxu0 %v16999_v62  ;;  %v17045_v62 = vld [vmem:[%s23153_s11 + $0x878] sm:$0xff]  }
  0xef   :  { %15609 = vmatpush3.bf16.msra.mxu1 %v17000_v63  ;;  %15588 = vmatprep.subr.bf16.mxu0 %v17001_v0  ;;  %v13872_v63 = vcombine.high %v99_v56, %v99_v56  ;;  %v17046_v0 = vld [vmem:[%s23153_s11 + $0x8f8] sm:$0xff]  }
  0xf0   :  { %15610 = vmatprep.subr.bf16.mxu1 %v17002_v1 }
  0xf2   :  { %15589 = vmatpush3.bf16.msra.mxu0 %v17003_v2 }
  0xf3   :  { %15611 = vmatpush3.bf16.msra.mxu1 %v17004_v3  ;;  %15618 = vmatprep.subr.bf16.mxu0 %v17009_v11  ;;  %v17047_v3 = vld [vmem:[%s23153_s11 + $0x838] sm:$0xff]   ;;  %v17050_v11 = vld [vmem:[%s23153_s11 + $0x8f0] sm:$0xff]  }
  0xf4   :  { %15640 = vmatprep.subr.bf16.mxu1 %v17010_v13 }
  0xf5   :  { %v15326_v6 = vpop.f32.mrf.mxu0  ;;  %7132 = vmatmul.mubr.bf16.vlgmr.msra.gmra.mxu0 %v13865_v8 }
  0xf6   :  { %v15348_v7 = vpop.f32.mrf.mxu1  ;;  %7172 = vmatmul.mubr.bf16.vlgmr.msra.gmra.mxu1 %v13867_v10  ;;  %15619 = vmatpush3.bf16.msra.mxu0 %v17011_v16  ;;  %v17049_v10 = vld [vmem:[%s23153_s11 + $0x870] sm:$0xff]  }
  0xf7   :  { %v15327_v14 = vpop.f32.mrf.mxu0  ;;  %15641 = vmatpush3.bf16.msra.mxu1 %v17012_v19  ;;  %15620 = vmatprep.subr.bf16.mxu0 %v17013_v24  ;;  %v17052_v16 = vld [vmem:[%s23153_s11 + $0x8b0] sm:$0xff]   ;;  %v17055_v19 = vld [vmem:[%s23153_s11 + $0x828] sm:$0xff]   ;;  %v17060_v24 = vld [vmem:[%s23153_s11 + $0x8a0] sm:$0xff]  }
  0xf8   :  { %v15349_v15 = vpop.f32.mrf.mxu1  ;;  %v15328_v17 = vadd.f32 %v15327_v14, %v15326_v6  ;;  %15642 = vmatprep.subr.bf16.mxu1 %v17014_v25  ;;  %7211 = vmatprep.mubr.bf16.mxu0 %v13870_v60  ;;  %v17048_v6 = vld [vmem:[%s23153_s11 + $0x8b8] sm:$0xff]   ;;  %v17085_v60 = vld [vmem:[%s23153_s11 + $0x970] sm:$0xff]  }
  0xf9   :  { %v15350_v18 = vadd.f32 %v15349_v15, %v15348_v7  ;;  %v15329_v21 = vpop.f32.mrf.mxu0  ;;  %7251 = vmatprep.mubr.bf16.mxu1 %v13872_v63  ;;  %v17051_v15 = vld [vmem:[%s23153_s11 + $0x830] sm:$0xff]   ;;  %v17061_v25 = vld [vmem:[%s23153_s11 + $0x858] sm:$0xff]  }
  0xfa   :  { %v15351_v22 = vpop.f32.mrf.mxu1  ;;  %v6654_v23 = vadd.f32 %v15328_v17, %v13840_v20  ;;  %15621 = vmatpush3.bf16.msra.mxu0 %v17015_v29  ;;  %v17053_v17 = vld [vmem:[%s23153_s11 + $0x868] sm:$0xff]   ;;  %v17057_v21 = vld [vmem:[%s23153_s11 + $0x860] sm:$0xff]   ;;  %v17065_v29 = vld [vmem:[%s23153_s11 + $0x850] sm:$0xff]  }
  0xfb   :  { %v15330_v26 = vpop.f32.mrf.mxu0  ;;  %15643 = vmatpush3.bf16.msra.mxu1 %v17016_v30  ;;  %15622 = vmatprep.subr.bf16.mxu0 %v17017_v31  ;;  %v17056_v20 = vld [vmem:[%s23153_s11 + $0x8a8] sm:$0xff]   ;;  %v17058_v22 = vld [vmem:[%s23153_s11 + $0x8e0] sm:$0xff]   ;;  %v17066_v30 = vld [vmem:[%s23153_s11 + $0x8d0] sm:$0xff]  }
  0xfc   :  { %v15352_v27 = vpop.f32.mrf.mxu1  ;;  %v19272_v28 = vadd.f32 %v15350_v18, %v6654_v23  ;;  %15644 = vmatprep.subr.bf16.mxu1 %v17018_v32  ;;  %v17054_v18 = vld [vmem:[%s23153_s11 + $0x8e8] sm:$0xff]   ;;  %v17059_v23 = vld [vmem:[%s23153_s11 + $0x820] sm:$0xff]   ;;  %v17062_v26 = vld [vmem:[%s23153_s11 + $0x8d8] sm:$0xff]  }
  0xfd   :  { %v17063_v27 = vld [vmem:[%s23153_s11 + $0x818] sm:$0xff]   ;;  %v17067_v31 = vld [vmem:[%s23153_s11 + $0x810] sm:$0xff]  }
  0xfe   :  { %15623 = vmatpush3.bf16.msra.mxu0 %v17019_v33  ;;  %v17068_v32 = vld [vmem:[%s23153_s11 + $0x890] sm:$0xff]   ;;  %v17069_v33 = vld [vmem:[%s23153_s11 + $0x848] sm:$0xff]  }
  0xff   :  { %15645 = vmatpush3.bf16.msra.mxu1 %v17020_v34  ;;  %15624 = vmatprep.subr.bf16.mxu0 %v17021_v35  ;;  %v17070_v34 = vld [vmem:[%s23153_s11 + $0x8c8] sm:$0xff]   ;;  %v17086_v63 = vld [vmem:[%s23153_s11 + $0x9f0] sm:$0xff]  }
 0x100   :  { %15646 = vmatprep.subr.bf16.mxu1 %v17022_v36  ;;  %v17071_v35 = vld [vmem:[%s23153_s11 + $0x808] sm:$0xff]  }
 0x101   :  { %v17072_v36 = vld [vmem:[%s23153_s11 + $0x888] sm:$0xff]  }
 0x102   :  { %15625 = vmatpush3.bf16.msra.mxu0 %v17023_v37  ;;  %v17073_v37 = vld [vmem:[%s23153_s11 + $0x840] sm:$0xff]  }
 0x103   :  { %15647 = vmatpush3.bf16.msra.mxu1 %v17024_v38  ;;  %15626 = vmatprep.subr.bf16.mxu0 %v17025_v39  ;;  %v17074_v38 = vld [vmem:[%s23153_s11 + $0x8c0] sm:$0xff]  }
 0x104   :  { %15648 = vmatprep.subr.bf16.mxu1 %v17026_v40  ;;  %v17075_v39 = vld [vmem:[%s23153_s11 + $0x800] sm:$0xff]  }
 0x105   :  { %v17076_v40 = vld [vmem:[%s23153_s11 + $0x880] sm:$0xff]  }
 0x106   :  { %15627 = vmatpush3.bf16.msra.mxu0 %v17027_v41  ;;  %v100_v41 = vld [vmem:[%s23154_s7 + $0x80] sm:$0xff] }
 0x107   :  { %15649 = vmatpush3.bf16.msra.mxu1 %v17028_v42  ;;  %15628 = vmatprep.subr.bf16.mxu0 %v17029_v43  ;;  %v13873_v43 = vcombine.low %v100_v41, %v100_v41 }
 0x108   :  { %15650 = vmatprep.subr.bf16.mxu1 %v17030_v44  ;;  %v13874_v44 = vcombine.high %v100_v41, %v100_v41  ;;  %v17120_v41 = vld [vmem:[%s23153_s11 + $0xab8] sm:$0xff]  }
 0x10a   :  { %15629 = vmatpush3.bf16.msra.mxu0 %v17031_v45  ;;  %v101_v45 = vld [vmem:[%s23154_s7 + $0x88] sm:$0xff] }
 0x10b   :  { %15651 = vmatpush3.bf16.msra.mxu1 %v17032_v46  ;;  %15630 = vmatprep.subr.bf16.mxu0 %v17033_v47  ;;  %v13875_v47 = vcombine.low %v101_v45, %v101_v45 }
 0x10c   :  { %15652 = vmatprep.subr.bf16.mxu1 %v17034_v48  ;;  %v13876_v48 = vcombine.high %v101_v45, %v101_v45 }
 0x10e   :  { %15631 = vmatpush3.bf16.msra.mxu0 %v17035_v49  ;;  %v17081_v49 = vld [vmem:[%s23153_s11 + $0x978] sm:$0xff]  }
 0x10f   :  { %15653 = vmatpush3.bf16.msra.mxu1 %v17036_v50  ;;  %15632 = vmatprep.subr.bf16.mxu0 %v17037_v51  ;;  %v17082_v51 = vld [vmem:[%s23153_s11 + $0x9f8] sm:$0xff]  }
 0x110   :  { %15654 = vmatprep.subr.bf16.mxu1 %v17038_v52 }
 0x112   :  { %15633 = vmatpush3.bf16.msra.mxu0 %v17039_v53 }
 0x113   :  { %15655 = vmatpush3.bf16.msra.mxu1 %v17040_v54  ;;  %15662 = vmatprep.subr.bf16.mxu0 %v17045_v62  ;;  %v17083_v54 = vld [vmem:[%s23153_s11 + $0x938] sm:$0xff]  }
 0x114   :  { %15684 = vmatprep.subr.bf16.mxu1 %v17046_v0 }
 0x115   :  { %v15370_v57 = vpop.f32.mrf.mxu0  ;;  %7212 = vmatmul.mubr.bf16.vlgmr.msra.gmra.mxu0 %v13869_v59 }
 0x116   :  { %v15392_v58 = vpop.f32.mrf.mxu1  ;;  %7252 = vmatmul.mubr.bf16.vlgmr.msra.gmra.mxu1 %v13871_v61  ;;  %15663 = vmatpush3.bf16.msra.mxu0 %v17047_v3  ;;  %v17089_v3 = vld [vmem:[%s23153_s11 + $0x968] sm:$0xff]  }
 0x117   :  { %v15371_v1 = vpop.f32.mrf.mxu0  ;;  %15685 = vmatpush3.bf16.msra.mxu1 %v17048_v6  ;;  %15664 = vmatprep.subr.bf16.mxu0 %v17049_v10  ;;  %v17092_v6 = vld [vmem:[%s23153_s11 + $0x9a8] sm:$0xff]   ;;  %v17096_v10 = vld [vmem:[%s23153_s11 + $0x9a0] sm:$0xff]  }
 0x118   :  { %v15393_v2 = vpop.f32.mrf.mxu1  ;;  %v15372_v4 = vadd.f32 %v15371_v1, %v15370_v57  ;;  %15686 = vmatprep.subr.bf16.mxu1 %v17050_v11  ;;  %7291 = vmatprep.mubr.bf16.mxu0 %v13874_v44  ;;  %v17084_v57 = vld [vmem:[%s23153_s11 + $0x9b8] sm:$0xff]   ;;  %v17087_v1 = vld [vmem:[%s23153_s11 + $0x930] sm:$0xff]  }
 0x119   :  { %v15394_v5 = vadd.f32 %v15393_v2, %v15392_v58  ;;  %v15373_v7 = vpop.f32.mrf.mxu0  ;;  %7331 = vmatprep.mubr.bf16.mxu1 %v13876_v48  ;;  %v17088_v2 = vld [vmem:[%s23153_s11 + $0x9b0] sm:$0xff]   ;;  %v17097_v11 = vld [vmem:[%s23153_s11 + $0x958] sm:$0xff]  }
 0x11a   :  { %v15395_v8 = vpop.f32.mrf.mxu1  ;;  %v6734_v9 = vadd.f32 %v15372_v4, %v19272_v28  ;;  %15665 = vmatpush3.bf16.msra.mxu0 %v17051_v15  ;;  %v17064_v28 = vld [vmem:[%s23153_s11 + $0x898] sm:$0xff]   ;;  %v17090_v4 = vld [vmem:[%s23153_s11 + $0x9e8] sm:$0xff]   ;;  %v17093_v7 = vld [vmem:[%s23153_s11 + $0x960] sm:$0xff]  }
 0x11b   :  { %v15374_v12 = vpop.f32.mrf.mxu0  ;;  %15687 = vmatpush3.bf16.msra.mxu1 %v17052_v16  ;;  %15666 = vmatprep.subr.bf16.mxu0 %v17053_v17  ;;  %v17094_v8 = vld [vmem:[%s23153_s11 + $0x9e0] sm:$0xff]   ;;  %v17101_v15 = vld [vmem:[%s23153_s11 + $0x950] sm:$0xff]  }
 0x11c   :  { %v15396_v13 = vpop.f32.mrf.mxu1  ;;  %v19377_v14 = vadd.f32 %v15394_v5, %v6734_v9  ;;  %15688 = vmatprep.subr.bf16.mxu1 %v17054_v18  ;;  %v17091_v5 = vld [vmem:[%s23153_s11 + $0x928] sm:$0xff]   ;;  %v17095_v9 = vld [vmem:[%s23153_s11 + $0x920] sm:$0xff]   ;;  %v17098_v12 = vld [vmem:[%s23153_s11 + $0x9d8] sm:$0xff]  }
 0x11d   :  { %v17099_v13 = vld [vmem:[%s23153_s11 + $0x918] sm:$0xff]   ;;  %v17102_v16 = vld [vmem:[%s23153_s11 + $0x9d0] sm:$0xff]  }
 0x11e   :  { %15667 = vmatpush3.bf16.msra.mxu0 %v17055_v19  ;;  %v17103_v17 = vld [vmem:[%s23153_s11 + $0x910] sm:$0xff]   ;;  %v17105_v19 = vld [vmem:[%s23153_s11 + $0x948] sm:$0xff]  }
 0x11f   :  { %15689 = vmatpush3.bf16.msra.mxu1 %v17056_v20  ;;  %15668 = vmatprep.subr.bf16.mxu0 %v17057_v21  ;;  %v17104_v18 = vld [vmem:[%s23153_s11 + $0x990] sm:$0xff]   ;;  %v17106_v20 = vld [vmem:[%s23153_s11 + $0x9c8] sm:$0xff]  }
 0x120   :  { %15690 = vmatprep.subr.bf16.mxu1 %v17058_v22  ;;  %v17107_v21 = vld [vmem:[%s23153_s11 + $0x908] sm:$0xff]  }
 0x121   :  { %v17108_v22 = vld [vmem:[%s23153_s11 + $0x988] sm:$0xff]  }
 0x122   :  { %15669 = vmatpush3.bf16.msra.mxu0 %v17059_v23  ;;  %v17109_v23 = vld [vmem:[%s23153_s11 + $0x940] sm:$0xff]  }
 0x123   :  { %15691 = vmatpush3.bf16.msra.mxu1 %v17060_v24  ;;  %15670 = vmatprep.subr.bf16.mxu0 %v17061_v25  ;;  %v17110_v24 = vld [vmem:[%s23153_s11 + $0x9c0] sm:$0xff]  }
 0x124   :  { %15692 = vmatprep.subr.bf16.mxu1 %v17062_v26  ;;  %v17111_v25 = vld [vmem:[%s23153_s11 + $0x900] sm:$0xff]  }
 0x125   :  { %v17112_v26 = vld [vmem:[%s23153_s11 + $0x980] sm:$0xff]  }
 0x126   :  { %15671 = vmatpush3.bf16.msra.mxu0 %v17063_v27  ;;  %v102_v27 = vld [vmem:[%s23154_s7 + $0x90] sm:$0xff] }
 0x127   :  { %15693 = vmatpush3.bf16.msra.mxu1 %v17064_v28  ;;  %15672 = vmatprep.subr.bf16.mxu0 %v17065_v29  ;;  %v103_v28 = vld [vmem:[%s23154_s7 + $0x98] sm:$0xff] }
 0x128   :  { %15694 = vmatprep.subr.bf16.mxu1 %v17066_v30  ;;  %v13877_v30 = vcombine.low %v102_v27, %v102_v27 }
 0x12a   :  { %15673 = vmatpush3.bf16.msra.mxu0 %v17067_v31  ;;  %v13878_v31 = vcombine.high %v102_v27, %v102_v27 }
 0x12b   :  { %15695 = vmatpush3.bf16.msra.mxu1 %v17068_v32  ;;  %15674 = vmatprep.subr.bf16.mxu0 %v17069_v33  ;;  %v13879_v32 = vcombine.low %v103_v28, %v103_v28  ;;  %v13880_v33 = vcombine.high %v103_v28, %v103_v28  ;;  %v17156_v28 = vld [vmem:[%s23153_s11 + $0xbb8] sm:$0xff]  }
 0x12c   :  { %15696 = vmatprep.subr.bf16.mxu1 %v17070_v34 }
 0x12e   :  { %15675 = vmatpush3.bf16.msra.mxu0 %v17071_v35  ;;  %v17117_v35 = vld [vmem:[%s23153_s11 + $0xa78] sm:$0xff]  }
 0x12f   :  { %15697 = vmatpush3.bf16.msra.mxu1 %v17072_v36  ;;  %15676 = vmatprep.subr.bf16.mxu0 %v17073_v37  ;;  %v17118_v36 = vld [vmem:[%s23153_s11 + $0xaf8] sm:$0xff]  }
 0x130   :  { %15698 = vmatprep.subr.bf16.mxu1 %v17074_v38  ;;  %v17119_v38 = vld [vmem:[%s23153_s11 + $0xa38] sm:$0xff]  }
 0x132   :  { %15677 = vmatpush3.bf16.msra.mxu0 %v17075_v39 }
 0x133   :  { %15699 = vmatpush3.bf16.msra.mxu1 %v17076_v40  ;;  %15706 = vmatprep.subr.bf16.mxu0 %v17081_v49 }
 0x134   :  { %15728 = vmatprep.subr.bf16.mxu1 %v17082_v51 }
 0x135   :  { %v15414_v42 = vpop.f32.mrf.mxu0  ;;  %7292 = vmatmul.mubr.bf16.vlgmr.msra.gmra.mxu0 %v13873_v43 }
 0x136   :  { %v15436_v46 = vpop.f32.mrf.mxu1  ;;  %7332 = vmatmul.mubr.bf16.vlgmr.msra.gmra.mxu1 %v13875_v47  ;;  %15707 = vmatpush3.bf16.msra.mxu0 %v17083_v54  ;;  %v17122_v47 = vld [vmem:[%s23153_s11 + $0xaf0] sm:$0xff]   ;;  %v17126_v54 = vld [vmem:[%s23153_s11 + $0xae8] sm:$0xff]  }
 0x137   :  { %v15415_v50 = vpop.f32.mrf.mxu0  ;;  %15729 = vmatpush3.bf16.msra.mxu1 %v17084_v57  ;;  %15708 = vmatprep.subr.bf16.mxu0 %v17085_v60  ;;  %v17129_v57 = vld [vmem:[%s23153_s11 + $0xa60] sm:$0xff]  }
 0x138   :  { %v15416_v52 = vadd.f32 %v15415_v50, %v15414_v42  ;;  %v15437_v53 = vpop.f32.mrf.mxu1  ;;  %15730 = vmatprep.subr.bf16.mxu1 %v17086_v63  ;;  %7371 = vmatprep.mubr.bf16.mxu0 %v13878_v31  ;;  %v17123_v50 = vld [vmem:[%s23153_s11 + $0xa30] sm:$0xff]   ;;  %v17132_v60 = vld [vmem:[%s23153_s11 + $0xaa0] sm:$0xff]   ;;  %v17135_v63 = vld [vmem:[%s23153_s11 + $0xa18] sm:$0xff]  }
 0x139   :  { %v15438_v55 = vadd.f32 %v15437_v53, %v15436_v46  ;;  %v15417_v56 = vpop.f32.mrf.mxu0  ;;  %7411 = vmatprep.mubr.bf16.mxu1 %v13880_v33  ;;  %v17121_v46 = vld [vmem:[%s23153_s11 + $0xa70] sm:$0xff]   ;;  %v17125_v53 = vld [vmem:[%s23153_s11 + $0xa68] sm:$0xff]  }
 0x13a   :  { %v6814_v58 = vadd.f32 %v15416_v52, %v19377_v14  ;;  %v15439_v59 = vpop.f32.mrf.mxu1  ;;  %15709 = vmatpush3.bf16.msra.mxu0 %v17087_v1  ;;  %v17100_v14 = vld [vmem:[%s23153_s11 + $0x998] sm:$0xff]   ;;  %v17124_v52 = vld [vmem:[%s23153_s11 + $0xab0] sm:$0xff]   ;;  %v17128_v56 = vld [vmem:[%s23153_s11 + $0xaa8] sm:$0xff]  }
 0x13b   :  { %v15418_v61 = vpop.f32.mrf.mxu0  ;;  %15731 = vmatpush3.bf16.msra.mxu1 %v17088_v2  ;;  %15710 = vmatprep.subr.bf16.mxu0 %v17089_v3  ;;  %v17131_v59 = vld [vmem:[%s23153_s11 + $0xa20] sm:$0xff]   ;;  %v17137_v1 = vld [vmem:[%s23153_s11 + $0xa50] sm:$0xff]  }
 0x13c   :  { %v19479_v62 = vadd.f32 %v15438_v55, %v6814_v58  ;;  %v15440_v0 = vpop.f32.mrf.mxu1  ;;  %15732 = vmatprep.subr.bf16.mxu1 %v17090_v4  ;;  %v17127_v55 = vld [vmem:[%s23153_s11 + $0xa28] sm:$0xff]   ;;  %v17130_v58 = vld [vmem:[%s23153_s11 + $0xae0] sm:$0xff]   ;;  %v17133_v61 = vld [vmem:[%s23153_s11 + $0xa58] sm:$0xff]  }
 0x13d   :  { %v17136_v0 = vld [vmem:[%s23153_s11 + $0xa98] sm:$0xff]   ;;  %v17138_v2 = vld [vmem:[%s23153_s11 + $0xad0] sm:$0xff]  }
 0x13e   :  { %15711 = vmatpush3.bf16.msra.mxu0 %v17091_v5  ;;  %v17139_v3 = vld [vmem:[%s23153_s11 + $0xa10] sm:$0xff]   ;;  %v17141_v5 = vld [vmem:[%s23153_s11 + $0xa48] sm:$0xff]  }
 0x13f   :  { %15733 = vmatpush3.bf16.msra.mxu1 %v17092_v6  ;;  %15712 = vmatprep.subr.bf16.mxu0 %v17093_v7  ;;  %v17140_v4 = vld [vmem:[%s23153_s11 + $0xa90] sm:$0xff]   ;;  %v17142_v6 = vld [vmem:[%s23153_s11 + $0xac8] sm:$0xff]  }
 0x140   :  { %15734 = vmatprep.subr.bf16.mxu1 %v17094_v8  ;;  %v17143_v7 = vld [vmem:[%s23153_s11 + $0xa08] sm:$0xff]   ;;  %v17158_v33 = vld [vmem:[%s23153_s11 + $0xbf0] sm:$0xff]  }
 0x141   :  { %v17144_v8 = vld [vmem:[%s23153_s11 + $0xa88] sm:$0xff]  }
 0x142   :  { %15713 = vmatpush3.bf16.msra.mxu0 %v17095_v9  ;;  %v17145_v9 = vld [vmem:[%s23153_s11 + $0xa40] sm:$0xff]  }
 0x143   :  { %15735 = vmatpush3.bf16.msra.mxu1 %v17096_v10  ;;  %15714 = vmatprep.subr.bf16.mxu0 %v17097_v11  ;;  %v17146_v10 = vld [vmem:[%s23153_s11 + $0xac0] sm:$0xff]  }
 0x144   :  { %15736 = vmatprep.subr.bf16.mxu1 %v17098_v12  ;;  %v17147_v11 = vld [vmem:[%s23153_s11 + $0xa00] sm:$0xff]  }
 0x145   :  { %v17148_v12 = vld [vmem:[%s23153_s11 + $0xa80] sm:$0xff]  }
 0x146   :  { %15715 = vmatpush3.bf16.msra.mxu0 %v17099_v13  ;;  %v104_v13 = vld [vmem:[%s23154_s7 + $0xa0] sm:$0xff] }
 0x147   :  { %15737 = vmatpush3.bf16.msra.mxu1 %v17100_v14  ;;  %15716 = vmatprep.subr.bf16.mxu0 %v17101_v15  ;;  %v105_v14 = vld [vmem:[%s23154_s7 + $0xa8] sm:$0xff] }
 0x148   :  { %15738 = vmatprep.subr.bf16.mxu1 %v17102_v16 }
 0x14a   :  { %15717 = vmatpush3.bf16.msra.mxu0 %v17103_v17  ;;  %v13881_v17 = vcombine.low %v104_v13, %v104_v13 }
 0x14b   :  { %15739 = vmatpush3.bf16.msra.mxu1 %v17104_v18  ;;  %15718 = vmatprep.subr.bf16.mxu0 %v17105_v19  ;;  %v13882_v18 = vcombine.high %v104_v13, %v104_v13  ;;  %v13883_v19 = vcombine.low %v105_v14, %v105_v14 }
 0x14c   :  { %15740 = vmatprep.subr.bf16.mxu1 %v17106_v20  ;;  %v17153_v20 = vld [vmem:[%s23153_s11 + $0xb78] sm:$0xff]  }
 0x14e   :  { %15719 = vmatpush3.bf16.msra.mxu0 %v17107_v21  ;;  %v13884_v21 = vcombine.high %v105_v14, %v105_v14 }
 0x14f   :  { %15741 = vmatpush3.bf16.msra.mxu1 %v17108_v22  ;;  %15720 = vmatprep.subr.bf16.mxu0 %v17109_v23  ;;  %v17154_v22 = vld [vmem:[%s23153_s11 + $0xbf8] sm:$0xff]  }
 0x150   :  { %15742 = vmatprep.subr.bf16.mxu1 %v17110_v24 }
 0x152   :  { %15721 = vmatpush3.bf16.msra.mxu0 %v17111_v25  ;;  %v17155_v25 = vld [vmem:[%s23153_s11 + $0xb38] sm:$0xff]  }
 0x153   :  { %15743 = vmatpush3.bf16.msra.mxu1 %v17112_v26  ;;  %15750 = vmatprep.subr.bf16.mxu0 %v17117_v35 }
 0x154   :  { %15772 = vmatprep.subr.bf16.mxu1 %v17118_v36 }
 0x155   :  { %v15458_v29 = vpop.f32.mrf.mxu0  ;;  %7372 = vmatmul.mubr.bf16.vlgmr.msra.gmra.mxu0 %v13877_v30 }
 0x156   :  { %v15480_v34 = vpop.f32.mrf.mxu1  ;;  %7412 = vmatmul.mubr.bf16.vlgmr.msra.gmra.mxu1 %v13879_v32  ;;  %15751 = vmatpush3.bf16.msra.mxu0 %v17119_v38  ;;  %v17157_v32 = vld [vmem:[%s23153_s11 + $0xb70] sm:$0xff]  }
 0x157   :  { %v15459_v37 = vpop.f32.mrf.mxu0  ;;  %15773 = vmatpush3.bf16.msra.mxu1 %v17120_v41  ;;  %15752 = vmatprep.subr.bf16.mxu0 %v17121_v46  ;;  %v17160_v38 = vld [vmem:[%s23153_s11 + $0xbb0] sm:$0xff]   ;;  %v17163_v41 = vld [vmem:[%s23153_s11 + $0xb28] sm:$0xff]   ;;  %v17168_v46 = vld [vmem:[%s23153_s11 + $0xba0] sm:$0xff]  }
 0x158   :  { %v15460_v39 = vadd.f32 %v15459_v37, %v15458_v29  ;;  %v15481_v40 = vpop.f32.mrf.mxu1  ;;  %15774 = vmatprep.subr.bf16.mxu1 %v17122_v47  ;;  %7451 = vmatprep.mubr.bf16.mxu0 %v13882_v18  ;;  %v17159_v37 = vld [vmem:[%s23153_s11 + $0xb30] sm:$0xff]   ;;  %v17169_v47 = vld [vmem:[%s23153_s11 + $0xb58] sm:$0xff]  }
 0x159   :  { %v15482_v42 = vadd.f32 %v15481_v40, %v15480_v34  ;;  %v15461_v43 = vpop.f32.mrf.mxu0  ;;  %7491 = vmatprep.mubr.bf16.mxu1 %v13884_v21  ;;  %v17162_v40 = vld [vmem:[%s23153_s11 + $0xbe8] sm:$0xff]   ;;  %v17193_v18 = vld [vmem:[%s23153_s11 + $0xc70] sm:$0xff]  }
 0x15a   :  { %v6894_v44 = vadd.f32 %v15460_v39, %v19479_v62  ;;  %v15483_v45 = vpop.f32.mrf.mxu1  ;;  %15753 = vmatpush3.bf16.msra.mxu0 %v17123_v50  ;;  %v17134_v62 = vld [vmem:[%s23153_s11 + $0xad8] sm:$0xff]   ;;  %v17161_v39 = vld [vmem:[%s23153_s11 + $0xb68] sm:$0xff]   ;;  %v17165_v43 = vld [vmem:[%s23153_s11 + $0xb60] sm:$0xff]  }
 0x15b   :  { %v15462_v48 = vpop.f32.mrf.mxu0  ;;  %15775 = vmatpush3.bf16.msra.mxu1 %v17124_v52  ;;  %15754 = vmatprep.subr.bf16.mxu0 %v17125_v53  ;;  %v17167_v45 = vld [vmem:[%s23153_s11 + $0xb20] sm:$0xff]   ;;  %v17172_v50 = vld [vmem:[%s23153_s11 + $0xb98] sm:$0xff]   ;;  %v17174_v52 = vld [vmem:[%s23153_s11 + $0xbd0] sm:$0xff]  }
 0x15c   :  { %v19587_v49 = vadd.f32 %v15482_v42, %v6894_v44  ;;  %v15484_v51 = vpop.f32.mrf.mxu1  ;;  %15776 = vmatprep.subr.bf16.mxu1 %v17126_v54  ;;  %v17164_v42 = vld [vmem:[%s23153_s11 + $0xba8] sm:$0xff]   ;;  %v17166_v44 = vld [vmem:[%s23153_s11 + $0xbe0] sm:$0xff]   ;;  %v17170_v48 = vld [vmem:[%s23153_s11 + $0xbd8] sm:$0xff]  }
 0x15d   :  { %v17173_v51 = vld [vmem:[%s23153_s11 + $0xb50] sm:$0xff]  }
 0x15e   :  { %15755 = vmatpush3.bf16.msra.mxu0 %v17127_v55  ;;  %v17175_v53 = vld [vmem:[%s23153_s11 + $0xb10] sm:$0xff]   ;;  %v17177_v55 = vld [vmem:[%s23153_s11 + $0xb48] sm:$0xff]  }
 0x15f   :  { %15777 = vmatpush3.bf16.msra.mxu1 %v17128_v56  ;;  %15756 = vmatprep.subr.bf16.mxu0 %v17129_v57  ;;  %v17176_v54 = vld [vmem:[%s23153_s11 + $0xb90] sm:$0xff]   ;;  %v17178_v56 = vld [vmem:[%s23153_s11 + $0xbc8] sm:$0xff]  }
 0x160   :  { %15778 = vmatprep.subr.bf16.mxu1 %v17130_v58  ;;  %v17179_v57 = vld [vmem:[%s23153_s11 + $0xb08] sm:$0xff]   ;;  %v17194_v21 = vld [vmem:[%s23153_s11 + $0xcf0] sm:$0xff]  }
 0x161   :  { %v17180_v58 = vld [vmem:[%s23153_s11 + $0xb88] sm:$0xff]  }
 0x162   :  { %15757 = vmatpush3.bf16.msra.mxu0 %v17131_v59  ;;  %v17181_v59 = vld [vmem:[%s23153_s11 + $0xb40] sm:$0xff]  }
 0x163   :  { %15779 = vmatpush3.bf16.msra.mxu1 %v17132_v60  ;;  %15758 = vmatprep.subr.bf16.mxu0 %v17133_v61  ;;  %v17182_v60 = vld [vmem:[%s23153_s11 + $0xbc0] sm:$0xff]  }
 0x164   :  { %15780 = vmatprep.subr.bf16.mxu1 %v17134_v62  ;;  %v17183_v61 = vld [vmem:[%s23153_s11 + $0xb00] sm:$0xff]  }
 0x165   :  { %v17184_v62 = vld [vmem:[%s23153_s11 + $0xb80] sm:$0xff]  }
 0x166   :  { %15759 = vmatpush3.bf16.msra.mxu0 %v17135_v63  ;;  %v106_v63 = vld [vmem:[%s23154_s7 + $0xb0] sm:$0xff] }
 0x167   :  { %15781 = vmatpush3.bf16.msra.mxu1 %v17136_v0  ;;  %15760 = vmatprep.subr.bf16.mxu0 %v17137_v1  ;;  %v13885_v1 = vcombine.low %v106_v63, %v106_v63 }
 0x168   :  { %15782 = vmatprep.subr.bf16.mxu1 %v17138_v2  ;;  %v13886_v2 = vcombine.high %v106_v63, %v106_v63  ;;  %v17228_v63 = vld [vmem:[%s23153_s11 + $0xdb8] sm:$0xff]  }
 0x16a   :  { %15761 = vmatpush3.bf16.msra.mxu0 %v17139_v3  ;;  %v107_v3 = vld [vmem:[%s23154_s7 + $0xb8] sm:$0xff] }
 0x16b   :  { %15783 = vmatpush3.bf16.msra.mxu1 %v17140_v4  ;;  %15762 = vmatprep.subr.bf16.mxu0 %v17141_v5  ;;  %v13887_v5 = vcombine.low %v107_v3, %v107_v3 }
 0x16c   :  { %15784 = vmatprep.subr.bf16.mxu1 %v17142_v6  ;;  %v13888_v6 = vcombine.high %v107_v3, %v107_v3 }
 0x16e   :  { %15763 = vmatpush3.bf16.msra.mxu0 %v17143_v7  ;;  %v17189_v7 = vld [vmem:[%s23153_s11 + $0xc78] sm:$0xff]  }
 0x16f   :  { %15785 = vmatpush3.bf16.msra.mxu1 %v17144_v8  ;;  %15764 = vmatprep.subr.bf16.mxu0 %v17145_v9  ;;  %v17190_v9 = vld [vmem:[%s23153_s11 + $0xcf8] sm:$0xff]  }
 0x170   :  { %15786 = vmatprep.subr.bf16.mxu1 %v17146_v10 }
 0x172   :  { %15765 = vmatpush3.bf16.msra.mxu0 %v17147_v11 }
 0x173   :  { %15787 = vmatpush3.bf16.msra.mxu1 %v17148_v12  ;;  %15794 = vmatprep.subr.bf16.mxu0 %v17153_v20  ;;  %v17191_v12 = vld [vmem:[%s23153_s11 + $0xc38] sm:$0xff]  }
 0x174   :  { %15816 = vmatprep.subr.bf16.mxu1 %v17154_v22 }
 0x175   :  { %v15502_v15 = vpop.f32.mrf.mxu0  ;;  %7452 = vmatmul.mubr.bf16.vlgmr.msra.gmra.mxu0 %v13881_v17 }
 0x176   :  { %v15524_v16 = vpop.f32.mrf.mxu1  ;;  %7492 = vmatmul.mubr.bf16.vlgmr.msra.gmra.mxu1 %v13883_v19  ;;  %15795 = vmatpush3.bf16.msra.mxu0 %v17155_v25  ;;  %v17197_v25 = vld [vmem:[%s23153_s11 + $0xc68] sm:$0xff]  }
 0x177   :  { %v15503_v23 = vpop.f32.mrf.mxu0  ;;  %15817 = vmatpush3.bf16.msra.mxu1 %v17156_v28  ;;  %15796 = vmatprep.subr.bf16.mxu0 %v17157_v32  ;;  %v17200_v28 = vld [vmem:[%s23153_s11 + $0xca8] sm:$0xff]   ;;  %v17204_v32 = vld [vmem:[%s23153_s11 + $0xca0] sm:$0xff]  }
 0x178   :  { %v15525_v24 = vpop.f32.mrf.mxu1  ;;  %v15504_v26 = vadd.f32 %v15503_v23, %v15502_v15  ;;  %15818 = vmatprep.subr.bf16.mxu1 %v17158_v33  ;;  %7531 = vmatprep.mubr.bf16.mxu0 %v13886_v2  ;;  %v17192_v15 = vld [vmem:[%s23153_s11 + $0xcb8] sm:$0xff]   ;;  %v17195_v23 = vld [vmem:[%s23153_s11 + $0xc30] sm:$0xff]  }
 0x179   :  { %v15526_v27 = vadd.f32 %v15525_v24, %v15524_v16  ;;  %v15505_v29 = vpop.f32.mrf.mxu0  ;;  %7571 = vmatprep.mubr.bf16.mxu1 %v13888_v6  ;;  %v17196_v24 = vld [vmem:[%s23153_s11 + $0xcb0] sm:$0xff]   ;;  %v17205_v33 = vld [vmem:[%s23153_s11 + $0xc58] sm:$0xff]  }
 0x17a   :  { %v15527_v30 = vpop.f32.mrf.mxu1  ;;  %v6974_v31 = vadd.f32 %v15504_v26, %v19587_v49  ;;  %15797 = vmatpush3.bf16.msra.mxu0 %v17159_v37  ;;  %v17171_v49 = vld [vmem:[%s23153_s11 + $0xb18] sm:$0xff]   ;;  %v17198_v26 = vld [vmem:[%s23153_s11 + $0xce8] sm:$0xff]   ;;  %v17201_v29 = vld [vmem:[%s23153_s11 + $0xc60] sm:$0xff]  }
 0x17b   :  { %v15506_v34 = vpop.f32.mrf.mxu0  ;;  %15819 = vmatpush3.bf16.msra.mxu1 %v17160_v38  ;;  %15798 = vmatprep.subr.bf16.mxu0 %v17161_v39  ;;  %v17202_v30 = vld [vmem:[%s23153_s11 + $0xce0] sm:$0xff]   ;;  %v17209_v37 = vld [vmem:[%s23153_s11 + $0xc50] sm:$0xff]  }
 0x17c   :  { %v15528_v35 = vpop.f32.mrf.mxu1  ;;  %v19692_v36 = vadd.f32 %v15526_v27, %v6974_v31  ;;  %15820 = vmatprep.subr.bf16.mxu1 %v17162_v40  ;;  %v17199_v27 = vld [vmem:[%s23153_s11 + $0xc28] sm:$0xff]   ;;  %v17203_v31 = vld [vmem:[%s23153_s11 + $0xc20] sm:$0xff]   ;;  %v17206_v34 = vld [vmem:[%s23153_s11 + $0xcd8] sm:$0xff]  }
 0x17d   :  { %v17207_v35 = vld [vmem:[%s23153_s11 + $0xc18] sm:$0xff]   ;;  %v17210_v38 = vld [vmem:[%s23153_s11 + $0xcd0] sm:$0xff]  }
 0x17e   :  { %15799 = vmatpush3.bf16.msra.mxu0 %v17163_v41  ;;  %v17211_v39 = vld [vmem:[%s23153_s11 + $0xc10] sm:$0xff]   ;;  %v17213_v41 = vld [vmem:[%s23153_s11 + $0xc48] sm:$0xff]  }
 0x17f   :  { %15821 = vmatpush3.bf16.msra.mxu1 %v17164_v42  ;;  %15800 = vmatprep.subr.bf16.mxu0 %v17165_v43  ;;  %v17212_v40 = vld [vmem:[%s23153_s11 + $0xc90] sm:$0xff]   ;;  %v17214_v42 = vld [vmem:[%s23153_s11 + $0xcc8] sm:$0xff]  }
 0x180   :  { %15822 = vmatprep.subr.bf16.mxu1 %v17166_v44  ;;  %v17215_v43 = vld [vmem:[%s23153_s11 + $0xc08] sm:$0xff]  }
 0x181   :  { %v17216_v44 = vld [vmem:[%s23153_s11 + $0xc88] sm:$0xff]  }
 0x182   :  { %15801 = vmatpush3.bf16.msra.mxu0 %v17167_v45  ;;  %v17217_v45 = vld [vmem:[%s23153_s11 + $0xc40] sm:$0xff]  }
 0x183   :  { %15823 = vmatpush3.bf16.msra.mxu1 %v17168_v46  ;;  %15802 = vmatprep.subr.bf16.mxu0 %v17169_v47  ;;  %v17218_v46 = vld [vmem:[%s23153_s11 + $0xcc0] sm:$0xff]  }
 0x184   :  { %15824 = vmatprep.subr.bf16.mxu1 %v17170_v48  ;;  %v17219_v47 = vld [vmem:[%s23153_s11 + $0xc00] sm:$0xff]  }
 0x185   :  { %v17220_v48 = vld [vmem:[%s23153_s11 + $0xc80] sm:$0xff]  }
 0x186   :  { %15803 = vmatpush3.bf16.msra.mxu0 %v17171_v49  ;;  %v108_v49 = vld [vmem:[%s23154_s7 + $0xc0] sm:$0xff] }
 0x187   :  { %15825 = vmatpush3.bf16.msra.mxu1 %v17172_v50  ;;  %15804 = vmatprep.subr.bf16.mxu0 %v17173_v51  ;;  %v109_v50 = vld [vmem:[%s23154_s7 + $0xc8] sm:$0xff] }
 0x188   :  { %15826 = vmatprep.subr.bf16.mxu1 %v17174_v52  ;;  %v13889_v52 = vcombine.low %v108_v49, %v108_v49 }
 0x18a   :  { %15805 = vmatpush3.bf16.msra.mxu0 %v17175_v53  ;;  %v13890_v53 = vcombine.high %v108_v49, %v108_v49  ;;  %v17264_v49 = vld [vmem:[%s23153_s11 + $0xeb8] sm:$0xff]  }
 0x18b   :  { %15827 = vmatpush3.bf16.msra.mxu1 %v17176_v54  ;;  %15806 = vmatprep.subr.bf16.mxu0 %v17177_v55  ;;  %v13891_v54 = vcombine.low %v109_v50, %v109_v50  ;;  %v13892_v55 = vcombine.high %v109_v50, %v109_v50 }
 0x18c   :  { %15828 = vmatprep.subr.bf16.mxu1 %v17178_v56 }
 0x18e   :  { %15807 = vmatpush3.bf16.msra.mxu0 %v17179_v57  ;;  %v17225_v57 = vld [vmem:[%s23153_s11 + $0xd78] sm:$0xff]  }
 0x18f   :  { %15829 = vmatpush3.bf16.msra.mxu1 %v17180_v58  ;;  %15808 = vmatprep.subr.bf16.mxu0 %v17181_v59  ;;  %v17226_v58 = vld [vmem:[%s23153_s11 + $0xdf8] sm:$0xff]  }
 0x190   :  { %15830 = vmatprep.subr.bf16.mxu1 %v17182_v60  ;;  %v17227_v60 = vld [vmem:[%s23153_s11 + $0xd38] sm:$0xff]  }
 0x192   :  { %15809 = vmatpush3.bf16.msra.mxu0 %v17183_v61 }
 0x193   :  { %15831 = vmatpush3.bf16.msra.mxu1 %v17184_v62  ;;  %15838 = vmatprep.subr.bf16.mxu0 %v17189_v7 }
 0x194   :  { %15860 = vmatprep.subr.bf16.mxu1 %v17190_v9 }
 0x195   :  { %v15546_v0 = vpop.f32.mrf.mxu0  ;;  %7532 = vmatmul.mubr.bf16.vlgmr.msra.gmra.mxu0 %v13885_v1 }
 0x196   :  { %v15568_v4 = vpop.f32.mrf.mxu1  ;;  %7572 = vmatmul.mubr.bf16.vlgmr.msra.gmra.mxu1 %v13887_v5  ;;  %15839 = vmatpush3.bf16.msra.mxu0 %v17191_v12  ;;  %v17230_v5 = vld [vmem:[%s23153_s11 + $0xdf0] sm:$0xff]   ;;  %v17234_v12 = vld [vmem:[%s23153_s11 + $0xde8] sm:$0xff]  }
 0x197   :  { %v15547_v8 = vpop.f32.mrf.mxu0  ;;  %15861 = vmatpush3.bf16.msra.mxu1 %v17192_v15  ;;  %15840 = vmatprep.subr.bf16.mxu0 %v17193_v18  ;;  %v17237_v15 = vld [vmem:[%s23153_s11 + $0xd60] sm:$0xff]  }
 0x198   :  { %v15548_v10 = vadd.f32 %v15547_v8, %v15546_v0  ;;  %v15569_v11 = vpop.f32.mrf.mxu1  ;;  %15862 = vmatprep.subr.bf16.mxu1 %v17194_v21  ;;  %7611 = vmatprep.mubr.bf16.mxu0 %v13890_v53  ;;  %v17231_v8 = vld [vmem:[%s23153_s11 + $0xd30] sm:$0xff]   ;;  %v17240_v18 = vld [vmem:[%s23153_s11 + $0xda0] sm:$0xff]   ;;  %v17243_v21 = vld [vmem:[%s23153_s11 + $0xd18] sm:$0xff]  }
 0x199   :  { %v15570_v13 = vadd.f32 %v15569_v11, %v15568_v4  ;;  %v15549_v14 = vpop.f32.mrf.mxu0  ;;  %7651 = vmatprep.mubr.bf16.mxu1 %v13892_v55  ;;  %v17229_v4 = vld [vmem:[%s23153_s11 + $0xd70] sm:$0xff]   ;;  %v17233_v11 = vld [vmem:[%s23153_s11 + $0xd68] sm:$0xff]  }
 0x19a   :  { %v7054_v16 = vadd.f32 %v15548_v10, %v19692_v36  ;;  %v15571_v17 = vpop.f32.mrf.mxu1  ;;  %15841 = vmatpush3.bf16.msra.mxu0 %v17195_v23  ;;  %v17208_v36 = vld [vmem:[%s23153_s11 + $0xc98] sm:$0xff]   ;;  %v17232_v10 = vld [vmem:[%s23153_s11 + $0xdb0] sm:$0xff]   ;;  %v17236_v14 = vld [vmem:[%s23153_s11 + $0xda8] sm:$0xff]  }
 0x19b   :  { %v15550_v19 = vpop.f32.mrf.mxu0  ;;  %15863 = vmatpush3.bf16.msra.mxu1 %v17196_v24  ;;  %15842 = vmatprep.subr.bf16.mxu0 %v17197_v25  ;;  %v17239_v17 = vld [vmem:[%s23153_s11 + $0xd20] sm:$0xff]   ;;  %v17245_v23 = vld [vmem:[%s23153_s11 + $0xd50] sm:$0xff]  }
 0x19c   :  { %v19794_v20 = vadd.f32 %v15570_v13, %v7054_v16  ;;  %v15572_v22 = vpop.f32.mrf.mxu1  ;;  %15864 = vmatprep.subr.bf16.mxu1 %v17198_v26  ;;  %v17235_v13 = vld [vmem:[%s23153_s11 + $0xd28] sm:$0xff]   ;;  %v17238_v16 = vld [vmem:[%s23153_s11 + $0xde0] sm:$0xff]   ;;  %v17241_v19 = vld [vmem:[%s23153_s11 + $0xd58] sm:$0xff]  }
 0x19d   :  { %v17244_v22 = vld [vmem:[%s23153_s11 + $0xd98] sm:$0xff]   ;;  %v17246_v24 = vld [vmem:[%s23153_s11 + $0xdd0] sm:$0xff]  }
 0x19e   :  { %15843 = vmatpush3.bf16.msra.mxu0 %v17199_v27  ;;  %v17247_v25 = vld [vmem:[%s23153_s11 + $0xd10] sm:$0xff]   ;;  %v17249_v27 = vld [vmem:[%s23153_s11 + $0xd48] sm:$0xff]  }
 0x19f   :  { %15865 = vmatpush3.bf16.msra.mxu1 %v17200_v28  ;;  %15844 = vmatprep.subr.bf16.mxu0 %v17201_v29  ;;  %v17248_v26 = vld [vmem:[%s23153_s11 + $0xd90] sm:$0xff]   ;;  %v17250_v28 = vld [vmem:[%s23153_s11 + $0xdc8] sm:$0xff]  }
 0x1a0   :  { %15866 = vmatprep.subr.bf16.mxu1 %v17202_v30  ;;  %v17251_v29 = vld [vmem:[%s23153_s11 + $0xd08] sm:$0xff]   ;;  %v17266_v55 = vld [vmem:[%s23153_s11 + $0xef0] sm:$0xff]  }
 0x1a1   :  { %v17252_v30 = vld [vmem:[%s23153_s11 + $0xd88] sm:$0xff]  }
 0x1a2   :  { %15845 = vmatpush3.bf16.msra.mxu0 %v17203_v31  ;;  %v17253_v31 = vld [vmem:[%s23153_s11 + $0xd40] sm:$0xff]  }
 0x1a3   :  { %15867 = vmatpush3.bf16.msra.mxu1 %v17204_v32  ;;  %15846 = vmatprep.subr.bf16.mxu0 %v17205_v33  ;;  %v17254_v32 = vld [vmem:[%s23153_s11 + $0xdc0] sm:$0xff]  }
 0x1a4   :  { %15868 = vmatprep.subr.bf16.mxu1 %v17206_v34  ;;  %v17255_v33 = vld [vmem:[%s23153_s11 + $0xd00] sm:$0xff]  }
 0x1a5   :  { %v17256_v34 = vld [vmem:[%s23153_s11 + $0xd80] sm:$0xff]  }
 0x1a6   :  { %15847 = vmatpush3.bf16.msra.mxu0 %v17207_v35  ;;  %v110_v35 = vld [vmem:[%s23154_s7 + $0xd0] sm:$0xff] }
 0x1a7   :  { %15869 = vmatpush3.bf16.msra.mxu1 %v17208_v36  ;;  %15848 = vmatprep.subr.bf16.mxu0 %v17209_v37  ;;  %v111_v36 = vld [vmem:[%s23154_s7 + $0xd8] sm:$0xff] }
 0x1a8   :  { %15870 = vmatprep.subr.bf16.mxu1 %v17210_v38  ;;  %v13893_v38 = vcombine.low %v110_v35, %v110_v35 }
 0x1aa   :  { %15849 = vmatpush3.bf16.msra.mxu0 %v17211_v39  ;;  %v13894_v39 = vcombine.high %v110_v35, %v110_v35 }
 0x1ab   :  { %15871 = vmatpush3.bf16.msra.mxu1 %v17212_v40  ;;  %15850 = vmatprep.subr.bf16.mxu0 %v17213_v41  ;;  %v13895_v40 = vcombine.low %v111_v36, %v111_v36 }
 0x1ac   :  { %15872 = vmatprep.subr.bf16.mxu1 %v17214_v42  ;;  %v17261_v42 = vld [vmem:[%s23153_s11 + $0xe78] sm:$0xff]  }
 0x1ae   :  { %15851 = vmatpush3.bf16.msra.mxu0 %v17215_v43  ;;  %v13896_v43 = vcombine.high %v111_v36, %v111_v36  ;;  %v17300_v36 = vld [vmem:[%s23153_s11 + $0xfb8] sm:$0xff]  }
 0x1af   :  { %15873 = vmatpush3.bf16.msra.mxu1 %v17216_v44  ;;  %15852 = vmatprep.subr.bf16.mxu0 %v17217_v45  ;;  %v17262_v44 = vld [vmem:[%s23153_s11 + $0xef8] sm:$0xff]  }
 0x1b0   :  { %15874 = vmatprep.subr.bf16.mxu1 %v17218_v46  ;;  %v17263_v46 = vld [vmem:[%s23153_s11 + $0xe38] sm:$0xff]  }
 0x1b2   :  { %15853 = vmatpush3.bf16.msra.mxu0 %v17219_v47 }
 0x1b3   :  { %15875 = vmatpush3.bf16.msra.mxu1 %v17220_v48  ;;  %15882 = vmatprep.subr.bf16.mxu0 %v17225_v57 }
 0x1b4   :  { %15904 = vmatprep.subr.bf16.mxu1 %v17226_v58  ;;  %v17267_v58 = vld [vmem:[%s23153_s11 + $0xe30] sm:$0xff]  }
 0x1b5   :  { %v15590_v51 = vpop.f32.mrf.mxu0  ;;  %7612 = vmatmul.mubr.bf16.vlgmr.msra.gmra.mxu0 %v13889_v52 }
 0x1b6   :  { %v15612_v56 = vpop.f32.mrf.mxu1  ;;  %7652 = vmatmul.mubr.bf16.vlgmr.msra.gmra.mxu1 %v13891_v54  ;;  %15883 = vmatpush3.bf16.msra.mxu0 %v17227_v60  ;;  %v17265_v54 = vld [vmem:[%s23153_s11 + $0xe70] sm:$0xff]  }
 0x1b7   :  { %v15591_v59 = vpop.f32.mrf.mxu0  ;;  %15905 = vmatpush3.bf16.msra.mxu1 %v17228_v63  ;;  %15884 = vmatprep.subr.bf16.mxu0 %v17229_v4  ;;  %v17268_v60 = vld [vmem:[%s23153_s11 + $0xeb0] sm:$0xff]   ;;  %v17271_v63 = vld [vmem:[%s23153_s11 + $0xe28] sm:$0xff]   ;;  %v17276_v4 = vld [vmem:[%s23153_s11 + $0xea0] sm:$0xff]  }
 0x1b8   :  { %v15592_v61 = vadd.f32 %v15591_v59, %v15590_v51  ;;  %v15613_v62 = vpop.f32.mrf.mxu1  ;;  %15906 = vmatprep.subr.bf16.mxu1 %v17230_v5  ;;  %7691 = vmatprep.mubr.bf16.mxu0 %v13894_v39  ;;  %v17277_v5 = vld [vmem:[%s23153_s11 + $0xe58] sm:$0xff]  }
 0x1b9   :  { %v15614_v0 = vadd.f32 %v15613_v62, %v15612_v56  ;;  %v15593_v1 = vpop.f32.mrf.mxu0  ;;  %7731 = vmatprep.mubr.bf16.mxu1 %v13896_v43  ;;  %v17270_v62 = vld [vmem:[%s23153_s11 + $0xee8] sm:$0xff]  }
 0x1ba   :  { %v7134_v2 = vadd.f32 %v15592_v61, %v19794_v20  ;;  %v15615_v3 = vpop.f32.mrf.mxu1  ;;  %15885 = vmatpush3.bf16.msra.mxu0 %v17231_v8  ;;  %v17242_v20 = vld [vmem:[%s23153_s11 + $0xdd8] sm:$0xff]   ;;  %v17269_v61 = vld [vmem:[%s23153_s11 + $0xe68] sm:$0xff]   ;;  %v17273_v1 = vld [vmem:[%s23153_s11 + $0xe60] sm:$0xff]  }
 0x1bb   :  { %v15594_v6 = vpop.f32.mrf.mxu0  ;;  %15907 = vmatpush3.bf16.msra.mxu1 %v17232_v10  ;;  %15886 = vmatprep.subr.bf16.mxu0 %v17233_v11  ;;  %v17275_v3 = vld [vmem:[%s23153_s11 + $0xe20] sm:$0xff]   ;;  %v17280_v8 = vld [vmem:[%s23153_s11 + $0xe98] sm:$0xff]   ;;  %v17282_v10 = vld [vmem:[%s23153_s11 + $0xed0] sm:$0xff]  }
 0x1bc   :  { %v19902_v7 = vadd.f32 %v15614_v0, %v7134_v2  ;;  %v15616_v9 = vpop.f32.mrf.mxu1  ;;  %15908 = vmatprep.subr.bf16.mxu1 %v17234_v12  ;;  %v17272_v0 = vld [vmem:[%s23153_s11 + $0xea8] sm:$0xff]   ;;  %v17274_v2 = vld [vmem:[%s23153_s11 + $0xee0] sm:$0xff]   ;;  %v17278_v6 = vld [vmem:[%s23153_s11 + $0xed8] sm:$0xff]  }
 0x1bd   :  { %v17281_v9 = vld [vmem:[%s23153_s11 + $0xe50] sm:$0xff]  }
 0x1be   :  { %15887 = vmatpush3.bf16.msra.mxu0 %v17235_v13  ;;  %v17283_v11 = vld [vmem:[%s23153_s11 + $0xe10] sm:$0xff]   ;;  %v17285_v13 = vld [vmem:[%s23153_s11 + $0xe48] sm:$0xff]  }
 0x1bf   :  { %15909 = vmatpush3.bf16.msra.mxu1 %v17236_v14  ;;  %15888 = vmatprep.subr.bf16.mxu0 %v17237_v15  ;;  %v17284_v12 = vld [vmem:[%s23153_s11 + $0xe90] sm:$0xff]   ;;  %v17286_v14 = vld [vmem:[%s23153_s11 + $0xec8] sm:$0xff]  }
 0x1c0   :  { %15910 = vmatprep.subr.bf16.mxu1 %v17238_v16  ;;  %v17287_v15 = vld [vmem:[%s23153_s11 + $0xe08] sm:$0xff]  }
 0x1c1   :  { %v17288_v16 = vld [vmem:[%s23153_s11 + $0xe88] sm:$0xff]  }
 0x1c2   :  { %15889 = vmatpush3.bf16.msra.mxu0 %v17239_v17  ;;  %v17289_v17 = vld [vmem:[%s23153_s11 + $0xe40] sm:$0xff]  }
 0x1c3   :  { %15911 = vmatpush3.bf16.msra.mxu1 %v17240_v18  ;;  %15890 = vmatprep.subr.bf16.mxu0 %v17241_v19  ;;  %v17290_v18 = vld [vmem:[%s23153_s11 + $0xec0] sm:$0xff]  }
 0x1c4   :  { %15912 = vmatprep.subr.bf16.mxu1 %v17242_v20  ;;  %v17291_v19 = vld [vmem:[%s23153_s11 + $0xe00] sm:$0xff]  }
 0x1c5   :  { %v17292_v20 = vld [vmem:[%s23153_s11 + $0xe80] sm:$0xff]  }
 0x1c6   :  { %15891 = vmatpush3.bf16.msra.mxu0 %v17243_v21  ;;  %v112_v21 = vld [vmem:[%s23154_s7 + $0xe0] sm:$0xff] }
 0x1c7   :  { %15913 = vmatpush3.bf16.msra.mxu1 %v17244_v22  ;;  %15892 = vmatprep.subr.bf16.mxu0 %v17245_v23  ;;  %v13897_v22 = vcombine.low %v112_v21, %v112_v21  ;;  %v13898_v23 = vcombine.high %v112_v21, %v112_v21  ;;  %v17336_v21 = vld [vmem:[%s23153_s11 + $0x10b8] sm:$0xff]  }
 0x1c8   :  { %15914 = vmatprep.subr.bf16.mxu1 %v17246_v24  ;;  %v113_v24 = vld [vmem:[%s23154_s7 + $0xe8] sm:$0xff] }
 0x1ca   :  { %15893 = vmatpush3.bf16.msra.mxu0 %v17247_v25 }
 0x1cb   :  { %15915 = vmatpush3.bf16.msra.mxu1 %v17248_v26  ;;  %15894 = vmatprep.subr.bf16.mxu0 %v17249_v27  ;;  %v13899_v27 = vcombine.low %v113_v24, %v113_v24 }
 0x1cc   :  { %15916 = vmatprep.subr.bf16.mxu1 %v17250_v28  ;;  %v13900_v28 = vcombine.high %v113_v24, %v113_v24 }
 0x1ce   :  { %15895 = vmatpush3.bf16.msra.mxu0 %v17251_v29  ;;  %v17297_v29 = vld [vmem:[%s23153_s11 + $0xf78] sm:$0xff]  }
 0x1cf   :  { %15917 = vmatpush3.bf16.msra.mxu1 %v17252_v30  ;;  %15896 = vmatprep.subr.bf16.mxu0 %v17253_v31  ;;  %v17298_v30 = vld [vmem:[%s23153_s11 + $0xff8] sm:$0xff]  }
 0x1d0   :  { %15918 = vmatprep.subr.bf16.mxu1 %v17254_v32 }
 0x1d2   :  { %15897 = vmatpush3.bf16.msra.mxu0 %v17255_v33  ;;  %v17299_v33 = vld [vmem:[%s23153_s11 + $0xf38] sm:$0xff]  }
 0x1d3   :  { %15919 = vmatpush3.bf16.msra.mxu1 %v17256_v34  ;;  %15926 = vmatprep.subr.bf16.mxu0 %v17261_v42 }
 0x1d4   :  { %15948 = vmatprep.subr.bf16.mxu1 %v17262_v44 }
 0x1d5   :  { %v15634_v37 = vpop.f32.mrf.mxu0  ;;  %7692 = vmatmul.mubr.bf16.vlgmr.msra.gmra.mxu0 %v13893_v38 }
 0x1d6   :  { %v15656_v41 = vpop.f32.mrf.mxu1  ;;  %7732 = vmatmul.mubr.bf16.vlgmr.msra.gmra.mxu1 %v13895_v40  ;;  %15927 = vmatpush3.bf16.msra.mxu0 %v17263_v46  ;;  %v17301_v40 = vld [vmem:[%s23153_s11 + $0xf70] sm:$0xff]  }
 0x1d7   :  { %v15635_v45 = vpop.f32.mrf.mxu0  ;;  %15949 = vmatpush3.bf16.msra.mxu1 %v17264_v49  ;;  %15928 = vmatprep.subr.bf16.mxu0 %v17265_v54  ;;  %v17304_v46 = vld [vmem:[%s23153_s11 + $0xfb0] sm:$0xff]   ;;  %v17307_v49 = vld [vmem:[%s23153_s11 + $0xf28] sm:$0xff]   ;;  %v17312_v54 = vld [vmem:[%s23153_s11 + $0xfa0] sm:$0xff]  }
 0x1d8   :  { %v15636_v47 = vadd.f32 %v15635_v45, %v15634_v37  ;;  %v15657_v48 = vpop.f32.mrf.mxu1  ;;  %15950 = vmatprep.subr.bf16.mxu1 %v17266_v55  ;;  %7771 = vmatprep.mubr.bf16.mxu0 %v13898_v23  ;;  %v17303_v45 = vld [vmem:[%s23153_s11 + $0xf30] sm:$0xff]   ;;  %v17313_v55 = vld [vmem:[%s23153_s11 + $0xf58] sm:$0xff]  }
 0x1d9   :  { %v15658_v50 = vadd.f32 %v15657_v48, %v15656_v41  ;;  %v15637_v51 = vpop.f32.mrf.mxu0  ;;  %7811 = vmatprep.mubr.bf16.mxu1 %v13900_v28  ;;  %v17302_v41 = vld [vmem:[%s23153_s11 + $0xff0] sm:$0xff]   ;;  %v17306_v48 = vld [vmem:[%s23153_s11 + $0xfe8] sm:$0xff]  }
 0x1da   :  { %v7214_v52 = vadd.f32 %v15636_v47, %v19902_v7  ;;  %v15659_v53 = vpop.f32.mrf.mxu1  ;;  %15929 = vmatpush3.bf16.msra.mxu0 %v17267_v58  ;;  %v17279_v7 = vld [vmem:[%s23153_s11 + $0xe18] sm:$0xff]   ;;  %v17305_v47 = vld [vmem:[%s23153_s11 + $0xf68] sm:$0xff]   ;;  %v17309_v51 = vld [vmem:[%s23153_s11 + $0xf60] sm:$0xff]  }
 0x1db   :  { %v15638_v56 = vpop.f32.mrf.mxu0  ;;  %15951 = vmatpush3.bf16.msra.mxu1 %v17268_v60  ;;  %15930 = vmatprep.subr.bf16.mxu0 %v17269_v61  ;;  %v17311_v53 = vld [vmem:[%s23153_s11 + $0xf20] sm:$0xff]   ;;  %v17316_v58 = vld [vmem:[%s23153_s11 + $0xf98] sm:$0xff]   ;;  %v17318_v60 = vld [vmem:[%s23153_s11 + $0xfd0] sm:$0xff]  }
 0x1dc   :  { %v20007_v57 = vadd.f32 %v15658_v50, %v7214_v52  ;;  %v15660_v59 = vpop.f32.mrf.mxu1  ;;  %15952 = vmatprep.subr.bf16.mxu1 %v17270_v62  ;;  %v17308_v50 = vld [vmem:[%s23153_s11 + $0xfa8] sm:$0xff]   ;;  %v17310_v52 = vld [vmem:[%s23153_s11 + $0xfe0] sm:$0xff]   ;;  %v17314_v56 = vld [vmem:[%s23153_s11 + $0xfd8] sm:$0xff]  }
 0x1dd   :  { %v17317_v59 = vld [vmem:[%s23153_s11 + $0xf50] sm:$0xff]  }
 0x1de   :  { %15931 = vmatpush3.bf16.msra.mxu0 %v17271_v63  ;;  %v17319_v61 = vld [vmem:[%s23153_s11 + $0xf10] sm:$0xff]   ;;  %v17321_v63 = vld [vmem:[%s23153_s11 + $0xf48] sm:$0xff]  }
 0x1df   :  { %15953 = vmatpush3.bf16.msra.mxu1 %v17272_v0  ;;  %15932 = vmatprep.subr.bf16.mxu0 %v17273_v1  ;;  %v17320_v62 = vld [vmem:[%s23153_s11 + $0xf90] sm:$0xff]   ;;  %v17322_v0 = vld [vmem:[%s23153_s11 + $0xfc8] sm:$0xff]  }
 0x1e0   :  { %15954 = vmatprep.subr.bf16.mxu1 %v17274_v2  ;;  %v17323_v1 = vld [vmem:[%s23153_s11 + $0xf08] sm:$0xff]  }
 0x1e1   :  { %v17324_v2 = vld [vmem:[%s23153_s11 + $0xf88] sm:$0xff]  }
 0x1e2   :  { %15933 = vmatpush3.bf16.msra.mxu0 %v17275_v3  ;;  %v17325_v3 = vld [vmem:[%s23153_s11 + $0xf40] sm:$0xff]  }
 0x1e3   :  { %15955 = vmatpush3.bf16.msra.mxu1 %v17276_v4  ;;  %15934 = vmatprep.subr.bf16.mxu0 %v17277_v5  ;;  %v17326_v4 = vld [vmem:[%s23153_s11 + $0xfc0] sm:$0xff]  }
 0x1e4   :  { %15956 = vmatprep.subr.bf16.mxu1 %v17278_v6  ;;  %v17327_v5 = vld [vmem:[%s23153_s11 + $0xf00] sm:$0xff]  }
 0x1e5   :  { %v17328_v6 = vld [vmem:[%s23153_s11 + $0xf80] sm:$0xff]  }
 0x1e6   :  { %15935 = vmatpush3.bf16.msra.mxu0 %v17279_v7  ;;  %v114_v7 = vld [vmem:[%s23154_s7 + $0xf0] sm:$0xff] }
 0x1e7   :  { %15957 = vmatpush3.bf16.msra.mxu1 %v17280_v8  ;;  %15936 = vmatprep.subr.bf16.mxu0 %v17281_v9  ;;  %v115_v8 = vld [vmem:[%s23154_s7 + $0xf8] sm:$0xff] }
 0x1e8   :  { %15958 = vmatprep.subr.bf16.mxu1 %v17282_v10  ;;  %v13901_v10 = vcombine.low %v114_v7, %v114_v7 }
 0x1ea   :  { %15937 = vmatpush3.bf16.msra.mxu0 %v17283_v11  ;;  %v13902_v11 = vcombine.high %v114_v7, %v114_v7  ;;  %v17372_v7 = vld [vmem:[%s23153_s11 + $0x11b8] sm:$0xff]  }
 0x1eb   :  { %15959 = vmatpush3.bf16.msra.mxu1 %v17284_v12  ;;  %15938 = vmatprep.subr.bf16.mxu0 %v17285_v13  ;;  %v13903_v12 = vcombine.low %v115_v8, %v115_v8  ;;  %v13904_v13 = vcombine.high %v115_v8, %v115_v8 }
 0x1ec   :  { %15960 = vmatprep.subr.bf16.mxu1 %v17286_v14 }
 0x1ee   :  { %15939 = vmatpush3.bf16.msra.mxu0 %v17287_v15  ;;  %v17333_v15 = vld [vmem:[%s23153_s11 + $0x1078] sm:$0xff]  }
 0x1ef   :  { %15961 = vmatpush3.bf16.msra.mxu1 %v17288_v16  ;;  %15940 = vmatprep.subr.bf16.mxu0 %v17289_v17  ;;  %v17334_v16 = vld [vmem:[%s23153_s11 + $0x10f8] sm:$0xff]  }
 0x1f0   :  { %15962 = vmatprep.subr.bf16.mxu1 %v17290_v18  ;;  %v17335_v18 = vld [vmem:[%s23153_s11 + $0x1038] sm:$0xff]  }
 0x1f2   :  { %15941 = vmatpush3.bf16.msra.mxu0 %v17291_v19 }
 0x1f3   :  { %15963 = vmatpush3.bf16.msra.mxu1 %v17292_v20  ;;  %15970 = vmatprep.subr.bf16.mxu0 %v17297_v29 }
 0x1f4   :  { %15992 = vmatprep.subr.bf16.mxu1 %v17298_v30  ;;  %v17339_v30 = vld [vmem:[%s23153_s11 + $0x1030] sm:$0xff]  }
 0x1f5   :  { %v15678_v25 = vpop.f32.mrf.mxu0  ;;  %7772 = vmatmul.mubr.bf16.vlgmr.msra.gmra.mxu0 %v13897_v22 }
 0x1f6   :  { %v15700_v26 = vpop.f32.mrf.mxu1  ;;  %7812 = vmatmul.mubr.bf16.vlgmr.msra.gmra.mxu1 %v13899_v27  ;;  %15971 = vmatpush3.bf16.msra.mxu0 %v17299_v33  ;;  %v17338_v27 = vld [vmem:[%s23153_s11 + $0x10f0] sm:$0xff]   ;;  %v17341_v33 = vld [vmem:[%s23153_s11 + $0x1068] sm:$0xff]  }
 0x1f7   :  { %v15679_v31 = vpop.f32.mrf.mxu0  ;;  %15993 = vmatpush3.bf16.msra.mxu1 %v17300_v36  ;;  %15972 = vmatprep.subr.bf16.mxu0 %v17301_v40  ;;  %v17344_v36 = vld [vmem:[%s23153_s11 + $0x10a8] sm:$0xff]   ;;  %v17348_v40 = vld [vmem:[%s23153_s11 + $0x10a0] sm:$0xff]  }
 0x1f8   :  { %v15701_v32 = vpop.f32.mrf.mxu1  ;;  %v15680_v34 = vadd.f32 %v15679_v31, %v15678_v25  ;;  %15994 = vmatprep.subr.bf16.mxu1 %v17302_v41  ;;  %7851 = vmatprep.mubr.bf16.mxu0 %v13902_v11  ;;  %v17349_v41 = vld [vmem:[%s23153_s11 + $0x1058] sm:$0xff]  }
 0x1f9   :  { %v15702_v35 = vadd.f32 %v15701_v32, %v15700_v26  ;;  %v15681_v37 = vpop.f32.mrf.mxu0  ;;  %7891 = vmatprep.mubr.bf16.mxu1 %v13904_v13  ;;  %v17337_v26 = vld [vmem:[%s23153_s11 + $0x1070] sm:$0xff]  }
 0x1fa   :  { %v15703_v38 = vpop.f32.mrf.mxu1  ;;  %v7294_v39 = vadd.f32 %v15680_v34, %v20007_v57  ;;  %15973 = vmatpush3.bf16.msra.mxu0 %v17303_v45  ;;  %v17315_v57 = vld [vmem:[%s23153_s11 + $0xf18] sm:$0xff]   ;;  %v17340_v32 = vld [vmem:[%s23153_s11 + $0x10b0] sm:$0xff]   ;;  %v17342_v34 = vld [vmem:[%s23153_s11 + $0x10e8] sm:$0xff]  }
 0x1fb   :  { %v15682_v42 = vpop.f32.mrf.mxu0  ;;  %15995 = vmatpush3.bf16.msra.mxu1 %v17304_v46  ;;  %15974 = vmatprep.subr.bf16.mxu0 %v17305_v47  ;;  %v17345_v37 = vld [vmem:[%s23153_s11 + $0x1060] sm:$0xff]   ;;  %v17353_v45 = vld [vmem:[%s23153_s11 + $0x1050] sm:$0xff]  }
 0x1fc   :  { %v15704_v43 = vpop.f32.mrf.mxu1  ;;  %v20112_v44 = vadd.f32 %v15702_v35, %v7294_v39  ;;  %15996 = vmatprep.subr.bf16.mxu1 %v17306_v48  ;;  %v17343_v35 = vld [vmem:[%s23153_s11 + $0x1028] sm:$0xff]   ;;  %v17346_v38 = vld [vmem:[%s23153_s11 + $0x10e0] sm:$0xff]   ;;  %v17350_v42 = vld [vmem:[%s23153_s11 + $0x10d8] sm:$0xff]  }
 0x1fd   :  { %v17347_v39 = vld [vmem:[%s23153_s11 + $0x1020] sm:$0xff]   ;;  %v17351_v43 = vld [vmem:[%s23153_s11 + $0x1018] sm:$0xff]   ;;  %v17354_v46 = vld [vmem:[%s23153_s11 + $0x10d0] sm:$0xff]  }
 0x1fe   :  { %15975 = vmatpush3.bf16.msra.mxu0 %v17307_v49  ;;  %v17355_v47 = vld [vmem:[%s23153_s11 + $0x1010] sm:$0xff]   ;;  %v17357_v49 = vld [vmem:[%s23153_s11 + $0x1048] sm:$0xff]  }
 0x1ff   :  { %15997 = vmatpush3.bf16.msra.mxu1 %v17308_v50  ;;  %15976 = vmatprep.subr.bf16.mxu0 %v17309_v51  ;;  %v17356_v48 = vld [vmem:[%s23153_s11 + $0x1090] sm:$0xff]   ;;  %v17358_v50 = vld [vmem:[%s23153_s11 + $0x10c8] sm:$0xff]  }
 0x200   :  { %15998 = vmatprep.subr.bf16.mxu1 %v17310_v52  ;;  %v17359_v51 = vld [vmem:[%s23153_s11 + $0x1008] sm:$0xff]   ;;  %v17374_v13 = vld [vmem:[%s23153_s11 + $0x11f0] sm:$0xff]  }
 0x201   :  { %v17360_v52 = vld [vmem:[%s23153_s11 + $0x1088] sm:$0xff]  }
 0x202   :  { %15977 = vmatpush3.bf16.msra.mxu0 %v17311_v53  ;;  %v17361_v53 = vld [vmem:[%s23153_s11 + $0x1040] sm:$0xff]  }
 0x203   :  { %15999 = vmatpush3.bf16.msra.mxu1 %v17312_v54  ;;  %15978 = vmatprep.subr.bf16.mxu0 %v17313_v55  ;;  %v17362_v54 = vld [vmem:[%s23153_s11 + $0x10c0] sm:$0xff]  }
 0x204   :  { %16000 = vmatprep.subr.bf16.mxu1 %v17314_v56  ;;  %v17363_v55 = vld [vmem:[%s23153_s11 + $0x1000] sm:$0xff]  }
 0x205   :  { %v17364_v56 = vld [vmem:[%s23153_s11 + $0x1080] sm:$0xff]  }
 0x206   :  { %15979 = vmatpush3.bf16.msra.mxu0 %v17315_v57  ;;  %v116_v57 = vld [vmem:[%s23154_s7 + $0x100] sm:$0xff] }
 0x207   :  { %16001 = vmatpush3.bf16.msra.mxu1 %v17316_v58  ;;  %15980 = vmatprep.subr.bf16.mxu0 %v17317_v59  ;;  %v117_v58 = vld [vmem:[%s23154_s7 + $0x108] sm:$0xff] }
 0x208   :  { %16002 = vmatprep.subr.bf16.mxu1 %v17318_v60  ;;  %v13905_v60 = vcombine.low %v116_v57, %v116_v57 }
 0x20a   :  { %15981 = vmatpush3.bf16.msra.mxu0 %v17319_v61  ;;  %v13906_v61 = vcombine.high %v116_v57, %v116_v57 }
 0x20b   :  { %16003 = vmatpush3.bf16.msra.mxu1 %v17320_v62  ;;  %15982 = vmatprep.subr.bf16.mxu0 %v17321_v63  ;;  %v13907_v62 = vcombine.low %v117_v58, %v117_v58 }
 0x20c   :  { %16004 = vmatprep.subr.bf16.mxu1 %v17322_v0  ;;  %v17369_v0 = vld [vmem:[%s23153_s11 + $0x1178] sm:$0xff]  }
 0x20e   :  { %15983 = vmatpush3.bf16.msra.mxu0 %v17323_v1  ;;  %v13908_v1 = vcombine.high %v117_v58, %v117_v58  ;;  %v17408_v58 = vld [vmem:[%s23153_s11 + $0x12b8] sm:$0xff]  }
 0x20f   :  { %16005 = vmatpush3.bf16.msra.mxu1 %v17324_v2  ;;  %15984 = vmatprep.subr.bf16.mxu0 %v17325_v3  ;;  %v17370_v2 = vld [vmem:[%s23153_s11 + $0x11f8] sm:$0xff]  }
 0x210   :  { %16006 = vmatprep.subr.bf16.mxu1 %v17326_v4  ;;  %v17371_v4 = vld [vmem:[%s23153_s11 + $0x1138] sm:$0xff]  }
 0x212   :  { %15985 = vmatpush3.bf16.msra.mxu0 %v17327_v5 }
 0x213   :  { %16007 = vmatpush3.bf16.msra.mxu1 %v17328_v6  ;;  %16014 = vmatprep.subr.bf16.mxu0 %v17333_v15 }
 0x214   :  { %16036 = vmatprep.subr.bf16.mxu1 %v17334_v16  ;;  %v17375_v16 = vld [vmem:[%s23153_s11 + $0x1130] sm:$0xff]  }
 0x215   :  { %v15722_v9 = vpop.f32.mrf.mxu0  ;;  %7852 = vmatmul.mubr.bf16.vlgmr.msra.gmra.mxu0 %v13901_v10 }
 0x216   :  { %v15744_v14 = vpop.f32.mrf.mxu1  ;;  %7892 = vmatmul.mubr.bf16.vlgmr.msra.gmra.mxu1 %v13903_v12  ;;  %16015 = vmatpush3.bf16.msra.mxu0 %v17335_v18  ;;  %v17373_v12 = vld [vmem:[%s23153_s11 + $0x1170] sm:$0xff]  }
 0x217   :  { %v15723_v17 = vpop.f32.mrf.mxu0  ;;  %16037 = vmatpush3.bf16.msra.mxu1 %v17336_v21  ;;  %16016 = vmatprep.subr.bf16.mxu0 %v17337_v26  ;;  %v17376_v18 = vld [vmem:[%s23153_s11 + $0x11b0] sm:$0xff]   ;;  %v17379_v21 = vld [vmem:[%s23153_s11 + $0x1128] sm:$0xff]   ;;  %v17384_v26 = vld [vmem:[%s23153_s11 + $0x11a0] sm:$0xff]  }
 0x218   :  { %v15724_v19 = vadd.f32 %v15723_v17, %v15722_v9  ;;  %v15745_v20 = vpop.f32.mrf.mxu1  ;;  %16038 = vmatprep.subr.bf16.mxu1 %v17338_v27  ;;  %7931 = vmatprep.mubr.bf16.mxu0 %v13906_v61  ;;  %v17385_v27 = vld [vmem:[%s23153_s11 + $0x1158] sm:$0xff]  }
 0x219   :  { %v15746_v22 = vadd.f32 %v15745_v20, %v15744_v14  ;;  %v15725_v23 = vpop.f32.mrf.mxu0  ;;  %7971 = vmatprep.mubr.bf16.mxu1 %v13908_v1  ;;  %v17378_v20 = vld [vmem:[%s23153_s11 + $0x11e8] sm:$0xff]  }
 0x21a   :  { %v7374_v24 = vadd.f32 %v15724_v19, %v20112_v44  ;;  %v15747_v25 = vpop.f32.mrf.mxu1  ;;  %16017 = vmatpush3.bf16.msra.mxu0 %v17339_v30  ;;  %v17352_v44 = vld [vmem:[%s23153_s11 + $0x1098] sm:$0xff]   ;;  %v17377_v19 = vld [vmem:[%s23153_s11 + $0x1168] sm:$0xff]   ;;  %v17381_v23 = vld [vmem:[%s23153_s11 + $0x1160] sm:$0xff]  }
 0x21b   :  { %v15726_v28 = vpop.f32.mrf.mxu0  ;;  %16039 = vmatpush3.bf16.msra.mxu1 %v17340_v32  ;;  %16018 = vmatprep.subr.bf16.mxu0 %v17341_v33  ;;  %v17383_v25 = vld [vmem:[%s23153_s11 + $0x1120] sm:$0xff]   ;;  %v17388_v30 = vld [vmem:[%s23153_s11 + $0x1198] sm:$0xff]   ;;  %v17390_v32 = vld [vmem:[%s23153_s11 + $0x11d0] sm:$0xff]  }
 0x21c   :  { %v20217_v29 = vadd.f32 %v15746_v22, %v7374_v24  ;;  %v15748_v31 = vpop.f32.mrf.mxu1  ;;  %16040 = vmatprep.subr.bf16.mxu1 %v17342_v34  ;;  %v17380_v22 = vld [vmem:[%s23153_s11 + $0x11a8] sm:$0xff]   ;;  %v17382_v24 = vld [vmem:[%s23153_s11 + $0x11e0] sm:$0xff]   ;;  %v17386_v28 = vld [vmem:[%s23153_s11 + $0x11d8] sm:$0xff]  }
 0x21d   :  { %v17389_v31 = vld [vmem:[%s23153_s11 + $0x1150] sm:$0xff]  }
 0x21e   :  { %16019 = vmatpush3.bf16.msra.mxu0 %v17343_v35  ;;  %v17391_v33 = vld [vmem:[%s23153_s11 + $0x1110] sm:$0xff]   ;;  %v17393_v35 = vld [vmem:[%s23153_s11 + $0x1148] sm:$0xff]  }
 0x21f   :  { %16041 = vmatpush3.bf16.msra.mxu1 %v17344_v36  ;;  %16020 = vmatprep.subr.bf16.mxu0 %v17345_v37  ;;  %v17392_v34 = vld [vmem:[%s23153_s11 + $0x1190] sm:$0xff]   ;;  %v17394_v36 = vld [vmem:[%s23153_s11 + $0x11c8] sm:$0xff]  }
 0x220   :  { %16042 = vmatprep.subr.bf16.mxu1 %v17346_v38  ;;  %v17395_v37 = vld [vmem:[%s23153_s11 + $0x1108] sm:$0xff]  }
 0x221   :  { %v17396_v38 = vld [vmem:[%s23153_s11 + $0x1188] sm:$0xff]  }
 0x222   :  { %16021 = vmatpush3.bf16.msra.mxu0 %v17347_v39  ;;  %v17397_v39 = vld [vmem:[%s23153_s11 + $0x1140] sm:$0xff]  }
 0x223   :  { %16043 = vmatpush3.bf16.msra.mxu1 %v17348_v40  ;;  %16022 = vmatprep.subr.bf16.mxu0 %v17349_v41  ;;  %v17398_v40 = vld [vmem:[%s23153_s11 + $0x11c0] sm:$0xff]  }
 0x224   :  { %16044 = vmatprep.subr.bf16.mxu1 %v17350_v42  ;;  %v17399_v41 = vld [vmem:[%s23153_s11 + $0x1100] sm:$0xff]  }
 0x225   :  { %v17400_v42 = vld [vmem:[%s23153_s11 + $0x1180] sm:$0xff]  }
 0x226   :  { %16023 = vmatpush3.bf16.msra.mxu0 %v17351_v43  ;;  %v118_v43 = vld [vmem:[%s23154_s7 + $0x110] sm:$0xff] }
 0x227   :  { %16045 = vmatpush3.bf16.msra.mxu1 %v17352_v44  ;;  %16024 = vmatprep.subr.bf16.mxu0 %v17353_v45  ;;  %v13909_v44 = vcombine.low %v118_v43, %v118_v43  ;;  %v13910_v45 = vcombine.high %v118_v43, %v118_v43  ;;  %v17444_v43 = vld [vmem:[%s23153_s11 + $0x13b8] sm:$0xff]  }
 0x228   :  { %16046 = vmatprep.subr.bf16.mxu1 %v17354_v46  ;;  %v119_v46 = vld [vmem:[%s23154_s7 + $0x118] sm:$0xff] }
 0x22a   :  { %16025 = vmatpush3.bf16.msra.mxu0 %v17355_v47 }
 0x22b   :  { %16047 = vmatpush3.bf16.msra.mxu1 %v17356_v48  ;;  %16026 = vmatprep.subr.bf16.mxu0 %v17357_v49  ;;  %v13911_v49 = vcombine.low %v119_v46, %v119_v46 }
 0x22c   :  { %16048 = vmatprep.subr.bf16.mxu1 %v17358_v50  ;;  %v13912_v50 = vcombine.high %v119_v46, %v119_v46 }
 0x22e   :  { %16027 = vmatpush3.bf16.msra.mxu0 %v17359_v51  ;;  %v17405_v51 = vld [vmem:[%s23153_s11 + $0x1278] sm:$0xff]  }
 0x22f   :  { %16049 = vmatpush3.bf16.msra.mxu1 %v17360_v52  ;;  %16028 = vmatprep.subr.bf16.mxu0 %v17361_v53  ;;  %v17406_v52 = vld [vmem:[%s23153_s11 + $0x12f8] sm:$0xff]  }
 0x230   :  { %16050 = vmatprep.subr.bf16.mxu1 %v17362_v54 }
 0x232   :  { %16029 = vmatpush3.bf16.msra.mxu0 %v17363_v55  ;;  %v17407_v55 = vld [vmem:[%s23153_s11 + $0x1238] sm:$0xff]  }
 0x233   :  { %16051 = vmatpush3.bf16.msra.mxu1 %v17364_v56  ;;  %16058 = vmatprep.subr.bf16.mxu0 %v17369_v0 }
 0x234   :  { %16080 = vmatprep.subr.bf16.mxu1 %v17370_v2 }
 0x235   :  { %v15766_v59 = vpop.f32.mrf.mxu0  ;;  %7932 = vmatmul.mubr.bf16.vlgmr.msra.gmra.mxu0 %v13905_v60 }
 0x236   :  { %v15788_v63 = vpop.f32.mrf.mxu1  ;;  %7972 = vmatmul.mubr.bf16.vlgmr.msra.gmra.mxu1 %v13907_v62  ;;  %16059 = vmatpush3.bf16.msra.mxu0 %v17371_v4  ;;  %v17409_v62 = vld [vmem:[%s23153_s11 + $0x1270] sm:$0xff]  }
 0x237   :  { %v15767_v3 = vpop.f32.mrf.mxu0  ;;  %16081 = vmatpush3.bf16.msra.mxu1 %v17372_v7  ;;  %16060 = vmatprep.subr.bf16.mxu0 %v17373_v12  ;;  %v17412_v4 = vld [vmem:[%s23153_s11 + $0x12b0] sm:$0xff]   ;;  %v17415_v7 = vld [vmem:[%s23153_s11 + $0x1228] sm:$0xff]   ;;  %v17420_v12 = vld [vmem:[%s23153_s11 + $0x12a0] sm:$0xff]  }
 0x238   :  { %v15768_v5 = vadd.f32 %v15767_v3, %v15766_v59  ;;  %v15789_v6 = vpop.f32.mrf.mxu1  ;;  %16082 = vmatprep.subr.bf16.mxu1 %v17374_v13  ;;  %8011 = vmatprep.mubr.bf16.mxu0 %v13910_v45  ;;  %v17411_v3 = vld [vmem:[%s23153_s11 + $0x1230] sm:$0xff]   ;;  %v17421_v13 = vld [vmem:[%s23153_s11 + $0x1258] sm:$0xff]  }
 0x239   :  { %v15790_v8 = vadd.f32 %v15789_v6, %v15788_v63  ;;  %v15769_v9 = vpop.f32.mrf.mxu0  ;;  %8051 = vmatprep.mubr.bf16.mxu1 %v13912_v50  ;;  %v17410_v63 = vld [vmem:[%s23153_s11 + $0x12f0] sm:$0xff]   ;;  %v17414_v6 = vld [vmem:[%s23153_s11 + $0x12e8] sm:$0xff]  }
 0x23a   :  { %v7454_v10 = vadd.f32 %v15768_v5, %v20217_v29  ;;  %v15791_v11 = vpop.f32.mrf.mxu1  ;;  %16061 = vmatpush3.bf16.msra.mxu0 %v17375_v16  ;;  %v17387_v29 = vld [vmem:[%s23153_s11 + $0x1118] sm:$0xff]   ;;  %v17413_v5 = vld [vmem:[%s23153_s11 + $0x1268] sm:$0xff]   ;;  %v17417_v9 = vld [vmem:[%s23153_s11 + $0x1260] sm:$0xff]  }
 0x23b   :  { %v15770_v14 = vpop.f32.mrf.mxu0  ;;  %16083 = vmatpush3.bf16.msra.mxu1 %v17376_v18  ;;  %16062 = vmatprep.subr.bf16.mxu0 %v17377_v19  ;;  %v17419_v11 = vld [vmem:[%s23153_s11 + $0x1220] sm:$0xff]   ;;  %v17424_v16 = vld [vmem:[%s23153_s11 + $0x1298] sm:$0xff]   ;;  %v17426_v18 = vld [vmem:[%s23153_s11 + $0x12d0] sm:$0xff]  }
 0x23c   :  { %v20322_v15 = vadd.f32 %v15790_v8, %v7454_v10  ;;  %v15792_v17 = vpop.f32.mrf.mxu1  ;;  %16084 = vmatprep.subr.bf16.mxu1 %v17378_v20  ;;  %v17416_v8 = vld [vmem:[%s23153_s11 + $0x12a8] sm:$0xff]   ;;  %v17418_v10 = vld [vmem:[%s23153_s11 + $0x12e0] sm:$0xff]   ;;  %v17422_v14 = vld [vmem:[%s23153_s11 + $0x12d8] sm:$0xff]  }
 0x23d   :  { %v17425_v17 = vld [vmem:[%s23153_s11 + $0x1250] sm:$0xff]  }
 0x23e   :  { %16063 = vmatpush3.bf16.msra.mxu0 %v17379_v21  ;;  %v17427_v19 = vld [vmem:[%s23153_s11 + $0x1210] sm:$0xff]   ;;  %v17429_v21 = vld [vmem:[%s23153_s11 + $0x1248] sm:$0xff]  }
 0x23f   :  { %16085 = vmatpush3.bf16.msra.mxu1 %v17380_v22  ;;  %16064 = vmatprep.subr.bf16.mxu0 %v17381_v23  ;;  %v17428_v20 = vld [vmem:[%s23153_s11 + $0x1290] sm:$0xff]   ;;  %v17430_v22 = vld [vmem:[%s23153_s11 + $0x12c8] sm:$0xff]  }
 0x240   :  { %16086 = vmatprep.subr.bf16.mxu1 %v17382_v24  ;;  %v17431_v23 = vld [vmem:[%s23153_s11 + $0x1208] sm:$0xff]  }
 0x241   :  { %v17432_v24 = vld [vmem:[%s23153_s11 + $0x1288] sm:$0xff]  }
 0x242   :  { %16065 = vmatpush3.bf16.msra.mxu0 %v17383_v25  ;;  %v17433_v25 = vld [vmem:[%s23153_s11 + $0x1240] sm:$0xff]  }
 0x243   :  { %16087 = vmatpush3.bf16.msra.mxu1 %v17384_v26  ;;  %16066 = vmatprep.subr.bf16.mxu0 %v17385_v27  ;;  %v17434_v26 = vld [vmem:[%s23153_s11 + $0x12c0] sm:$0xff]  }
 0x244   :  { %16088 = vmatprep.subr.bf16.mxu1 %v17386_v28  ;;  %v17435_v27 = vld [vmem:[%s23153_s11 + $0x1200] sm:$0xff]  }
 0x245   :  { %v17436_v28 = vld [vmem:[%s23153_s11 + $0x1280] sm:$0xff]  }
 0x246   :  { %16067 = vmatpush3.bf16.msra.mxu0 %v17387_v29  ;;  %v120_v29 = vld [vmem:[%s23154_s7 + $0x120] sm:$0xff] }
 0x247   :  { %16089 = vmatpush3.bf16.msra.mxu1 %v17388_v30  ;;  %16068 = vmatprep.subr.bf16.mxu0 %v17389_v31  ;;  %v121_v30 = vld [vmem:[%s23154_s7 + $0x128] sm:$0xff] }
 0x248   :  { %16090 = vmatprep.subr.bf16.mxu1 %v17390_v32  ;;  %v13913_v32 = vcombine.low %v120_v29, %v120_v29 }
 0x24a   :  { %16069 = vmatpush3.bf16.msra.mxu0 %v17391_v33  ;;  %v13914_v33 = vcombine.high %v120_v29, %v120_v29  ;;  %v17480_v29 = vld [vmem:[%s23153_s11 + $0x14b8] sm:$0xff]  }
 0x24b   :  { %16091 = vmatpush3.bf16.msra.mxu1 %v17392_v34  ;;  %16070 = vmatprep.subr.bf16.mxu0 %v17393_v35  ;;  %v13915_v34 = vcombine.low %v121_v30, %v121_v30  ;;  %v13916_v35 = vcombine.high %v121_v30, %v121_v30 }
 0x24c   :  { %16092 = vmatprep.subr.bf16.mxu1 %v17394_v36 }
 0x24e   :  { %16071 = vmatpush3.bf16.msra.mxu0 %v17395_v37  ;;  %v17441_v37 = vld [vmem:[%s23153_s11 + $0x1378] sm:$0xff]  }
 0x24f   :  { %16093 = vmatpush3.bf16.msra.mxu1 %v17396_v38  ;;  %16072 = vmatprep.subr.bf16.mxu0 %v17397_v39  ;;  %v17442_v38 = vld [vmem:[%s23153_s11 + $0x13f8] sm:$0xff]  }
 0x250   :  { %16094 = vmatprep.subr.bf16.mxu1 %v17398_v40  ;;  %v17443_v40 = vld [vmem:[%s23153_s11 + $0x1338] sm:$0xff]  }
 0x252   :  { %16073 = vmatpush3.bf16.msra.mxu0 %v17399_v41 }
 0x253   :  { %16095 = vmatpush3.bf16.msra.mxu1 %v17400_v42  ;;  %16102 = vmatprep.subr.bf16.mxu0 %v17405_v51 }
 0x254   :  { %16124 = vmatprep.subr.bf16.mxu1 %v17406_v52  ;;  %v17447_v52 = vld [vmem:[%s23153_s11 + $0x1330] sm:$0xff]  }
 0x255   :  { %v15810_v47 = vpop.f32.mrf.mxu0  ;;  %8012 = vmatmul.mubr.bf16.vlgmr.msra.gmra.mxu0 %v13909_v44 }
 0x256   :  { %v15832_v48 = vpop.f32.mrf.mxu1  ;;  %8052 = vmatmul.mubr.bf16.vlgmr.msra.gmra.mxu1 %v13911_v49  ;;  %16103 = vmatpush3.bf16.msra.mxu0 %v17407_v55  ;;  %v17446_v49 = vld [vmem:[%s23153_s11 + $0x13f0] sm:$0xff]   ;;  %v17449_v55 = vld [vmem:[%s23153_s11 + $0x1368] sm:$0xff]  }
 0x257   :  { %v15811_v53 = vpop.f32.mrf.mxu0  ;;  %16125 = vmatpush3.bf16.msra.mxu1 %v17408_v58  ;;  %16104 = vmatprep.subr.bf16.mxu0 %v17409_v62  ;;  %v17452_v58 = vld [vmem:[%s23153_s11 + $0x13a8] sm:$0xff]   ;;  %v17456_v62 = vld [vmem:[%s23153_s11 + $0x13a0] sm:$0xff]  }
 0x258   :  { %v15833_v54 = vpop.f32.mrf.mxu1  ;;  %v15812_v56 = vadd.f32 %v15811_v53, %v15810_v47  ;;  %16126 = vmatprep.subr.bf16.mxu1 %v17410_v63  ;;  %8091 = vmatprep.mubr.bf16.mxu0 %v13914_v33  ;;  %v17457_v63 = vld [vmem:[%s23153_s11 + $0x1358] sm:$0xff]  }
 0x259   :  { %v15834_v57 = vadd.f32 %v15833_v54, %v15832_v48  ;;  %v15813_v59 = vpop.f32.mrf.mxu0  ;;  %8131 = vmatprep.mubr.bf16.mxu1 %v13916_v35  ;;  %v17445_v48 = vld [vmem:[%s23153_s11 + $0x1370] sm:$0xff]  }
 0x25a   :  { %v15835_v60 = vpop.f32.mrf.mxu1  ;;  %v7534_v61 = vadd.f32 %v15812_v56, %v20322_v15  ;;  %16105 = vmatpush3.bf16.msra.mxu0 %v17411_v3  ;;  %v17423_v15 = vld [vmem:[%s23153_s11 + $0x1218] sm:$0xff]   ;;  %v17448_v54 = vld [vmem:[%s23153_s11 + $0x13b0] sm:$0xff]   ;;  %v17450_v56 = vld [vmem:[%s23153_s11 + $0x13e8] sm:$0xff]  }
 0x25b   :  { %v15814_v0 = vpop.f32.mrf.mxu0  ;;  %16127 = vmatpush3.bf16.msra.mxu1 %v17412_v4  ;;  %16106 = vmatprep.subr.bf16.mxu0 %v17413_v5  ;;  %v17453_v59 = vld [vmem:[%s23153_s11 + $0x1360] sm:$0xff]   ;;  %v17461_v3 = vld [vmem:[%s23153_s11 + $0x1350] sm:$0xff]  }
 0x25c   :  { %v15836_v1 = vpop.f32.mrf.mxu1  ;;  %v20427_v2 = vadd.f32 %v15834_v57, %v7534_v61  ;;  %16128 = vmatprep.subr.bf16.mxu1 %v17414_v6  ;;  %v17451_v57 = vld [vmem:[%s23153_s11 + $0x1328] sm:$0xff]   ;;  %v17454_v60 = vld [vmem:[%s23153_s11 + $0x13e0] sm:$0xff]   ;;  %v17458_v0 = vld [vmem:[%s23153_s11 + $0x13d8] sm:$0xff]  }
 0x25d   :  { %v17455_v61 = vld [vmem:[%s23153_s11 + $0x1320] sm:$0xff]   ;;  %v17459_v1 = vld [vmem:[%s23153_s11 + $0x1318] sm:$0xff]   ;;  %v17462_v4 = vld [vmem:[%s23153_s11 + $0x13d0] sm:$0xff]  }
 0x25e   :  { %16107 = vmatpush3.bf16.msra.mxu0 %v17415_v7  ;;  %v17463_v5 = vld [vmem:[%s23153_s11 + $0x1310] sm:$0xff]   ;;  %v17465_v7 = vld [vmem:[%s23153_s11 + $0x1348] sm:$0xff]  }
 0x25f   :  { %16129 = vmatpush3.bf16.msra.mxu1 %v17416_v8  ;;  %16108 = vmatprep.subr.bf16.mxu0 %v17417_v9  ;;  %v17464_v6 = vld [vmem:[%s23153_s11 + $0x1390] sm:$0xff]   ;;  %v17466_v8 = vld [vmem:[%s23153_s11 + $0x13c8] sm:$0xff]  }
 0x260   :  { %16130 = vmatprep.subr.bf16.mxu1 %v17418_v10  ;;  %v17467_v9 = vld [vmem:[%s23153_s11 + $0x1308] sm:$0xff]   ;;  %v17482_v35 = vld [vmem:[%s23153_s11 + $0x14f0] sm:$0xff]  }
 0x261   :  { %v17468_v10 = vld [vmem:[%s23153_s11 + $0x1388] sm:$0xff]  }
 0x262   :  { %16109 = vmatpush3.bf16.msra.mxu0 %v17419_v11  ;;  %v17469_v11 = vld [vmem:[%s23153_s11 + $0x1340] sm:$0xff]  }
 0x263   :  { %16131 = vmatpush3.bf16.msra.mxu1 %v17420_v12  ;;  %16110 = vmatprep.subr.bf16.mxu0 %v17421_v13  ;;  %v17470_v12 = vld [vmem:[%s23153_s11 + $0x13c0] sm:$0xff]  }
 0x264   :  { %16132 = vmatprep.subr.bf16.mxu1 %v17422_v14  ;;  %v17471_v13 = vld [vmem:[%s23153_s11 + $0x1300] sm:$0xff]  }
 0x265   :  { %v17472_v14 = vld [vmem:[%s23153_s11 + $0x1380] sm:$0xff]  }
 0x266   :  { %16111 = vmatpush3.bf16.msra.mxu0 %v17423_v15  ;;  %v122_v15 = vld [vmem:[%s23154_s7 + $0x130] sm:$0xff] }
 0x267   :  { %16133 = vmatpush3.bf16.msra.mxu1 %v17424_v16  ;;  %16112 = vmatprep.subr.bf16.mxu0 %v17425_v17  ;;  %v123_v16 = vld [vmem:[%s23154_s7 + $0x138] sm:$0xff] }
 0x268   :  { %16134 = vmatprep.subr.bf16.mxu1 %v17426_v18  ;;  %v13917_v18 = vcombine.low %v122_v15, %v122_v15 }
 0x26a   :  { %16113 = vmatpush3.bf16.msra.mxu0 %v17427_v19  ;;  %v13918_v19 = vcombine.high %v122_v15, %v122_v15 }
 0x26b   :  { %16135 = vmatpush3.bf16.msra.mxu1 %v17428_v20  ;;  %16114 = vmatprep.subr.bf16.mxu0 %v17429_v21  ;;  %v13919_v20 = vcombine.low %v123_v16, %v123_v16 }
 0x26c   :  { %16136 = vmatprep.subr.bf16.mxu1 %v17430_v22  ;;  %v17477_v22 = vld [vmem:[%s23153_s11 + $0x1478] sm:$0xff]  }
 0x26e   :  { %16115 = vmatpush3.bf16.msra.mxu0 %v17431_v23  ;;  %v13920_v23 = vcombine.high %v123_v16, %v123_v16  ;;  %v17516_v16 = vld [vmem:[%s23153_s11 + $0x15b8] sm:$0xff]  }
 0x26f   :  { %16137 = vmatpush3.bf16.msra.mxu1 %v17432_v24  ;;  %16116 = vmatprep.subr.bf16.mxu0 %v17433_v25  ;;  %v17478_v24 = vld [vmem:[%s23153_s11 + $0x14f8] sm:$0xff]  }
 0x270   :  { %16138 = vmatprep.subr.bf16.mxu1 %v17434_v26  ;;  %v17479_v26 = vld [vmem:[%s23153_s11 + $0x1438] sm:$0xff]  }
 0x272   :  { %16117 = vmatpush3.bf16.msra.mxu0 %v17435_v27 }
 0x273   :  { %16139 = vmatpush3.bf16.msra.mxu1 %v17436_v28  ;;  %16146 = vmatprep.subr.bf16.mxu0 %v17441_v37 }
 0x274   :  { %16168 = vmatprep.subr.bf16.mxu1 %v17442_v38  ;;  %v17483_v38 = vld [vmem:[%s23153_s11 + $0x1430] sm:$0xff]  }
 0x275   :  { %v15854_v31 = vpop.f32.mrf.mxu0  ;;  %8092 = vmatmul.mubr.bf16.vlgmr.msra.gmra.mxu0 %v13913_v32 }
 0x276   :  { %v15876_v36 = vpop.f32.mrf.mxu1  ;;  %8132 = vmatmul.mubr.bf16.vlgmr.msra.gmra.mxu1 %v13915_v34  ;;  %16147 = vmatpush3.bf16.msra.mxu0 %v17443_v40  ;;  %v17481_v34 = vld [vmem:[%s23153_s11 + $0x1470] sm:$0xff]  }
 0x277   :  { %v15855_v39 = vpop.f32.mrf.mxu0  ;;  %16169 = vmatpush3.bf16.msra.mxu1 %v17444_v43  ;;  %16148 = vmatprep.subr.bf16.mxu0 %v17445_v48  ;;  %v17484_v40 = vld [vmem:[%s23153_s11 + $0x14b0] sm:$0xff]   ;;  %v17487_v43 = vld [vmem:[%s23153_s11 + $0x1428] sm:$0xff]   ;;  %v17492_v48 = vld [vmem:[%s23153_s11 + $0x14a0] sm:$0xff]  }
 0x278   :  { %v15856_v41 = vadd.f32 %v15855_v39, %v15854_v31  ;;  %v15877_v42 = vpop.f32.mrf.mxu1  ;;  %16170 = vmatprep.subr.bf16.mxu1 %v17446_v49  ;;  %8171 = vmatprep.mubr.bf16.mxu0 %v13918_v19  ;;  %v17493_v49 = vld [vmem:[%s23153_s11 + $0x1458] sm:$0xff]  }
 0x279   :  { %v15878_v44 = vadd.f32 %v15877_v42, %v15876_v36  ;;  %v15857_v45 = vpop.f32.mrf.mxu0  ;;  %8211 = vmatprep.mubr.bf16.mxu1 %v13920_v23  ;;  %v17486_v42 = vld [vmem:[%s23153_s11 + $0x14e8] sm:$0xff]  }
 0x27a   :  { %v7614_v46 = vadd.f32 %v15856_v41, %v20427_v2  ;;  %v15879_v47 = vpop.f32.mrf.mxu1  ;;  %16149 = vmatpush3.bf16.msra.mxu0 %v17447_v52  ;;  %v17460_v2 = vld [vmem:[%s23153_s11 + $0x1398] sm:$0xff]   ;;  %v17485_v41 = vld [vmem:[%s23153_s11 + $0x1468] sm:$0xff]   ;;  %v17489_v45 = vld [vmem:[%s23153_s11 + $0x1460] sm:$0xff]  }
 0x27b   :  { %v15858_v50 = vpop.f32.mrf.mxu0  ;;  %16171 = vmatpush3.bf16.msra.mxu1 %v17448_v54  ;;  %16150 = vmatprep.subr.bf16.mxu0 %v17449_v55  ;;  %v17491_v47 = vld [vmem:[%s23153_s11 + $0x1420] sm:$0xff]   ;;  %v17496_v52 = vld [vmem:[%s23153_s11 + $0x1498] sm:$0xff]   ;;  %v17498_v54 = vld [vmem:[%s23153_s11 + $0x14d0] sm:$0xff]  }
 0x27c   :  { %v20532_v51 = vadd.f32 %v15878_v44, %v7614_v46  ;;  %v15880_v53 = vpop.f32.mrf.mxu1  ;;  %16172 = vmatprep.subr.bf16.mxu1 %v17450_v56  ;;  %v17488_v44 = vld [vmem:[%s23153_s11 + $0x14a8] sm:$0xff]   ;;  %v17490_v46 = vld [vmem:[%s23153_s11 + $0x14e0] sm:$0xff]   ;;  %v17494_v50 = vld [vmem:[%s23153_s11 + $0x14d8] sm:$0xff]  }
 0x27d   :  { %v17497_v53 = vld [vmem:[%s23153_s11 + $0x1450] sm:$0xff]  }
 0x27e   :  { %16151 = vmatpush3.bf16.msra.mxu0 %v17451_v57  ;;  %v17499_v55 = vld [vmem:[%s23153_s11 + $0x1410] sm:$0xff]   ;;  %v17501_v57 = vld [vmem:[%s23153_s11 + $0x1448] sm:$0xff]  }
 0x27f   :  { %16173 = vmatpush3.bf16.msra.mxu1 %v17452_v58  ;;  %16152 = vmatprep.subr.bf16.mxu0 %v17453_v59  ;;  %v17500_v56 = vld [vmem:[%s23153_s11 + $0x1490] sm:$0xff]   ;;  %v17502_v58 = vld [vmem:[%s23153_s11 + $0x14c8] sm:$0xff]  }
 0x280   :  { %16174 = vmatprep.subr.bf16.mxu1 %v17454_v60  ;;  %v17503_v59 = vld [vmem:[%s23153_s11 + $0x1408] sm:$0xff]  }
 0x281   :  { %v17504_v60 = vld [vmem:[%s23153_s11 + $0x1488] sm:$0xff]  }
 0x282   :  { %16153 = vmatpush3.bf16.msra.mxu0 %v17455_v61  ;;  %v17505_v61 = vld [vmem:[%s23153_s11 + $0x1440] sm:$0xff]  }
 0x283   :  { %16175 = vmatpush3.bf16.msra.mxu1 %v17456_v62  ;;  %16154 = vmatprep.subr.bf16.mxu0 %v17457_v63  ;;  %v17506_v62 = vld [vmem:[%s23153_s11 + $0x14c0] sm:$0xff]  }
 0x284   :  { %16176 = vmatprep.subr.bf16.mxu1 %v17458_v0  ;;  %v17507_v63 = vld [vmem:[%s23153_s11 + $0x1400] sm:$0xff]  }
 0x285   :  { %v17508_v0 = vld [vmem:[%s23153_s11 + $0x1480] sm:$0xff]  }
 0x286   :  { %16155 = vmatpush3.bf16.msra.mxu0 %v17459_v1  ;;  %v124_v1 = vld [vmem:[%s23154_s7 + $0x140] sm:$0xff] }
 0x287   :  { %16177 = vmatpush3.bf16.msra.mxu1 %v17460_v2  ;;  %16156 = vmatprep.subr.bf16.mxu0 %v17461_v3  ;;  %v13921_v2 = vcombine.low %v124_v1, %v124_v1  ;;  %v13922_v3 = vcombine.high %v124_v1, %v124_v1  ;;  %v17552_v1 = vld [vmem:[%s23153_s11 + $0x16b8] sm:$0xff]  }
 0x288   :  { %16178 = vmatprep.subr.bf16.mxu1 %v17462_v4  ;;  %v125_v4 = vld [vmem:[%s23154_s7 + $0x148] sm:$0xff] }
 0x28a   :  { %16157 = vmatpush3.bf16.msra.mxu0 %v17463_v5 }
 0x28b   :  { %16179 = vmatpush3.bf16.msra.mxu1 %v17464_v6  ;;  %16158 = vmatprep.subr.bf16.mxu0 %v17465_v7  ;;  %v13923_v7 = vcombine.low %v125_v4, %v125_v4 }
 0x28c   :  { %16180 = vmatprep.subr.bf16.mxu1 %v17466_v8  ;;  %v13924_v8 = vcombine.high %v125_v4, %v125_v4 }
 0x28e   :  { %16159 = vmatpush3.bf16.msra.mxu0 %v17467_v9  ;;  %v17513_v9 = vld [vmem:[%s23153_s11 + $0x1578] sm:$0xff]  }
 0x28f   :  { %16181 = vmatpush3.bf16.msra.mxu1 %v17468_v10  ;;  %16160 = vmatprep.subr.bf16.mxu0 %v17469_v11  ;;  %v17514_v10 = vld [vmem:[%s23153_s11 + $0x15f8] sm:$0xff]  }
 0x290   :  { %16182 = vmatprep.subr.bf16.mxu1 %v17470_v12 }
 0x292   :  { %16161 = vmatpush3.bf16.msra.mxu0 %v17471_v13  ;;  %v17515_v13 = vld [vmem:[%s23153_s11 + $0x1538] sm:$0xff]  }
 0x293   :  { %16183 = vmatpush3.bf16.msra.mxu1 %v17472_v14  ;;  %16190 = vmatprep.subr.bf16.mxu0 %v17477_v22 }
 0x294   :  { %16212 = vmatprep.subr.bf16.mxu1 %v17478_v24 }
 0x295   :  { %v15898_v17 = vpop.f32.mrf.mxu0  ;;  %8172 = vmatmul.mubr.bf16.vlgmr.msra.gmra.mxu0 %v13917_v18 }
 0x296   :  { %v15920_v21 = vpop.f32.mrf.mxu1  ;;  %8212 = vmatmul.mubr.bf16.vlgmr.msra.gmra.mxu1 %v13919_v20  ;;  %16191 = vmatpush3.bf16.msra.mxu0 %v17479_v26  ;;  %v17517_v20 = vld [vmem:[%s23153_s11 + $0x1570] sm:$0xff]  }
 0x297   :  { %v15899_v25 = vpop.f32.mrf.mxu0  ;;  %16213 = vmatpush3.bf16.msra.mxu1 %v17480_v29  ;;  %16192 = vmatprep.subr.bf16.mxu0 %v17481_v34  ;;  %v17520_v26 = vld [vmem:[%s23153_s11 + $0x15b0] sm:$0xff]   ;;  %v17523_v29 = vld [vmem:[%s23153_s11 + $0x1528] sm:$0xff]   ;;  %v17528_v34 = vld [vmem:[%s23153_s11 + $0x15a0] sm:$0xff]  }
 0x298   :  { %v15900_v27 = vadd.f32 %v15899_v25, %v15898_v17  ;;  %v15921_v28 = vpop.f32.mrf.mxu1  ;;  %16214 = vmatprep.subr.bf16.mxu1 %v17482_v35  ;;  %8251 = vmatprep.mubr.bf16.mxu0 %v13922_v3  ;;  %v17519_v25 = vld [vmem:[%s23153_s11 + $0x1530] sm:$0xff]   ;;  %v17529_v35 = vld [vmem:[%s23153_s11 + $0x1558] sm:$0xff]  }
 0x299   :  { %v15922_v30 = vadd.f32 %v15921_v28, %v15920_v21  ;;  %v15901_v31 = vpop.f32.mrf.mxu0  ;;  %8291 = vmatprep.mubr.bf16.mxu1 %v13924_v8  ;;  %v17518_v21 = vld [vmem:[%s23153_s11 + $0x15f0] sm:$0xff]   ;;  %v17522_v28 = vld [vmem:[%s23153_s11 + $0x15e8] sm:$0xff]  }
 0x29a   :  { %v7694_v32 = vadd.f32 %v15900_v27, %v20532_v51  ;;  %v15923_v33 = vpop.f32.mrf.mxu1  ;;  %16193 = vmatpush3.bf16.msra.mxu0 %v17483_v38  ;;  %v17495_v51 = vld [vmem:[%s23153_s11 + $0x1418] sm:$0xff]   ;;  %v17521_v27 = vld [vmem:[%s23153_s11 + $0x1568] sm:$0xff]   ;;  %v17525_v31 = vld [vmem:[%s23153_s11 + $0x1560] sm:$0xff]  }
 0x29b   :  { %v15902_v36 = vpop.f32.mrf.mxu0  ;;  %16215 = vmatpush3.bf16.msra.mxu1 %v17484_v40  ;;  %16194 = vmatprep.subr.bf16.mxu0 %v17485_v41  ;;  %v17527_v33 = vld [vmem:[%s23153_s11 + $0x1520] sm:$0xff]   ;;  %v17532_v38 = vld [vmem:[%s23153_s11 + $0x1598] sm:$0xff]   ;;  %v17534_v40 = vld [vmem:[%s23153_s11 + $0x15d0] sm:$0xff]  }
 0x29c   :  { %v20637_v37 = vadd.f32 %v15922_v30, %v7694_v32  ;;  %v15924_v39 = vpop.f32.mrf.mxu1  ;;  %16216 = vmatprep.subr.bf16.mxu1 %v17486_v42  ;;  %v17524_v30 = vld [vmem:[%s23153_s11 + $0x15a8] sm:$0xff]   ;;  %v17526_v32 = vld [vmem:[%s23153_s11 + $0x15e0] sm:$0xff]   ;;  %v17530_v36 = vld [vmem:[%s23153_s11 + $0x15d8] sm:$0xff]  }
 0x29d   :  { %v17533_v39 = vld [vmem:[%s23153_s11 + $0x1550] sm:$0xff]  }
 0x29e   :  { %16195 = vmatpush3.bf16.msra.mxu0 %v17487_v43  ;;  %v17535_v41 = vld [vmem:[%s23153_s11 + $0x1510] sm:$0xff]   ;;  %v17537_v43 = vld [vmem:[%s23153_s11 + $0x1548] sm:$0xff]  }
 0x29f   :  { %16217 = vmatpush3.bf16.msra.mxu1 %v17488_v44  ;;  %16196 = vmatprep.subr.bf16.mxu0 %v17489_v45  ;;  %v17536_v42 = vld [vmem:[%s23153_s11 + $0x1590] sm:$0xff]   ;;  %v17538_v44 = vld [vmem:[%s23153_s11 + $0x15c8] sm:$0xff]  }
 0x2a0   :  { %16218 = vmatprep.subr.bf16.mxu1 %v17490_v46  ;;  %v17539_v45 = vld [vmem:[%s23153_s11 + $0x1508] sm:$0xff]  }
 0x2a1   :  { %v17540_v46 = vld [vmem:[%s23153_s11 + $0x1588] sm:$0xff]  }
 0x2a2   :  { %16197 = vmatpush3.bf16.msra.mxu0 %v17491_v47  ;;  %v17541_v47 = vld [vmem:[%s23153_s11 + $0x1540] sm:$0xff]  }
 0x2a3   :  { %16219 = vmatpush3.bf16.msra.mxu1 %v17492_v48  ;;  %16198 = vmatprep.subr.bf16.mxu0 %v17493_v49  ;;  %v17542_v48 = vld [vmem:[%s23153_s11 + $0x15c0] sm:$0xff]  }
 0x2a4   :  { %16220 = vmatprep.subr.bf16.mxu1 %v17494_v50  ;;  %v17543_v49 = vld [vmem:[%s23153_s11 + $0x1500] sm:$0xff]  }
 0x2a5   :  { %v17544_v50 = vld [vmem:[%s23153_s11 + $0x1580] sm:$0xff]  }
 0x2a6   :  { %16199 = vmatpush3.bf16.msra.mxu0 %v17495_v51  ;;  %v126_v51 = vld [vmem:[%s23154_s7 + $0x150] sm:$0xff] }
 0x2a7   :  { %16221 = vmatpush3.bf16.msra.mxu1 %v17496_v52  ;;  %16200 = vmatprep.subr.bf16.mxu0 %v17497_v53  ;;  %v127_v52 = vld [vmem:[%s23154_s7 + $0x158] sm:$0xff] }
 0x2a8   :  { %16222 = vmatprep.subr.bf16.mxu1 %v17498_v54  ;;  %v13925_v54 = vcombine.low %v126_v51, %v126_v51 }
 0x2aa   :  { %16201 = vmatpush3.bf16.msra.mxu0 %v17499_v55  ;;  %v13926_v55 = vcombine.high %v126_v51, %v126_v51  ;;  %v17588_v51 = vld [vmem:[%s23153_s11 + $0x17b8] sm:$0xff]  }
 0x2ab   :  { %16223 = vmatpush3.bf16.msra.mxu1 %v17500_v56  ;;  %16202 = vmatprep.subr.bf16.mxu0 %v17501_v57  ;;  %v13927_v56 = vcombine.low %v127_v52, %v127_v52  ;;  %v13928_v57 = vcombine.high %v127_v52, %v127_v52 }
 0x2ac   :  { %16224 = vmatprep.subr.bf16.mxu1 %v17502_v58 }
 0x2ae   :  { %16203 = vmatpush3.bf16.msra.mxu0 %v17503_v59  ;;  %v17549_v59 = vld [vmem:[%s23153_s11 + $0x1678] sm:$0xff]  }
 0x2af   :  { %16225 = vmatpush3.bf16.msra.mxu1 %v17504_v60  ;;  %16204 = vmatprep.subr.bf16.mxu0 %v17505_v61  ;;  %v17550_v60 = vld [vmem:[%s23153_s11 + $0x16f8] sm:$0xff]  }
 0x2b0   :  { %16226 = vmatprep.subr.bf16.mxu1 %v17506_v62  ;;  %v17551_v62 = vld [vmem:[%s23153_s11 + $0x1638] sm:$0xff]  }
 0x2b2   :  { %16205 = vmatpush3.bf16.msra.mxu0 %v17507_v63 }
 0x2b3   :  { %16227 = vmatpush3.bf16.msra.mxu1 %v17508_v0  ;;  %16234 = vmatprep.subr.bf16.mxu0 %v17513_v9 }
 0x2b4   :  { %16256 = vmatprep.subr.bf16.mxu1 %v17514_v10  ;;  %v17555_v10 = vld [vmem:[%s23153_s11 + $0x1630] sm:$0xff]  }
 0x2b5   :  { %v15942_v5 = vpop.f32.mrf.mxu0  ;;  %8252 = vmatmul.mubr.bf16.vlgmr.msra.gmra.mxu0 %v13921_v2 }
 0x2b6   :  { %v15964_v6 = vpop.f32.mrf.mxu1  ;;  %8292 = vmatmul.mubr.bf16.vlgmr.msra.gmra.mxu1 %v13923_v7  ;;  %16235 = vmatpush3.bf16.msra.mxu0 %v17515_v13  ;;  %v17554_v7 = vld [vmem:[%s23153_s11 + $0x16f0] sm:$0xff]   ;;  %v17557_v13 = vld [vmem:[%s23153_s11 + $0x1668] sm:$0xff]  }
 0x2b7   :  { %v15943_v11 = vpop.f32.mrf.mxu0  ;;  %16257 = vmatpush3.bf16.msra.mxu1 %v17516_v16  ;;  %16236 = vmatprep.subr.bf16.mxu0 %v17517_v20  ;;  %v17560_v16 = vld [vmem:[%s23153_s11 + $0x16a8] sm:$0xff]   ;;  %v17564_v20 = vld [vmem:[%s23153_s11 + $0x16a0] sm:$0xff]  }
 0x2b8   :  { %v15965_v12 = vpop.f32.mrf.mxu1  ;;  %v15944_v14 = vadd.f32 %v15943_v11, %v15942_v5  ;;  %16258 = vmatprep.subr.bf16.mxu1 %v17518_v21  ;;  %8331 = vmatprep.mubr.bf16.mxu0 %v13926_v55  ;;  %v17565_v21 = vld [vmem:[%s23153_s11 + $0x1658] sm:$0xff]  }
 0x2b9   :  { %v15966_v15 = vadd.f32 %v15965_v12, %v15964_v6  ;;  %v15945_v17 = vpop.f32.mrf.mxu0  ;;  %8371 = vmatprep.mubr.bf16.mxu1 %v13928_v57  ;;  %v17553_v6 = vld [vmem:[%s23153_s11 + $0x1670] sm:$0xff]  }
 0x2ba   :  { %v15967_v18 = vpop.f32.mrf.mxu1  ;;  %v7774_v19 = vadd.f32 %v15944_v14, %v20637_v37  ;;  %16237 = vmatpush3.bf16.msra.mxu0 %v17519_v25  ;;  %v17531_v37 = vld [vmem:[%s23153_s11 + $0x1518] sm:$0xff]   ;;  %v17556_v12 = vld [vmem:[%s23153_s11 + $0x16b0] sm:$0xff]   ;;  %v17558_v14 = vld [vmem:[%s23153_s11 + $0x16e8] sm:$0xff]  }
 0x2bb   :  { %v15946_v22 = vpop.f32.mrf.mxu0  ;;  %16259 = vmatpush3.bf16.msra.mxu1 %v17520_v26  ;;  %16238 = vmatprep.subr.bf16.mxu0 %v17521_v27  ;;  %v17561_v17 = vld [vmem:[%s23153_s11 + $0x1660] sm:$0xff]   ;;  %v17569_v25 = vld [vmem:[%s23153_s11 + $0x1650] sm:$0xff]  }
 0x2bc   :  { %v15968_v23 = vpop.f32.mrf.mxu1  ;;  %v20742_v24 = vadd.f32 %v15966_v15, %v7774_v19  ;;  %16260 = vmatprep.subr.bf16.mxu1 %v17522_v28  ;;  %v17559_v15 = vld [vmem:[%s23153_s11 + $0x1628] sm:$0xff]   ;;  %v17562_v18 = vld [vmem:[%s23153_s11 + $0x16e0] sm:$0xff]   ;;  %v17566_v22 = vld [vmem:[%s23153_s11 + $0x16d8] sm:$0xff]  }
 0x2bd   :  { %v17563_v19 = vld [vmem:[%s23153_s11 + $0x1620] sm:$0xff]   ;;  %v17567_v23 = vld [vmem:[%s23153_s11 + $0x1618] sm:$0xff]   ;;  %v17570_v26 = vld [vmem:[%s23153_s11 + $0x16d0] sm:$0xff]  }
 0x2be   :  { %16239 = vmatpush3.bf16.msra.mxu0 %v17523_v29  ;;  %v17571_v27 = vld [vmem:[%s23153_s11 + $0x1610] sm:$0xff]   ;;  %v17573_v29 = vld [vmem:[%s23153_s11 + $0x1648] sm:$0xff]  }
 0x2bf   :  { %16261 = vmatpush3.bf16.msra.mxu1 %v17524_v30  ;;  %16240 = vmatprep.subr.bf16.mxu0 %v17525_v31  ;;  %v17572_v28 = vld [vmem:[%s23153_s11 + $0x1690] sm:$0xff]   ;;  %v17574_v30 = vld [vmem:[%s23153_s11 + $0x16c8] sm:$0xff]  }
 0x2c0   :  { %16262 = vmatprep.subr.bf16.mxu1 %v17526_v32  ;;  %v17575_v31 = vld [vmem:[%s23153_s11 + $0x1608] sm:$0xff]   ;;  %v17590_v57 = vld [vmem:[%s23153_s11 + $0x17f0] sm:$0xff]  }
 0x2c1   :  { %v17576_v32 = vld [vmem:[%s23153_s11 + $0x1688] sm:$0xff]  }
 0x2c2   :  { %16241 = vmatpush3.bf16.msra.mxu0 %v17527_v33  ;;  %v17577_v33 = vld [vmem:[%s23153_s11 + $0x1640] sm:$0xff]  }
 0x2c3   :  { %16263 = vmatpush3.bf16.msra.mxu1 %v17528_v34  ;;  %16242 = vmatprep.subr.bf16.mxu0 %v17529_v35  ;;  %v17578_v34 = vld [vmem:[%s23153_s11 + $0x16c0] sm:$0xff]  }
 0x2c4   :  { %16264 = vmatprep.subr.bf16.mxu1 %v17530_v36  ;;  %v17579_v35 = vld [vmem:[%s23153_s11 + $0x1600] sm:$0xff]  }
 0x2c5   :  { %v17580_v36 = vld [vmem:[%s23153_s11 + $0x1680] sm:$0xff]  }
 0x2c6   :  { %16243 = vmatpush3.bf16.msra.mxu0 %v17531_v37  ;;  %v128_v37 = vld [vmem:[%s23154_s7 + $0x160] sm:$0xff] }
 0x2c7   :  { %16265 = vmatpush3.bf16.msra.mxu1 %v17532_v38  ;;  %16244 = vmatprep.subr.bf16.mxu0 %v17533_v39  ;;  %v129_v38 = vld [vmem:[%s23154_s7 + $0x168] sm:$0xff] }
 0x2c8   :  { %16266 = vmatprep.subr.bf16.mxu1 %v17534_v40  ;;  %v13929_v40 = vcombine.low %v128_v37, %v128_v37 }
 0x2ca   :  { %16245 = vmatpush3.bf16.msra.mxu0 %v17535_v41  ;;  %v13930_v41 = vcombine.high %v128_v37, %v128_v37 }
 0x2cb   :  { %16267 = vmatpush3.bf16.msra.mxu1 %v17536_v42  ;;  %16246 = vmatprep.subr.bf16.mxu0 %v17537_v43  ;;  %v13931_v42 = vcombine.low %v129_v38, %v129_v38 }
 0x2cc   :  { %16268 = vmatprep.subr.bf16.mxu1 %v17538_v44  ;;  %v17585_v44 = vld [vmem:[%s23153_s11 + $0x1778] sm:$0xff]  }
 0x2ce   :  { %16247 = vmatpush3.bf16.msra.mxu0 %v17539_v45  ;;  %v13932_v45 = vcombine.high %v129_v38, %v129_v38 }
 0x2cf   :  { %16269 = vmatpush3.bf16.msra.mxu1 %v17540_v46  ;;  %16248 = vmatprep.subr.bf16.mxu0 %v17541_v47  ;;  %v17586_v46 = vld [vmem:[%s23153_s11 + $0x17f8] sm:$0xff]  }
 0x2d0   :  { %16270 = vmatprep.subr.bf16.mxu1 %v17542_v48  ;;  %v17587_v48 = vld [vmem:[%s23153_s11 + $0x1738] sm:$0xff]  }
 0x2d2   :  { %16249 = vmatpush3.bf16.msra.mxu0 %v17543_v49 }
 0x2d3   :  { %16271 = vmatpush3.bf16.msra.mxu1 %v17544_v50  ;;  %16278 = vmatprep.subr.bf16.mxu0 %v17549_v59 }
 0x2d4   :  { %16300 = vmatprep.subr.bf16.mxu1 %v17550_v60  ;;  %v17591_v60 = vld [vmem:[%s23153_s11 + $0x1730] sm:$0xff]  }
 0x2d5   :  { %v15986_v53 = vpop.f32.mrf.mxu0  ;;  %8332 = vmatmul.mubr.bf16.vlgmr.msra.gmra.mxu0 %v13925_v54 }
 0x2d6   :  { %v16008_v58 = vpop.f32.mrf.mxu1  ;;  %8372 = vmatmul.mubr.bf16.vlgmr.msra.gmra.mxu1 %v13927_v56  ;;  %16279 = vmatpush3.bf16.msra.mxu0 %v17551_v62  ;;  %v17589_v56 = vld [vmem:[%s23153_s11 + $0x1770] sm:$0xff]  }
 0x2d7   :  { %v15987_v61 = vpop.f32.mrf.mxu0  ;;  %16301 = vmatpush3.bf16.msra.mxu1 %v17552_v1  ;;  %16280 = vmatprep.subr.bf16.mxu0 %v17553_v6  ;;  %v17592_v62 = vld [vmem:[%s23153_s11 + $0x17b0] sm:$0xff]   ;;  %v17595_v1 = vld [vmem:[%s23153_s11 + $0x1728] sm:$0xff]   ;;  %v17600_v6 = vld [vmem:[%s23153_s11 + $0x17a0] sm:$0xff]  }
 0x2d8   :  { %v15988_v63 = vadd.f32 %v15987_v61, %v15986_v53  ;;  %v16009_v0 = vpop.f32.mrf.mxu1  ;;  %16302 = vmatprep.subr.bf16.mxu1 %v17554_v7  ;;  %8411 = vmatprep.mubr.bf16.mxu0 %v13930_v41  ;;  %v17601_v7 = vld [vmem:[%s23153_s11 + $0x1758] sm:$0xff]  }
 0x2d9   :  { %v16010_v2 = vadd.f32 %v16009_v0, %v16008_v58  ;;  %v15989_v3 = vpop.f32.mrf.mxu0  ;;  %8451 = vmatprep.mubr.bf16.mxu1 %v13932_v45  ;;  %v17594_v0 = vld [vmem:[%s23153_s11 + $0x17e8] sm:$0xff]  }
 0x2da   :  { %v7854_v4 = vadd.f32 %v15988_v63, %v20742_v24  ;;  %v16011_v5 = vpop.f32.mrf.mxu1  ;;  %16281 = vmatpush3.bf16.msra.mxu0 %v17555_v10  ;;  %v17568_v24 = vld [vmem:[%s23153_s11 + $0x1698] sm:$0xff]   ;;  %v17593_v63 = vld [vmem:[%s23153_s11 + $0x1768] sm:$0xff]   ;;  %v17597_v3 = vld [vmem:[%s23153_s11 + $0x1760] sm:$0xff]  }
 0x2db   :  { %v15990_v8 = vpop.f32.mrf.mxu0  ;;  %16303 = vmatpush3.bf16.msra.mxu1 %v17556_v12  ;;  %16282 = vmatprep.subr.bf16.mxu0 %v17557_v13  ;;  %v17599_v5 = vld [vmem:[%s23153_s11 + $0x1720] sm:$0xff]   ;;  %v17604_v10 = vld [vmem:[%s23153_s11 + $0x1798] sm:$0xff]   ;;  %v17606_v12 = vld [vmem:[%s23153_s11 + $0x17d0] sm:$0xff]  }
 0x2dc   :  { %v20847_v9 = vadd.f32 %v16010_v2, %v7854_v4  ;;  %v16012_v11 = vpop.f32.mrf.mxu1  ;;  %16304 = vmatprep.subr.bf16.mxu1 %v17558_v14  ;;  %v17596_v2 = vld [vmem:[%s23153_s11 + $0x17a8] sm:$0xff]   ;;  %v17598_v4 = vld [vmem:[%s23153_s11 + $0x17e0] sm:$0xff]   ;;  %v17602_v8 = vld [vmem:[%s23153_s11 + $0x17d8] sm:$0xff]  }
 0x2dd   :  { %v17605_v11 = vld [vmem:[%s23153_s11 + $0x1750] sm:$0xff]  }
 0x2de   :  { %16283 = vmatpush3.bf16.msra.mxu0 %v17559_v15  ;;  %v17607_v13 = vld [vmem:[%s23153_s11 + $0x1710] sm:$0xff]   ;;  %v17609_v15 = vld [vmem:[%s23153_s11 + $0x1748] sm:$0xff]  }
 0x2df   :  { %16305 = vmatpush3.bf16.msra.mxu1 %v17560_v16  ;;  %16284 = vmatprep.subr.bf16.mxu0 %v17561_v17  ;;  %v17608_v14 = vld [vmem:[%s23153_s11 + $0x1790] sm:$0xff]   ;;  %v17610_v16 = vld [vmem:[%s23153_s11 + $0x17c8] sm:$0xff]  }
 0x2e0   :  { %16306 = vmatprep.subr.bf16.mxu1 %v17562_v18  ;;  %v17611_v17 = vld [vmem:[%s23153_s11 + $0x1708] sm:$0xff]  }
 0x2e1   :  { %v17612_v18 = vld [vmem:[%s23153_s11 + $0x1788] sm:$0xff]  }
 0x2e2   :  { %16285 = vmatpush3.bf16.msra.mxu0 %v17563_v19  ;;  %v17613_v19 = vld [vmem:[%s23153_s11 + $0x1740] sm:$0xff]  }
 0x2e3   :  { %16307 = vmatpush3.bf16.msra.mxu1 %v17564_v20  ;;  %16286 = vmatprep.subr.bf16.mxu0 %v17565_v21  ;;  %v17614_v20 = vld [vmem:[%s23153_s11 + $0x17c0] sm:$0xff]  }
 0x2e4   :  { %16308 = vmatprep.subr.bf16.mxu1 %v17566_v22  ;;  %v17615_v21 = vld [vmem:[%s23153_s11 + $0x1700] sm:$0xff]  }
 0x2e5   :  { %v17616_v22 = vld [vmem:[%s23153_s11 + $0x1780] sm:$0xff]  }
 0x2e6   :  { %16287 = vmatpush3.bf16.msra.mxu0 %v17567_v23  ;;  %v130_v23 = vld [vmem:[%s23154_s7 + $0x170] sm:$0xff] }
 0x2e7   :  { %16309 = vmatpush3.bf16.msra.mxu1 %v17568_v24  ;;  %16288 = vmatprep.subr.bf16.mxu0 %v17569_v25  ;;  %v13933_v24 = vcombine.low %v130_v23, %v130_v23  ;;  %v13934_v25 = vcombine.high %v130_v23, %v130_v23 }
 0x2e8   :  { %16310 = vmatprep.subr.bf16.mxu1 %v17570_v26  ;;  %v131_v26 = vld [vmem:[%s23154_s7 + $0x178] sm:$0xff]  ;;  %s23160_s7 = sld [smem:[#allocation7_spill]] }
 0x2ea   :  { %16289 = vmatpush3.bf16.msra.mxu0 %v17571_v27 }
 0x2eb   :  { %16311 = vmatpush3.bf16.msra.mxu1 %v17572_v28  ;;  %16290 = vmatprep.subr.bf16.mxu0 %v17573_v29  ;;  %v13935_v29 = vcombine.low %v131_v26, %v131_v26 }
 0x2ec   :  { %16312 = vmatprep.subr.bf16.mxu1 %v17574_v30  ;;  %v13936_v30 = vcombine.high %v131_v26, %v131_v26 }
 0x2ee   :  { %16291 = vmatpush3.bf16.msra.mxu0 %v17575_v31 }
 0x2ef   :  { %16313 = vmatpush3.bf16.msra.mxu1 %v17576_v32  ;;  %16292 = vmatprep.subr.bf16.mxu0 %v17577_v33 }
 0x2f0   :  { %16314 = vmatprep.subr.bf16.mxu1 %v17578_v34 }
 0x2f2   :  { %16293 = vmatpush3.bf16.msra.mxu0 %v17579_v35 }
 0x2f3   :  { %16315 = vmatpush3.bf16.msra.mxu1 %v17580_v36  ;;  %16322 = vmatprep.subr.bf16.mxu0 %v17585_v44 }
 0x2f4   :  { %16344 = vmatprep.subr.bf16.mxu1 %v17586_v46 }
 0x2f5   :  { %v16030_v39 = vpop.f32.mrf.mxu0  ;;  %8412 = vmatmul.mubr.bf16.vlgmr.msra.gmra.mxu0 %v13929_v40 }
 0x2f6   :  { %v16052_v43 = vpop.f32.mrf.mxu1  ;;  %8452 = vmatmul.mubr.bf16.vlgmr.msra.gmra.mxu1 %v13931_v42  ;;  %16323 = vmatpush3.bf16.msra.mxu0 %v17587_v48 }
 0x2f7   :  { %v16031_v47 = vpop.f32.mrf.mxu0  ;;  %16345 = vmatpush3.bf16.msra.mxu1 %v17588_v51  ;;  %16324 = vmatprep.subr.bf16.mxu0 %v17589_v56 }
 0x2f8   :  { %v16032_v49 = vadd.f32 %v16031_v47, %v16030_v39  ;;  %v16053_v50 = vpop.f32.mrf.mxu1  ;;  %16346 = vmatprep.subr.bf16.mxu1 %v17590_v57  ;;  %8491 = vmatprep.mubr.bf16.mxu0 %v13934_v25 }
 0x2f9   :  { %v16054_v52 = vadd.f32 %v16053_v50, %v16052_v43  ;;  %v16033_v53 = vpop.f32.mrf.mxu0  ;;  %8531 = vmatprep.mubr.bf16.mxu1 %v13936_v30 }
 0x2fa   :  { %v7934_v54 = vadd.f32 %v16032_v49, %v20847_v9  ;;  %v16055_v55 = vpop.f32.mrf.mxu1  ;;  %16325 = vmatpush3.bf16.msra.mxu0 %v17591_v60  ;;  %v17603_v9 = vld [vmem:[%s23153_s11 + $0x1718] sm:$0xff]   ;;  %s23159_s11 = sld [smem:[#allocation6_spill]] }
 0x2fb   :  { %v16034_v58 = vpop.f32.mrf.mxu0  ;;  %16347 = vmatpush3.bf16.msra.mxu1 %v17592_v62  ;;  %16326 = vmatprep.subr.bf16.mxu0 %v17593_v63 }
 0x2fc   :  { %v20952_v59 = vadd.f32 %v16054_v52, %v7934_v54  ;;  %v16056_v61 = vpop.f32.mrf.mxu1  ;;  %16348 = vmatprep.subr.bf16.mxu1 %v17594_v0 }
 0x2fe   :  { %16327 = vmatpush3.bf16.msra.mxu0 %v17595_v1  ;;  %v17621_v1 = vld [vmem:[%s23156_s0] sm:$0xff]  }
 0x2ff   :  { %16349 = vmatpush3.bf16.msra.mxu1 %v17596_v2  ;;  %16328 = vmatprep.subr.bf16.mxu0 %v17597_v3 }
 0x300   :  { %16350 = vmatprep.subr.bf16.mxu1 %v17598_v4 }
 0x302   :  { %16329 = vmatpush3.bf16.msra.mxu0 %v17599_v5 }
 0x303   :  { %16351 = vmatpush3.bf16.msra.mxu1 %v17600_v6  ;;  %16330 = vmatprep.subr.bf16.mxu0 %v17601_v7 }
 0x304   :  { %16352 = vmatprep.subr.bf16.mxu1 %v17602_v8 }
 0x306   :  { %16331 = vmatpush3.bf16.msra.mxu0 %v17603_v9 }
 0x307   :  { %16353 = vmatpush3.bf16.msra.mxu1 %v17604_v10  ;;  %16332 = vmatprep.subr.bf16.mxu0 %v17605_v11 }
 0x308   :  { %16354 = vmatprep.subr.bf16.mxu1 %v17606_v12 }
 0x30a   :  { %16333 = vmatpush3.bf16.msra.mxu0 %v17607_v13 }
 0x30b   :  { %16355 = vmatpush3.bf16.msra.mxu1 %v17608_v14  ;;  %16334 = vmatprep.subr.bf16.mxu0 %v17609_v15 }
 0x30c   :  { %16356 = vmatprep.subr.bf16.mxu1 %v17610_v16 }
 0x30e   :  { %16335 = vmatpush3.bf16.msra.mxu0 %v17611_v17 }
 0x30f   :  { %16357 = vmatpush3.bf16.msra.mxu1 %v17612_v18  ;;  %16336 = vmatprep.subr.bf16.mxu0 %v17613_v19 }
 0x310   :  { %16358 = vmatprep.subr.bf16.mxu1 %v17614_v20 }
 0x312   :  { %16337 = vmatpush3.bf16.msra.mxu0 %v17615_v21 }
 0x313   :  { %16359 = vmatpush3.bf16.msra.mxu1 %v17616_v22 }
 0x315   :  { %v16074_v27 = vpop.f32.mrf.mxu0  ;;  %8492 = vmatmul.mubr.bf16.vlgmr.msra.gmra.mxu0 %v13933_v24 }
 0x316   :  { %v16096_v28 = vpop.f32.mrf.mxu1  ;;  %8532 = vmatmul.mubr.bf16.vlgmr.msra.gmra.mxu1 %v13935_v29  ;;  %16566 = vmatprep.mubr.msk.bf16.mxu0 %vm8597_vm0, %v17621_v1  ;;  %v17631_v1 = vld [vmem:[%s23156_s0 + $0x20] sm:$0xff]  }
 0x317   :  { %v16075_v31 = vpop.f32.mrf.mxu0 }
 0x318   :  { %v16097_v32 = vpop.f32.mrf.mxu1  ;;  %v16076_v33 = vadd.f32 %v16075_v31, %v16074_v27 }
 0x319   :  { %v16098_v34 = vadd.f32 %v16097_v32, %v16096_v28  ;;  %v16077_v35 = vpop.f32.mrf.mxu0 }
 0x31a   :  { %v16099_v36 = vpop.f32.mrf.mxu1  ;;  %v8014_v37 = vadd.f32 %v16076_v33, %v20952_v59  ;;  %v17665_v33 = vld [vmem:[%s23157_s1] sm:$0xff]  }
 0x31b   :  { %v16078_v38 = vpop.f32.mrf.mxu0  ;;  %16584 = vmatprep.mubr.msk.bf16.mxu1 %vm8597_vm0, %v17665_v33  ;;  %v17662_v33 = vld [vmem:[%s23160_s7 + $0x74] ss:$8 sps:$4 sm:$0xff]  }
 0x31c   :  { %v16100_v39 = vpop.f32.mrf.mxu1  ;;  %v8054_v40 = vadd.f32 %v16098_v34, %v8014_v37 }
 0x335   :  { %v16118_v41 = vpop.f32.mrf.mxu0 }
 0x336   :  { %v16140_v42 = vpop.f32.mrf.mxu1 }
 0x337   :  { %v16119_v43 = vpop.f32.mrf.mxu0 }
 0x338   :  { %v16120_v44 = vadd.f32 %v16119_v43, %v16118_v41  ;;  %v16141_v45 = vpop.f32.mrf.mxu1 }
 0x339   :  { %v16142_v46 = vadd.f32 %v16141_v45, %v16140_v42  ;;  %v16121_v47 = vpop.f32.mrf.mxu0 }
 0x33a   :  { %v8094_v48 = vadd.f32 %v16120_v44, %v8054_v40  ;;  %v16143_v49 = vpop.f32.mrf.mxu1 }
 0x33b   :  { %v16122_v50 = vpop.f32.mrf.mxu0 }
 0x33c   :  { %v8134_v51 = vadd.f32 %v16142_v46, %v8094_v48  ;;  %v16144_v52 = vpop.f32.mrf.mxu1 }
 0x355   :  { %v16162_v53 = vpop.f32.mrf.mxu0 }
 0x356   :  { %v16184_v54 = vpop.f32.mrf.mxu1 }
 0x357   :  { %v16163_v55 = vpop.f32.mrf.mxu0 }
 0x358   :  { %v16164_v56 = vadd.f32 %v16163_v55, %v16162_v53  ;;  %v16185_v57 = vpop.f32.mrf.mxu1  ;;  %v17666_v53 = vld [vmem:[%s23158_s2 + $0x38] sm:$0xff]   ;;  %v17622_v55 = vld [vmem:[%s23156_s0 + $0x8] sm:$0xff]  }
 0x359   :  { %v16186_v58 = vadd.f32 %v16185_v57, %v16184_v54  ;;  %v16165_v59 = vpop.f32.mrf.mxu0  ;;  %v17623_v57 = vld [vmem:[%s23159_s11 + $0x38] sm:$0xff]  }
 0x35a   :  { %v8174_v60 = vadd.f32 %v16164_v56, %v8134_v51  ;;  %v16187_v61 = vpop.f32.mrf.mxu1  ;;  %v17667_v56 = vld [vmem:[%s23157_s1 + $0x8] sm:$0xff]   ;;  %v18394_v59 = vmov 0   ;;  %s23163_s1 = sld [smem:[#allocation12_spill]] }
 0x35b   :  { %v16166_v62 = vpop.f32.mrf.mxu0  ;;  %v17624_v61 = vld [vmem:[%s23159_s11 + $0x30] sm:$0xff]  }
 0x35c   :  { %v8214_v63 = vadd.f32 %v16186_v58, %v8174_v60  ;;  %v16188_v0 = vpop.f32.mrf.mxu1  ;;  %v17627_v58 = vld [vmem:[%s23156_s0 + $0x10] sm:$0xff]   ;;  %v17669_v62 = vld [vmem:[%s23158_s2 + $0x28] sm:$0xff]  }
 0x35d   :  { %v17668_v60 = vld [vmem:[%s23158_s2 + $0x30] sm:$0xff]   ;;  %v17625_v0 = vld [vmem:[%s23159_s11 + $0x28] sm:$0xff]  }
 0x375   :  { %v16206_v2 = vpop.f32.mrf.mxu0 }
 0x376   :  { %v16228_v3 = vpop.f32.mrf.mxu1 }
 0x377   :  { %v16207_v4 = vpop.f32.mrf.mxu0 }
 0x378   :  { %v16229_v5 = vpop.f32.mrf.mxu1  ;;  %v16208_v6 = vadd.f32 %v16207_v4, %v16206_v2  ;;  %v17670_v2 = vld [vmem:[%s23158_s2 + $0x20] sm:$0xff]   ;;  %v17671_v4 = vld [vmem:[%s23158_s2 + $0x18] sm:$0xff]  }
 0x379   :  { %v16230_v7 = vadd.f32 %v16229_v5, %v16228_v3  ;;  %v16209_v8 = vpop.f32.mrf.mxu0  ;;  %v17626_v3 = vld [vmem:[%s23159_s11 + $0x20] sm:$0xff]   ;;  %v17632_v5 = vld [vmem:[%s23156_s0 + $0x28] sm:$0xff]  }
 0x37a   :  { %v16231_v9 = vpop.f32.mrf.mxu1  ;;  %v8254_v10 = vadd.f32 %v16208_v6, %v8214_v63  ;;  %v17628_v63 = vld [vmem:[%s23156_s0 + $0x18] sm:$0xff]   ;;  %v17672_v8 = vld [vmem:[%s23158_s2 + $0x10] sm:$0xff]  }
 0x37b   :  { %v16210_v11 = vpop.f32.mrf.mxu0  ;;  %v17629_v6 = vld [vmem:[%s23159_s11 + $0x18] sm:$0xff]   ;;  %v17630_v9 = vld [vmem:[%s23159_s11 + $0x10] sm:$0xff]  }
 0x37c   :  { %v16232_v12 = vpop.f32.mrf.mxu1  ;;  %v8294_v13 = vadd.f32 %v16230_v7, %v8254_v10  ;;  %v17635_v7 = vld [vmem:[%s23156_s0 + $0x30] sm:$0xff]   ;;  %v17636_v10 = vld [vmem:[%s23156_s0 + $0x38] sm:$0xff]   ;;  %v17633_v11 = vld [vmem:[%s23159_s11 + $0x8] sm:$0xff]   ;;  %s23164_s0 = sld [smem:[#allocation13_spill]] }
 0x37d   :  { %v17643_v12 = vld [vmem:[%s23160_s7 + $0x4] ss:$8 sps:$4 sm:$0xff]  }
 0x395   :  { %v16250_v14 = vpop.f32.mrf.mxu0 }
 0x396   :  { %v16272_v15 = vpop.f32.mrf.mxu1 }
 0x397   :  { %v16251_v16 = vpop.f32.mrf.mxu0 }
 0x398   :  { %v16273_v17 = vpop.f32.mrf.mxu1  ;;  %v16252_v30 = vadd.f32 %v16251_v16, %v16250_v14  ;;  %v17637_v14 = vld [vmem:[%s23159_s11 + $0x58] sm:$0xff]   ;;  %v17639_v16 = vld [vmem:[%s23159_s11 + $0x48] sm:$0xff]  }
 0x399   :  { %v16253_v18 = vpop.f32.mrf.mxu0  ;;  %v16274_v32 = vadd.f32 %v16273_v17, %v16272_v15  ;;  %v17638_v15 = vld [vmem:[%s23159_s11 + $0x50] sm:$0xff]   ;;  %v17640_v17 = vld [vmem:[%s23159_s11 + $0x40] sm:$0xff]  }
 0x39a   :  { %v16275_v19 = vpop.f32.mrf.mxu1  ;;  %v8334_v31 = vadd.f32 %v16252_v30, %v8294_v13  ;;  %v17634_v13 = vld [vmem:[%s23159_s11] sm:$0xff]   ;;  %v17658_v30 = vld [vmem:[%s23160_s7 + $0x50] ss:$8 sps:$4 sm:$0xff]  }
 0x39b   :  { %v16254_v20 = vpop.f32.mrf.mxu0  ;;  %v17641_v18 = vld [vmem:[%s23160_s7] ss:$8 sps:$4 sm:$0xff]   ;;  %v17644_v19 = vld [vmem:[%s23160_s7 + $0x14] ss:$8 sps:$4 sm:$0xff]  }
 0x39c   :  { %v16276_v21 = vpop.f32.mrf.mxu1  ;;  %v8374_v35 = vadd.f32 %v16274_v32, %v8334_v31  ;;  %v17646_v20 = vld [vmem:[%s23160_s7 + $0x10] ss:$8 sps:$4 sm:$0xff]   ;;  %v17659_v31 = vld [vmem:[%s23160_s7 + $0x64] ss:$8 sps:$4 sm:$0xff]   ;;  %v17661_v32 = vld [vmem:[%s23160_s7 + $0x60] ss:$8 sps:$4 sm:$0xff]  }
 0x39d   :  { %v17647_v21 = vld [vmem:[%s23160_s7 + $0x24] ss:$8 sps:$4 sm:$0xff]  }
 0x3b5   :  { %v16294_v22 = vpop.f32.mrf.mxu0 }
 0x3b6   :  { %v16316_v23 = vpop.f32.mrf.mxu1 }
 0x3b7   :  { %v16295_v24 = vpop.f32.mrf.mxu0 }
 0x3b8   :  { %v16317_v25 = vpop.f32.mrf.mxu1  ;;  %v16296_v34 = vadd.f32 %v16295_v24, %v16294_v22  ;;  %v17649_v22 = vld [vmem:[%s23160_s7 + $0x20] ss:$8 sps:$4 sm:$0xff]  }
 0x3b9   :  { %v16297_v26 = vpop.f32.mrf.mxu0  ;;  %v16318_v37 = vadd.f32 %v16317_v25, %v16316_v23  ;;  %v17650_v23 = vld [vmem:[%s23160_s7 + $0x34] ss:$8 sps:$4 sm:$0xff]   ;;  %v17673_v24 = vld [vmem:[%s23158_s2 + $0x8] sm:$0xff]   ;;  %v17652_v25 = vld [vmem:[%s23160_s7 + $0x30] ss:$8 sps:$4 sm:$0xff]  }
 0x3ba   :  { %v16319_v27 = vpop.f32.mrf.mxu1  ;;  %v8414_v36 = vadd.f32 %v16296_v34, %v8374_v35  ;;  %v17674_v26 = vld [vmem:[%s23158_s2] sm:$0xff]   ;;  %v17664_v34 = vld [vmem:[%s23160_s7 + $0x70] ss:$8 sps:$4 sm:$0xff]  }
 0x3bb   :  { %v16298_v28 = vpop.f32.mrf.mxu0  ;;  %v17653_v27 = vld [vmem:[%s23160_s7 + $0x44] ss:$8 sps:$4 sm:$0xff]   ;;  %v17675_v35 = vld [vmem:[%s23161_s6 + $0x18] sm:$0xff]  }
 0x3bc   :  { %v16320_v29 = vpop.f32.mrf.mxu1  ;;  %v8454_v42 = vadd.f32 %v16318_v37, %v8414_v36  ;;  %v17655_v28 = vld [vmem:[%s23160_s7 + $0x40] ss:$8 sps:$4 sm:$0xff]  }
 0x3bd   :  { %v17656_v29 = vld [vmem:[%s23160_s7 + $0x54] ss:$8 sps:$4 sm:$0xff]  }
 0x3d5   :  { %v16338_v38 = vpop.f32.mrf.mxu0 }
 0x3d6   :  { %v16360_v39 = vpop.f32.mrf.mxu1 }
 0x3d7   :  { %v16339_v40 = vpop.f32.mrf.mxu0 }
 0x3d8   :  { %v16361_v41 = vpop.f32.mrf.mxu1  ;;  %v16340_v43 = vadd.f32 %v16339_v40, %v16338_v38 }
 0x3d9   :  { %v16341_v44 = vpop.f32.mrf.mxu0  ;;  %v16362_v47 = vadd.f32 %v16361_v41, %v16360_v39 }
 0x3da   :  { %v16363_v45 = vpop.f32.mrf.mxu1  ;;  %v8494_v46 = vadd.f32 %v16340_v43, %v8454_v42 }
 0x3db   :  { %v16342_v48 = vpop.f32.mrf.mxu0 }
 0x3dc   :  { %v16364_v49 = vpop.f32.mrf.mxu1  ;;  %v8534_v50 = vadd.f32 %v16362_v47, %v8494_v46  ;;  %v17676_v47 = vld [vmem:[%s23161_s6 + $0x10] sm:$0xff]  }
 0x3de   :  { %v8539_v51 = vmax.f32 %v8534_v50, 0.0  ;;  %v17677_v50 = vld [vmem:[%s23161_s6 + $0x8] sm:$0xff]  }
 0x3e0   :  { %v21047_v52 = vpack.c.bf16 %v8539_v51, %v8539_v51 }
 0x3e2   :  { %16752 = vmatprep.subr.msk.bf16.mxu0 %vm8622_vm1, %v21047_v52  ;;  %16753 = vmatprep.subr.msk.bf16.mxu1 %vm8622_vm1, %v21047_v52  ;;  %v8624_v54 = vsel %vm8622_vm1, %v21047_v52, 0 }
 0x3e3   :  { %16565 = vmatpush3.bf16.msra.mxu0 %v8624_v54  ;;  %16583 = vmatpush3.bf16.msra.mxu1 %v8624_v54 }
 0x3e4   :  { %9027 = vmatprep.subr.bf16.mxu0 %v18394_v59  ;;  %16588 = vmatprep.subr.bf16.mxu1 %v17666_v53 }
 0x3e6   :  { %16567 = vmatmul.mubr.msk.bf16.vlgmr.msra.gmra.mxu0 %vm8597_vm0, %v17622_v55  ;;  %16585 = vmatmul.mubr.msk.bf16.vlgmr.msra.gmra.mxu1 %vm8597_vm0, %v17667_v56  ;;  %v17678_v56 = vld [vmem:[%s23161_s6] sm:$0xff]  }
 0x3e7   :  { %9028 = vmatpush1.bf16.msra.mxu0 %v17623_v57  ;;  %16570 = vmatprep.mubr.msk.bf16.mxu0 %vm8597_vm0, %v17627_v58 }
 0x3e8   :  { %9029 = vmatprep.subr.bf16.mxu0 %v18394_v59  ;;  %16589 = vmatpush3.bf16.msra.mxu1 %v17666_v53 }
 0x3e9   :  { %16590 = vmatprep.subr.bf16.mxu1 %v17668_v60 }
 0x3eb   :  { %9030 = vmatpush1.bf16.msra.mxu0 %v17624_v61 }
 0x3ec   :  { %9031 = vmatprep.subr.bf16.mxu0 %v18394_v59  ;;  %16591 = vmatpush3.bf16.msra.mxu1 %v17668_v60 }
 0x3ed   :  { %16592 = vmatprep.subr.bf16.mxu1 %v17669_v62 }
 0x3ee   :  { %16571 = vmatmul.mubr.msk.bf16.gmra.mxu0 %vm8597_vm0, %v17628_v63 }
 0x3ef   :  { %9032 = vmatpush1.bf16.msra.mxu0 %v17625_v0  ;;  %16574 = vmatprep.mubr.msk.bf16.mxu0 %vm8597_vm0, %v17631_v1 }
 0x3f0   :  { %9033 = vmatprep.subr.bf16.mxu0 %v18394_v59  ;;  %16593 = vmatpush3.bf16.msra.mxu1 %v17669_v62 }
 0x3f1   :  { %16594 = vmatprep.subr.bf16.mxu1 %v17670_v2 }
 0x3f3   :  { %9034 = vmatpush1.bf16.msra.mxu0 %v17626_v3 }
 0x3f4   :  { %9035 = vmatprep.subr.bf16.mxu0 %v18394_v59  ;;  %16595 = vmatpush3.bf16.msra.mxu1 %v17670_v2 }
 0x3f5   :  { %16596 = vmatprep.subr.bf16.mxu1 %v17671_v4 }
 0x3f6   :  { %16575 = vmatmul.mubr.msk.bf16.gmra.mxu0 %vm8597_vm0, %v17632_v5 }
 0x3f7   :  { %9036 = vmatpush1.bf16.msra.mxu0 %v17629_v6  ;;  %16578 = vmatprep.mubr.msk.bf16.mxu0 %vm8597_vm0, %v17635_v7 }
 0x3f8   :  { %9037 = vmatprep.subr.bf16.mxu0 %v18394_v59  ;;  %16597 = vmatpush3.bf16.msra.mxu1 %v17671_v4  ;;  %v21235_v4 = vld [vmem:[%s23162_s29] ss:$0 sm:$0xff] }
 0x3f9   :  { %16598 = vmatprep.subr.bf16.mxu1 %v17672_v8 }
 0x3fb   :  { %9038 = vmatpush1.bf16.msra.mxu0 %v17630_v9 }
 0x3fc   :  { %9039 = vmatprep.subr.bf16.mxu0 %v18394_v59  ;;  %16599 = vmatpush3.bf16.msra.mxu1 %v17672_v8 }
 0x3fd   :  { %16600 = vmatprep.subr.bf16.mxu1 %v17673_v24 }
 0x3fe   :  { %16579 = vmatmul.mubr.msk.bf16.gmra.mxu0 %vm8597_vm0, %v17636_v10 }
 0x3ff   :  { %9040 = vmatpush1.bf16.msra.mxu0 %v17633_v11  ;;  %14754 = vmatprep.mubr.msk.bf16.mxu0 %vm9002_vm2, %v17643_v12 }
 0x400   :  { %9041 = vmatprep.subr.bf16.mxu0 %v18394_v59  ;;  %16601 = vmatpush3.bf16.msra.mxu1 %v17673_v24 }
 0x401   :  { %16602 = vmatprep.subr.bf16.mxu1 %v17674_v26 }
 0x403   :  { %9042 = vmatpush1.bf16.msra.mxu0 %v17634_v13 }
 0x404   :  { %9051 = vmatprep.subr.bf16.mxu0 %v18394_v59  ;;  %16603 = vmatpush3.bf16.msra.mxu1 %v17674_v26 }
 0x405   :  { %16620 = vmatprep.subr.bf16.mxu1 %v17675_v35 }
 0x407   :  { %9052 = vmatpush2.bf16.msra.mxu0 %v17637_v14 }
 0x408   :  { %9053 = vmatprep.subr.bf16.mxu0 %v18394_v59 }
 0x40b   :  { %9054 = vmatpush2.bf16.msra.mxu0 %v17638_v15 }
 0x40c   :  { %9055 = vmatprep.subr.bf16.mxu0 %v18394_v59 }
 0x40f   :  { %9056 = vmatpush2.bf16.msra.mxu0 %v17639_v16 }
 0x410   :  { %9057 = vmatprep.subr.bf16.mxu0 %v18394_v59 }
 0x413   :  { %9058 = vmatpush2.bf16.msra.mxu0 %v17640_v17 }
 0x416   :  { %9060 = vmatmul.mubr.bf16.vlgmr.msra.gmra.mxu0 %v17641_v18 }
 0x417   :  { %14755 = vmatprep.mubr.msk.bf16.mxu0 %vm9002_vm2, %v17644_v19 }
 0x41e   :  { %9068 = vmatmul.mubr.bf16.gmra.mxu0 %v17646_v20 }
 0x41f   :  { %14756 = vmatprep.mubr.msk.bf16.mxu0 %vm9002_vm2, %v17647_v21 }
 0x426   :  { %9076 = vmatmul.mubr.bf16.gmra.mxu0 %v17649_v22 }
 0x427   :  { %14757 = vmatprep.mubr.msk.bf16.mxu0 %vm9002_vm2, %v17650_v23 }
 0x42e   :  { %9084 = vmatmul.mubr.bf16.gmra.mxu0 %v17652_v25 }
 0x42f   :  { %14758 = vmatprep.mubr.msk.bf16.mxu0 %vm9002_vm2, %v17653_v27 }
 0x436   :  { %9092 = vmatmul.mubr.bf16.gmra.mxu0 %v17655_v28 }
 0x437   :  { %14759 = vmatprep.mubr.msk.bf16.mxu0 %vm9002_vm2, %v17656_v29 }
 0x43e   :  { %9100 = vmatmul.mubr.bf16.gmra.mxu0 %v17658_v30 }
 0x43f   :  { %14760 = vmatprep.mubr.msk.bf16.mxu0 %vm9002_vm2, %v17659_v31 }
 0x446   :  { %9108 = vmatmul.mubr.bf16.gmra.mxu0 %v17661_v32 }
 0x447   :  { %14761 = vmatprep.mubr.msk.bf16.mxu0 %vm9002_vm2, %v17662_v33 }
 0x44e   :  { %9116 = vmatmul.mubr.bf16.gmra.mxu0 %v17664_v34 }
 0x4a6   :  { %v16568_v36 = vpop.f32.mrf.mxu0  ;;  %v21215_v37 = vpop.f32.mrf.mxu1 }
 0x4a8   :  { %v8660_v38 = vpop.f32.mrf.mxu0  ;;  %v21217_v39 = vpop.f32.mrf.mxu1 }
 0x4aa   :  { %v16569_v40 = vpop.f32.mrf.mxu0  ;;  %v21219_v41 = vpop.f32.mrf.mxu1 }
 0x4ab   :  { %v8801_v42 = vpack.c.bf16 %v21219_v41, %v21215_v37  ;;  %v8724_v45 = vpack.c.bf16 %v16569_v40, %v16568_v36  ;;  %v17758_v37 = vld [vmem:[%s23118_s16 + $0x30] sm:$0xff]   ;;  %v17759_v41 = vld [vmem:[%s23118_s16 + $0x28] sm:$0xff]  }
 0x4ac   :  { %v8663_v43 = vpop.f32.mrf.mxu0 }
 0x4ad   :  { %v8723_v44 = vpack.c.bf16 %v8663_v43, %v8660_v38 }
 0x4ae   :  { %v16572_v46 = vpop.f32.mrf.mxu0 }
 0x4af   :  { %16604 = vmatprep.mubr.bf16.mxu1 %v8723_v44 }
 0x4b0   :  { %16605 = vmatmul.mubr.bf16.vlgmr.msra.gmra.mxu1 %v8724_v45  ;;  %v8676_v48 = vpop.f32.mrf.mxu0 }
 0x4b1   :  { %16621 = vmatpush3.bf16.msra.mxu1 %v17675_v35 }
 0x4b2   :  { %v16573_v49 = vpop.f32.mrf.mxu0  ;;  %16622 = vmatprep.subr.bf16.mxu1 %v17676_v47 }
 0x4b3   :  { %v8726_v51 = vpack.c.bf16 %v16573_v49, %v16572_v46 }
 0x4b4   :  { %v8679_v53 = vpop.f32.mrf.mxu0 }
 0x4b5   :  { %v8725_v54 = vpack.c.bf16 %v8679_v53, %v8676_v48  ;;  %16623 = vmatpush3.bf16.msra.mxu1 %v17676_v47 }
 0x4b6   :  { %v16576_v55 = vpop.f32.mrf.mxu0  ;;  %16624 = vmatprep.subr.bf16.mxu1 %v17677_v50 }
 0x4b7   :  { %16608 = vmatprep.mubr.bf16.mxu1 %v8725_v54 }
 0x4b8   :  { %v8692_v57 = vpop.f32.mrf.mxu0  ;;  %16609 = vmatmul.mubr.bf16.gmra.mxu1 %v8726_v51 }
 0x4b9   :  { %16625 = vmatpush3.bf16.msra.mxu1 %v17677_v50 }
 0x4ba   :  { %v16577_v58 = vpop.f32.mrf.mxu0  ;;  %16626 = vmatprep.subr.bf16.mxu1 %v17678_v56 }
 0x4bb   :  { %v8728_v59 = vpack.c.bf16 %v16577_v58, %v16576_v55 }
 0x4bc   :  { %v8695_v60 = vpop.f32.mrf.mxu0 }
 0x4bd   :  { %v8727_v61 = vpack.c.bf16 %v8695_v60, %v8692_v57  ;;  %16627 = vmatpush3.bf16.msra.mxu1 %v17678_v56 }
 0x4be   :  { %v16580_v62 = vpop.f32.mrf.mxu0 }
 0x4bf   :  { %16612 = vmatprep.mubr.bf16.mxu1 %v8727_v61 }
 0x4c0   :  { %v8708_v63 = vpop.f32.mrf.mxu0  ;;  %16613 = vmatmul.mubr.bf16.gmra.mxu1 %v8728_v59 }
 0x4c2   :  { %v16581_v0 = vpop.f32.mrf.mxu0 }
 0x4c3   :  { %v8730_v1 = vpack.c.bf16 %v16581_v0, %v16580_v62 }
 0x4c4   :  { %v8711_v2 = vpop.f32.mrf.mxu0 }
 0x4c5   :  { %v8729_v3 = vpack.c.bf16 %v8711_v2, %v8708_v63 }
 0x4c7   :  { %16616 = vmatprep.mubr.bf16.mxu1 %v8729_v3 }
 0x4c8   :  { %16617 = vmatmul.mubr.bf16.gmra.mxu1 %v8730_v1 }
 0x4d6   :  { %v9061_v5 = vpop.f32.mrf.mxu0 }
 0x4d7   :  { %v9062_v7 = vadd.f32 %v21235_v4, %v9061_v5 }
 0x4d8   :  { %v9063_v6 = vpop.f32.mrf.mxu0 }
 0x4d9   :  { %v9124_v11 = vmax.f32 %v9062_v7, 0.0 }
 0x4da   :  { %v9064_v8 = vpop.f32.mrf.mxu0 }
 0x4db   :  { %v9065_v9 = vadd.f32 %v21235_v4, %v9064_v8 }
 0x4dc   :  { %v9066_v10 = vpop.f32.mrf.mxu0 }
 0x4dd   :  { %v9125_v12 = vmax.f32 %v9065_v9, 0.0 }
 0x4de   :  { %v9069_v13 = vpop.f32.mrf.mxu0 }
 0x4df   :  { %v9140_v14 = vpack.c.bf16 %v9125_v12, %v9124_v11  ;;  %v9070_v16 = vadd.f32 %v21235_v4, %v9069_v13  ;;  %v17679_v11 = vld [vmem:[%s23163_s1 + $0x78] sm:$0xff]  }
 0x4e0   :  { %v9071_v15 = vpop.f32.mrf.mxu0  ;;  %16418 = vmatprep.subr.bf16.mxu0 %v17679_v11 }
 0x4e1   :  { %16628 = vmatprep.mubr.msk.bf16.mxu1 %vm9002_vm2, %v9140_v14  ;;  %v9126_v20 = vmax.f32 %v9070_v16, 0.0  ;;  %v17680_v14 = vld [vmem:[%s23163_s1 + $0x38] sm:$0xff]   ;;  %v17681_v15 = vld [vmem:[%s23163_s1 + $0x70] sm:$0xff]  }
 0x4e2   :  { %v9072_v17 = vpop.f32.mrf.mxu0  ;;  %16419 = vmatpush3.bf16.msra.mxu0 %v17680_v14 }
 0x4e3   :  { %v9073_v18 = vadd.f32 %v21235_v4, %v9072_v17  ;;  %v17682_v17 = vld [vmem:[%s23163_s1 + $0x30] sm:$0xff]   ;;  %16420 = vmatprep.subr.bf16.mxu0 %v17681_v15 }
 0x4e4   :  { %v9074_v19 = vpop.f32.mrf.mxu0 }
 0x4e5   :  { %v9127_v21 = vmax.f32 %v9073_v18, 0.0  ;;  %v17683_v19 = vld [vmem:[%s23163_s1 + $0x68] sm:$0xff]  }
 0x4e6   :  { %v9077_v22 = vpop.f32.mrf.mxu0  ;;  %16421 = vmatpush3.bf16.msra.mxu0 %v17682_v17 }
 0x4e7   :  { %v9141_v23 = vpack.c.bf16 %v9127_v21, %v9126_v20  ;;  %v9078_v25 = vadd.f32 %v21235_v4, %v9077_v22  ;;  %16422 = vmatprep.subr.bf16.mxu0 %v17683_v19 }
 0x4e8   :  { %v9079_v24 = vpop.f32.mrf.mxu0 }
 0x4e9   :  { %16629 = vmatmul.mubr.msk.bf16.vlgmr.msra.gmra.mxu1 %vm9002_vm2, %v9141_v23  ;;  %v9128_v29 = vmax.f32 %v9078_v25, 0.0  ;;  %v17684_v23 = vld [vmem:[%s23163_s1 + $0x28] sm:$0xff]   ;;  %v21289_v25 = vld [vmem:[%s23164_s0 + $0x10] sm:$0xff]  }
 0x4ea   :  { %v9080_v26 = vpop.f32.mrf.mxu0  ;;  %16423 = vmatpush3.bf16.msra.mxu0 %v17684_v23 }
 0x4eb   :  { %v9081_v27 = vadd.f32 %v21235_v4, %v9080_v26  ;;  %v21296_v26 = vld [vmem:[%s23164_s0 + $0x8] sm:$0xff]  }
 0x4ec   :  { %v9082_v28 = vpop.f32.mrf.mxu0 }
 0x4ed   :  { %v9129_v30 = vmax.f32 %v9081_v27, 0.0  ;;  %v21303_v27 = vld [vmem:[%s23164_s0] sm:$0xff]  }
 0x4ee   :  { %v9085_v31 = vpop.f32.mrf.mxu0  ;;  %v17687_v28 = vld [vmem:[%s23163_s1 + $0x60] sm:$0xff]  }
 0x4ef   :  { %v9142_v32 = vpack.c.bf16 %v9129_v30, %v9128_v29  ;;  %v9086_v34 = vadd.f32 %v21235_v4, %v9085_v31  ;;  %v17688_v29 = vld [vmem:[%s23163_s1 + $0x20] sm:$0xff]   ;;  %v17691_v30 = vld [vmem:[%s23163_s1 + $0x58] sm:$0xff]   ;;  %16424 = vmatprep.subr.bf16.mxu0 %v17687_v28 }
 0x4f0   :  { %v9087_v33 = vpop.f32.mrf.mxu0  ;;  %16425 = vmatpush3.bf16.msra.mxu0 %v17688_v29  ;;  %v17692_v31 = vld [vmem:[%s23163_s1 + $0x18] sm:$0xff]  }
 0x4f1   :  { %16632 = vmatprep.mubr.msk.bf16.mxu1 %vm9002_vm2, %v9142_v32  ;;  %v9130_v40 = vmax.f32 %v9086_v34, 0.0  ;;  %16426 = vmatprep.subr.bf16.mxu0 %v17691_v30  ;;  %v17693_v32 = vld [vmem:[%s23163_s1 + $0x50] sm:$0xff]   ;;  %v17695_v34 = vld [vmem:[%s23163_s1 + $0x48] sm:$0xff]   ;;  %v21433_v30 = vld [vmem:[%s23117_s12] ss:$0 sm:$0xff] }
 0x4f2   :  { %v9088_v35 = vpop.f32.mrf.mxu0  ;;  %v17694_v33 = vld [vmem:[%s23163_s1 + $0x10] sm:$0xff]  }
 0x4f3   :  { %v9089_v36 = vadd.f32 %v21235_v4, %v9088_v35  ;;  %v17696_v35 = vld [vmem:[%s23163_s1 + $0x8] sm:$0xff]  }
 0x4f4   :  { %v9090_v38 = vpop.f32.mrf.mxu0  ;;  %16427 = vmatpush3.bf16.msra.mxu0 %v17692_v31 }
 0x4f5   :  { %v9131_v43 = vmax.f32 %v9089_v36, 0.0  ;;  %16428 = vmatprep.subr.bf16.mxu0 %v17693_v32  ;;  %v17697_v36 = vld [vmem:[%s23163_s1 + $0x40] sm:$0xff]  }
 0x4f6   :  { %v9093_v44 = vpop.f32.mrf.mxu0  ;;  %v17698_v38 = vld [vmem:[%s23163_s1] sm:$0xff]  }
 0x4f7   :  { %v9143_v45 = vpack.c.bf16 %v9131_v43, %v9130_v40  ;;  %v9094_v47 = vadd.f32 %v21235_v4, %v9093_v44  ;;  %v17702_v40 = vld [vmem:[%s23115_s13 + $0x4] ss:$24 sps:$4 sm:$0xff]   ;;  %v17700_v43 = vld [vmem:[%s23115_s13] ss:$24 sps:$4 sm:$0xff]  }
 0x4f8   :  { %v9095_v46 = vpop.f32.mrf.mxu0  ;;  %16429 = vmatpush3.bf16.msra.mxu0 %v17694_v33  ;;  %v17704_v44 = vld [vmem:[%s23163_s1 + $0x178] sm:$0xff]   ;;  %10171 = vmatprep.mubr.bf16.mxu0 %v17702_v40 }
 0x4f9   :  { %16633 = vmatmul.mubr.msk.bf16.gmra.mxu1 %vm9002_vm2, %v9143_v45  ;;  %v9132_v51 = vmax.f32 %v9094_v47, 0.0  ;;  %16430 = vmatprep.subr.bf16.mxu0 %v17695_v34  ;;  %v17705_v45 = vld [vmem:[%s23163_s1 + $0x138] sm:$0xff]   ;;  %v17708_v47 = vld [vmem:[%s23163_s1 + $0x170] sm:$0xff]  }
 0x4fa   :  { %v9096_v48 = vpop.f32.mrf.mxu0  ;;  %v17699_v46 = vld [vmem:[%s23163_s1 + $0xf8] sm:$0xff]  }
 0x4fb   :  { %v9097_v49 = vadd.f32 %v21235_v4, %v9096_v48  ;;  %v17709_v48 = vld [vmem:[%s23163_s1 + $0x130] sm:$0xff]  }
 0x4fc   :  { %v9098_v50 = vpop.f32.mrf.mxu0  ;;  %16431 = vmatpush3.bf16.msra.mxu0 %v17696_v35 }
 0x4fd   :  { %v9133_v53 = vmax.f32 %v9097_v49, 0.0  ;;  %16432 = vmatprep.subr.bf16.mxu0 %v17697_v36  ;;  %v17712_v49 = vld [vmem:[%s23163_s1 + $0x168] sm:$0xff]  }
 0x4fe   :  { %v9101_v54 = vpop.f32.mrf.mxu0  ;;  %v17713_v50 = vld [vmem:[%s23163_s1 + $0x128] sm:$0xff]  }
 0x4ff   :  { %v9144_v55 = vpack.c.bf16 %v9133_v53, %v9132_v51  ;;  %v9102_v57 = vadd.f32 %v21235_v4, %v9101_v54  ;;  %v17716_v51 = vld [vmem:[%s23163_s1 + $0x160] sm:$0xff]   ;;  %v17720_v54 = vld [vmem:[%s23163_s1 + $0x158] sm:$0xff]  }
 0x500   :  { %v9103_v56 = vpop.f32.mrf.mxu0  ;;  %16433 = vmatpush3.bf16.msra.mxu0 %v17698_v38  ;;  %v17717_v53 = vld [vmem:[%s23163_s1 + $0x120] sm:$0xff]  }
 0x501   :  { %16636 = vmatprep.mubr.msk.bf16.mxu1 %vm9002_vm2, %v9144_v55  ;;  %v9134_v61 = vmax.f32 %v9102_v57, 0.0  ;;  %16474 = vmatprep.subr.bf16.mxu0 %v17704_v44  ;;  %v17721_v55 = vld [vmem:[%s23163_s1 + $0x118] sm:$0xff]   ;;  %v17724_v56 = vld [vmem:[%s23163_s1 + $0x150] sm:$0xff]  }
 0x502   :  { %v9104_v58 = vpop.f32.mrf.mxu0  ;;  %v17725_v57 = vld [vmem:[%s23163_s1 + $0x110] sm:$0xff]  }
 0x503   :  { %v9105_v59 = vadd.f32 %v21235_v4, %v9104_v58  ;;  %10172 = vmatmul.mubr.bf16.vlgmr.msra.gmra.mxu0 %v17700_v43  ;;  %v17728_v58 = vld [vmem:[%s23115_s13 + $0x34] ss:$24 sps:$4 sm:$0xff]  }
 0x504   :  { %v9106_v60 = vpop.f32.mrf.mxu0  ;;  %16475 = vmatpush3.bf16.msra.mxu0 %v17705_v45  ;;  %10179 = vmatprep.mubr.bf16.mxu0 %v17728_v58 }
 0x505   :  { %v9135_v62 = vmax.f32 %v9105_v59, 0.0  ;;  %16476 = vmatprep.subr.bf16.mxu0 %v17708_v47  ;;  %v17726_v59 = vld [vmem:[%s23115_s13 + $0x30] ss:$24 sps:$4 sm:$0xff]   ;;  %v17703_v47 = vld [vmem:[%s23163_s1 + $0xb8] sm:$0xff]  }
 0x506   :  { %v9109_v63 = vpop.f32.mrf.mxu0  ;;  %v17731_v60 = vld [vmem:[%s23163_s1 + $0x148] sm:$0xff]  }
 0x507   :  { %v9145_v0 = vpack.c.bf16 %v9135_v62, %v9134_v61  ;;  %v9110_v2 = vadd.f32 %v21235_v4, %v9109_v63  ;;  %v17732_v61 = vld [vmem:[%s23163_s1 + $0x108] sm:$0xff]   ;;  %v17735_v62 = vld [vmem:[%s23163_s1 + $0x140] sm:$0xff]  }
 0x508   :  { %v9111_v1 = vpop.f32.mrf.mxu0  ;;  %16477 = vmatpush3.bf16.msra.mxu0 %v17709_v48  ;;  %v17736_v63 = vld [vmem:[%s23163_s1 + $0x100] sm:$0xff]  }
 0x509   :  { %16637 = vmatmul.mubr.msk.bf16.gmra.mxu1 %vm9002_vm2, %v9145_v0  ;;  %v9136_v7 = vmax.f32 %v9110_v2, 0.0  ;;  %16478 = vmatprep.subr.bf16.mxu0 %v17712_v49  ;;  %v17740_v0 = vld [vmem:[%s23115_s13 + $0x10] ss:$24 sps:$4 sm:$0xff]   ;;  %v17742_v1 = vld [vmem:[%s23115_s13 + $0x14] ss:$24 sps:$4 sm:$0xff]   ;;  %v21406_v2 = vpop.f32.mrf.mxu1 }
 0x50a   :  { %v9112_v3 = vpop.f32.mrf.mxu0  ;;  %v17706_v49 = vld [vmem:[%s23163_s1 + $0xf0] sm:$0xff]  }
 0x50b   :  { %v9113_v5 = vadd.f32 %v21235_v4, %v9112_v3  ;;  %10180 = vmatmul.mubr.bf16.gmra.mxu0 %v17726_v59  ;;  %v17711_v59 = vld [vmem:[%s23163_s1 + $0xa8] sm:$0xff]  }
 0x50c   :  { %v9114_v6 = vpop.f32.mrf.mxu0  ;;  %16479 = vmatpush3.bf16.msra.mxu0 %v17713_v50  ;;  %10269 = vmatprep.mubr.bf16.mxu0 %v17742_v1 }
 0x50d   :  { %v9137_v8 = vmax.f32 %v9113_v5, 0.0  ;;  %16480 = vmatprep.subr.bf16.mxu0 %v17716_v51  ;;  %v17750_v6 = vld [vmem:[%s23115_s13 + $0x44] ss:$24 sps:$4 sm:$0xff]   ;;  %v17707_v51 = vld [vmem:[%s23163_s1 + $0xb0] sm:$0xff]  }
 0x50e   :  { %v9117_v9 = vpop.f32.mrf.mxu0 }
 0x50f   :  { %v9146_v10 = vpack.c.bf16 %v9137_v8, %v9136_v7  ;;  %v9118_v12 = vadd.f32 %v21235_v4, %v9117_v9  ;;  %v17748_v7 = vld [vmem:[%s23115_s13 + $0x40] ss:$24 sps:$4 sm:$0xff]  }
 0x510   :  { %v9119_v13 = vpop.f32.mrf.mxu0  ;;  %16481 = vmatpush3.bf16.msra.mxu0 %v17717_v53 }
 0x511   :  { %16640 = vmatprep.mubr.msk.bf16.mxu1 %vm9002_vm2, %v9146_v10  ;;  %v9138_v20 = vmax.f32 %v9118_v12, 0.0  ;;  %16482 = vmatprep.subr.bf16.mxu0 %v17720_v54  ;;  %v17710_v54 = vld [vmem:[%s23163_s1 + $0xe8] sm:$0xff]  }
 0x512   :  { %v9120_v16 = vpop.f32.mrf.mxu0 }
 0x513   :  { %v9121_v18 = vadd.f32 %v21235_v4, %v9120_v16  ;;  %v21282_v4 = vld [vmem:[%s23164_s0 + $0x18] sm:$0xff]  }
 0x514   :  { %v9122_v21 = vpop.f32.mrf.mxu0  ;;  %16644 = vmatprep.subr.bf16.mxu1 %v21282_v4  ;;  %16483 = vmatpush3.bf16.msra.mxu0 %v17721_v55 }
 0x515   :  { %v9139_v22 = vmax.f32 %v9121_v18, 0.0  ;;  %16645 = vmatpush3.bf16.msra.mxu1 %v21282_v4  ;;  %16484 = vmatprep.subr.bf16.mxu0 %v17724_v56 }
 0x516   :  { %16646 = vmatprep.subr.bf16.mxu1 %v21289_v25 }
 0x517   :  { %v9147_v24 = vpack.c.bf16 %v9139_v22, %v9138_v20 }
 0x518   :  { %16485 = vmatpush3.bf16.msra.mxu0 %v17725_v57 }
 0x519   :  { %16641 = vmatmul.mubr.msk.bf16.gmra.mxu1 %vm9002_vm2, %v9147_v24  ;;  %16486 = vmatprep.subr.bf16.mxu0 %v17731_v60 }
 0x51a   :  { %16647 = vmatpush3.bf16.msra.mxu1 %v21289_v25 }
 0x51b   :  { %16648 = vmatprep.subr.bf16.mxu1 %v21296_v26 }
 0x51c   :  { %16487 = vmatpush3.bf16.msra.mxu0 %v17732_v61  ;;  %v17714_v61 = vld [vmem:[%s23163_s1 + $0xe0] sm:$0xff]  }
 0x51d   :  { %16488 = vmatprep.subr.bf16.mxu0 %v17735_v62 }
 0x51e   :  { %16649 = vmatpush3.bf16.msra.mxu1 %v21296_v26 }
 0x51f   :  { %16650 = vmatprep.subr.bf16.mxu1 %v21303_v27 }
 0x520   :  { %16489 = vmatpush3.bf16.msra.mxu0 %v17736_v63 }
 0x522   :  { %16651 = vmatpush3.bf16.msra.mxu1 %v21303_v27 }
 0x523   :  { %16446 = vmatprep.subr.bf16.mxu1 %v17699_v46  ;;  %10270 = vmatmul.mubr.bf16.vlgmr.msra.gmra.mxu0 %v17740_v0 }
 0x524   :  { %10277 = vmatprep.mubr.bf16.mxu0 %v17750_v6 }
 0x52b   :  { %10278 = vmatmul.mubr.bf16.gmra.mxu0 %v17748_v7  ;;  %v17718_v7 = vld [vmem:[%s23163_s1 + $0xd8] sm:$0xff]  }
 0x570   :  { %v16606_v3 = vpop.f32.mrf.mxu1 }
 0x572   :  { %v9254_v5 = vpop.f32.mrf.mxu1 }
 0x574   :  { %v16607_v8 = vpop.f32.mrf.mxu1 }
 0x576   :  { %v9257_v9 = vpop.f32.mrf.mxu1 }
 0x578   :  { %v16610_v10 = vpop.f32.mrf.mxu1 }
 0x57a   :  { %v9270_v11 = vpop.f32.mrf.mxu1 }
 0x57c   :  { %v16611_v12 = vpop.f32.mrf.mxu1 }
 0x57e   :  { %v9273_v13 = vpop.f32.mrf.mxu1 }
 0x580   :  { %v21414_v14 = vpop.f32.mrf.mxu1 }
 0x582   :  { %v21416_v15 = vpop.f32.mrf.mxu1 }
 0x584   :  { %v21418_v16 = vpop.f32.mrf.mxu1 }
 0x586   :  { %v21420_v17 = vpop.f32.mrf.mxu1 }
 0x588   :  { %v21422_v18 = vpop.f32.mrf.mxu1 }
 0x58a   :  { %v21424_v19 = vpop.f32.mrf.mxu1 }
 0x58c   :  { %v21426_v20 = vpop.f32.mrf.mxu1 }
 0x58e   :  { %v21428_v21 = vpop.f32.mrf.mxu1 }
 0x5a9   :  { %v16630_v22 = vpop.f32.mrf.mxu1 }
 0x5aa   :  { %v9408_v28 = vadd.f32 %v16630_v22, %v16606_v3  ;;  %v17722_v22 = vld [vmem:[%s23163_s1 + $0xd0] sm:$0xff]  }
 0x5ab   :  { %v9399_v23 = vpop.f32.mrf.mxu1 }
 0x5ac   :  { %v9400_v24 = vadd.f32 %v9399_v23, %v9254_v5  ;;  %v9471_v36 = vadd.f32 %v21433_v30, %v9408_v28  ;;  %v17715_v5 = vld [vmem:[%s23163_s1 + $0xa0] sm:$0xff]  }
 0x5ad   :  { %v16631_v29 = vpop.f32.mrf.mxu1 }
 0x5ae   :  { %v9411_v31 = vadd.f32 %v16631_v29, %v16607_v8  ;;  %v9469_v33 = vadd.f32 %v21433_v30, %v9400_v24  ;;  %v9487_v45 = vmax.f32 %v9471_v36, 0.0  ;;  %v17723_v24 = vld [vmem:[%s23163_s1 + $0x90] sm:$0xff]   ;;  %v17729_v29 = vld [vmem:[%s23163_s1 + $0xc8] sm:$0xff]  }
 0x5af   :  { %v9402_v32 = vpop.f32.mrf.mxu1 }
 0x5b0   :  { %v9472_v34 = vadd.f32 %v21433_v30, %v9411_v31  ;;  %v9403_v35 = vadd.f32 %v9402_v32, %v9257_v9  ;;  %v9485_v43 = vmax.f32 %v9469_v33, 0.0 }
 0x5b2   :  { %v9470_v38 = vadd.f32 %v21433_v30, %v9403_v35  ;;  %v9488_v40 = vmax.f32 %v9472_v34, 0.0  ;;  %v17730_v35 = vld [vmem:[%s23163_s1 + $0x88] sm:$0xff]  }
 0x5b4   :  { %v9486_v44 = vmax.f32 %v9470_v38, 0.0  ;;  %v9502_v48 = vpack.c.bf16 %v9488_v40, %v9487_v45  ;;  %v17733_v38 = vld [vmem:[%s23163_s1 + $0xc0] sm:$0xff]  }
 0x5b6   :  { %v9501_v46 = vpack.c.bf16 %v9486_v44, %v9485_v43  ;;  %v17734_v44 = vld [vmem:[%s23163_s1 + $0x80] sm:$0xff]  }
 0x5b8   :  { %16652 = vmatprep.mubr.msk.bf16.mxu1 %vm9002_vm2, %v9501_v46  ;;  %v17743_v46 = vld [vmem:[%s23116_s4 + $0x38] sm:$0xff]  }
 0x5b9   :  { %v16634_v50 = vpop.f32.mrf.mxu1  ;;  %16653 = vmatmul.mubr.msk.bf16.vlgmr.msra.gmra.mxu1 %vm9002_vm2, %v9502_v48 }
 0x5ba   :  { %16447 = vmatpush3.bf16.msra.mxu1 %v17703_v47  ;;  %v9424_v56 = vadd.f32 %v16634_v50, %v16610_v10 }
 0x5bb   :  { %v9415_v53 = vpop.f32.mrf.mxu1  ;;  %16448 = vmatprep.subr.bf16.mxu1 %v17706_v49 }
 0x5bc   :  { %v9416_v55 = vadd.f32 %v9415_v53, %v9270_v11  ;;  %v9475_v1 = vadd.f32 %v21433_v30, %v9424_v56 }
 0x5bd   :  { %v16635_v57 = vpop.f32.mrf.mxu1 }
 0x5be   :  { %v9427_v58 = vadd.f32 %v16635_v57, %v16611_v12  ;;  %16449 = vmatpush3.bf16.msra.mxu1 %v17707_v51  ;;  %v9473_v62 = vadd.f32 %v21433_v30, %v9416_v55  ;;  %v9491_v10 = vmax.f32 %v9475_v1, 0.0  ;;  %v17719_v12 = vld [vmem:[%s23163_s1 + $0x98] sm:$0xff]  }
 0x5bf   :  { %v9418_v60 = vpop.f32.mrf.mxu1  ;;  %16450 = vmatprep.subr.bf16.mxu1 %v17710_v54 }
 0x5c0   :  { %v9476_v63 = vadd.f32 %v21433_v30, %v9427_v58  ;;  %v9419_v0 = vadd.f32 %v9418_v60, %v9273_v13  ;;  %v9489_v8 = vmax.f32 %v9473_v62, 0.0 }
 0x5c2   :  { %v9474_v3 = vadd.f32 %v21433_v30, %v9419_v0  ;;  %16451 = vmatpush3.bf16.msra.mxu1 %v17711_v59  ;;  %v9492_v6 = vmax.f32 %v9476_v63, 0.0 }
 0x5c3   :  { %16452 = vmatprep.subr.bf16.mxu1 %v17714_v61 }
 0x5c4   :  { %v9490_v9 = vmax.f32 %v9474_v3, 0.0  ;;  %v9504_v13 = vpack.c.bf16 %v9492_v6, %v9491_v10  ;;  %v17744_v6 = vld [vmem:[%s23116_s4 + $0x30] sm:$0xff]   ;;  %v8800_v10 = vpack.c.bf16 %v21406_v2, %v21217_v39  ;;  %v17755_v39 = vld [vmem:[%s23116_s4 + $0x8] sm:$0xff]   ;;  %v17756_v2 = vld [vmem:[%s23116_s4] sm:$0xff]  }
 0x5c6   :  { %v9503_v11 = vpack.c.bf16 %v9490_v9, %v9489_v8  ;;  %16453 = vmatpush3.bf16.msra.mxu1 %v17715_v5  ;;  %v17745_v8 = vld [vmem:[%s23115_s13 + $0x38] ss:$24 sps:$4 sm:$0xff]   ;;  %v17752_v9 = vld [vmem:[%s23116_s4 + $0x20] sm:$0xff]  }
 0x5c7   :  { %16454 = vmatprep.subr.bf16.mxu1 %v17718_v7  ;;  %v17751_v7 = vld [vmem:[%s23116_s4 + $0x28] sm:$0xff]  }
 0x5c8   :  { %16656 = vmatprep.mubr.msk.bf16.mxu1 %vm9002_vm2, %v9503_v11  ;;  %v17753_v11 = vld [vmem:[%s23116_s4 + $0x18] sm:$0xff]  }
 0x5c9   :  { %v16638_v23 = vpop.f32.mrf.mxu1  ;;  %16657 = vmatmul.mubr.msk.bf16.gmra.mxu1 %vm9002_vm2, %v9504_v13  ;;  %v17757_v13 = vld [vmem:[%s23118_s16 + $0x38] sm:$0xff]  }
 0x5ca   :  { %16455 = vmatpush3.bf16.msra.mxu1 %v17719_v12  ;;  %v9440_v32 = vadd.f32 %v16638_v23, %v21414_v14  ;;  %v17754_v12 = vld [vmem:[%s23116_s4 + $0x10] sm:$0xff]   ;;  %16688 = vmatprep.subr.bf16.mxu0 %v17757_v13  ;;  %v21591_v23 = vld [vmem:[%s23120_s24] ss:$0 sm:$0xff] }
 0x5cb   :  { %v9431_v28 = vpop.f32.mrf.mxu1  ;;  %16456 = vmatprep.subr.bf16.mxu1 %v17722_v22  ;;  %16689 = vmatpush3.bf16.msra.mxu0 %v17757_v13  ;;  %v17767_v22 = vld [vmem:[%s23119_s19 + $0x74] ss:$8 sps:$4 sm:$0xff]  }
 0x5cc   :  { %v9432_v31 = vadd.f32 %v9431_v28, %v21416_v15  ;;  %v9479_v43 = vadd.f32 %v21433_v30, %v9440_v32  ;;  %16690 = vmatprep.subr.bf16.mxu0 %v17758_v37 }
 0x5cd   :  { %v16639_v33 = vpop.f32.mrf.mxu1 }
 0x5ce   :  { %v9443_v34 = vadd.f32 %v16639_v33, %v21418_v16  ;;  %16457 = vmatpush3.bf16.msra.mxu1 %v17723_v24  ;;  %v9477_v40 = vadd.f32 %v21433_v30, %v9432_v31  ;;  %v9495_v49 = vmax.f32 %v9479_v43, 0.0 }
 0x5cf   :  { %v9434_v36 = vpop.f32.mrf.mxu1  ;;  %16458 = vmatprep.subr.bf16.mxu1 %v17729_v29  ;;  %16691 = vmatpush3.bf16.msra.mxu0 %v17758_v37 }
 0x5d0   :  { %v9480_v15 = vadd.f32 %v21433_v30, %v9443_v34  ;;  %v9435_v14 = vadd.f32 %v9434_v36, %v21420_v17  ;;  %v9493_v47 = vmax.f32 %v9477_v40, 0.0  ;;  %16692 = vmatprep.subr.bf16.mxu0 %v17759_v41  ;;  %v16434_v36 = vpop.f32.mrf.mxu0 }
 0x5d2   :  { %v9478_v16 = vadd.f32 %v21433_v30, %v9435_v14  ;;  %16459 = vmatpush3.bf16.msra.mxu1 %v17730_v35  ;;  %v9496_v45 = vmax.f32 %v9480_v15, 0.0  ;;  %v16435_v40 = vpop.f32.mrf.mxu0 }
 0x5d3   :  { %16460 = vmatprep.subr.bf16.mxu1 %v17733_v38  ;;  %16693 = vmatpush3.bf16.msra.mxu0 %v17759_v41 }
 0x5d4   :  { %v9494_v48 = vmax.f32 %v9478_v16, 0.0  ;;  %v9506_v17 = vpack.c.bf16 %v9496_v45, %v9495_v49 }
 0x5d6   :  { %v9505_v50 = vpack.c.bf16 %v9494_v48, %v9493_v47  ;;  %16461 = vmatpush3.bf16.msra.mxu1 %v17734_v44  ;;  %v16437_v44 = vpop.f32.mrf.mxu0 }
 0x5d7   :  { %16668 = vmatprep.subr.bf16.mxu1 %v17743_v46 }
 0x5d8   :  { %16660 = vmatprep.mubr.msk.bf16.mxu1 %vm9002_vm2, %v9505_v50  ;;  %v16438_v48 = vpop.f32.mrf.mxu0 }
 0x5d9   :  { %v16642_v51 = vpop.f32.mrf.mxu1  ;;  %16661 = vmatmul.mubr.msk.bf16.gmra.mxu1 %vm9002_vm2, %v9506_v17 }
 0x5da   :  { %v9456_v55 = vadd.f32 %v16642_v51, %v21422_v18  ;;  %v17739_v18 = vld [vmem:[%s23115_s13 + $0xc] ss:$24 sps:$4 sm:$0xff]   ;;  %v16440_v49 = vpop.f32.mrf.mxu0 }
 0x5db   :  { %v9447_v53 = vpop.f32.mrf.mxu1 }
 0x5dc   :  { %v9448_v54 = vadd.f32 %v9447_v53, %v21424_v19  ;;  %v9483_v62 = vadd.f32 %v21433_v30, %v9456_v55  ;;  %v16441_v50 = vpop.f32.mrf.mxu0 }
 0x5dd   :  { %v16643_v56 = vpop.f32.mrf.mxu1 }
 0x5de   :  { %v9459_v57 = vadd.f32 %v16643_v56, %v21426_v20  ;;  %v9481_v59 = vadd.f32 %v21433_v30, %v9448_v54  ;;  %v9499_v19 = vmax.f32 %v9483_v62, 0.0  ;;  %v16443_v54 = vpop.f32.mrf.mxu0 }
 0x5df   :  { %v9450_v58 = vpop.f32.mrf.mxu1 }
 0x5e0   :  { %v9484_v60 = vadd.f32 %v21433_v30, %v9459_v57  ;;  %v9451_v61 = vadd.f32 %v9450_v58, %v21428_v21  ;;  %v9497_v1 = vmax.f32 %v9481_v59, 0.0  ;;  %v17737_v21 = vld [vmem:[%s23115_s13 + $0x8] ss:$24 sps:$4 sm:$0xff]   ;;  %v16444_v59 = vpop.f32.mrf.mxu0 }
 0x5e2   :  { %v9482_v63 = vadd.f32 %v21433_v30, %v9451_v61  ;;  %v9500_v0 = vmax.f32 %v9484_v60, 0.0  ;;  %v17747_v30 = vld [vmem:[%s23115_s13 + $0x3c] ss:$24 sps:$4 sm:$0xff]  }
 0x5e3   :  { %v16490_v61 = vpop.f32.mrf.mxu0 }
 0x5e4   :  { %v9498_v3 = vmax.f32 %v9482_v63, 0.0  ;;  %v9508_v20 = vpack.c.bf16 %v9500_v0, %v9499_v19 }
 0x5e5   :  { %v16491_v62 = vpop.f32.mrf.mxu0 }
 0x5e6   :  { %v9507_v5 = vpack.c.bf16 %v9498_v3, %v9497_v1 }
 0x5e7   :  { %v16493_v3 = vpop.f32.mrf.mxu0 }
 0x5e8   :  { %16664 = vmatprep.mubr.msk.bf16.mxu1 %vm9002_vm2, %v9507_v5 }
 0x5e9   :  { %16665 = vmatmul.mubr.msk.bf16.gmra.mxu1 %vm9002_vm2, %v9508_v20  ;;  %v14796_v20 = vld [vmem:[%s23122_s15] ss:$0 sm:$0xff] }
 0x5ea   :  { %10220 = vmatprep.mubr.bf16.mxu1 %v17739_v18 }
 0x5f1   :  { %10221 = vmatmul.mubr.bf16.vlgmr.msra.gmra.mxu1 %v17737_v21 }
 0x5f2   :  { %16669 = vmatpush3.bf16.msra.mxu1 %v17743_v46  ;;  %10228 = vmatprep.mubr.bf16.mxu1 %v17747_v30  ;;  %v16494_v30 = vpop.f32.mrf.mxu0 }
 0x5f3   :  { %16670 = vmatprep.subr.bf16.mxu1 %v17744_v6 }
 0x5f6   :  { %16671 = vmatpush3.bf16.msra.mxu1 %v17744_v6  ;;  %v16436_v6 = vadd.f32 %v16435_v40, %v16434_v36 }
 0x5f7   :  { %16672 = vmatprep.subr.bf16.mxu1 %v17751_v7 }
 0x5f9   :  { %10229 = vmatmul.mubr.bf16.gmra.mxu1 %v17745_v8 }
 0x5fa   :  { %16673 = vmatpush3.bf16.msra.mxu1 %v17751_v7  ;;  %16684 = vmatprep.mubr.bf16.mxu1 %v8800_v10  ;;  %v16496_v10 = vpop.f32.mrf.mxu0 }
 0x5fb   :  { %16674 = vmatprep.subr.bf16.mxu1 %v17752_v9 }
 0x5fc   :  { %v16497_v41 = vpop.f32.mrf.mxu0 }
 0x5fe   :  { %16675 = vmatpush3.bf16.msra.mxu1 %v17752_v9 }
 0x5ff   :  { %16676 = vmatprep.subr.bf16.mxu1 %v17753_v11 }
 0x602   :  { %16677 = vmatpush3.bf16.msra.mxu1 %v17753_v11  ;;  %v10174_v11 = vadd.f32 %v16436_v6, %v14796_v20  ;;  %v17792_v6 = vld [vmem:[%s23119_s19 + $0xe0] ss:$8 sps:$4 sm:$0xff]  }
 0x603   :  { %16678 = vmatprep.subr.bf16.mxu1 %v17754_v12 }
 0x606   :  { %16679 = vmatpush3.bf16.msra.mxu1 %v17754_v12  ;;  %v16439_v12 = vadd.f32 %v16438_v48, %v16437_v44 }
 0x607   :  { %16680 = vmatprep.subr.bf16.mxu1 %v17755_v39 }
 0x60a   :  { %16681 = vmatpush3.bf16.msra.mxu1 %v17755_v39 }
 0x60b   :  { %16682 = vmatprep.subr.bf16.mxu1 %v17756_v2 }
 0x60e   :  { %16683 = vmatpush3.bf16.msra.mxu1 %v17756_v2 }
 0x60f   :  { %16708 = vmatprep.subr.bf16.mxu1 %v21282_v4 }
 0x611   :  { %16685 = vmatmul.mubr.bf16.vlgmr.msra.gmra.mxu1 %v8801_v42  ;;  %v17760_v42 = vld [vmem:[%s23118_s16 + $0x20] sm:$0xff]  }
 0x612   :  { %16709 = vmatpush3.bf16.msra.mxu1 %v21282_v4  ;;  %16694 = vmatprep.subr.bf16.mxu0 %v17760_v42  ;;  %v17761_v4 = vld [vmem:[%s23118_s16 + $0x18] sm:$0xff]  }
 0x613   :  { %16710 = vmatprep.subr.bf16.mxu1 %v21289_v25  ;;  %16695 = vmatpush3.bf16.msra.mxu0 %v17760_v42  ;;  %v10177_v42 = vadd.f32 %v16439_v12, %v14796_v20  ;;  %v17801_v12 = vld [vmem:[%s23119_s19 + $0xb0] ss:$8 sps:$4 sm:$0xff]  }
 0x614   :  { %16696 = vmatprep.subr.bf16.mxu0 %v17761_v4 }
 0x616   :  { %16711 = vmatpush3.bf16.msra.mxu1 %v21289_v25  ;;  %v17762_v25 = vld [vmem:[%s23118_s16 + $0x10] sm:$0xff]  }
 0x617   :  { %16712 = vmatprep.subr.bf16.mxu1 %v21296_v26  ;;  %16697 = vmatpush3.bf16.msra.mxu0 %v17761_v4  ;;  %v16442_v4 = vadd.f32 %v16441_v50, %v16440_v49  ;;  %v21663_v49 = vld [vmem:[%s23123_s18] sm:$0xff] }
 0x618   :  { %16698 = vmatprep.subr.bf16.mxu0 %v17762_v25 }
 0x61a   :  { %16713 = vmatpush3.bf16.msra.mxu1 %v21296_v26  ;;  %v17763_v26 = vld [vmem:[%s23118_s16 + $0x8] sm:$0xff]  }
 0x61b   :  { %16714 = vmatprep.subr.bf16.mxu1 %v21303_v27  ;;  %16699 = vmatpush3.bf16.msra.mxu0 %v17762_v25  ;;  %v16492_v25 = vadd.f32 %v16491_v62, %v16490_v61  ;;  %v17774_v61 = vld [vmem:[%s23119_s19 + $0x40] ss:$8 sps:$4 sm:$0xff]   ;;  %v17779_v62 = vld [vmem:[%s23119_s19 + $0x34] ss:$8 sps:$4 sm:$0xff]  }
 0x61c   :  { %16700 = vmatprep.subr.bf16.mxu0 %v17763_v26 }
 0x61e   :  { %16715 = vmatpush3.bf16.msra.mxu1 %v21303_v27  ;;  %v17764_v27 = vld [vmem:[%s23118_s16] sm:$0xff]  }
 0x61f   :  { %16701 = vmatpush3.bf16.msra.mxu0 %v17763_v26 }
 0x620   :  { %16702 = vmatprep.subr.bf16.mxu0 %v17764_v27 }
 0x623   :  { %16703 = vmatpush3.bf16.msra.mxu0 %v17764_v27 }
 0x624   :  { %13006 = vmatprep.subr.bf16.mxu0 %v17767_v22 }
 0x679   :  { %v16654_v24 = vpop.f32.mrf.mxu1 }
 0x67a   :  { %v9606_v28 = vadd.f32 %v16654_v24, %v21591_v23  ;;  %v16495_v24 = vadd.f32 %v16494_v30, %v16493_v3  ;;  %v17785_v3 = vld [vmem:[%s23119_s19 + $0x14] ss:$8 sps:$4 sm:$0xff]   ;;  %v17794_v30 = vld [vmem:[%s23119_s19 + $0xe4] ss:$8 sps:$4 sm:$0xff]  }
 0x67b   :  { %v9597_v29 = vpop.f32.mrf.mxu1 }
 0x67c   :  { %9662 = vst [vmem:[%s23121_s25 + $0x10] sm:$0xff] %v9606_v28  ;;  %v9598_v31 = vadd.f32 %v21591_v23, %v9597_v29  ;;  %v16499_v29 = vpop.f32.mrf.mxu0 }
 0x67d   :  { %v16655_v32 = vpop.f32.mrf.mxu1 }
 0x67e   :  { %9660 = vst [vmem:[%s23121_s25] sm:$0xff] %v9598_v31  ;;  %v9609_v33 = vadd.f32 %v16655_v32, %v21591_v23  ;;  %v10182_v31 = vadd.f32 %v16442_v4, %v14796_v20  ;;  %v16445_v32 = vadd.f32 %v16444_v59, %v16443_v54  ;;  %v17770_v54 = vld [vmem:[%s23119_s19 + $0x64] ss:$8 sps:$4 sm:$0xff]   ;;  %v17771_v59 = vld [vmem:[%s23119_s19 + $0x50] ss:$8 sps:$4 sm:$0xff]   ;;  %v17817_v4 = vld [vmem:[%s23119_s19 + $0x274] ss:$8 sps:$4 sm:$0xff]  }
 0x67f   :  { %v9600_v34 = vpop.f32.mrf.mxu1 }
 0x680   :  { %9663 = vst [vmem:[%s23121_s25 + $0x18] sm:$0xff] %v9609_v33  ;;  %v9601_v35 = vadd.f32 %v21591_v23, %v9600_v34 }
 0x682   :  { %9661 = vst [vmem:[%s23121_s25 + $0x8] sm:$0xff] %v9601_v35 }
 0x689   :  { %v16658_v38 = vpop.f32.mrf.mxu1 }
 0x68a   :  { %v9622_v15 = vadd.f32 %v16658_v38, %v21591_v23 }
 0x68b   :  { %v9613_v14 = vpop.f32.mrf.mxu1 }
 0x68c   :  { %9666 = vst [vmem:[%s23121_s25 + $0x30] sm:$0xff] %v9622_v15  ;;  %v9614_v43 = vadd.f32 %v21591_v23, %v9613_v14  ;;  %v16500_v14 = vpop.f32.mrf.mxu0 }
 0x68d   :  { %v16659_v16 = vpop.f32.mrf.mxu1  ;;  %v16501_v48 = vadd.f32 %v16500_v14, %v16499_v29  ;;  %v17821_v29 = vld [vmem:[%s23119_s19 + $0x250] ss:$8 sps:$4 sm:$0xff]   ;;  %v17838_v14 = vld [vmem:[%s23119_s19 + $0x204] ss:$8 sps:$4 sm:$0xff]  }
 0x68e   :  { %9664 = vst [vmem:[%s23121_s25 + $0x20] sm:$0xff] %v9614_v43  ;;  %v9625_v45 = vadd.f32 %v16659_v16, %v21591_v23  ;;  %v10185_v43 = vadd.f32 %v16445_v32, %v14796_v20  ;;  %v16498_v16 = vadd.f32 %v16497_v41, %v16496_v10  ;;  %v17791_v20 = vld [vmem:[%s23119_s19 + $0xf4] ss:$8 sps:$4 sm:$0xff]   ;;  %v17798_v10 = vld [vmem:[%s23119_s19 + $0xc0] ss:$8 sps:$4 sm:$0xff]  }
 0x68f   :  { %v9616_v46 = vpop.f32.mrf.mxu1  ;;  %v17812_v41 = vld [vmem:[%s23119_s19 + $0x84] ss:$8 sps:$4 sm:$0xff]   ;;  %v17824_v32 = vld [vmem:[%s23119_s19 + $0x240] ss:$8 sps:$4 sm:$0xff]  }
 0x690   :  { %9667 = vst [vmem:[%s23121_s25 + $0x38] sm:$0xff] %v9625_v45  ;;  %v9617_v47 = vadd.f32 %v21591_v23, %v9616_v46 }
 0x692   :  { %9665 = vst [vmem:[%s23121_s25 + $0x28] sm:$0xff] %v9617_v47 }
 0x699   :  { %v16662_v17 = vpop.f32.mrf.mxu1 }
 0x69a   :  { %v9638_v51 = vadd.f32 %v16662_v17, %v21591_v23 }
 0x69b   :  { %v9629_v53 = vpop.f32.mrf.mxu1 }
 0x69c   :  { %9670 = vst [vmem:[%s23121_s25 + $0x50] sm:$0xff] %v9638_v51  ;;  %v9630_v55 = vadd.f32 %v21591_v23, %v9629_v53  ;;  %v17765_v53 = vld [vmem:[%s23119_s19 + $0x70] ss:$8 sps:$4 sm:$0xff]  }
 0x69d   :  { %v16663_v56 = vpop.f32.mrf.mxu1 }
 0x69e   :  { %9668 = vst [vmem:[%s23121_s25 + $0x40] sm:$0xff] %v9630_v55  ;;  %v9641_v57 = vadd.f32 %v16663_v56, %v21591_v23  ;;  %v14877_v55 = vcombine.high %v21663_v49, %v21663_v49 }
 0x69f   :  { %v9632_v58 = vpop.f32.mrf.mxu1 }
 0x6a0   :  { %9671 = vst [vmem:[%s23121_s25 + $0x58] sm:$0xff] %v9641_v57  ;;  %v9633_v60 = vadd.f32 %v21591_v23, %v9632_v58  ;;  %v17768_v57 = vld [vmem:[%s23119_s19 + $0x60] ss:$8 sps:$4 sm:$0xff]   ;;  %v17773_v58 = vld [vmem:[%s23119_s19 + $0x54] ss:$8 sps:$4 sm:$0xff]  }
 0x6a2   :  { %9669 = vst [vmem:[%s23121_s25 + $0x48] sm:$0xff] %v9633_v60  ;;  %v17776_v60 = vld [vmem:[%s23119_s19 + $0x44] ss:$8 sps:$4 sm:$0xff]  }
 0x6a9   :  { %v16666_v63 = vpop.f32.mrf.mxu1 }
 0x6aa   :  { %v9654_v0 = vadd.f32 %v16666_v63, %v21591_v23  ;;  %v17777_v63 = vld [vmem:[%s23119_s19 + $0x30] ss:$8 sps:$4 sm:$0xff]  }
 0x6ab   :  { %v9645_v1 = vpop.f32.mrf.mxu1 }
 0x6ac   :  { %9674 = vst [vmem:[%s23121_s25 + $0x70] sm:$0xff] %v9654_v0  ;;  %v9646_v19 = vadd.f32 %v21591_v23, %v9645_v1  ;;  %v17782_v0 = vld [vmem:[%s23119_s19 + $0x24] ss:$8 sps:$4 sm:$0xff]   ;;  %v17780_v1 = vld [vmem:[%s23119_s19 + $0x20] ss:$8 sps:$4 sm:$0xff]  }
 0x6ad   :  { %v16667_v5 = vpop.f32.mrf.mxu1 }
 0x6ae   :  { %9672 = vst [vmem:[%s23121_s25 + $0x60] sm:$0xff] %v9646_v19  ;;  %v9657_v18 = vadd.f32 %v16667_v5, %v21591_v23  ;;  %v17783_v19 = vld [vmem:[%s23119_s19 + $0x10] ss:$8 sps:$4 sm:$0xff]   ;;  %v17788_v5 = vld [vmem:[%s23119_s19 + $0x4] ss:$8 sps:$4 sm:$0xff]  }
 0x6af   :  { %v9648_v21 = vpop.f32.mrf.mxu1 }
 0x6b0   :  { %9675 = vst [vmem:[%s23121_s25 + $0x78] sm:$0xff] %v9657_v18  ;;  %v9649_v7 = vadd.f32 %v21591_v23, %v9648_v21  ;;  %v17786_v18 = vld [vmem:[%s23119_s19] ss:$8 sps:$4 sm:$0xff]   ;;  %v17789_v21 = vld [vmem:[%s23119_s19 + $0xf0] ss:$8 sps:$4 sm:$0xff]  }
 0x6b1   :  { %v16462_v8 = vpop.f32.mrf.mxu1 }
 0x6b2   :  { %9673 = vst [vmem:[%s23121_s25 + $0x68] sm:$0xff] %v9649_v7  ;;  %v17797_v7 = vld [vmem:[%s23119_s19 + $0xd4] ss:$8 sps:$4 sm:$0xff]  }
 0x6b3   :  { %v16463_v9 = vpop.f32.mrf.mxu1 }
 0x6b4   :  { %v16464_v39 = vadd.f32 %v16463_v9, %v16462_v8  ;;  %v17795_v8 = vld [vmem:[%s23119_s19 + $0xd0] ss:$8 sps:$4 sm:$0xff]   ;;  %v17800_v9 = vld [vmem:[%s23119_s19 + $0xc4] ss:$8 sps:$4 sm:$0xff]  }
 0x6b5   :  { %v16465_v2 = vpop.f32.mrf.mxu1 }
 0x6b6   :  { %v10223_v13 = vadd.f32 %v16464_v39, %v10174_v11  ;;  %v17803_v11 = vld [vmem:[%s23119_s19 + $0xb4] ss:$8 sps:$4 sm:$0xff]   ;;  %v17806_v39 = vld [vmem:[%s23119_s19 + $0xa4] ss:$8 sps:$4 sm:$0xff]  }
 0x6b7   :  { %v16466_v37 = vpop.f32.mrf.mxu1 }
 0x6b8   :  { %v16467_v26 = vadd.f32 %v16466_v37, %v16465_v2  ;;  %v10272_v22 = vadd.f32 %v16492_v25, %v10223_v13  ;;  %v17804_v2 = vld [vmem:[%s23119_s19 + $0xa0] ss:$8 sps:$4 sm:$0xff]   ;;  %v17809_v13 = vld [vmem:[%s23119_s19 + $0x94] ss:$8 sps:$4 sm:$0xff]   ;;  %v17807_v37 = vld [vmem:[%s23119_s19 + $0x90] ss:$8 sps:$4 sm:$0xff]  }
 0x6b9   :  { %v16468_v27 = vpop.f32.mrf.mxu1  ;;  %v21766_v25 = vld [vmem:[%s23123_s18 + $0x10] sm:$0xff] }
 0x6ba   :  { %v10226_v23 = vadd.f32 %v16467_v26, %v10177_v42  ;;  %v10286_v36 = vmax.f32 %v10272_v22, 0.0  ;;  %v17810_v42 = vld [vmem:[%s23119_s19 + $0x80] ss:$8 sps:$4 sm:$0xff]   ;;  %v14876_v26 = vcombine.low %v21663_v49, %v21663_v49  ;;  %v14881_v22 = vcombine.high %v21766_v25, %v21766_v25  ;;  %v17850_v49 = vld [vmem:[%s23119_s19 + $0x2c4] ss:$8 sps:$4 sm:$0xff]  }
 0x6bb   :  { %v16469_v28 = vpop.f32.mrf.mxu1 }
 0x6bc   :  { %v10275_v33 = vadd.f32 %v16495_v24, %v10226_v23  ;;  %v16470_v34 = vadd.f32 %v16469_v28, %v16468_v27  ;;  %v17815_v27 = vld [vmem:[%s23119_s19 + $0x270] ss:$8 sps:$4 sm:$0xff]   ;;  %v17820_v23 = vld [vmem:[%s23119_s19 + $0x264] ss:$8 sps:$4 sm:$0xff]   ;;  %v17818_v24 = vld [vmem:[%s23119_s19 + $0x260] ss:$8 sps:$4 sm:$0xff]  }
 0x6bd   :  { %v16471_v35 = vpop.f32.mrf.mxu1  ;;  %v17823_v28 = vld [vmem:[%s23119_s19 + $0x254] ss:$8 sps:$4 sm:$0xff]  }
 0x6be   :  { %v10287_v38 = vmax.f32 %v10275_v33, 0.0  ;;  %v10231_v40 = vadd.f32 %v16470_v34, %v10182_v31  ;;  %v17826_v31 = vld [vmem:[%s23119_s19 + $0x244] ss:$8 sps:$4 sm:$0xff]   ;;  %v17829_v33 = vld [vmem:[%s23119_s19 + $0x234] ss:$8 sps:$4 sm:$0xff]  }
 0x6bf   :  { %v16472_v15 = vpop.f32.mrf.mxu1  ;;  %v17827_v34 = vld [vmem:[%s23119_s19 + $0x230] ss:$8 sps:$4 sm:$0xff]  }
 0x6c0   :  { %v16473_v44 = vadd.f32 %v16472_v15, %v16471_v35  ;;  %v10290_v45 = vpack.c.bf16 %v10287_v38, %v10286_v36  ;;  %v10280_v46 = vadd.f32 %v16498_v16, %v10231_v40  ;;  %v17832_v35 = vld [vmem:[%s23119_s19 + $0x224] ss:$8 sps:$4 sm:$0xff]   ;;  %v17929_v36 = vld [vmem:[%s23119_s19 + $0x174] ss:$8 sps:$4 sm:$0xff]   ;;  %v17830_v38 = vld [vmem:[%s23119_s19 + $0x220] ss:$8 sps:$4 sm:$0xff]  }
 0x6c1   :  { %13047 = vmatprep.subr.bf16.mxu1 %v17929_v36  ;;  %v17835_v40 = vld [vmem:[%s23119_s19 + $0x214] ss:$8 sps:$4 sm:$0xff]   ;;  %v17833_v15 = vld [vmem:[%s23119_s19 + $0x210] ss:$8 sps:$4 sm:$0xff]  }
 0x6c2   :  { %v10234_v47 = vadd.f32 %v16473_v44, %v10185_v43  ;;  %16704 = vmatprep.mubr.bf16.mxu0 %v10290_v45  ;;  %v10288_v17 = vmax.f32 %v10280_v46, 0.0  ;;  %v17836_v43 = vld [vmem:[%s23119_s19 + $0x200] ss:$8 sps:$4 sm:$0xff]   ;;  %v17841_v16 = vld [vmem:[%s23119_s19 + $0x2f4] ss:$8 sps:$4 sm:$0xff]  }
 0x6c3   :  { %v17839_v44 = vld [vmem:[%s23119_s19 + $0x2f0] ss:$8 sps:$4 sm:$0xff]   ;;  %v17844_v45 = vld [vmem:[%s23119_s19 + $0x2e4] ss:$8 sps:$4 sm:$0xff]   ;;  %v17842_v46 = vld [vmem:[%s23119_s19 + $0x2e0] ss:$8 sps:$4 sm:$0xff]  }
 0x6c4   :  { %v10283_v50 = vadd.f32 %v16501_v48, %v10234_v47  ;;  %v17847_v47 = vld [vmem:[%s23119_s19 + $0x2d4] ss:$8 sps:$4 sm:$0xff]   ;;  %v17845_v48 = vld [vmem:[%s23119_s19 + $0x2d0] ss:$8 sps:$4 sm:$0xff]  }
 0x6c6   :  { %v10289_v51 = vmax.f32 %v10283_v50, 0.0  ;;  %v17848_v50 = vld [vmem:[%s23119_s19 + $0x2c0] ss:$8 sps:$4 sm:$0xff]  }
 0x6c8   :  { %v10291_v56 = vpack.c.bf16 %v10289_v51, %v10288_v17  ;;  %v17853_v17 = vld [vmem:[%s23119_s19 + $0x2b4] ss:$8 sps:$4 sm:$0xff]   ;;  %v17851_v51 = vld [vmem:[%s23119_s19 + $0x2b0] ss:$8 sps:$4 sm:$0xff]  }
 0x6ca   :  { %16705 = vmatmul.mubr.bf16.vlgmr.msra.gmra.mxu0 %v10291_v56  ;;  %v17857_v56 = vld [vmem:[%s23119_s19 + $0x290] ss:$8 sps:$4 sm:$0xff]  }
 0x6cb   :  { %13007 = vmatpush1.bf16.msra.mxu0 %v17765_v53  ;;  %13038 = vmatprep.mubr.bf16.mxu0 %v14877_v55  ;;  %v17856_v53 = vld [vmem:[%s23119_s19 + $0x2a4] ss:$8 sps:$4 sm:$0xff]   ;;  %v17859_v55 = vld [vmem:[%s23119_s19 + $0x294] ss:$8 sps:$4 sm:$0xff]  }
 0x6cc   :  { %13008 = vmatprep.subr.bf16.mxu0 %v17770_v54  ;;  %v17854_v54 = vld [vmem:[%s23119_s19 + $0x2a0] ss:$8 sps:$4 sm:$0xff]  }
 0x6cf   :  { %13009 = vmatpush1.bf16.msra.mxu0 %v17768_v57  ;;  %v17862_v57 = vld [vmem:[%s23119_s19 + $0x284] ss:$8 sps:$4 sm:$0xff]  }
 0x6d0   :  { %13010 = vmatprep.subr.bf16.mxu0 %v17773_v58  ;;  %v17860_v58 = vld [vmem:[%s23119_s19 + $0x280] ss:$8 sps:$4 sm:$0xff]  }
 0x6d3   :  { %13011 = vmatpush1.bf16.msra.mxu0 %v17771_v59  ;;  %v17867_v59 = vld [vmem:[%s23119_s19 + $0x474] ss:$8 sps:$4 sm:$0xff]  }
 0x6d4   :  { %13012 = vmatprep.subr.bf16.mxu0 %v17776_v60  ;;  %v21874_v60 = vld [vmem:[%s23123_s18 + $0x20] sm:$0xff] }
 0x6d7   :  { %13013 = vmatpush1.bf16.msra.mxu0 %v17774_v61  ;;  %v14880_v61 = vcombine.low %v21766_v25, %v21766_v25  ;;  %v17901_v25 = vld [vmem:[%s23119_s19 + $0x4b0] ss:$8 sps:$4 sm:$0xff]  }
 0x6d8   :  { %13014 = vmatprep.subr.bf16.mxu0 %v17779_v62  ;;  %v17865_v62 = vld [vmem:[%s23119_s19 + $0x470] ss:$8 sps:$4 sm:$0xff]  }
 0x6db   :  { %13015 = vmatpush1.bf16.msra.mxu0 %v17777_v63  ;;  %v14885_v63 = vcombine.high %v21874_v60, %v21874_v60 }
 0x6dc   :  { %13016 = vmatprep.subr.bf16.mxu0 %v17782_v0  ;;  %v17870_v0 = vld [vmem:[%s23119_s19 + $0x464] ss:$8 sps:$4 sm:$0xff]  }
 0x6df   :  { %13017 = vmatpush1.bf16.msra.mxu0 %v17780_v1  ;;  %v17868_v1 = vld [vmem:[%s23119_s19 + $0x460] ss:$8 sps:$4 sm:$0xff]  }
 0x6e0   :  { %13018 = vmatprep.subr.bf16.mxu0 %v17785_v3  ;;  %v17873_v3 = vld [vmem:[%s23119_s19 + $0x454] ss:$8 sps:$4 sm:$0xff]  }
 0x6e3   :  { %13019 = vmatpush1.bf16.msra.mxu0 %v17783_v19  ;;  %v17871_v19 = vld [vmem:[%s23119_s19 + $0x450] ss:$8 sps:$4 sm:$0xff]  }
 0x6e4   :  { %13020 = vmatprep.subr.bf16.mxu0 %v17788_v5  ;;  %v17876_v5 = vld [vmem:[%s23119_s19 + $0x444] ss:$8 sps:$4 sm:$0xff]  }
 0x6e7   :  { %13021 = vmatpush1.bf16.msra.mxu0 %v17786_v18  ;;  %v17874_v18 = vld [vmem:[%s23119_s19 + $0x440] ss:$8 sps:$4 sm:$0xff]  }
 0x6e8   :  { %13022 = vmatprep.subr.bf16.mxu0 %v17791_v20  ;;  %v17879_v20 = vld [vmem:[%s23119_s19 + $0x434] ss:$8 sps:$4 sm:$0xff]  }
 0x6eb   :  { %13023 = vmatpush2.bf16.msra.mxu0 %v17789_v21  ;;  %v17877_v21 = vld [vmem:[%s23119_s19 + $0x430] ss:$8 sps:$4 sm:$0xff]  }
 0x6ec   :  { %13024 = vmatprep.subr.bf16.mxu0 %v17794_v30  ;;  %v17882_v30 = vld [vmem:[%s23119_s19 + $0x424] ss:$8 sps:$4 sm:$0xff]  }
 0x6ef   :  { %13025 = vmatpush2.bf16.msra.mxu0 %v17792_v6  ;;  %v17880_v6 = vld [vmem:[%s23119_s19 + $0x420] ss:$8 sps:$4 sm:$0xff]  }
 0x6f0   :  { %13026 = vmatprep.subr.bf16.mxu0 %v17797_v7  ;;  %v17885_v7 = vld [vmem:[%s23119_s19 + $0x414] ss:$8 sps:$4 sm:$0xff]  }
 0x6f3   :  { %13027 = vmatpush2.bf16.msra.mxu0 %v17795_v8  ;;  %v17883_v8 = vld [vmem:[%s23119_s19 + $0x410] ss:$8 sps:$4 sm:$0xff]  }
 0x6f4   :  { %13028 = vmatprep.subr.bf16.mxu0 %v17800_v9  ;;  %v17888_v9 = vld [vmem:[%s23119_s19 + $0x404] ss:$8 sps:$4 sm:$0xff]  }
 0x6f7   :  { %13029 = vmatpush2.bf16.msra.mxu0 %v17798_v10  ;;  %v17886_v10 = vld [vmem:[%s23119_s19 + $0x400] ss:$8 sps:$4 sm:$0xff]  }
 0x6f8   :  { %13030 = vmatprep.subr.bf16.mxu0 %v17803_v11  ;;  %v17891_v11 = vld [vmem:[%s23119_s19 + $0x4f4] ss:$8 sps:$4 sm:$0xff]  }
 0x6fb   :  { %13031 = vmatpush2.bf16.msra.mxu0 %v17801_v12  ;;  %v17889_v12 = vld [vmem:[%s23119_s19 + $0x4f0] ss:$8 sps:$4 sm:$0xff]  }
 0x6fc   :  { %13032 = vmatprep.subr.bf16.mxu0 %v17806_v39  ;;  %v17894_v39 = vld [vmem:[%s23119_s19 + $0x4e4] ss:$8 sps:$4 sm:$0xff]  }
 0x6ff   :  { %13033 = vmatpush2.bf16.msra.mxu0 %v17804_v2  ;;  %v17892_v2 = vld [vmem:[%s23119_s19 + $0x4e0] ss:$8 sps:$4 sm:$0xff]  }
 0x700   :  { %13034 = vmatprep.subr.bf16.mxu0 %v17809_v13  ;;  %v17897_v13 = vld [vmem:[%s23119_s19 + $0x4d4] ss:$8 sps:$4 sm:$0xff]  }
 0x703   :  { %13035 = vmatpush2.bf16.msra.mxu0 %v17807_v37  ;;  %v17895_v37 = vld [vmem:[%s23119_s19 + $0x4d0] ss:$8 sps:$4 sm:$0xff]  }
 0x704   :  { %13036 = vmatprep.subr.bf16.mxu0 %v17812_v41  ;;  %v17900_v41 = vld [vmem:[%s23119_s19 + $0x4c4] ss:$8 sps:$4 sm:$0xff]  }
 0x707   :  { %13037 = vmatpush2.bf16.msra.mxu0 %v17810_v42  ;;  %v17898_v42 = vld [vmem:[%s23119_s19 + $0x4c0] ss:$8 sps:$4 sm:$0xff]  }
 0x708   :  { %13088 = vmatprep.subr.bf16.mxu0 %v17817_v4  ;;  %v17903_v4 = vld [vmem:[%s23119_s19 + $0x4b4] ss:$8 sps:$4 sm:$0xff]  }
 0x70a   :  { %13039 = vmatmul.mubr.bf16.vlgmr.msra.gmra.mxu0 %v14876_v26  ;;  %v17906_v26 = vld [vmem:[%s23119_s19 + $0x4a4] ss:$8 sps:$4 sm:$0xff]  }
 0x70b   :  { %13089 = vmatpush1.bf16.msra.mxu0 %v17815_v27  ;;  %13120 = vmatprep.mubr.bf16.mxu0 %v14881_v22  ;;  %v17904_v27 = vld [vmem:[%s23119_s19 + $0x4a0] ss:$8 sps:$4 sm:$0xff]   ;;  %v17909_v22 = vld [vmem:[%s23119_s19 + $0x494] ss:$8 sps:$4 sm:$0xff]  }
 0x70c   :  { %13090 = vmatprep.subr.bf16.mxu0 %v17820_v23  ;;  %v17907_v23 = vld [vmem:[%s23119_s19 + $0x490] ss:$8 sps:$4 sm:$0xff]  }
 0x70f   :  { %13091 = vmatpush1.bf16.msra.mxu0 %v17818_v24  ;;  %v17912_v24 = vld [vmem:[%s23119_s19 + $0x484] ss:$8 sps:$4 sm:$0xff]  }
 0x710   :  { %13092 = vmatprep.subr.bf16.mxu0 %v17823_v28  ;;  %v17910_v28 = vld [vmem:[%s23119_s19 + $0x480] ss:$8 sps:$4 sm:$0xff]  }
 0x713   :  { %13093 = vmatpush1.bf16.msra.mxu0 %v17821_v29  ;;  %v16686_v29 = vpop.f32.mrf.mxu1 }
 0x714   :  { %13094 = vmatprep.subr.bf16.mxu0 %v17826_v31  ;;  %v17917_v31 = vld [vmem:[%s23119_s19 + $0x674] ss:$8 sps:$4 sm:$0xff]  }
 0x715   :  { %v10406_v36 = vpop.f32.mrf.mxu1 }
 0x717   :  { %13095 = vmatpush1.bf16.msra.mxu0 %v17824_v32  ;;  %v21979_v32 = vld [vmem:[%s23123_s18 + $0x30] sm:$0xff] }
 0x718   :  { %13096 = vmatprep.subr.bf16.mxu0 %v17829_v33  ;;  %v14884_v33 = vcombine.low %v21874_v60, %v21874_v60  ;;  %v17932_v60 = vld [vmem:[%s23119_s19 + $0x634] ss:$8 sps:$4 sm:$0xff]  }
 0x71b   :  { %13097 = vmatpush1.bf16.msra.mxu0 %v17827_v34  ;;  %v17915_v34 = vld [vmem:[%s23119_s19 + $0x670] ss:$8 sps:$4 sm:$0xff]  }
 0x71c   :  { %13098 = vmatprep.subr.bf16.mxu0 %v17832_v35  ;;  %v14889_v35 = vcombine.high %v21979_v32, %v21979_v32 }
 0x71f   :  { %13099 = vmatpush1.bf16.msra.mxu0 %v17830_v38  ;;  %v17920_v38 = vld [vmem:[%s23119_s19 + $0x664] ss:$8 sps:$4 sm:$0xff]  }
 0x720   :  { %13100 = vmatprep.subr.bf16.mxu0 %v17835_v40 }
 0x723   :  { %13101 = vmatpush1.bf16.msra.mxu0 %v17833_v15  ;;  %v17918_v15 = vld [vmem:[%s23119_s19 + $0x660] ss:$8 sps:$4 sm:$0xff]  }
 0x724   :  { %13102 = vmatprep.subr.bf16.mxu0 %v17838_v14  ;;  %v16687_v14 = vpop.f32.mrf.mxu1 }
 0x727   :  { %13103 = vmatpush1.bf16.msra.mxu0 %v17836_v43 }
 0x728   :  { %13104 = vmatprep.subr.bf16.mxu0 %v17841_v16  ;;  %v17923_v16 = vld [vmem:[%s23119_s19 + $0x654] ss:$8 sps:$4 sm:$0xff]  }
 0x72b   :  { %13105 = vmatpush2.bf16.msra.mxu0 %v17839_v44 }
 0x72c   :  { %13106 = vmatprep.subr.bf16.mxu0 %v17844_v45 }
 0x72f   :  { %13107 = vmatpush2.bf16.msra.mxu0 %v17842_v46 }
 0x730   :  { %13108 = vmatprep.subr.bf16.mxu0 %v17847_v47  ;;  %v14873_v47 = vld [vmem:[%s23124_s17] ss:$0 sm:$0xff] }
 0x733   :  { %13109 = vmatpush2.bf16.msra.mxu0 %v17845_v48 }
 0x734   :  { %13110 = vmatprep.subr.bf16.mxu0 %v17850_v49  ;;  %v17921_v49 = vld [vmem:[%s23119_s19 + $0x650] ss:$8 sps:$4 sm:$0xff]  }
 0x737   :  { %13111 = vmatpush2.bf16.msra.mxu0 %v17848_v50  ;;  %v10409_v50 = vpop.f32.mrf.mxu1 }
 0x738   :  { %13112 = vmatprep.subr.bf16.mxu0 %v17853_v17 }
 0x73b   :  { %13113 = vmatpush2.bf16.msra.mxu0 %v17851_v51  ;;  %v17926_v51 = vld [vmem:[%s23119_s19 + $0x644] ss:$8 sps:$4 sm:$0xff]  }
 0x73c   :  { %13114 = vmatprep.subr.bf16.mxu0 %v17856_v53 }
 0x73f   :  { %13115 = vmatpush2.bf16.msra.mxu0 %v17854_v54 }
 0x740   :  { %13116 = vmatprep.subr.bf16.mxu0 %v17859_v55 }
 0x743   :  { %13117 = vmatpush2.bf16.msra.mxu0 %v17857_v56 }
 0x744   :  { %13118 = vmatprep.subr.bf16.mxu0 %v17862_v57 }
 0x747   :  { %13119 = vmatpush2.bf16.msra.mxu0 %v17860_v58  ;;  %v17924_v58 = vld [vmem:[%s23119_s19 + $0x640] ss:$8 sps:$4 sm:$0xff]  }
 0x748   :  { %13170 = vmatprep.subr.bf16.mxu0 %v17867_v59 }
 0x74a   :  { %13121 = vmatmul.mubr.bf16.vlgmr.msra.gmra.mxu0 %v14880_v61 }
 0x74b   :  { %13171 = vmatpush1.bf16.msra.mxu0 %v17865_v62  ;;  %13202 = vmatprep.mubr.bf16.mxu0 %v14885_v63 }
 0x74c   :  { %13172 = vmatprep.subr.bf16.mxu0 %v17870_v0  ;;  %v22015_v0 = vld [vmem:[%s23123_s18 + $0x8] sm:$0xff] }
 0x74f   :  { %13173 = vmatpush1.bf16.msra.mxu0 %v17868_v1 }
 0x750   :  { %13174 = vmatprep.subr.bf16.mxu0 %v17873_v3  ;;  %v17927_v3 = vld [vmem:[%s23119_s19 + $0x170] ss:$8 sps:$4 sm:$0xff]  }
 0x753   :  { %13175 = vmatpush1.bf16.msra.mxu0 %v17871_v19  ;;  %v17930_v19 = vld [vmem:[%s23119_s19 + $0x630] ss:$8 sps:$4 sm:$0xff]  }
 0x754   :  { %13176 = vmatprep.subr.bf16.mxu0 %v17876_v5 }
 0x757   :  { %13177 = vmatpush1.bf16.msra.mxu0 %v17874_v18  ;;  %v17935_v18 = vld [vmem:[%s23119_s19 + $0x164] ss:$8 sps:$4 sm:$0xff]  }
 0x758   :  { %13178 = vmatprep.subr.bf16.mxu0 %v17879_v20  ;;  %v17938_v20 = vld [vmem:[%s23119_s19 + $0x624] ss:$8 sps:$4 sm:$0xff]  }
 0x75b   :  { %13179 = vmatpush1.bf16.msra.mxu0 %v17877_v21  ;;  %v14879_v21 = vcombine.high %v22015_v0, %v22015_v0 }
 0x75c   :  { %13180 = vmatprep.subr.bf16.mxu0 %v17882_v30  ;;  %v17933_v30 = vld [vmem:[%s23119_s19 + $0x160] ss:$8 sps:$4 sm:$0xff]  }
 0x75f   :  { %13181 = vmatpush1.bf16.msra.mxu0 %v17880_v6  ;;  %v17936_v6 = vld [vmem:[%s23119_s19 + $0x620] ss:$8 sps:$4 sm:$0xff]  }
 0x760   :  { %13182 = vmatprep.subr.bf16.mxu0 %v17885_v7  ;;  %v17941_v7 = vld [vmem:[%s23119_s19 + $0x154] ss:$8 sps:$4 sm:$0xff]  }
 0x763   :  { %13183 = vmatpush1.bf16.msra.mxu0 %v17883_v8  ;;  %v17944_v8 = vld [vmem:[%s23119_s19 + $0x614] ss:$8 sps:$4 sm:$0xff]  }
 0x764   :  { %13184 = vmatprep.subr.bf16.mxu0 %v17888_v9  ;;  %v17939_v9 = vld [vmem:[%s23119_s19 + $0x150] ss:$8 sps:$4 sm:$0xff]  }
 0x767   :  { %13185 = vmatpush1.bf16.msra.mxu0 %v17886_v10  ;;  %v17942_v10 = vld [vmem:[%s23119_s19 + $0x610] ss:$8 sps:$4 sm:$0xff]  }
 0x768   :  { %13186 = vmatprep.subr.bf16.mxu0 %v17891_v11  ;;  %v17947_v11 = vld [vmem:[%s23119_s19 + $0x144] ss:$8 sps:$4 sm:$0xff]  }
 0x76b   :  { %13187 = vmatpush2.bf16.msra.mxu0 %v17889_v12  ;;  %v17950_v12 = vld [vmem:[%s23119_s19 + $0x604] ss:$8 sps:$4 sm:$0xff]  }
 0x76c   :  { %13188 = vmatprep.subr.bf16.mxu0 %v17894_v39  ;;  %v17945_v39 = vld [vmem:[%s23119_s19 + $0x140] ss:$8 sps:$4 sm:$0xff]  }
 0x76f   :  { %13189 = vmatpush2.bf16.msra.mxu0 %v17892_v2  ;;  %v17948_v2 = vld [vmem:[%s23119_s19 + $0x600] ss:$8 sps:$4 sm:$0xff]  }
 0x770   :  { %13190 = vmatprep.subr.bf16.mxu0 %v17897_v13  ;;  %v17953_v13 = vld [vmem:[%s23119_s19 + $0x134] ss:$8 sps:$4 sm:$0xff]  }
 0x773   :  { %13191 = vmatpush2.bf16.msra.mxu0 %v17895_v37  ;;  %v17956_v37 = vld [vmem:[%s23119_s19 + $0x6f4] ss:$8 sps:$4 sm:$0xff]  }
 0x774   :  { %13192 = vmatprep.subr.bf16.mxu0 %v17900_v41  ;;  %v17951_v41 = vld [vmem:[%s23119_s19 + $0x130] ss:$8 sps:$4 sm:$0xff]  }
 0x777   :  { %13193 = vmatpush2.bf16.msra.mxu0 %v17898_v42  ;;  %v17954_v42 = vld [vmem:[%s23119_s19 + $0x6f0] ss:$8 sps:$4 sm:$0xff]  }
 0x778   :  { %13194 = vmatprep.subr.bf16.mxu0 %v17903_v4  ;;  %v17959_v4 = vld [vmem:[%s23119_s19 + $0x124] ss:$8 sps:$4 sm:$0xff]  }
 0x77b   :  { %13195 = vmatpush2.bf16.msra.mxu0 %v17901_v25  ;;  %v17962_v25 = vld [vmem:[%s23119_s19 + $0x6e4] ss:$8 sps:$4 sm:$0xff]  }
 0x77c   :  { %13196 = vmatprep.subr.bf16.mxu0 %v17906_v26  ;;  %v17957_v26 = vld [vmem:[%s23119_s19 + $0x120] ss:$8 sps:$4 sm:$0xff]  }
 0x77f   :  { %13197 = vmatpush2.bf16.msra.mxu0 %v17904_v27  ;;  %v17960_v27 = vld [vmem:[%s23119_s19 + $0x6e0] ss:$8 sps:$4 sm:$0xff]  }
 0x780   :  { %13198 = vmatprep.subr.bf16.mxu0 %v17909_v22  ;;  %v17965_v22 = vld [vmem:[%s23119_s19 + $0x114] ss:$8 sps:$4 sm:$0xff]  }
 0x783   :  { %13199 = vmatpush2.bf16.msra.mxu0 %v17907_v23  ;;  %v17968_v23 = vld [vmem:[%s23119_s19 + $0x6d4] ss:$8 sps:$4 sm:$0xff]  }
 0x784   :  { %13200 = vmatprep.subr.bf16.mxu0 %v17912_v24  ;;  %v17963_v24 = vld [vmem:[%s23119_s19 + $0x110] ss:$8 sps:$4 sm:$0xff]  }
 0x787   :  { %13201 = vmatpush2.bf16.msra.mxu0 %v17910_v28  ;;  %v17966_v28 = vld [vmem:[%s23119_s19 + $0x6d0] ss:$8 sps:$4 sm:$0xff]  }
 0x788   :  { %13252 = vmatprep.subr.bf16.mxu0 %v17917_v31  ;;  %v17974_v31 = vld [vmem:[%s23119_s19 + $0x6c4] ss:$8 sps:$4 sm:$0xff]  }
 0x78a   :  { %v16706_v40 = vpop.f32.mrf.mxu0  ;;  %13203 = vmatmul.mubr.bf16.vlgmr.msra.gmra.mxu0 %v14884_v33  ;;  %v17969_v33 = vld [vmem:[%s23119_s19 + $0x100] ss:$8 sps:$4 sm:$0xff]  }
 0x78b   :  { %13253 = vmatpush1.bf16.msra.mxu0 %v17915_v34  ;;  %13284 = vmatprep.mubr.bf16.mxu0 %v14889_v35  ;;  %v10512_v45 = vadd.f32 %v16706_v40, %v16686_v29  ;;  %v17971_v29 = vld [vmem:[%s23119_s19 + $0x104] ss:$8 sps:$4 sm:$0xff]   ;;  %v17972_v34 = vld [vmem:[%s23119_s19 + $0x6c0] ss:$8 sps:$4 sm:$0xff]   ;;  %v17977_v35 = vld [vmem:[%s23119_s19 + $0x1f4] ss:$8 sps:$4 sm:$0xff]  }
 0x78c   :  { %v10503_v43 = vpop.f32.mrf.mxu0  ;;  %13254 = vmatprep.subr.bf16.mxu0 %v17920_v38  ;;  %v17975_v38 = vld [vmem:[%s23119_s19 + $0x1f0] ss:$8 sps:$4 sm:$0xff]  }
 0x78d   :  { %v10504_v44 = vadd.f32 %v10503_v43, %v10406_v36  ;;  %v10527_v56 = vadd.f32 %v14873_v47, %v10512_v45  ;;  %v17980_v36 = vld [vmem:[%s23119_s19 + $0x6b4] ss:$8 sps:$4 sm:$0xff]   ;;  %v17978_v40 = vld [vmem:[%s23119_s19 + $0x6b0] ss:$8 sps:$4 sm:$0xff]   ;;  %v17981_v43 = vld [vmem:[%s23119_s19 + $0x1e0] ss:$8 sps:$4 sm:$0xff]  }
 0x78e   :  { %v16707_v46 = vpop.f32.mrf.mxu0  ;;  %v17992_v45 = vld [vmem:[%s23119_s19 + $0x694] ss:$8 sps:$4 sm:$0xff]  }
 0x78f   :  { %v10515_v48 = vadd.f32 %v16707_v46, %v16687_v14  ;;  %13255 = vmatpush1.bf16.msra.mxu0 %v17918_v15  ;;  %v10525_v53 = vadd.f32 %v14873_v47, %v10504_v44  ;;  %v10531_v63 = vmax.f32 %v10527_v56, 0.0  ;;  %v17983_v15 = vld [vmem:[%s23119_s19 + $0x1e4] ss:$8 sps:$4 sm:$0xff]   ;;  %v17989_v44 = vld [vmem:[%s23119_s19 + $0x1d4] ss:$8 sps:$4 sm:$0xff]  }
 0x790   :  { %v10506_v17 = vpop.f32.mrf.mxu0  ;;  %13256 = vmatprep.subr.bf16.mxu0 %v17923_v16  ;;  %v17986_v14 = vld [vmem:[%s23119_s19 + $0x6a4] ss:$8 sps:$4 sm:$0xff]   ;;  %v17984_v16 = vld [vmem:[%s23119_s19 + $0x6a0] ss:$8 sps:$4 sm:$0xff]   ;;  %v17987_v46 = vld [vmem:[%s23119_s19 + $0x1d0] ss:$8 sps:$4 sm:$0xff]  }
 0x791   :  { %v10528_v54 = vadd.f32 %v14873_v47, %v10515_v48  ;;  %v10507_v55 = vadd.f32 %v10506_v17, %v10409_v50  ;;  %v10529_v61 = vmax.f32 %v10525_v53, 0.0  ;;  %v17995_v48 = vld [vmem:[%s23119_s19 + $0x1c4] ss:$8 sps:$4 sm:$0xff]   ;;  %v17993_v50 = vld [vmem:[%s23119_s19 + $0x1c0] ss:$8 sps:$4 sm:$0xff]  }
 0x792   :  { %v17996_v17 = vld [vmem:[%s23119_s19 + $0x680] ss:$8 sps:$4 sm:$0xff]   ;;  %v18006_v53 = vld [vmem:[%s23119_s19 + $0x874] ss:$8 sps:$4 sm:$0xff]   ;;  %v17999_v56 = vld [vmem:[%s23119_s19 + $0x1b0] ss:$8 sps:$4 sm:$0xff]  }
 0x793   :  { %v10526_v57 = vadd.f32 %v14873_v47, %v10507_v55  ;;  %13257 = vmatpush1.bf16.msra.mxu0 %v17921_v49  ;;  %v10532_v59 = vmax.f32 %v10528_v54, 0.0  ;;  %v17990_v47 = vld [vmem:[%s23119_s19 + $0x690] ss:$8 sps:$4 sm:$0xff]   ;;  %v17998_v49 = vld [vmem:[%s23119_s19 + $0x684] ss:$8 sps:$4 sm:$0xff]   ;;  %v14888_v54 = vcombine.low %v21979_v32, %v21979_v32 }
 0x794   :  { %13258 = vmatprep.subr.bf16.mxu0 %v17926_v51  ;;  %v18001_v51 = vld [vmem:[%s23119_s19 + $0x1b4] ss:$8 sps:$4 sm:$0xff]   ;;  %v22170_v55 = vld [vmem:[%s23123_s18 + $0x40] sm:$0xff] }
 0x795   :  { %v10530_v62 = vmax.f32 %v10526_v57, 0.0  ;;  %v10534_v5 = vpack.c.bf16 %v10532_v59, %v10531_v63  ;;  %v18004_v57 = vld [vmem:[%s23119_s19 + $0x870] ss:$8 sps:$4 sm:$0xff]   ;;  %v18009_v32 = vld [vmem:[%s23119_s19 + $0x1a4] ss:$8 sps:$4 sm:$0xff]  }
 0x796   :  { %v18007_v59 = vld [vmem:[%s23119_s19 + $0x1a0] ss:$8 sps:$4 sm:$0xff]   ;;  %v18018_v63 = vld [vmem:[%s23119_s19 + $0x854] ss:$8 sps:$4 sm:$0xff]  }
 0x797   :  { %v10533_v1 = vpack.c.bf16 %v10530_v62, %v10529_v61  ;;  %13259 = vmatpush1.bf16.msra.mxu0 %v17924_v58  ;;  %v18012_v58 = vld [vmem:[%s23119_s19 + $0x864] ss:$8 sps:$4 sm:$0xff]   ;;  %v14893_v61 = vcombine.high %v22170_v55, %v22170_v55  ;;  %v18015_v62 = vld [vmem:[%s23119_s19 + $0x194] ss:$8 sps:$4 sm:$0xff]  }
 0x798   :  { %13260 = vmatprep.subr.bf16.mxu0 %v17932_v60  ;;  %v18010_v60 = vld [vmem:[%s23119_s19 + $0x860] ss:$8 sps:$4 sm:$0xff]  }
 0x799   :  { %16716 = vmatprep.mubr.msk.bf16.mxu1 %vm9002_vm2, %v10533_v1  ;;  %v18013_v1 = vld [vmem:[%s23119_s19 + $0x190] ss:$8 sps:$4 sm:$0xff]  }
 0x79a   :  { %16717 = vmatmul.mubr.msk.bf16.vlgmr.msra.gmra.mxu1 %vm9002_vm2, %v10534_v5  ;;  %v18024_v5 = vld [vmem:[%s23119_s19 + $0x844] ss:$8 sps:$4 sm:$0xff]  }
 0x79b   :  { %13048 = vmatpush1.bf16.msra.mxu1 %v17927_v3  ;;  %13261 = vmatpush1.bf16.msra.mxu0 %v17930_v19  ;;  %v18016_v3 = vld [vmem:[%s23119_s19 + $0x850] ss:$8 sps:$4 sm:$0xff]   ;;  %v18021_v19 = vld [vmem:[%s23119_s19 + $0x184] ss:$8 sps:$4 sm:$0xff]  }
 0x79c   :  { %13049 = vmatprep.subr.bf16.mxu1 %v17935_v18  ;;  %13262 = vmatprep.subr.bf16.mxu0 %v17938_v20  ;;  %v18019_v18 = vld [vmem:[%s23119_s19 + $0x180] ss:$8 sps:$4 sm:$0xff]  }
 0x79d   :  { %13079 = vmatprep.mubr.bf16.mxu1 %v14879_v21  ;;  %v18022_v20 = vld [vmem:[%s23119_s19 + $0x840] ss:$8 sps:$4 sm:$0xff]   ;;  %v18029_v21 = vld [vmem:[%s23119_s19 + $0x374] ss:$8 sps:$4 sm:$0xff]  }
 0x79f   :  { %13050 = vmatpush1.bf16.msra.mxu1 %v17933_v30  ;;  %13263 = vmatpush1.bf16.msra.mxu0 %v17936_v6  ;;  %v18032_v30 = vld [vmem:[%s23119_s19 + $0x834] ss:$8 sps:$4 sm:$0xff]   ;;  %v14878_v6 = vcombine.low %v22015_v0, %v22015_v0  ;;  %v18035_v0 = vld [vmem:[%s23119_s19 + $0x364] ss:$8 sps:$4 sm:$0xff]  }
 0x7a0   :  { %13051 = vmatprep.subr.bf16.mxu1 %v17941_v7  ;;  %13264 = vmatprep.subr.bf16.mxu0 %v17944_v8  ;;  %v22227_v7 = vld [vmem:[%s23123_s18 + $0x18] sm:$0xff] }
 0x7a1   :  { %v18027_v8 = vld [vmem:[%s23119_s19 + $0x370] ss:$8 sps:$4 sm:$0xff]  }
 0x7a3   :  { %13052 = vmatpush1.bf16.msra.mxu1 %v17939_v9  ;;  %13265 = vmatpush1.bf16.msra.mxu0 %v17942_v10  ;;  %v18030_v9 = vld [vmem:[%s23119_s19 + $0x830] ss:$8 sps:$4 sm:$0xff]   ;;  %v18038_v10 = vld [vmem:[%s23119_s19 + $0x824] ss:$8 sps:$4 sm:$0xff]  }
 0x7a4   :  { %13053 = vmatprep.subr.bf16.mxu1 %v17947_v11  ;;  %13266 = vmatprep.subr.bf16.mxu0 %v17950_v12  ;;  %v14883_v11 = vcombine.high %v22227_v7, %v22227_v7  ;;  %v18033_v12 = vld [vmem:[%s23119_s19 + $0x360] ss:$8 sps:$4 sm:$0xff]  }
 0x7a7   :  { %13054 = vmatpush1.bf16.msra.mxu1 %v17945_v39  ;;  %13267 = vmatpush1.bf16.msra.mxu0 %v17948_v2  ;;  %v18036_v39 = vld [vmem:[%s23119_s19 + $0x820] ss:$8 sps:$4 sm:$0xff]   ;;  %v18041_v2 = vld [vmem:[%s23119_s19 + $0x354] ss:$8 sps:$4 sm:$0xff]  }
 0x7a8   :  { %13055 = vmatprep.subr.bf16.mxu1 %v17953_v13  ;;  %13268 = vmatprep.subr.bf16.mxu0 %v17956_v37  ;;  %v18044_v13 = vld [vmem:[%s23119_s19 + $0x814] ss:$8 sps:$4 sm:$0xff]   ;;  %v18039_v37 = vld [vmem:[%s23119_s19 + $0x350] ss:$8 sps:$4 sm:$0xff]  }
 0x7ab   :  { %13056 = vmatpush1.bf16.msra.mxu1 %v17951_v41  ;;  %13269 = vmatpush2.bf16.msra.mxu0 %v17954_v42  ;;  %v18042_v41 = vld [vmem:[%s23119_s19 + $0x810] ss:$8 sps:$4 sm:$0xff]   ;;  %v18047_v42 = vld [vmem:[%s23119_s19 + $0x344] ss:$8 sps:$4 sm:$0xff]  }
 0x7ac   :  { %13057 = vmatprep.subr.bf16.mxu1 %v17959_v4  ;;  %13270 = vmatprep.subr.bf16.mxu0 %v17962_v25  ;;  %v18050_v4 = vld [vmem:[%s23119_s19 + $0x804] ss:$8 sps:$4 sm:$0xff]   ;;  %v18045_v25 = vld [vmem:[%s23119_s19 + $0x340] ss:$8 sps:$4 sm:$0xff]  }
 0x7af   :  { %13058 = vmatpush1.bf16.msra.mxu1 %v17957_v26  ;;  %13271 = vmatpush2.bf16.msra.mxu0 %v17960_v27  ;;  %v18048_v26 = vld [vmem:[%s23119_s19 + $0x800] ss:$8 sps:$4 sm:$0xff]   ;;  %v18053_v27 = vld [vmem:[%s23119_s19 + $0x334] ss:$8 sps:$4 sm:$0xff]  }
 0x7b0   :  { %13059 = vmatprep.subr.bf16.mxu1 %v17965_v22  ;;  %13272 = vmatprep.subr.bf16.mxu0 %v17968_v23  ;;  %v18056_v22 = vld [vmem:[%s23119_s19 + $0x8f4] ss:$8 sps:$4 sm:$0xff]   ;;  %v18051_v23 = vld [vmem:[%s23119_s19 + $0x330] ss:$8 sps:$4 sm:$0xff]  }
 0x7b3   :  { %13060 = vmatpush1.bf16.msra.mxu1 %v17963_v24  ;;  %13273 = vmatpush2.bf16.msra.mxu0 %v17966_v28  ;;  %v18054_v24 = vld [vmem:[%s23119_s19 + $0x8f0] ss:$8 sps:$4 sm:$0xff]   ;;  %v18059_v28 = vld [vmem:[%s23119_s19 + $0x324] ss:$8 sps:$4 sm:$0xff]  }
 0x7b4   :  { %13061 = vmatprep.subr.bf16.mxu1 %v17971_v29  ;;  %13274 = vmatprep.subr.bf16.mxu0 %v17974_v31  ;;  %v18062_v29 = vld [vmem:[%s23119_s19 + $0x8e4] ss:$8 sps:$4 sm:$0xff]   ;;  %v18057_v31 = vld [vmem:[%s23119_s19 + $0x320] ss:$8 sps:$4 sm:$0xff]  }
 0x7b7   :  { %13062 = vmatpush1.bf16.msra.mxu1 %v17969_v33  ;;  %13275 = vmatpush2.bf16.msra.mxu0 %v17972_v34  ;;  %v18060_v33 = vld [vmem:[%s23119_s19 + $0x8e0] ss:$8 sps:$4 sm:$0xff]   ;;  %v18065_v34 = vld [vmem:[%s23119_s19 + $0x314] ss:$8 sps:$4 sm:$0xff]  }
 0x7b8   :  { %13063 = vmatprep.subr.bf16.mxu1 %v17977_v35  ;;  %13276 = vmatprep.subr.bf16.mxu0 %v17980_v36  ;;  %v18068_v35 = vld [vmem:[%s23119_s19 + $0x8d4] ss:$8 sps:$4 sm:$0xff]   ;;  %v18063_v36 = vld [vmem:[%s23119_s19 + $0x310] ss:$8 sps:$4 sm:$0xff]  }
 0x7bb   :  { %13064 = vmatpush2.bf16.msra.mxu1 %v17975_v38  ;;  %13277 = vmatpush2.bf16.msra.mxu0 %v17978_v40  ;;  %v18066_v38 = vld [vmem:[%s23119_s19 + $0x8d0] ss:$8 sps:$4 sm:$0xff]   ;;  %v18071_v40 = vld [vmem:[%s23119_s19 + $0x304] ss:$8 sps:$4 sm:$0xff]  }
 0x7bc   :  { %13065 = vmatprep.subr.bf16.mxu1 %v17983_v15  ;;  %13278 = vmatprep.subr.bf16.mxu0 %v17986_v14  ;;  %v18074_v15 = vld [vmem:[%s23119_s19 + $0x8c4] ss:$8 sps:$4 sm:$0xff]   ;;  %v18069_v14 = vld [vmem:[%s23119_s19 + $0x300] ss:$8 sps:$4 sm:$0xff]  }
 0x7bf   :  { %13066 = vmatpush2.bf16.msra.mxu1 %v17981_v43  ;;  %13279 = vmatpush2.bf16.msra.mxu0 %v17984_v16  ;;  %v18072_v43 = vld [vmem:[%s23119_s19 + $0x8c0] ss:$8 sps:$4 sm:$0xff]   ;;  %v18077_v16 = vld [vmem:[%s23119_s19 + $0x3f4] ss:$8 sps:$4 sm:$0xff]  }
 0x7c0   :  { %13067 = vmatprep.subr.bf16.mxu1 %v17989_v44  ;;  %13280 = vmatprep.subr.bf16.mxu0 %v17992_v45  ;;  %v18080_v44 = vld [vmem:[%s23119_s19 + $0x8b4] ss:$8 sps:$4 sm:$0xff]   ;;  %v18075_v45 = vld [vmem:[%s23119_s19 + $0x3f0] ss:$8 sps:$4 sm:$0xff]  }
 0x7c3   :  { %13068 = vmatpush2.bf16.msra.mxu1 %v17987_v46  ;;  %13281 = vmatpush2.bf16.msra.mxu0 %v17990_v47  ;;  %v18078_v46 = vld [vmem:[%s23119_s19 + $0x8b0] ss:$8 sps:$4 sm:$0xff]   ;;  %v18083_v47 = vld [vmem:[%s23119_s19 + $0x3e4] ss:$8 sps:$4 sm:$0xff]  }
 0x7c4   :  { %13069 = vmatprep.subr.bf16.mxu1 %v17995_v48  ;;  %13282 = vmatprep.subr.bf16.mxu0 %v17998_v49  ;;  %v18086_v48 = vld [vmem:[%s23119_s19 + $0x8a4] ss:$8 sps:$4 sm:$0xff]   ;;  %v18081_v49 = vld [vmem:[%s23119_s19 + $0x3e0] ss:$8 sps:$4 sm:$0xff]  }
 0x7c7   :  { %13070 = vmatpush2.bf16.msra.mxu1 %v17993_v50  ;;  %13283 = vmatpush2.bf16.msra.mxu0 %v17996_v17  ;;  %v18084_v50 = vld [vmem:[%s23119_s19 + $0x8a0] ss:$8 sps:$4 sm:$0xff]   ;;  %v18089_v17 = vld [vmem:[%s23119_s19 + $0x3d4] ss:$8 sps:$4 sm:$0xff]  }
 0x7c8   :  { %13071 = vmatprep.subr.bf16.mxu1 %v18001_v51  ;;  %13334 = vmatprep.subr.bf16.mxu0 %v18006_v53  ;;  %v18092_v51 = vld [vmem:[%s23119_s19 + $0x894] ss:$8 sps:$4 sm:$0xff]   ;;  %v18087_v53 = vld [vmem:[%s23119_s19 + $0x3d0] ss:$8 sps:$4 sm:$0xff]  }
 0x7ca   :  { %13285 = vmatmul.mubr.bf16.vlgmr.msra.gmra.mxu0 %v14888_v54  ;;  %v18090_v54 = vld [vmem:[%s23119_s19 + $0x890] ss:$8 sps:$4 sm:$0xff]  }
 0x7cb   :  { %13072 = vmatpush2.bf16.msra.mxu1 %v17999_v56  ;;  %13335 = vmatpush1.bf16.msra.mxu0 %v18004_v57  ;;  %v18095_v56 = vld [vmem:[%s23119_s19 + $0x3c4] ss:$8 sps:$4 sm:$0xff]  }
 0x7cc   :  { %13073 = vmatprep.subr.bf16.mxu1 %v18009_v32  ;;  %13336 = vmatprep.subr.bf16.mxu0 %v18012_v58  ;;  %v18098_v57 = vld [vmem:[%s23119_s19 + $0x884] ss:$8 sps:$4 sm:$0xff]   ;;  %v18093_v32 = vld [vmem:[%s23119_s19 + $0x3c0] ss:$8 sps:$4 sm:$0xff]  }
 0x7cd   :  { %13366 = vmatprep.mubr.bf16.mxu0 %v14893_v61  ;;  %v18096_v58 = vld [vmem:[%s23119_s19 + $0x880] ss:$8 sps:$4 sm:$0xff]   ;;  %v14892_v61 = vcombine.low %v22170_v55, %v22170_v55  ;;  %v18109_v55 = vld [vmem:[%s23119_s19 + $0x3a4] ss:$8 sps:$4 sm:$0xff]  }
 0x7cf   :  { %13074 = vmatpush2.bf16.msra.mxu1 %v18007_v59  ;;  %13337 = vmatpush1.bf16.msra.mxu0 %v18010_v60  ;;  %v18101_v59 = vld [vmem:[%s23119_s19 + $0x3b4] ss:$8 sps:$4 sm:$0xff]  }
 0x7d0   :  { %13075 = vmatprep.subr.bf16.mxu1 %v18015_v62  ;;  %13338 = vmatprep.subr.bf16.mxu0 %v18018_v63  ;;  %v18106_v60 = vld [vmem:[%s23119_s19 + $0xa74] ss:$8 sps:$4 sm:$0xff]   ;;  %v18099_v63 = vld [vmem:[%s23119_s19 + $0x3b0] ss:$8 sps:$4 sm:$0xff]  }
 0x7d1   :  { %v22380_v62 = vld [vmem:[%s23123_s18 + $0x50] sm:$0xff] }
 0x7d3   :  { %13076 = vmatpush2.bf16.msra.mxu1 %v18013_v1  ;;  %13339 = vmatpush1.bf16.msra.mxu0 %v18016_v3  ;;  %v18104_v1 = vld [vmem:[%s23119_s19 + $0xa70] ss:$8 sps:$4 sm:$0xff]   ;;  %v18112_v3 = vld [vmem:[%s23119_s19 + $0xa64] ss:$8 sps:$4 sm:$0xff]  }
 0x7d4   :  { %13077 = vmatprep.subr.bf16.mxu1 %v18021_v19  ;;  %13340 = vmatprep.subr.bf16.mxu0 %v18024_v5  ;;  %v14897_v19 = vcombine.high %v22380_v62, %v22380_v62  ;;  %v18107_v5 = vld [vmem:[%s23119_s19 + $0x3a0] ss:$8 sps:$4 sm:$0xff]  }
 0x7d7   :  { %13078 = vmatpush2.bf16.msra.mxu1 %v18019_v18  ;;  %13341 = vmatpush1.bf16.msra.mxu0 %v18022_v20  ;;  %v18110_v18 = vld [vmem:[%s23119_s19 + $0xa60] ss:$8 sps:$4 sm:$0xff]   ;;  %v18115_v20 = vld [vmem:[%s23119_s19 + $0x394] ss:$8 sps:$4 sm:$0xff]  }
 0x7d8   :  { %13129 = vmatprep.subr.bf16.mxu1 %v18029_v21  ;;  %13342 = vmatprep.subr.bf16.mxu0 %v18032_v30  ;;  %v18118_v21 = vld [vmem:[%s23119_s19 + $0xa54] ss:$8 sps:$4 sm:$0xff]   ;;  %v18113_v30 = vld [vmem:[%s23119_s19 + $0x390] ss:$8 sps:$4 sm:$0xff]  }
 0x7da   :  { %13080 = vmatmul.mubr.bf16.vlgmr.msra.gmra.mxu1 %v14878_v6  ;;  %v18116_v6 = vld [vmem:[%s23119_s19 + $0xa50] ss:$8 sps:$4 sm:$0xff]  }
 0x7db   :  { %13130 = vmatpush1.bf16.msra.mxu1 %v18027_v8  ;;  %13343 = vmatpush1.bf16.msra.mxu0 %v18030_v9  ;;  %v18121_v8 = vld [vmem:[%s23119_s19 + $0x384] ss:$8 sps:$4 sm:$0xff]  }
 0x7dc   :  { %13131 = vmatprep.subr.bf16.mxu1 %v18035_v0  ;;  %13344 = vmatprep.subr.bf16.mxu0 %v18038_v10  ;;  %v18124_v9 = vld [vmem:[%s23119_s19 + $0xa44] ss:$8 sps:$4 sm:$0xff]   ;;  %v18119_v0 = vld [vmem:[%s23119_s19 + $0x380] ss:$8 sps:$4 sm:$0xff]  }
 0x7dd   :  { %13161 = vmatprep.mubr.bf16.mxu1 %v14883_v11  ;;  %v18122_v10 = vld [vmem:[%s23119_s19 + $0xa40] ss:$8 sps:$4 sm:$0xff]   ;;  %v22426_v11 = vpop.f32.mrf.mxu0 }
 0x7df   :  { %13132 = vmatpush1.bf16.msra.mxu1 %v18033_v12  ;;  %13345 = vmatpush1.bf16.msra.mxu0 %v18036_v39  ;;  %v18129_v12 = vld [vmem:[%s23119_s19 + $0x574] ss:$8 sps:$4 sm:$0xff]  }
 0x7e0   :  { %13133 = vmatprep.subr.bf16.mxu1 %v18041_v2  ;;  %13346 = vmatprep.subr.bf16.mxu0 %v18044_v13  ;;  %v18132_v39 = vld [vmem:[%s23119_s19 + $0xa34] ss:$8 sps:$4 sm:$0xff]   ;;  %v22434_v2 = vpop.f32.mrf.mxu0  ;;  %v14882_v13 = vcombine.low %v22227_v7, %v22227_v7  ;;  %v18135_v7 = vld [vmem:[%s23119_s19 + $0x564] ss:$8 sps:$4 sm:$0xff]  }
 0x7e3   :  { %13134 = vmatpush1.bf16.msra.mxu1 %v18039_v37  ;;  %13347 = vmatpush1.bf16.msra.mxu0 %v18042_v41  ;;  %v22441_v37 = vld [vmem:[%s23123_s18 + $0x28] sm:$0xff]  ;;  %v18127_v41 = vld [vmem:[%s23119_s19 + $0x570] ss:$8 sps:$4 sm:$0xff]  }
 0x7e4   :  { %13135 = vmatprep.subr.bf16.mxu1 %v18047_v42  ;;  %13348 = vmatprep.subr.bf16.mxu0 %v18050_v4  ;;  %v18130_v42 = vld [vmem:[%s23119_s19 + $0xa30] ss:$8 sps:$4 sm:$0xff]   ;;  %v13044_v4 = vpop.f32.mrf.mxu0 }
 0x7e5   :  { %v18209_v4 = vld [vmem:[%s23119_s19 + $0x590] ss:$8 sps:$4 sm:$0xff]  }
 0x7e7   :  { %13136 = vmatpush1.bf16.msra.mxu1 %v18045_v25  ;;  %13349 = vmatpush1.bf16.msra.mxu0 %v18048_v26  ;;  %v18138_v25 = vld [vmem:[%s23119_s19 + $0xa24] ss:$8 sps:$4 sm:$0xff]   ;;  %v14887_v26 = vcombine.high %v22441_v37, %v22441_v37 }
 0x7e8   :  { %13137 = vmatprep.subr.bf16.mxu1 %v18053_v27  ;;  %13350 = vmatprep.subr.bf16.mxu0 %v18056_v22  ;;  %v13045_v27 = vpop.f32.mrf.mxu0  ;;  %v18133_v22 = vld [vmem:[%s23119_s19 + $0x560] ss:$8 sps:$4 sm:$0xff]  }
 0x7e9   :  { %v18216_v27 = vld [vmem:[%s23125_s5 + $0x20] sm:$0xff]  }
 0x7eb   :  { %13138 = vmatpush1.bf16.msra.mxu1 %v18051_v23  ;;  %13351 = vmatpush2.bf16.msra.mxu0 %v18054_v24  ;;  %v18136_v23 = vld [vmem:[%s23119_s19 + $0xa20] ss:$8 sps:$4 sm:$0xff]   ;;  %v18141_v24 = vld [vmem:[%s23119_s19 + $0x554] ss:$8 sps:$4 sm:$0xff]  }
 0x7ec   :  { %13139 = vmatprep.subr.bf16.mxu1 %v18059_v28  ;;  %13352 = vmatprep.subr.bf16.mxu0 %v18062_v29  ;;  %v18144_v28 = vld [vmem:[%s23119_s19 + $0xa14] ss:$8 sps:$4 sm:$0xff]  }
 0x7ef   :  { %13140 = vmatpush1.bf16.msra.mxu1 %v18057_v31  ;;  %13353 = vmatpush2.bf16.msra.mxu0 %v18060_v33  ;;  %v18139_v33 = vld [vmem:[%s23119_s19 + $0x550] ss:$8 sps:$4 sm:$0xff]  }
 0x7f0   :  { %13141 = vmatprep.subr.bf16.mxu1 %v18065_v34  ;;  %13354 = vmatprep.subr.bf16.mxu0 %v18068_v35  ;;  %v18142_v34 = vld [vmem:[%s23119_s19 + $0xa10] ss:$8 sps:$4 sm:$0xff]   ;;  %v18147_v35 = vld [vmem:[%s23119_s19 + $0x544] ss:$8 sps:$4 sm:$0xff]  }
 0x7f3   :  { %13142 = vmatpush1.bf16.msra.mxu1 %v18063_v36  ;;  %13355 = vmatpush2.bf16.msra.mxu0 %v18066_v38  ;;  %v18150_v36 = vld [vmem:[%s23119_s19 + $0xa04] ss:$8 sps:$4 sm:$0xff]  }
 0x7f4   :  { %13143 = vmatprep.subr.bf16.mxu1 %v18071_v40  ;;  %13356 = vmatprep.subr.bf16.mxu0 %v18074_v15  ;;  %v18145_v15 = vld [vmem:[%s23119_s19 + $0x540] ss:$8 sps:$4 sm:$0xff]  }
 0x7f7   :  { %13144 = vmatpush1.bf16.msra.mxu1 %v18069_v14  ;;  %13357 = vmatpush2.bf16.msra.mxu0 %v18072_v43  ;;  %v18148_v14 = vld [vmem:[%s23119_s19 + $0xa00] ss:$8 sps:$4 sm:$0xff]   ;;  %v18153_v43 = vld [vmem:[%s23119_s19 + $0x534] ss:$8 sps:$4 sm:$0xff]  }
 0x7f8   :  { %13145 = vmatprep.subr.bf16.mxu1 %v18077_v16  ;;  %13358 = vmatprep.subr.bf16.mxu0 %v18080_v44  ;;  %v18156_v16 = vld [vmem:[%s23119_s19 + $0xaf4] ss:$8 sps:$4 sm:$0xff]   ;;  %v18151_v44 = vld [vmem:[%s23119_s19 + $0x530] ss:$8 sps:$4 sm:$0xff]  }
 0x7fb   :  { %13146 = vmatpush2.bf16.msra.mxu1 %v18075_v45  ;;  %13359 = vmatpush2.bf16.msra.mxu0 %v18078_v46  ;;  %v18154_v45 = vld [vmem:[%s23119_s19 + $0xaf0] ss:$8 sps:$4 sm:$0xff]   ;;  %v18159_v46 = vld [vmem:[%s23119_s19 + $0x524] ss:$8 sps:$4 sm:$0xff]  }
 0x7fc   :  { %13147 = vmatprep.subr.bf16.mxu1 %v18083_v47  ;;  %13360 = vmatprep.subr.bf16.mxu0 %v18086_v48  ;;  %v18162_v47 = vld [vmem:[%s23119_s19 + $0xae4] ss:$8 sps:$4 sm:$0xff]   ;;  %v18157_v48 = vld [vmem:[%s23119_s19 + $0x520] ss:$8 sps:$4 sm:$0xff]  }
 0x7ff   :  { %13148 = vmatpush2.bf16.msra.mxu1 %v18081_v49  ;;  %13361 = vmatpush2.bf16.msra.mxu0 %v18084_v50  ;;  %v18160_v49 = vld [vmem:[%s23119_s19 + $0xae0] ss:$8 sps:$4 sm:$0xff]   ;;  %v18165_v50 = vld [vmem:[%s23119_s19 + $0x514] ss:$8 sps:$4 sm:$0xff]  }
 0x800   :  { %13149 = vmatprep.subr.bf16.mxu1 %v18089_v17  ;;  %13362 = vmatprep.subr.bf16.mxu0 %v18092_v51  ;;  %v18168_v17 = vld [vmem:[%s23119_s19 + $0xad4] ss:$8 sps:$4 sm:$0xff]   ;;  %v18163_v51 = vld [vmem:[%s23119_s19 + $0x510] ss:$8 sps:$4 sm:$0xff]  }
 0x803   :  { %13150 = vmatpush2.bf16.msra.mxu1 %v18087_v53  ;;  %13363 = vmatpush2.bf16.msra.mxu0 %v18090_v54  ;;  %v18166_v53 = vld [vmem:[%s23119_s19 + $0xad0] ss:$8 sps:$4 sm:$0xff]   ;;  %v18171_v54 = vld [vmem:[%s23119_s19 + $0x504] ss:$8 sps:$4 sm:$0xff]  }
 0x804   :  { %13151 = vmatprep.subr.bf16.mxu1 %v18095_v56  ;;  %13364 = vmatprep.subr.bf16.mxu0 %v18098_v57  ;;  %v18174_v56 = vld [vmem:[%s23119_s19 + $0xac4] ss:$8 sps:$4 sm:$0xff]   ;;  %v18169_v57 = vld [vmem:[%s23119_s19 + $0x500] ss:$8 sps:$4 sm:$0xff]  }
 0x807   :  { %13152 = vmatpush2.bf16.msra.mxu1 %v18093_v32  ;;  %13365 = vmatpush2.bf16.msra.mxu0 %v18096_v58  ;;  %v18172_v32 = vld [vmem:[%s23119_s19 + $0xac0] ss:$8 sps:$4 sm:$0xff]   ;;  %v18177_v58 = vld [vmem:[%s23119_s19 + $0x5f4] ss:$8 sps:$4 sm:$0xff]  }
 0x808   :  { %13153 = vmatprep.subr.bf16.mxu1 %v18101_v59  ;;  %13416 = vmatprep.subr.bf16.mxu0 %v18106_v60  ;;  %v18180_v59 = vld [vmem:[%s23119_s19 + $0xab4] ss:$8 sps:$4 sm:$0xff]   ;;  %v18175_v60 = vld [vmem:[%s23119_s19 + $0x5f0] ss:$8 sps:$4 sm:$0xff]  }
 0x80a   :  { %13367 = vmatmul.mubr.bf16.vlgmr.msra.gmra.mxu0 %v14892_v61  ;;  %v22469_v29 = vpop.f32.mrf.mxu0  ;;  %v18178_v61 = vld [vmem:[%s23119_s19 + $0xab0] ss:$8 sps:$4 sm:$0xff]  }
 0x80b   :  { %13154 = vmatpush2.bf16.msra.mxu1 %v18099_v63  ;;  %13417 = vmatpush1.bf16.msra.mxu0 %v18104_v1  ;;  %v18183_v63 = vld [vmem:[%s23119_s19 + $0x5e4] ss:$8 sps:$4 sm:$0xff]  }
 0x80c   :  { %13155 = vmatprep.subr.bf16.mxu1 %v18109_v55  ;;  %13418 = vmatprep.subr.bf16.mxu0 %v18112_v3  ;;  %v22471_v31 = vpop.f32.mrf.mxu0  ;;  %v18186_v1 = vld [vmem:[%s23119_s19 + $0xaa4] ss:$8 sps:$4 sm:$0xff]   ;;  %v18181_v55 = vld [vmem:[%s23119_s19 + $0x5e0] ss:$8 sps:$4 sm:$0xff]  }
 0x80d   :  { %13448 = vmatprep.mubr.bf16.mxu0 %v14897_v19  ;;  %v18184_v3 = vld [vmem:[%s23119_s19 + $0xaa0] ss:$8 sps:$4 sm:$0xff]   ;;  %v18189_v19 = vld [vmem:[%s23119_s19 + $0x5d4] ss:$8 sps:$4 sm:$0xff]  }
 0x80e   :  { %v13126_v38 = vpop.f32.mrf.mxu0 }
 0x80f   :  { %13156 = vmatpush2.bf16.msra.mxu1 %v18107_v5  ;;  %13419 = vmatpush1.bf16.msra.mxu0 %v18110_v18  ;;  %v18192_v5 = vld [vmem:[%s23119_s19 + $0xa94] ss:$8 sps:$4 sm:$0xff]   ;;  %v18187_v18 = vld [vmem:[%s23119_s19 + $0x5d0] ss:$8 sps:$4 sm:$0xff]  }
 0x810   :  { %13157 = vmatprep.subr.bf16.mxu1 %v18115_v20  ;;  %13420 = vmatprep.subr.bf16.mxu0 %v18118_v21  ;;  %v13127_v40 = vpop.f32.mrf.mxu0  ;;  %v18190_v20 = vld [vmem:[%s23119_s19 + $0xa90] ss:$8 sps:$4 sm:$0xff]   ;;  %v18195_v21 = vld [vmem:[%s23119_s19 + $0x5c4] ss:$8 sps:$4 sm:$0xff]  }
 0x811   :  { %v18223_v40 = vld [vmem:[%s23119_s19 + $0x760] ss:$8 sps:$4 sm:$0xff]  }
 0x813   :  { %13158 = vmatpush2.bf16.msra.mxu1 %v18113_v30  ;;  %13421 = vmatpush1.bf16.msra.mxu0 %v18116_v6  ;;  %v18198_v30 = vld [vmem:[%s23119_s19 + $0xa84] ss:$8 sps:$4 sm:$0xff]   ;;  %v18193_v6 = vld [vmem:[%s23119_s19 + $0x5c0] ss:$8 sps:$4 sm:$0xff]  }
 0x814   :  { %13159 = vmatprep.subr.bf16.mxu1 %v18121_v8  ;;  %13422 = vmatprep.subr.bf16.mxu0 %v18124_v9  ;;  %v18196_v8 = vld [vmem:[%s23119_s19 + $0xa80] ss:$8 sps:$4 sm:$0xff]   ;;  %v18201_v9 = vld [vmem:[%s23119_s19 + $0x5b4] ss:$8 sps:$4 sm:$0xff]  }
 0x817   :  { %13160 = vmatpush2.bf16.msra.mxu1 %v18119_v0  ;;  %13423 = vmatpush1.bf16.msra.mxu0 %v18122_v10  ;;  %v14896_v0 = vcombine.low %v22380_v62, %v22380_v62  ;;  %v18199_v10 = vld [vmem:[%s23119_s19 + $0x5b0] ss:$8 sps:$4 sm:$0xff]   ;;  %v18205_v62 = vld [vmem:[%s23119_s19 + $0x5a0] ss:$8 sps:$4 sm:$0xff]  }
 0x818   :  { %13211 = vmatprep.subr.bf16.mxu1 %v18129_v12  ;;  %13424 = vmatprep.subr.bf16.mxu0 %v18132_v39  ;;  %v18204_v12 = vld [vmem:[%s23125_s5 + $0x38] sm:$0xff]   ;;  %v18395_v39 = vmov 0.0  }
 0x81a   :  { %13162 = vmatmul.mubr.bf16.vlgmr.msra.gmra.mxu1 %v14882_v13  ;;  %v18207_v13 = vld [vmem:[%s23119_s19 + $0x5a4] ss:$8 sps:$4 sm:$0xff]  }
 0x81b   :  { %13212 = vmatpush1.bf16.msra.mxu1 %v18127_v41  ;;  %13425 = vmatpush1.bf16.msra.mxu0 %v18130_v42  ;;  %v18208_v41 = vld [vmem:[%s23125_s5 + $0x30] sm:$0xff]  }
 0x81c   :  { %13213 = vmatprep.subr.bf16.mxu1 %v18135_v7  ;;  %13426 = vmatprep.subr.bf16.mxu0 %v18138_v25  ;;  %v18211_v42 = vld [vmem:[%s23119_s19 + $0x594] ss:$8 sps:$4 sm:$0xff]   ;;  %v18212_v7 = vld [vmem:[%s23125_s5 + $0x28] sm:$0xff]  }
 0x81d   :  { %13243 = vmatprep.mubr.bf16.mxu1 %v14887_v26  ;;  %v18215_v25 = vld [vmem:[%s23119_s19 + $0x584] ss:$8 sps:$4 sm:$0xff]   ;;  %v18213_v26 = vld [vmem:[%s23119_s19 + $0x580] ss:$8 sps:$4 sm:$0xff]  }
 0x81f   :  { %13214 = vmatpush1.bf16.msra.mxu1 %v18133_v22  ;;  %13427 = vmatpush1.bf16.msra.mxu0 %v18136_v23  ;;  %v18221_v22 = vld [vmem:[%s23119_s19 + $0x774] ss:$8 sps:$4 sm:$0xff]   ;;  %v14886_v23 = vcombine.low %v22441_v37, %v22441_v37  ;;  %v18225_v37 = vld [vmem:[%s23119_s19 + $0x764] ss:$8 sps:$4 sm:$0xff]  }
 0x820   :  { %13215 = vmatprep.subr.bf16.mxu1 %v18141_v24  ;;  %13428 = vmatprep.subr.bf16.mxu0 %v18144_v28  ;;  %v22639_v24 = vld [vmem:[%s23123_s18 + $0x38] sm:$0xff] }
 0x821   :  { %v18219_v28 = vld [vmem:[%s23119_s19 + $0x770] ss:$8 sps:$4 sm:$0xff]  }
 0x823   :  { %13216 = vmatpush1.bf16.msra.mxu1 %v18139_v33  ;;  %13429 = vmatpush1.bf16.msra.mxu0 %v18142_v34  ;;  %v18222_v33 = vld [vmem:[%s23125_s5 + $0x18] sm:$0xff]   ;;  %v14891_v34 = vcombine.high %v22639_v24, %v22639_v24 }
 0x824   :  { %13217 = vmatprep.subr.bf16.mxu1 %v18147_v35  ;;  %13430 = vmatprep.subr.bf16.mxu0 %v18150_v36  ;;  %v22656_v36 = vld [vmem:[%s23120_s24] ss:$0 sm:$0xff] }
 0x827   :  { %13218 = vmatpush1.bf16.msra.mxu1 %v18145_v15  ;;  %13431 = vmatpush1.bf16.msra.mxu0 %v18148_v14  ;;  %v18226_v15 = vld [vmem:[%s23125_s5 + $0x10] sm:$0xff]  }
 0x828   :  { %13219 = vmatprep.subr.bf16.mxu1 %v18153_v43  ;;  %13432 = vmatprep.subr.bf16.mxu0 %v18156_v16  ;;  %v18229_v43 = vld [vmem:[%s23119_s19 + $0x754] ss:$8 sps:$4 sm:$0xff]  }
 0x82b   :  { %13220 = vmatpush1.bf16.msra.mxu1 %v18151_v44  ;;  %13433 = vmatpush2.bf16.msra.mxu0 %v18154_v45 }
 0x82c   :  { %13221 = vmatprep.subr.bf16.mxu1 %v18159_v46  ;;  %13434 = vmatprep.subr.bf16.mxu0 %v18162_v47 }
 0x82f   :  { %13222 = vmatpush1.bf16.msra.mxu1 %v18157_v48  ;;  %13435 = vmatpush2.bf16.msra.mxu0 %v18160_v49  ;;  %v18227_v48 = vld [vmem:[%s23119_s19 + $0x750] ss:$8 sps:$4 sm:$0xff]   ;;  %v18230_v49 = vld [vmem:[%s23125_s5 + $0x8] sm:$0xff]  }
 0x830   :  { %13223 = vmatprep.subr.bf16.mxu1 %v18165_v50  ;;  %13436 = vmatprep.subr.bf16.mxu0 %v18168_v17  ;;  %v18233_v17 = vld [vmem:[%s23119_s19 + $0x744] ss:$8 sps:$4 sm:$0xff]  }
 0x833   :  { %13224 = vmatpush1.bf16.msra.mxu1 %v18163_v51  ;;  %13437 = vmatpush2.bf16.msra.mxu0 %v18166_v53 }
 0x834   :  { %13225 = vmatprep.subr.bf16.mxu1 %v18171_v54  ;;  %13438 = vmatprep.subr.bf16.mxu0 %v18174_v56  ;;  %v18231_v56 = vld [vmem:[%s23119_s19 + $0x740] ss:$8 sps:$4 sm:$0xff]  }
 0x837   :  { %13226 = vmatpush1.bf16.msra.mxu1 %v18169_v57  ;;  %13439 = vmatpush2.bf16.msra.mxu0 %v18172_v32  ;;  %v18234_v57 = vld [vmem:[%s23125_s5] sm:$0xff]   ;;  %v18237_v32 = vld [vmem:[%s23119_s19 + $0x734] ss:$8 sps:$4 sm:$0xff]  }
 0x838   :  { %13227 = vmatprep.subr.bf16.mxu1 %v18177_v58  ;;  %13440 = vmatprep.subr.bf16.mxu0 %v18180_v59  ;;  %v18235_v58 = vld [vmem:[%s23119_s19 + $0x730] ss:$8 sps:$4 sm:$0xff]   ;;  %v18240_v59 = vld [vmem:[%s23119_s19 + $0x724] ss:$8 sps:$4 sm:$0xff]  }
 0x83b   :  { %13228 = vmatpush2.bf16.msra.mxu1 %v18175_v60  ;;  %13441 = vmatpush2.bf16.msra.mxu0 %v18178_v61  ;;  %v18238_v60 = vld [vmem:[%s23119_s19 + $0x720] ss:$8 sps:$4 sm:$0xff]   ;;  %v18390_v61 = vld [vmem:[%s23164_s0 + $0x18] sm:$0xff]  }
 0x83c   :  { %13229 = vmatprep.subr.bf16.mxu1 %v18183_v63  ;;  %13442 = vmatprep.subr.bf16.mxu0 %v18186_v1  ;;  %v18243_v63 = vld [vmem:[%s23119_s19 + $0x714] ss:$8 sps:$4 sm:$0xff]  }
 0x83d   :  { %v18391_v1 = vld [vmem:[%s23164_s0 + $0x10] sm:$0xff]  }
 0x83f   :  { %13230 = vmatpush2.bf16.msra.mxu1 %v18181_v55  ;;  %13443 = vmatpush2.bf16.msra.mxu0 %v18184_v3  ;;  %v18246_v55 = vld [vmem:[%s23119_s19 + $0x704] ss:$8 sps:$4 sm:$0xff]   ;;  %v18244_v3 = vld [vmem:[%s23119_s19 + $0x700] ss:$8 sps:$4 sm:$0xff]  }
 0x840   :  { %13231 = vmatprep.subr.bf16.mxu1 %v18189_v19  ;;  %13444 = vmatprep.subr.bf16.mxu0 %v18192_v5  ;;  %v18392_v19 = vld [vmem:[%s23164_s0 + $0x8] sm:$0xff]   ;;  %v18249_v5 = vld [vmem:[%s23119_s19 + $0x7f4] ss:$8 sps:$4 sm:$0xff]  }
 0x843   :  { %13232 = vmatpush2.bf16.msra.mxu1 %v18187_v18  ;;  %13445 = vmatpush2.bf16.msra.mxu0 %v18190_v20  ;;  %v18247_v18 = vld [vmem:[%s23119_s19 + $0x7f0] ss:$8 sps:$4 sm:$0xff]   ;;  %v18393_v20 = vld [vmem:[%s23164_s0] sm:$0xff]  }
 0x844   :  { %13233 = vmatprep.subr.bf16.mxu1 %v18195_v21  ;;  %13446 = vmatprep.subr.bf16.mxu0 %v18198_v30  ;;  %v18252_v21 = vld [vmem:[%s23119_s19 + $0x7e4] ss:$8 sps:$4 sm:$0xff]   ;;  %v18250_v30 = vld [vmem:[%s23119_s19 + $0x7e0] ss:$8 sps:$4 sm:$0xff]  }
 0x847   :  { %13234 = vmatpush2.bf16.msra.mxu1 %v18193_v6  ;;  %13447 = vmatpush2.bf16.msra.mxu0 %v18196_v8  ;;  %v18255_v6 = vld [vmem:[%s23119_s19 + $0x7d4] ss:$8 sps:$4 sm:$0xff]   ;;  %v18253_v8 = vld [vmem:[%s23119_s19 + $0x7d0] ss:$8 sps:$4 sm:$0xff]  }
 0x848   :  { %13235 = vmatprep.subr.bf16.mxu1 %v18201_v9  ;;  %16720 = vmatprep.subr.bf16.mxu0 %v18395_v39  ;;  %v18258_v9 = vld [vmem:[%s23119_s19 + $0x7c4] ss:$8 sps:$4 sm:$0xff]  }
 0x84a   :  { %13449 = vmatmul.mubr.bf16.vlgmr.msra.gmra.mxu0 %v14896_v0  ;;  %v22669_v16 = vpop.f32.mrf.mxu0  ;;  %v18256_v0 = vld [vmem:[%s23119_s19 + $0x7c0] ss:$8 sps:$4 sm:$0xff]  }
 0x84b   :  { %13236 = vmatpush2.bf16.msra.mxu1 %v18199_v10  ;;  %16721 = vmatpush3.bf16.msra.mxu0 %v18204_v12  ;;  %v18261_v10 = vld [vmem:[%s23119_s19 + $0x7b4] ss:$8 sps:$4 sm:$0xff]   ;;  %v18259_v12 = vld [vmem:[%s23119_s19 + $0x7b0] ss:$8 sps:$4 sm:$0xff]  }
 0x84c   :  { %13237 = vmatprep.subr.bf16.mxu1 %v18207_v13  ;;  %16722 = vmatprep.subr.bf16.mxu0 %v18395_v39  ;;  %v22675_v46 = vpop.f32.mrf.mxu0  ;;  %v18264_v13 = vld [vmem:[%s23119_s19 + $0x7a4] ss:$8 sps:$4 sm:$0xff]  }
 0x84d   :  { %16736 = vmatprep.mubr.msk.bf16.mxu0 %vm18396_vm3, %v18395_v39 }
 0x84e   :  { %v13208_v51 = vpop.f32.mrf.mxu0 }
 0x84f   :  { %13238 = vmatpush2.bf16.msra.mxu1 %v18205_v62  ;;  %16723 = vmatpush3.bf16.msra.mxu0 %v18208_v41  ;;  %v18262_v62 = vld [vmem:[%s23119_s19 + $0x7a0] ss:$8 sps:$4 sm:$0xff]  }
 0x850   :  { %13239 = vmatprep.subr.bf16.mxu1 %v18211_v42  ;;  %16724 = vmatprep.subr.bf16.mxu0 %v18395_v39  ;;  %v13209_v54 = vpop.f32.mrf.mxu0  ;;  %v18267_v42 = vld [vmem:[%s23119_s19 + $0x794] ss:$8 sps:$4 sm:$0xff]  }
 0x851   :  { %v18284_v54 = vld [vmem:[%s23119_s19 + $0x944] ss:$8 sps:$4 sm:$0xff]  }
 0x853   :  { %13240 = vmatpush2.bf16.msra.mxu1 %v18209_v4  ;;  %16725 = vmatpush3.bf16.msra.mxu0 %v18212_v7  ;;  %v18265_v4 = vld [vmem:[%s23119_s19 + $0x790] ss:$8 sps:$4 sm:$0xff]  }
 0x854   :  { %13241 = vmatprep.subr.bf16.mxu1 %v18215_v25  ;;  %16726 = vmatprep.subr.bf16.mxu0 %v18395_v39 }
 0x857   :  { %13242 = vmatpush2.bf16.msra.mxu1 %v18213_v26  ;;  %16727 = vmatpush3.bf16.msra.mxu0 %v18216_v27  ;;  %v18270_v26 = vld [vmem:[%s23119_s19 + $0x784] ss:$8 sps:$4 sm:$0xff]   ;;  %v10990_v27 = vld [vmem:[%s23127_s20] sm:$0x3] }
 0x858   :  { %13293 = vmatprep.subr.bf16.mxu1 %v18221_v22  ;;  %16728 = vmatprep.subr.bf16.mxu0 %v18395_v39 }
 0x85a   :  { %13244 = vmatmul.mubr.bf16.vlgmr.msra.gmra.mxu1 %v14886_v23  ;;  %v16718_v35 = vpop.f32.mrf.mxu1  ;;  %v18268_v23 = vld [vmem:[%s23119_s19 + $0x780] ss:$8 sps:$4 sm:$0xff]  }
 0x85b   :  { %v10584_v38 = vadd.f32 %v22656_v36, %v16718_v35  ;;  %13294 = vmatpush1.bf16.msra.mxu1 %v18219_v28  ;;  %16729 = vmatpush3.bf16.msra.mxu0 %v18222_v33 }
 0x85c   :  { %v10575_v14 = vpop.f32.mrf.mxu1  ;;  %13295 = vmatprep.subr.bf16.mxu1 %v18225_v37  ;;  %16730 = vmatprep.subr.bf16.mxu0 %v18395_v39  ;;  %v18275_v37 = vld [vmem:[%s23119_s19 + $0x974] ss:$8 sps:$4 sm:$0xff]  }
 0x85d   :  { %10592 = vst [vmem:[%s23126_s26 + $0x10] sm:$0xff] %v10584_v38  ;;  %v10576_v44 = vadd.f32 %v22656_v36, %v10575_v14  ;;  %13325 = vmatprep.mubr.bf16.mxu1 %v14891_v34  ;;  %v22809_v34 = vld [vmem:[%s23123_s18 + $0x48] sm:$0xff]  ;;  %v18273_v14 = vld [vmem:[%s23119_s19 + $0x970] ss:$8 sps:$4 sm:$0xff]  }
 0x85e   :  { %v16719_v45 = vpop.f32.mrf.mxu1 }
 0x85f   :  { %10590 = vst [vmem:[%s23126_s26] sm:$0xff] %v10576_v44  ;;  %v10587_v47 = vadd.f32 %v22656_v36, %v16719_v45  ;;  %13296 = vmatpush1.bf16.msra.mxu1 %v18223_v40  ;;  %16731 = vmatpush3.bf16.msra.mxu0 %v18226_v15  ;;  %v14890_v40 = vcombine.low %v22639_v24, %v22639_v24  ;;  %v18278_v45 = vld [vmem:[%s23119_s19 + $0x964] ss:$8 sps:$4 sm:$0xff]  }
 0x860   :  { %v10578_v50 = vpop.f32.mrf.mxu1  ;;  %13297 = vmatprep.subr.bf16.mxu1 %v18229_v43  ;;  %16732 = vmatprep.subr.bf16.mxu0 %v18395_v39  ;;  %v14895_v43 = vcombine.high %v22809_v34, %v22809_v34 }
 0x861   :  { %10593 = vst [vmem:[%s23126_s26 + $0x18] sm:$0xff] %v10587_v47  ;;  %v10579_v53 = vadd.f32 %v22656_v36, %v10578_v50  ;;  %v18281_v50 = vld [vmem:[%s23119_s19 + $0x954] ss:$8 sps:$4 sm:$0xff]  }
 0x863   :  { %10591 = vst [vmem:[%s23126_s26 + $0x8] sm:$0xff] %v10579_v53  ;;  %13298 = vmatpush1.bf16.msra.mxu1 %v18227_v48  ;;  %16733 = vmatpush3.bf16.msra.mxu0 %v18230_v49 }
 0x864   :  { %13299 = vmatprep.subr.bf16.mxu1 %v18233_v17  ;;  %16734 = vmatprep.subr.bf16.mxu0 %v18395_v39 }
 0x867   :  { %13300 = vmatpush1.bf16.msra.mxu1 %v18231_v56  ;;  %16735 = vmatpush3.bf16.msra.mxu0 %v18234_v57  ;;  %v18282_v56 = vld [vmem:[%s23119_s19 + $0x940] ss:$8 sps:$4 sm:$0xff]   ;;  %v18287_v57 = vld [vmem:[%s23119_s19 + $0x934] ss:$8 sps:$4 sm:$0xff]  }
 0x868   :  { %13301 = vmatprep.subr.bf16.mxu1 %v18237_v32  ;;  %16740 = vmatprep.subr.bf16.mxu0 %v18395_v39  ;;  %v18285_v32 = vld [vmem:[%s23119_s19 + $0x930] ss:$8 sps:$4 sm:$0xff]  }
 0x86a   :  { %16737 = vmatmul.mubr.bf16.vlgmr.msra.gmra.mxu0 %v21047_v52  ;;  %v18241_v52 = vld [vmem:[%s23119_s19 + $0x710] ss:$8 sps:$4 sm:$0xff]  }
 0x86b   :  { %13302 = vmatpush1.bf16.msra.mxu1 %v18235_v58  ;;  %16741 = vmatpush3.bf16.msra.mxu0 %v18390_v61  ;;  %v18290_v58 = vld [vmem:[%s23119_s19 + $0x924] ss:$8 sps:$4 sm:$0xff]   ;;  %v18291_v61 = vld [vmem:[%s23119_s19 + $0x910] ss:$8 sps:$4 sm:$0xff]  }
 0x86c   :  { %13303 = vmatprep.subr.bf16.mxu1 %v18240_v59  ;;  %16742 = vmatprep.subr.bf16.mxu0 %v18395_v39  ;;  %v18288_v59 = vld [vmem:[%s23119_s19 + $0x920] ss:$8 sps:$4 sm:$0xff]  }
 0x86d   :  { %16748 = vmatprep.mubr.msk.bf16.mxu0 %vm18396_vm3, %v18395_v39 }
 0x86f   :  { %13304 = vmatpush1.bf16.msra.mxu1 %v18238_v60  ;;  %16743 = vmatpush3.bf16.msra.mxu0 %v18391_v1  ;;  %v18293_v60 = vld [vmem:[%s23119_s19 + $0x914] ss:$8 sps:$4 sm:$0xff]  }
 0x870   :  { %13305 = vmatprep.subr.bf16.mxu1 %v18243_v63  ;;  %16744 = vmatprep.subr.bf16.mxu0 %v18395_v39  ;;  %v18296_v63 = vld [vmem:[%s23119_s19 + $0x904] ss:$8 sps:$4 sm:$0xff]   ;;  %v18299_v1 = vld [vmem:[%s23119_s19 + $0x9f4] ss:$8 sps:$4 sm:$0xff]  }
 0x873   :  { %13306 = vmatpush1.bf16.msra.mxu1 %v18241_v52  ;;  %16745 = vmatpush3.bf16.msra.mxu0 %v18392_v19  ;;  %v18294_v52 = vld [vmem:[%s23119_s19 + $0x900] ss:$8 sps:$4 sm:$0xff]  }
 0x874   :  { %13307 = vmatprep.subr.bf16.mxu1 %v18246_v55  ;;  %16746 = vmatprep.subr.bf16.mxu0 %v18395_v39  ;;  %v10992_v39 = vlaneseq  ;;  %v18297_v55 = vld [vmem:[%s23119_s19 + $0x9f0] ss:$8 sps:$4 sm:$0xff]   ;;  %v18300_v19 = vld [vmem:[%s23119_s19 + $0x9e0] ss:$8 sps:$4 sm:$0xff]  }
 0x876   :  { %v10993_v41 = vshrl.u32 %v10992_v39, 7 }
 0x877   :  { %13308 = vmatpush1.bf16.msra.mxu1 %v18244_v3  ;;  %16747 = vmatpush3.bf16.msra.mxu0 %v18393_v20  ;;  %v18302_v3 = vld [vmem:[%s23119_s19 + $0x9e4] ss:$8 sps:$4 sm:$0xff]  }
 0x878   :  { %13309 = vmatprep.subr.bf16.mxu1 %v18249_v5  ;;  %v10994_v7 = vsub.s32 0, %v10993_v41  ;;  %v10998_v22 = vsub.s32 1, %v10993_v41  ;;  %v18305_v5 = vld [vmem:[%s23119_s19 + $0x9d4] ss:$8 sps:$4 sm:$0xff]   ;;  %v18308_v20 = vld [vmem:[%s23119_s19 + $0x9c4] ss:$8 sps:$4 sm:$0xff]  }
 0x87a   :  { %v10995_v28 = vrot.slane %v10990_v27, %v10994_v7  ;;  %v10999_v35 = vrot.slane %v10990_v27, %v10998_v22  ;;  %v22924_v7 = vld [vmem:[%s23123_s18 + $0x58] sm:$0xff] }
 0x87b   :  { %13310 = vmatpush2.bf16.msra.mxu1 %v18247_v18  ;;  %v18303_v18 = vld [vmem:[%s23119_s19 + $0x9d0] ss:$8 sps:$4 sm:$0xff]   ;;  %v14899_v22 = vcombine.high %v22924_v7, %v22924_v7 }
 0x87c   :  { %13311 = vmatprep.subr.bf16.mxu1 %v18252_v21  ;;  %v13041_v15 = vadd.f32 %v22426_v11, %v10995_v28  ;;  %v13043_v47 = vadd.f32 %v22434_v2, %v10999_v35  ;;  %v18276_v11 = vld [vmem:[%s23119_s19 + $0x960] ss:$8 sps:$4 sm:$0xff]   ;;  %v18279_v2 = vld [vmem:[%s23119_s19 + $0x950] ss:$8 sps:$4 sm:$0xff]  }
 0x87d   :  { %v18306_v21 = vld [vmem:[%s23119_s19 + $0x9c0] ss:$8 sps:$4 sm:$0xff]   ;;  %v18323_v27 = vld [vmem:[%s23119_s19 + $0xb70] ss:$8 sps:$4 sm:$0xff]  }
 0x87f   :  { %13312 = vmatpush2.bf16.msra.mxu1 %v18250_v30  ;;  %v18311_v30 = vld [vmem:[%s23119_s19 + $0x9b4] ss:$8 sps:$4 sm:$0xff]  }
 0x880   :  { %13313 = vmatprep.subr.bf16.mxu1 %v18255_v6  ;;  %v18309_v6 = vld [vmem:[%s23119_s19 + $0x9b0] ss:$8 sps:$4 sm:$0xff]  }
 0x883   :  { %13314 = vmatpush2.bf16.msra.mxu1 %v18253_v8  ;;  %v18314_v8 = vld [vmem:[%s23119_s19 + $0x9a4] ss:$8 sps:$4 sm:$0xff]  }
 0x884   :  { %13315 = vmatprep.subr.bf16.mxu1 %v18258_v9 }
 0x887   :  { %13316 = vmatpush2.bf16.msra.mxu1 %v18256_v0  ;;  %v18312_v0 = vld [vmem:[%s23119_s19 + $0x9a0] ss:$8 sps:$4 sm:$0xff]  }
 0x888   :  { %13317 = vmatprep.subr.bf16.mxu1 %v18261_v10  ;;  %v18317_v10 = vld [vmem:[%s23119_s19 + $0x994] ss:$8 sps:$4 sm:$0xff]  }
 0x88a   :  { %v22790_v25 = vpop.f32.mrf.mxu0 }
 0x88b   :  { %13318 = vmatpush2.bf16.msra.mxu1 %v18259_v12 }
 0x88c   :  { %13319 = vmatprep.subr.bf16.mxu1 %v18264_v13  ;;  %v22801_v33 = vpop.f32.mrf.mxu0  ;;  %v18315_v13 = vld [vmem:[%s23119_s19 + $0x990] ss:$8 sps:$4 sm:$0xff]  }
 0x88e   :  { %v13290_v38 = vpop.f32.mrf.mxu0 }
 0x88f   :  { %13320 = vmatpush2.bf16.msra.mxu1 %v18262_v62  ;;  %v18320_v62 = vld [vmem:[%s23119_s19 + $0x984] ss:$8 sps:$4 sm:$0xff]   ;;  %v18326_v38 = vld [vmem:[%s23119_s19 + $0xb60] ss:$8 sps:$4 sm:$0xff]  }
 0x890   :  { %13321 = vmatprep.subr.bf16.mxu1 %v18267_v42  ;;  %v13291_v44 = vpop.f32.mrf.mxu0  ;;  %v18318_v42 = vld [vmem:[%s23119_s19 + $0x980] ss:$8 sps:$4 sm:$0xff]  }
 0x891   :  { %v18334_v44 = vld [vmem:[%s23119_s19 + $0xb44] ss:$8 sps:$4 sm:$0xff]  }
 0x893   :  { %13322 = vmatpush2.bf16.msra.mxu1 %v18265_v4  ;;  %v18325_v4 = vld [vmem:[%s23119_s19 + $0xb74] ss:$8 sps:$4 sm:$0xff]  }
 0x894   :  { %13323 = vmatprep.subr.bf16.mxu1 %v18270_v26  ;;  %v14894_v26 = vcombine.low %v22809_v34, %v22809_v34 }
 0x897   :  { %13324 = vmatpush2.bf16.msra.mxu1 %v18268_v23  ;;  %v18328_v23 = vld [vmem:[%s23119_s19 + $0xb64] ss:$8 sps:$4 sm:$0xff]  }
 0x898   :  { %13375 = vmatprep.subr.bf16.mxu1 %v18275_v37 }
 0x89a   :  { %v13081_v48 = vpop.f32.mrf.mxu1  ;;  %13326 = vmatmul.mubr.bf16.vlgmr.msra.gmra.mxu1 %v14890_v40 }
 0x89b   :  { %v22823_v24 = vadd.f32 %v13081_v48, %v13041_v15  ;;  %13376 = vmatpush1.bf16.msra.mxu1 %v18273_v14  ;;  %13407 = vmatprep.mubr.bf16.mxu1 %v14895_v43  ;;  %v18331_v15 = vld [vmem:[%s23119_s19 + $0xb54] ss:$8 sps:$4 sm:$0xff]   ;;  %v18335_v48 = vld [vmem:[%s23119_s19 + $0xb30] ss:$8 sps:$4 sm:$0xff]  }
 0x89c   :  { %v13083_v49 = vpop.f32.mrf.mxu1  ;;  %13377 = vmatprep.subr.bf16.mxu1 %v18278_v45  ;;  %v18332_v45 = vld [vmem:[%s23119_s19 + $0xb40] ss:$8 sps:$4 sm:$0xff]  }
 0x89d   :  { %v22831_v17 = vadd.f32 %v13083_v49, %v13043_v47  ;;  %v13123_v28 = vadd.f32 %v22469_v29, %v22823_v24  ;;  %v18337_v47 = vld [vmem:[%s23119_s19 + $0xb34] ss:$8 sps:$4 sm:$0xff]   ;;  %v18340_v24 = vld [vmem:[%s23119_s19 + $0xb24] ss:$8 sps:$4 sm:$0xff]  }
 0x89e   :  { %v13085_v51 = vpop.f32.mrf.mxu1  ;;  %v18343_v49 = vld [vmem:[%s23119_s19 + $0xb14] ss:$8 sps:$4 sm:$0xff]  }
 0x89f   :  { %13378 = vmatpush1.bf16.msra.mxu1 %v18276_v11  ;;  %v13125_v34 = vadd.f32 %v22471_v31, %v22831_v17  ;;  %v18329_v31 = vld [vmem:[%s23119_s19 + $0xb50] ss:$8 sps:$4 sm:$0xff]   ;;  %v18338_v11 = vld [vmem:[%s23119_s19 + $0xb20] ss:$8 sps:$4 sm:$0xff]   ;;  %v18346_v17 = vld [vmem:[%s23119_s19 + $0xb04] ss:$8 sps:$4 sm:$0xff]  }
 0x8a0   :  { %v13086_v53 = vpop.f32.mrf.mxu1  ;;  %13379 = vmatprep.subr.bf16.mxu1 %v18281_v50  ;;  %v18341_v50 = vld [vmem:[%s23119_s19 + $0xb10] ss:$8 sps:$4 sm:$0xff]   ;;  %v18344_v51 = vld [vmem:[%s23119_s19 + $0xb00] ss:$8 sps:$4 sm:$0xff]  }
 0x8a1   :  { %v18347_v53 = vld [vmem:[%s23119_s19 + $0xbf0] ss:$8 sps:$4 sm:$0xff]  }
 0x8a3   :  { %13380 = vmatpush1.bf16.msra.mxu1 %v18279_v2  ;;  %v18349_v2 = vld [vmem:[%s23119_s19 + $0xbf4] ss:$8 sps:$4 sm:$0xff]  }
 0x8a4   :  { %13381 = vmatprep.subr.bf16.mxu1 %v18284_v54  ;;  %v18352_v54 = vld [vmem:[%s23119_s19 + $0xbe4] ss:$8 sps:$4 sm:$0xff]  }
 0x8a7   :  { %13382 = vmatpush1.bf16.msra.mxu1 %v18282_v56  ;;  %v18350_v56 = vld [vmem:[%s23119_s19 + $0xbe0] ss:$8 sps:$4 sm:$0xff]  }
 0x8a8   :  { %13383 = vmatprep.subr.bf16.mxu1 %v18287_v57  ;;  %v18355_v57 = vld [vmem:[%s23119_s19 + $0xbd4] ss:$8 sps:$4 sm:$0xff]  }
 0x8ab   :  { %13384 = vmatpush1.bf16.msra.mxu1 %v18285_v32  ;;  %v18353_v32 = vld [vmem:[%s23119_s19 + $0xbd0] ss:$8 sps:$4 sm:$0xff]  }
 0x8ac   :  { %13385 = vmatprep.subr.bf16.mxu1 %v18290_v58  ;;  %v18358_v58 = vld [vmem:[%s23119_s19 + $0xbc4] ss:$8 sps:$4 sm:$0xff]  }
 0x8af   :  { %13386 = vmatpush1.bf16.msra.mxu1 %v18288_v59  ;;  %v18356_v59 = vld [vmem:[%s23119_s19 + $0xbc0] ss:$8 sps:$4 sm:$0xff]  }
 0x8b0   :  { %13387 = vmatprep.subr.bf16.mxu1 %v18293_v60  ;;  %v18361_v60 = vld [vmem:[%s23119_s19 + $0xbb4] ss:$8 sps:$4 sm:$0xff]  }
 0x8b3   :  { %13388 = vmatpush1.bf16.msra.mxu1 %v18291_v61  ;;  %v18359_v61 = vld [vmem:[%s23119_s19 + $0xbb0] ss:$8 sps:$4 sm:$0xff]  }
 0x8b4   :  { %13389 = vmatprep.subr.bf16.mxu1 %v18296_v63  ;;  %v18364_v63 = vld [vmem:[%s23119_s19 + $0xba4] ss:$8 sps:$4 sm:$0xff]  }
 0x8b7   :  { %13390 = vmatpush1.bf16.msra.mxu1 %v18294_v52 }
 0x8b8   :  { %13391 = vmatprep.subr.bf16.mxu1 %v18299_v1  ;;  %v18362_v1 = vld [vmem:[%s23119_s19 + $0xba0] ss:$8 sps:$4 sm:$0xff]  }
 0x8bb   :  { %13392 = vmatpush2.bf16.msra.mxu1 %v18297_v55  ;;  %v18367_v55 = vld [vmem:[%s23119_s19 + $0xb94] ss:$8 sps:$4 sm:$0xff]  }
 0x8bc   :  { %13393 = vmatprep.subr.bf16.mxu1 %v18302_v3 }
 0x8bf   :  { %13394 = vmatpush2.bf16.msra.mxu1 %v18300_v19 }
 0x8c0   :  { %13395 = vmatprep.subr.bf16.mxu1 %v18305_v5  ;;  %v18365_v5 = vld [vmem:[%s23119_s19 + $0xb90] ss:$8 sps:$4 sm:$0xff]  }
 0x8c3   :  { %13396 = vmatpush2.bf16.msra.mxu1 %v18303_v18  ;;  %v18370_v18 = vld [vmem:[%s23119_s19 + $0xb84] ss:$8 sps:$4 sm:$0xff]  }
 0x8c4   :  { %13397 = vmatprep.subr.bf16.mxu1 %v18308_v20 }
 0x8c7   :  { %13398 = vmatpush2.bf16.msra.mxu1 %v18306_v21  ;;  %v18368_v21 = vld [vmem:[%s23119_s19 + $0xb80] ss:$8 sps:$4 sm:$0xff]  }
 0x8c8   :  { %13399 = vmatprep.subr.bf16.mxu1 %v18311_v30  ;;  %v14898_v30 = vcombine.low %v22924_v7, %v22924_v7  ;;  %v18377_v7 = vld [vmem:[%s23128_s21 + $0x68] sm:$0xff]  }
 0x8ca   :  { %v22899_v9 = vpop.f32.mrf.mxu0 }
 0x8cb   :  { %13400 = vmatpush2.bf16.msra.mxu1 %v18309_v6 }
 0x8cc   :  { %13401 = vmatprep.subr.bf16.mxu1 %v18314_v8  ;;  %v22907_v12 = vpop.f32.mrf.mxu0 }
 0x8ce   :  { %v13372_v39 = vpop.f32.mrf.mxu0 }
 0x8cf   :  { %13402 = vmatpush2.bf16.msra.mxu1 %v18312_v0 }
 0x8d0   :  { %13403 = vmatprep.subr.bf16.mxu1 %v18317_v10  ;;  %v13373_v41 = vpop.f32.mrf.mxu0 }
 0x8d3   :  { %13404 = vmatpush2.bf16.msra.mxu1 %v18315_v13 }
 0x8d4   :  { %13405 = vmatprep.subr.bf16.mxu1 %v18320_v62 }
 0x8d7   :  { %13406 = vmatpush2.bf16.msra.mxu1 %v18318_v42  ;;  %v18373_v42 = vld [vmem:[%s23128_s21 + $0x78] sm:$0xff]  }
 0x8d8   :  { %13457 = vmatprep.subr.bf16.mxu1 %v18325_v4  ;;  %v18374_v4 = vld [vmem:[%s23128_s21 + $0x38] sm:$0xff]  }
 0x8da   :  { %v13163_v37 = vpop.f32.mrf.mxu1  ;;  %13408 = vmatmul.mubr.bf16.vlgmr.msra.gmra.mxu1 %v14894_v26  ;;  %v18378_v26 = vld [vmem:[%s23128_s21 + $0x28] sm:$0xff]  }
 0x8db   :  { %v22940_v35 = vadd.f32 %v13163_v37, %v13123_v28  ;;  %13458 = vmatpush1.bf16.msra.mxu1 %v18323_v27  ;;  %13489 = vmatprep.mubr.bf16.mxu1 %v14899_v22  ;;  %v18379_v27 = vld [vmem:[%s23128_s21 + $0x60] sm:$0xff]   ;;  %v18381_v37 = vld [vmem:[%s23128_s21 + $0x58] sm:$0xff]  }
 0x8dc   :  { %v13165_v40 = vpop.f32.mrf.mxu1  ;;  %13459 = vmatprep.subr.bf16.mxu1 %v18328_v23  ;;  %v18380_v23 = vld [vmem:[%s23128_s21 + $0x20] sm:$0xff]  }
 0x8dd   :  { %v22948_v29 = vadd.f32 %v13165_v40, %v13125_v34  ;;  %v13205_v6 = vadd.f32 %v22669_v16, %v22940_v35  ;;  %v18375_v16 = vld [vmem:[%s23128_s21 + $0x70] sm:$0xff]  }
 0x8de   :  { %v13167_v14 = vpop.f32.mrf.mxu1  ;;  %v18383_v40 = vld [vmem:[%s23128_s21 + $0x50] sm:$0xff]  }
 0x8df   :  { %13460 = vmatpush1.bf16.msra.mxu1 %v18326_v38  ;;  %v13207_v0 = vadd.f32 %v22675_v46, %v22948_v29  ;;  %v18376_v46 = vld [vmem:[%s23128_s21 + $0x30] sm:$0xff]   ;;  %v18382_v38 = vld [vmem:[%s23128_s21 + $0x18] sm:$0xff]  }
 0x8e0   :  { %v13168_v43 = vpop.f32.mrf.mxu1  ;;  %13461 = vmatprep.subr.bf16.mxu1 %v18331_v15  ;;  %v18384_v15 = vld [vmem:[%s23128_s21 + $0x10] sm:$0xff]  }
 0x8e3   :  { %13462 = vmatpush1.bf16.msra.mxu1 %v18329_v31  ;;  %v18385_v31 = vld [vmem:[%s23128_s21 + $0x48] sm:$0xff]  }
 0x8e4   :  { %13463 = vmatprep.subr.bf16.mxu1 %v18334_v44 }
 0x8e7   :  { %13464 = vmatpush1.bf16.msra.mxu1 %v18332_v45  ;;  %v18386_v45 = vld [vmem:[%s23128_s21 + $0x8] sm:$0xff]  }
 0x8e8   :  { %13465 = vmatprep.subr.bf16.mxu1 %v18337_v47 }
 0x8eb   :  { %13466 = vmatpush1.bf16.msra.mxu1 %v18335_v48 }
 0x8ec   :  { %13467 = vmatprep.subr.bf16.mxu1 %v18340_v24 }
 0x8ef   :  { %13468 = vmatpush1.bf16.msra.mxu1 %v18338_v11  ;;  %v18388_v11 = vld [vmem:[%s23128_s21] sm:$0xff]  }
 0x8f0   :  { %13469 = vmatprep.subr.bf16.mxu1 %v18343_v49 }
 0x8f3   :  { %13470 = vmatpush1.bf16.msra.mxu1 %v18341_v50 }
 0x8f4   :  { %13471 = vmatprep.subr.bf16.mxu1 %v18346_v17 }
 0x8f7   :  { %13472 = vmatpush1.bf16.msra.mxu1 %v18344_v51 }
 0x8f8   :  { %13473 = vmatprep.subr.bf16.mxu1 %v18349_v2 }
 0x8fb   :  { %13474 = vmatpush2.bf16.msra.mxu1 %v18347_v53 }
 0x8fc   :  { %13475 = vmatprep.subr.bf16.mxu1 %v18352_v54 }
 0x8ff   :  { %13476 = vmatpush2.bf16.msra.mxu1 %v18350_v56 }
 0x900   :  { %13477 = vmatprep.subr.bf16.mxu1 %v18355_v57 }
 0x903   :  { %13478 = vmatpush2.bf16.msra.mxu1 %v18353_v32 }
 0x904   :  { %13479 = vmatprep.subr.bf16.mxu1 %v18358_v58 }
 0x907   :  { %13480 = vmatpush2.bf16.msra.mxu1 %v18356_v59 }
 0x908   :  { %13481 = vmatprep.subr.bf16.mxu1 %v18361_v60 }
 0x90a   :  { %v23016_v52 = vpop.f32.mrf.mxu0 }
 0x90b   :  { %13482 = vmatpush2.bf16.msra.mxu1 %v18359_v61 }
 0x90c   :  { %13483 = vmatprep.subr.bf16.mxu1 %v18364_v63  ;;  %v23024_v3 = vpop.f32.mrf.mxu0 }
 0x90e   :  { %v13454_v19 = vpop.f32.mrf.mxu0 }
 0x90f   :  { %13484 = vmatpush2.bf16.msra.mxu1 %v18362_v1 }
 0x910   :  { %13485 = vmatprep.subr.bf16.mxu1 %v18367_v55  ;;  %v13455_v20 = vpop.f32.mrf.mxu0 }
 0x913   :  { %13486 = vmatpush2.bf16.msra.mxu1 %v18365_v5 }
 0x914   :  { %13487 = vmatprep.subr.bf16.mxu1 %v18370_v18 }
 0x917   :  { %13488 = vmatpush2.bf16.msra.mxu1 %v18368_v21 }
 0x918   :  { %16537 = vmatprep.subr.bf16.mxu1 %v18373_v42 }
 0x91a   :  { %v13245_v8 = vpop.f32.mrf.mxu1  ;;  %13490 = vmatmul.mubr.bf16.vlgmr.msra.gmra.mxu1 %v14898_v30 }
 0x91b   :  { %v13246_v10 = vadd.f32 %v13245_v8, %v13205_v6  ;;  %16538 = vmatpush3.bf16.msra.mxu1 %v18374_v4 }
 0x91c   :  { %v13247_v39 = vpop.f32.mrf.mxu1  ;;  %16539 = vmatprep.subr.bf16.mxu1 %v18375_v16 }
 0x91d   :  { %v13248_v13 = vadd.f32 %v13247_v39, %v13207_v0  ;;  %v13287_v29 = vadd.f32 %v22790_v25, %v13246_v10  ;;  %v18387_v25 = vld [vmem:[%s23128_s21 + $0x40] sm:$0xff]  }
 0x91e   :  { %v13249_v62 = vpop.f32.mrf.mxu1 }
 0x91f   :  { %16540 = vmatpush3.bf16.msra.mxu1 %v18376_v46  ;;  %v13289_v44 = vadd.f32 %v22801_v33, %v13248_v13 }
 0x920   :  { %v13250_v41 = vpop.f32.mrf.mxu1  ;;  %16541 = vmatprep.subr.bf16.mxu1 %v18377_v7 }
 0x923   :  { %16542 = vmatpush3.bf16.msra.mxu1 %v18378_v26 }
 0x924   :  { %16543 = vmatprep.subr.bf16.mxu1 %v18379_v27 }
 0x927   :  { %16544 = vmatpush3.bf16.msra.mxu1 %v18380_v23 }
 0x928   :  { %16545 = vmatprep.subr.bf16.mxu1 %v18381_v37 }
 0x92a   :  { %v13632_v22 = vpop.f32.mrf.mxu0 }
 0x92b   :  { %16546 = vmatpush3.bf16.msra.mxu1 %v18382_v38 }
 0x92c   :  { %v16738_v28 = vpop.f32.mrf.mxu0  ;;  %16547 = vmatprep.subr.bf16.mxu1 %v18383_v40 }
 0x92e   :  { %v13635_v34 = vpop.f32.mrf.mxu0 }
 0x92f   :  { %16548 = vmatpush3.bf16.msra.mxu1 %v18384_v15 }
 0x930   :  { %v16739_v35 = vpop.f32.mrf.mxu0  ;;  %16549 = vmatprep.subr.bf16.mxu1 %v18385_v31 }
 0x933   :  { %16550 = vmatpush3.bf16.msra.mxu1 %v18386_v45 }
 0x934   :  { %16551 = vmatprep.subr.bf16.mxu1 %v18387_v25 }
 0x937   :  { %16552 = vmatpush3.bf16.msra.mxu1 %v18388_v11 }
 0x95a   :  { %v13327_v14 = vpop.f32.mrf.mxu1 }
 0x95b   :  { %v13328_v43 = vadd.f32 %v13327_v14, %v13287_v29 }
 0x95c   :  { %v13329_v47 = vpop.f32.mrf.mxu1 }
 0x95d   :  { %v13330_v48 = vadd.f32 %v13329_v47, %v13289_v44  ;;  %v13369_v2 = vadd.f32 %v22899_v9, %v13328_v43 }
 0x95e   :  { %v13331_v24 = vpop.f32.mrf.mxu1 }
 0x95f   :  { %v13371_v54 = vadd.f32 %v22907_v12, %v13330_v48 }
 0x960   :  { %v13332_v49 = vpop.f32.mrf.mxu1 }
 0x99a   :  { %v13409_v33 = vpop.f32.mrf.mxu1 }
 0x99b   :  { %v13410_v53 = vadd.f32 %v13409_v33, %v13369_v2 }
 0x99c   :  { %v13411_v50 = vpop.f32.mrf.mxu1 }
 0x99d   :  { %v13412_v56 = vadd.f32 %v13411_v50, %v13371_v54  ;;  %v13451_v57 = vadd.f32 %v23016_v52, %v13410_v53  ;;  %v15308_v52 = vld [vmem:[%s23129_s22] ss:$0 sm:$0xff] }
 0x99e   :  { %v13413_v17 = vpop.f32.mrf.mxu1 }
 0x99f   :  { %v13453_v59 = vadd.f32 %v23024_v3, %v13412_v56 }
 0x9a0   :  { %v13414_v51 = vpop.f32.mrf.mxu1 }
 0x9da   :  { %v13491_v32 = vpop.f32.mrf.mxu1 }
 0x9db   :  { %v13492_v58 = vadd.f32 %v13491_v32, %v13451_v57 }
 0x9dc   :  { %v13493_v60 = vpop.f32.mrf.mxu1 }
 0x9dd   :  { %v13494_v61 = vadd.f32 %v13493_v60, %v13453_v59  ;;  %v13498_v63 = vmax.f32 %v13492_v58, 0.0 }
 0x9de   :  { %v13495_v1 = vpop.f32.mrf.mxu1 }
 0x9df   :  { %v13499_v55 = vmax.f32 %v13494_v61, 0.0  ;;  %v13500_v18 = vpack.c.bf16 %v13498_v63, %v13498_v63 }
 0x9e0   :  { %v13496_v19 = vpop.f32.mrf.mxu1 }
 0x9e1   :  { %v13501_v5 = vpack.c.bf16 %v13499_v55, %v13499_v55 }
 0x9e3   :  { %13766 = vmatprep.mubr.bf16.mxu1 %v13501_v5 }
 0x9e4   :  { %13767 = vmatmul.mubr.bf16.vlgmr.msra.gmra.mxu1 %v13500_v18 }
 0xaa4   :  { %v16553_v9 = vpop.f32.mrf.mxu1 }
 0xaa6   :  { %v16554_v20 = vpop.f32.mrf.mxu1 }
 0xaa7   :  { %v16555_v12 = vadd.f32 %v16554_v20, %v16553_v9 }
 0xaa8   :  { %v16556_v21 = vpop.f32.mrf.mxu1 }
 0xaa9   :  { %v13769_v30 = vadd.f32 %v16555_v12, %v13632_v22 }
 0xaaa   :  { %v16557_v3 = vpop.f32.mrf.mxu1 }
 0xaab   :  { %v13781_v6 = vadd.f32 %v15308_v52, %v13769_v30 }
 0xaad   :  { %v13782_v8 = vmax.f32 %v13781_v6, 0.0 }
 0xaaf   :  { %v13783_v0 = vpack.c.bf16 %v13782_v8, %v13782_v8 }
 0xab1   :  { %16749 = vmatmul.mubr.msk.bf16.vlgmr.msra.gmra.mxu0 %vm9002_vm2, %v13783_v0 }
 0xb71   :  { %v13821_v10 = vpop.f32.mrf.mxu0 }
 0xb72   :  { %v13822_v39 = vadd.f32 %v22656_v36, %v13821_v10 }
 0xb73   :  { %v16750_v13 = vpop.f32.mrf.mxu0 }
 0xb74   :  { %13827 = vst [vmem:[%s23130_s27] sm:$0xff] %v13822_v39 }
 0xb75   :  { %v13824_v62 = vpop.f32.mrf.mxu0 }
 0xb77   :  { %v16751_v41 = vpop.f32.mrf.mxu0 }

</bundles_post_ra>
